<compile_context>
chip_gen: v7x
topology: tpu7x:2x2x1
jax: 0.10.0
libtpu: 0.0.40
codegen_flags: <defaults>
</compile_context>

<pallas_src>
import functools

import jax
import jax.numpy as jnp
from jax.experimental import pallas as pl
from jax.experimental.pallas import tpu as pltpu

CFG = dict(d_model=32, d_ff=64, head=4, encoder_N=2, decoder_N=2, dropout=0.0)

# Ordered key lists shared by the packer (wrapper) and the kernel unpacking.
_ENC_KEYS = ("e_qkv_w", "e_qkv_b", "e_o_w", "e_o_b",
             "e_w1", "e_b1", "e_w2", "e_b2",
             "e_ln1_g", "e_ln1_b", "e_ln2_g", "e_ln2_b")
_DEC_KEYS = ("d_sqkv_w", "d_sqkv_b", "d_so_w", "d_so_b",
             "d_cqkv_w", "d_cqkv_b", "d_co_w", "d_co_b",
             "d_w1", "d_b1", "d_w2", "d_b2",
             "d_ln1_g", "d_ln1_b", "d_ln2_g", "d_ln2_b", "d_ln3_g", "d_ln3_b")
_FIN_KEYS = ("enc_norm_g", "enc_norm_b", "dec_norm_g", "dec_norm_b",
             "last_w", "last_b")


# ------------------------- single fused Pallas kernel ------------------------

def _model_kernel(head, *refs):
    (src_ref, tgt_ref, pe_src_ref, pe_tgt_ref,
     enc_mask_ref, self_mask_ref, cross_mask_ref) = refs[:7]
    rest = refs[7:]
    enc_w = rest[:12]
    dec_w = rest[12:30]
    (enc_ng_ref, enc_nb_ref, dec_ng_ref, dec_nb_ref, last_w_ref, last_b_ref,
     out_ref, attn_src_scr, attn_tgt_scr) = rest[30:]

    (e_qkv_w, e_qkv_b, e_o_w, e_o_b, e_w1, e_b1, e_w2, e_b2,
     e_ln1_g, e_ln1_b, e_ln2_g, e_ln2_b) = enc_w
    (d_sqkv_w, d_sqkv_b, d_so_w, d_so_b,
     d_cqkv_w, d_cqkv_b, d_co_w, d_co_b,
     d_w1, d_b1, d_w2, d_b2,
     d_ln1_g, d_ln1_b, d_ln2_g, d_ln2_b, d_ln3_g, d_ln3_b) = dec_w

    B, S_src, _ = enc_mask_ref.shape
    S_tgt = self_mask_ref.shape[1]
    D = src_ref.shape[-1]
    dk = D // head
    scale = 1.0 / (float(dk) ** 0.5)   # folded 1/sqrt(dk), compile-time constant
    f32 = jnp.float32

    def layer_norm(x, g, b, eps=1e-6):
        # Annotated-Transformer LayerNorm: unbiased std, eps added to std.
        d = x.shape[-1]
        mean = jnp.mean(x, axis=-1, keepdims=True)
        var = jnp.sum((x - mean) ** 2, axis=-1, keepdims=True) / (d - 1)
        return g * (x - mean) / (jnp.sqrt(var) + eps) + b

    def attention(q, k, v, mask_ref, Sq, Sk, scr):
        # q: (B*Sq, D), k/v: (B*Sk, D). Heads & batches handled with static
        # slices; per-head results assembled in a VMEM scratch (no HBM traffic).
        for b in range(B):
            m = mask_ref[b]                                   # (Sq, Sk) {0,1}
            for h in range(head):
                qbh = q[b * Sq:(b + 1) * Sq, h * dk:(h + 1) * dk] * scale
                kbh = k[b * Sk:(b + 1) * Sk, h * dk:(h + 1) * dk]
                vbh = v[b * Sk:(b + 1) * Sk, h * dk:(h + 1) * dk]
                s = jnp.dot(qbh, kbh.T, preferred_element_type=f32)
                s = jnp.where(m == 0.0, f32(-1e9), s)
                s = s - jnp.max(s, axis=-1, keepdims=True)
                p = jnp.exp(s)
                p = p * pl.reciprocal(jnp.sum(p, axis=-1, keepdims=True),
                                      approx=True)
                scr[b * Sq:(b + 1) * Sq, h * dk:(h + 1) * dk] = jnp.dot(
                    p, vbh, preferred_element_type=f32)
        return scr[...]

    def self_mha(x, mask_ref, wqkv, bqkv, wo, bo, S, scr):
        qkv = jnp.dot(x, wqkv, preferred_element_type=f32) + bqkv   # (B*S, 3D)
        o = attention(qkv[:, :D], qkv[:, D:2 * D], qkv[:, 2 * D:],
                      mask_ref, S, S, scr)
        return jnp.dot(o, wo, preferred_element_type=f32) + bo

    def cross_mha(x, mem, mask_ref, wqkv, bqkv, wo, bo, Sq, Sk, scr):
        q = jnp.dot(x, wqkv[:, :D], preferred_element_type=f32) + bqkv[:, :D]
        kv = jnp.dot(mem, wqkv[:, D:], preferred_element_type=f32) + bqkv[:, D:]
        o = attention(q, kv[:, :D], kv[:, D:], mask_ref, Sq, Sk, scr)
        return jnp.dot(o, wo, preferred_element_type=f32) + bo

    def ffn(x, w1, b1, w2, b2):
        h1 = jnp.maximum(jnp.dot(x, w1, preferred_element_type=f32) + b1, 0.0)
        return jnp.dot(h1, w2, preferred_element_type=f32) + b2

    # -------------------------------- encoder --------------------------------
    x = src_ref[...] + pe_src_ref[...]
    for li in range(e_qkv_w.shape[0]):
        y = layer_norm(x, e_ln1_g[li], e_ln1_b[li])        # computed once, q=k=v
        x = x + self_mha(y, enc_mask_ref, e_qkv_w[li], e_qkv_b[li],
                         e_o_w[li], e_o_b[li], S_src, attn_src_scr)
        y = layer_norm(x, e_ln2_g[li], e_ln2_b[li])
        x = x + ffn(y, e_w1[li], e_b1[li], e_w2[li], e_b2[li])
    memory = layer_norm(x, enc_ng_ref[...], enc_nb_ref[...])

    # -------------------------------- decoder --------------------------------
    x = tgt_ref[...] + pe_tgt_ref[...]
    for li in range(d_sqkv_w.shape[0]):
        y = layer_norm(x, d_ln1_g[li], d_ln1_b[li])
        x = x + self_mha(y, self_mask_ref, d_sqkv_w[li], d_sqkv_b[li],
                         d_so_w[li], d_so_b[li], S_tgt, attn_tgt_scr)
        y = layer_norm(x, d_ln2_g[li], d_ln2_b[li])
        x = x + cross_mha(y, memory, cross_mask_ref, d_cqkv_w[li], d_cqkv_b[li],
                          d_co_w[li], d_co_b[li], S_tgt, S_src, attn_tgt_scr)
        y = layer_norm(x, d_ln3_g[li], d_ln3_b[li])
        x = x + ffn(y, d_w1[li], d_b1[li], d_w2[li], d_b2[li])
    x = layer_norm(x, dec_ng_ref[...], dec_nb_ref[...])

    # final Linear + ReLU epilogue, single output store.
    out = jnp.dot(x, last_w_ref[...], preferred_element_type=f32) + last_b_ref[...]
    out_ref[...] = jnp.maximum(out, 0.0).astype(out_ref.dtype)


# ----------------------------- parameter init --------------------------------

def init_linear(key, din, dout):
    k1, k2 = jax.random.split(key)
    lim = 1.0 / jnp.sqrt(jnp.float32(din))
    w = jax.random.uniform(k1, (din, dout), jnp.float32, -lim, lim)
    b = jax.random.uniform(k2, (dout,), jnp.float32, -lim, lim)
    return dict(w=w, b=b)


def init_ln(d):
    return dict(g=jnp.ones((1, d), jnp.float32), b=jnp.zeros((1, d), jnp.float32))


def init_attn(key, d_model, h):
    ks = jax.random.split(key, 4)
    return dict(h=h,
                q=init_linear(ks[0], d_model, d_model),
                k=init_linear(ks[1], d_model, d_model),
                v=init_linear(ks[2], d_model, d_model),
                o=init_linear(ks[3], d_model, d_model))


def init_ff(key, d_model, d_ff):
    k1, k2 = jax.random.split(key)
    return dict(l1=init_linear(k1, d_model, d_ff),
                l2=init_linear(k2, d_ff, d_model))


def init_params(key, cfg):
    d, dff, h = cfg["d_model"], cfg["d_ff"], cfg["head"]
    keys = jax.random.split(key, 1 + 2 * cfg["encoder_N"] + 3 * cfg["decoder_N"] + 1)
    ki = iter(keys)
    enc_layers = []
    for _ in range(cfg["encoder_N"]):
        enc_layers.append(dict(attn=init_attn(next(ki), d, h),
                               ff=init_ff(next(ki), d, dff),
                               ln1=init_ln(d), ln2=init_ln(d)))
    dec_layers = []
    for _ in range(cfg["decoder_N"]):
        dec_layers.append(dict(self_attn=init_attn(next(ki), d, h),
                               src_attn=init_attn(next(ki), d, h),
                               ff=init_ff(next(ki), d, dff),
                               ln1=init_ln(d), ln2=init_ln(d), ln3=init_ln(d)))
    return dict(enc_layers=enc_layers, dec_layers=dec_layers,
                enc_norm=init_ln(d), dec_norm=init_ln(d),
                last=init_linear(next(ki), d, d))


def pack_params(params):
    """Concatenate Q|K|V weights and stack per-layer weights along a leading axis."""
    enc = params["enc_layers"]
    dec = params["dec_layers"]

    def qkv_w(a):
        return jnp.concatenate([a["q"]["w"], a["k"]["w"], a["v"]["w"]], axis=1)

    def qkv_b(a):
        return jnp.concatenate([a["q"]["b"], a["k"]["b"], a["v"]["b"]],
                               axis=0).reshape(1, -1)

    st = lambda xs: jnp.stack(xs, axis=0)
    packed = dict(
        # encoder stacks (N_enc leading dim)
        e_qkv_w=st([qkv_w(l["attn"]) for l in enc]),
        e_qkv_b=st([qkv_b(l["attn"]) for l in enc]),
        e_o_w=st([l["attn"]["o"]["w"] for l in enc]),
        e_o_b=st([l["attn"]["o"]["b"].reshape(1, -1) for l in enc]),
        e_w1=st([l["ff"]["l1"]["w"] for l in enc]),
        e_b1=st([l["ff"]["l1"]["b"].reshape(1, -1) for l in enc]),
        e_w2=st([l["ff"]["l2"]["w"] for l in enc]),
        e_b2=st([l["ff"]["l2"]["b"].reshape(1, -1) for l in enc]),
        e_ln1_g=st([l["ln1"]["g"] for l in enc]),
        e_ln1_b=st([l["ln1"]["b"] for l in enc]),
        e_ln2_g=st([l["ln2"]["g"] for l in enc]),
        e_ln2_b=st([l["ln2"]["b"] for l in enc]),
        # decoder stacks (N_dec leading dim)
        d_sqkv_w=st([qkv_w(l["self_attn"]) for l in dec]),
        d_sqkv_b=st([qkv_b(l["self_attn"]) for l in dec]),
        d_so_w=st([l["self_attn"]["o"]["w"] for l in dec]),
        d_so_b=st([l["self_attn"]["o"]["b"].reshape(1, -1) for l in dec]),
        d_cqkv_w=st([qkv_w(l["src_attn"]) for l in dec]),
        d_cqkv_b=st([qkv_b(l["src_attn"]) for l in dec]),
        d_co_w=st([l["src_attn"]["o"]["w"] for l in dec]),
        d_co_b=st([l["src_attn"]["o"]["b"].reshape(1, -1) for l in dec]),
        d_w1=st([l["ff"]["l1"]["w"] for l in dec]),
        d_b1=st([l["ff"]["l1"]["b"].reshape(1, -1) for l in dec]),
        d_w2=st([l["ff"]["l2"]["w"] for l in dec]),
        d_b2=st([l["ff"]["l2"]["b"].reshape(1, -1) for l in dec]),
        d_ln1_g=st([l["ln1"]["g"] for l in dec]),
        d_ln1_b=st([l["ln1"]["b"] for l in dec]),
        d_ln2_g=st([l["ln2"]["g"] for l in dec]),
        d_ln2_b=st([l["ln2"]["b"] for l in dec]),
        d_ln3_g=st([l["ln3"]["g"] for l in dec]),
        d_ln3_b=st([l["ln3"]["b"] for l in dec]),
        # finals
        enc_norm_g=params["enc_norm"]["g"], enc_norm_b=params["enc_norm"]["b"],
        dec_norm_g=params["dec_norm"]["g"], dec_norm_b=params["dec_norm"]["b"],
        last_w=params["last"]["w"], last_b=params["last"]["b"].reshape(1, -1),
    )
    return packed


# ------------------------------ jitted forward --------------------------------

def _pe_table(d_model, max_len):
    # PositionalEncoding(max_len = cfg['d_model']); dropout = 0. Note: sequences
    # longer than max_len=d_model would get no PE (matches the original spec).
    pos = jnp.arange(max_len, dtype=jnp.float32)[:, None]
    div = jnp.exp(jnp.arange(0, d_model, 2, dtype=jnp.float32)
                  * (-jnp.log(10000.0) / d_model))
    pe = jnp.zeros((max_len, d_model), jnp.float32)
    pe = pe.at[:, 0::2].set(jnp.sin(pos * div))
    pe = pe.at[:, 1::2].set(jnp.cos(pos * div))
    return pe


@jax.jit
def my_transformer_forward(packed, src, tgt, src_mask, tgt_mask):
    head = CFG["head"]
    B, S_src, D = src.shape
    S_tgt = tgt.shape[1]

    pe = _pe_table(D, max_len=D)
    pe_src = jnp.tile(pe[:S_src], (B, 1))                       # (B*S_src, D)
    pe_tgt = jnp.tile(pe[:S_tgt], (B, 1))                       # (B*S_tgt, D)

    enc_mask = jnp.broadcast_to(src_mask.astype(jnp.float32), (B, S_src, S_src))
    slf_mask = jnp.broadcast_to(tgt_mask.astype(jnp.float32), (B, S_tgt, S_tgt))
    crs_mask = jnp.broadcast_to(src_mask.astype(jnp.float32), (B, S_tgt, S_src))

    inputs = [src.reshape(B * S_src, D), tgt.reshape(B * S_tgt, D),
              pe_src, pe_tgt, enc_mask, slf_mask, crs_mask]
    inputs += [packed[k] for k in _ENC_KEYS + _DEC_KEYS + _FIN_KEYS]

    out2d = pl.pallas_call(
        functools.partial(_model_kernel, head),
        out_shape=jax.ShapeDtypeStruct((B * S_tgt, D), jnp.float32),
        # No grid / no tiling: all weights + activations (<1 MiB) are full-array
        # VMEM blocks; scratch buffers hold per-head attention outputs.
        scratch_shapes=[pltpu.VMEM((B * S_src, D), jnp.float32),
                        pltpu.VMEM((B * S_tgt, D), jnp.float32)],
    )(*inputs)
    return out2d.reshape(B, S_tgt, D)


# ----------------------------------- main --------------------------------------

if __name__ == "__main__":
    key = jax.random.PRNGKey(0)
    kp, ks, kt = jax.random.split(key, 3)

    B, S_src, S_tgt, D = 2, 8, 8, CFG["d_model"]
    params = init_params(kp, CFG)
    packed = pack_params(params)

    src = jax.random.normal(ks, (B, S_src, D), jnp.float32)
    tgt = jax.random.normal(kt, (B, S_tgt, D), jnp.float32)
    src_mask = jnp.ones((B, 1, S_src), jnp.float32)                      # padding mask
    tgt_mask = jnp.tril(jnp.ones((S_tgt, S_tgt), jnp.float32))[None]     # causal
    tgt_mask = jnp.broadcast_to(tgt_mask, (B, S_tgt, S_tgt))

    out = my_transformer_forward(packed, src, tgt, src_mask, tgt_mask)
    out = jax.block_until_ready(out)
    assert out.shape == (B, S_tgt, D)
    assert bool(jnp.all(out >= 0.0))   # final relu
    print("KERNEL_OK")
</pallas_src>

<mosaic_0001>
module attributes {stable_mosaic.version = 11 : i64} {
  func.func @_model_kernel(%arg0: memref<16x32xf32, #tpu.memory_space<vmem>>, %arg1: memref<16x32xf32, #tpu.memory_space<vmem>>, %arg2: memref<16x32xf32, #tpu.memory_space<vmem>>, %arg3: memref<16x32xf32, #tpu.memory_space<vmem>>, %arg4: memref<2x8x8xf32, #tpu.memory_space<vmem>>, %arg5: memref<2x8x8xf32, #tpu.memory_space<vmem>>, %arg6: memref<2x8x8xf32, #tpu.memory_space<vmem>>, %arg7: memref<2x32x96xf32, #tpu.memory_space<vmem>>, %arg8: memref<2x1x96xf32, #tpu.memory_space<vmem>>, %arg9: memref<2x32x32xf32, #tpu.memory_space<vmem>>, %arg10: memref<2x1x32xf32, #tpu.memory_space<vmem>>, %arg11: memref<2x32x64xf32, #tpu.memory_space<vmem>>, %arg12: memref<2x1x64xf32, #tpu.memory_space<vmem>>, %arg13: memref<2x64x32xf32, #tpu.memory_space<vmem>>, %arg14: memref<2x1x32xf32, #tpu.memory_space<vmem>>, %arg15: memref<2x1x32xf32, #tpu.memory_space<vmem>>, %arg16: memref<2x1x32xf32, #tpu.memory_space<vmem>>, %arg17: memref<2x1x32xf32, #tpu.memory_space<vmem>>, %arg18: memref<2x1x32xf32, #tpu.memory_space<vmem>>, %arg19: memref<2x32x96xf32, #tpu.memory_space<vmem>>, %arg20: memref<2x1x96xf32, #tpu.memory_space<vmem>>, %arg21: memref<2x32x32xf32, #tpu.memory_space<vmem>>, %arg22: memref<2x1x32xf32, #tpu.memory_space<vmem>>, %arg23: memref<2x32x96xf32, #tpu.memory_space<vmem>>, %arg24: memref<2x1x96xf32, #tpu.memory_space<vmem>>, %arg25: memref<2x32x32xf32, #tpu.memory_space<vmem>>, %arg26: memref<2x1x32xf32, #tpu.memory_space<vmem>>, %arg27: memref<2x32x64xf32, #tpu.memory_space<vmem>>, %arg28: memref<2x1x64xf32, #tpu.memory_space<vmem>>, %arg29: memref<2x64x32xf32, #tpu.memory_space<vmem>>, %arg30: memref<2x1x32xf32, #tpu.memory_space<vmem>>, %arg31: memref<2x1x32xf32, #tpu.memory_space<vmem>>, %arg32: memref<2x1x32xf32, #tpu.memory_space<vmem>>, %arg33: memref<2x1x32xf32, #tpu.memory_space<vmem>>, %arg34: memref<2x1x32xf32, #tpu.memory_space<vmem>>, %arg35: memref<2x1x32xf32, #tpu.memory_space<vmem>>, %arg36: memref<2x1x32xf32, #tpu.memory_space<vmem>>, %arg37: memref<1x32xf32, #tpu.memory_space<vmem>>, %arg38: memref<1x32xf32, #tpu.memory_space<vmem>>, %arg39: memref<1x32xf32, #tpu.memory_space<vmem>>, %arg40: memref<1x32xf32, #tpu.memory_space<vmem>>, %arg41: memref<32x32xf32, #tpu.memory_space<vmem>>, %arg42: memref<1x32xf32, #tpu.memory_space<vmem>>, %arg43: memref<16x32xf32, #tpu.memory_space<vmem>>, %arg44: memref<16x32xf32, #tpu.memory_space<vmem>>, %arg45: memref<16x32xf32, #tpu.memory_space<vmem>>) attributes {dimension_semantics = [], scalar_prefetch = 0 : i64, scratch_operands = 2 : i64, tpu.core_type = #tpu.core_type<tc>} {
    %c0 = arith.constant 0 : index
    %c0_0 = arith.constant 0 : index
    %0 = vector.load %arg0[%c0, %c0_0] : memref<16x32xf32, #tpu.memory_space<vmem>>, vector<16x32xf32>
    %c0_1 = arith.constant 0 : index
    %c0_2 = arith.constant 0 : index
    %1 = vector.load %arg2[%c0_1, %c0_2] : memref<16x32xf32, #tpu.memory_space<vmem>>, vector<16x32xf32>
    %2 = arith.addf %0, %1 : vector<16x32xf32>
    %c0_3 = arith.constant 0 : index
    %c0_4 = arith.constant 0 : index
    %c0_5 = arith.constant 0 : index
    %3 = vector.load %arg15[%c0_3, %c0_4, %c0_5] : memref<2x1x32xf32, #tpu.memory_space<vmem>>, vector<1x1x32xf32>
    %4 = vector.shape_cast %3 : vector<1x1x32xf32> to vector<1x32xf32>
    %c0_6 = arith.constant 0 : index
    %c0_7 = arith.constant 0 : index
    %c0_8 = arith.constant 0 : index
    %5 = vector.load %arg16[%c0_6, %c0_7, %c0_8] : memref<2x1x32xf32, #tpu.memory_space<vmem>>, vector<1x1x32xf32>
    %6 = vector.shape_cast %5 : vector<1x1x32xf32> to vector<1x32xf32>
    %cst = arith.constant dense<0.000000e+00> : vector<16xf32>
    %7 = vector.multi_reduction <add>, %2, %cst [1] : vector<16x32xf32> to vector<16xf32>
    %8 = vector.shape_cast %7 : vector<16xf32> to vector<16x1xf32>
    %cst_9 = arith.constant 3.200000e+01 : f32
    %9 = vector.broadcast %cst_9 : f32 to vector<16x1xf32>
    %10 = arith.divf %8, %9 : vector<16x1xf32>
    %11 = vector.broadcast %10 : vector<16x1xf32> to vector<16x32xf32>
    %12 = arith.subf %2, %11 : vector<16x32xf32>
    %13 = arith.mulf %12, %12 : vector<16x32xf32>
    %cst_10 = arith.constant dense<0.000000e+00> : vector<16xf32>
    %14 = vector.multi_reduction <add>, %13, %cst_10 [1] : vector<16x32xf32> to vector<16xf32>
    %15 = vector.shape_cast %14 : vector<16xf32> to vector<16x1xf32>
    %cst_11 = arith.constant 3.100000e+01 : f32
    %16 = vector.broadcast %cst_11 : f32 to vector<16x1xf32>
    %17 = arith.divf %15, %16 : vector<16x1xf32>
    %18 = vector.broadcast %10 : vector<16x1xf32> to vector<16x32xf32>
    %19 = arith.subf %2, %18 : vector<16x32xf32>
    %20 = vector.broadcast %4 : vector<1x32xf32> to vector<16x32xf32>
    %21 = arith.mulf %20, %19 : vector<16x32xf32>
    %22 = math.sqrt %17 : vector<16x1xf32>
    %cst_12 = arith.constant 9.99999997E-7 : f32
    %23 = vector.broadcast %cst_12 : f32 to vector<16x1xf32>
    %24 = arith.addf %22, %23 : vector<16x1xf32>
    %25 = vector.broadcast %24 : vector<16x1xf32> to vector<16x32xf32>
    %26 = arith.divf %21, %25 : vector<16x32xf32>
    %27 = vector.broadcast %6 : vector<1x32xf32> to vector<16x32xf32>
    %28 = arith.addf %26, %27 : vector<16x32xf32>
    %c0_13 = arith.constant 0 : index
    %c0_14 = arith.constant 0 : index
    %c0_15 = arith.constant 0 : index
    %29 = vector.load %arg7[%c0_13, %c0_14, %c0_15] : memref<2x32x96xf32, #tpu.memory_space<vmem>>, vector<1x32x96xf32>
    %30 = vector.shape_cast %29 : vector<1x32x96xf32> to vector<32x96xf32>
    %c0_16 = arith.constant 0 : index
    %c0_17 = arith.constant 0 : index
    %c0_18 = arith.constant 0 : index
    %31 = vector.load %arg8[%c0_16, %c0_17, %c0_18] : memref<2x1x96xf32, #tpu.memory_space<vmem>>, vector<1x1x96xf32>
    %32 = vector.shape_cast %31 : vector<1x1x96xf32> to vector<1x96xf32>
    %c0_19 = arith.constant 0 : index
    %c0_20 = arith.constant 0 : index
    %c0_21 = arith.constant 0 : index
    %33 = vector.load %arg9[%c0_19, %c0_20, %c0_21] : memref<2x32x32xf32, #tpu.memory_space<vmem>>, vector<1x32x32xf32>
    %34 = vector.shape_cast %33 : vector<1x32x32xf32> to vector<32x32xf32>
    %c0_22 = arith.constant 0 : index
    %c0_23 = arith.constant 0 : index
    %c0_24 = arith.constant 0 : index
    %35 = vector.load %arg10[%c0_22, %c0_23, %c0_24] : memref<2x1x32xf32, #tpu.memory_space<vmem>>, vector<1x1x32xf32>
    %36 = vector.shape_cast %35 : vector<1x1x32xf32> to vector<1x32xf32>
    %cst_25 = arith.constant dense<0.000000e+00> : vector<16x96xf32>
    %37 = tpu.matmul %28, %30, %cst_25 {dimension_numbers = #tpu.dot_dimension_numbers<[1], [0], [0], [1], [0, 0, 1, 1], [], []>} : vector<16x32xf32>, vector<32x96xf32>, vector<16x96xf32> -> vector<16x96xf32>
    %38 = vector.broadcast %32 : vector<1x96xf32> to vector<16x96xf32>
    %39 = arith.addf %37, %38 : vector<16x96xf32>
    %40 = vector.extract_strided_slice %39 {offsets = [0, 0], sizes = [16, 32], strides = [1, 1]} : vector<16x96xf32> to vector<16x32xf32>
    %41 = vector.extract_strided_slice %39 {offsets = [0, 32], sizes = [16, 32], strides = [1, 1]} : vector<16x96xf32> to vector<16x32xf32>
    %42 = vector.extract_strided_slice %39 {offsets = [0, 64], sizes = [16, 32], strides = [1, 1]} : vector<16x96xf32> to vector<16x32xf32>
    %c0_26 = arith.constant 0 : index
    %c0_27 = arith.constant 0 : index
    %c0_28 = arith.constant 0 : index
    %43 = vector.load %arg4[%c0_26, %c0_27, %c0_28] : memref<2x8x8xf32, #tpu.memory_space<vmem>>, vector<1x8x8xf32>
    %44 = vector.shape_cast %43 : vector<1x8x8xf32> to vector<8x8xf32>
    %45 = vector.extract_strided_slice %40 {offsets = [0, 0], sizes = [8, 8], strides = [1, 1]} : vector<16x32xf32> to vector<8x8xf32>
    %cst_29 = arith.constant 0.353553385 : f32
    %46 = vector.broadcast %cst_29 : f32 to vector<8x8xf32>
    %47 = arith.mulf %45, %46 : vector<8x8xf32>
    %48 = vector.extract_strided_slice %41 {offsets = [0, 0], sizes = [8, 8], strides = [1, 1]} : vector<16x32xf32> to vector<8x8xf32>
    %49 = vector.extract_strided_slice %42 {offsets = [0, 0], sizes = [8, 8], strides = [1, 1]} : vector<16x32xf32> to vector<8x8xf32>
    %50 = tpu.transpose %48, [1, 0] : vector<8x8xf32> -> vector<8x8xf32>
    %cst_30 = arith.constant dense<0.000000e+00> : vector<8x8xf32>
    %51 = tpu.matmul %47, %50, %cst_30 {dimension_numbers = #tpu.dot_dimension_numbers<[1], [0], [0], [1], [0, 0, 1, 1], [], []>} : vector<8x8xf32>, vector<8x8xf32>, vector<8x8xf32> -> vector<8x8xf32>
    %cst_31 = arith.constant 0.000000e+00 : f32
    %52 = vector.broadcast %cst_31 : f32 to vector<8x8xf32>
    %53 = arith.cmpf oeq, %44, %52 : vector<8x8xf32>
    %cst_32 = arith.constant -1.000000e+09 : f32
    %54 = vector.broadcast %cst_32 : f32 to vector<8x8xf32>
    %55 = arith.select %53, %54, %51 : vector<8x8xi1>, vector<8x8xf32>
    %cst_33 = arith.constant dense<0xFF800000> : vector<8xf32>
    %56 = vector.multi_reduction <maximumf>, %55, %cst_33 [1] : vector<8x8xf32> to vector<8xf32>
    %57 = vector.shape_cast %56 : vector<8xf32> to vector<8x1xf32>
    %58 = vector.broadcast %57 : vector<8x1xf32> to vector<8x8xf32>
    %59 = arith.subf %55, %58 : vector<8x8xf32>
    %60 = math.exp %59 : vector<8x8xf32>
    %cst_34 = arith.constant dense<0.000000e+00> : vector<8xf32>
    %61 = vector.multi_reduction <add>, %60, %cst_34 [1] : vector<8x8xf32> to vector<8xf32>
    %62 = vector.shape_cast %61 : vector<8xf32> to vector<8x1xf32>
    %63 = tpu.reciprocal %62 {approx = true} : vector<8x1xf32> -> vector<8x1xf32>
    %64 = vector.broadcast %63 : vector<8x1xf32> to vector<8x8xf32>
    %65 = arith.mulf %60, %64 : vector<8x8xf32>
    %cst_35 = arith.constant dense<0.000000e+00> : vector<8x8xf32>
    %66 = tpu.matmul %65, %49, %cst_35 {dimension_numbers = #tpu.dot_dimension_numbers<[1], [0], [0], [1], [0, 0, 1, 1], [], []>} : vector<8x8xf32>, vector<8x8xf32>, vector<8x8xf32> -> vector<8x8xf32>
    %c0_36 = arith.constant 0 : index
    %c0_37 = arith.constant 0 : index
    %67 = vector.load %arg44[%c0_36, %c0_37] : memref<16x32xf32, #tpu.memory_space<vmem>>, vector<8x8xf32>
    tpu.vector_store %arg44[%c0_36, %c0_37], %66 {strides = array<i32>} : memref<16x32xf32, #tpu.memory_space<vmem>>, vector<8x8xf32>,
    %68 = vector.extract_strided_slice %40 {offsets = [0, 8], sizes = [8, 8], strides = [1, 1]} : vector<16x32xf32> to vector<8x8xf32>
    %cst_38 = arith.constant 0.353553385 : f32
    %69 = vector.broadcast %cst_38 : f32 to vector<8x8xf32>
    %70 = arith.mulf %68, %69 : vector<8x8xf32>
    %71 = vector.extract_strided_slice %41 {offsets = [0, 8], sizes = [8, 8], strides = [1, 1]} : vector<16x32xf32> to vector<8x8xf32>
    %72 = vector.extract_strided_slice %42 {offsets = [0, 8], sizes = [8, 8], strides = [1, 1]} : vector<16x32xf32> to vector<8x8xf32>
    %73 = tpu.transpose %71, [1, 0] : vector<8x8xf32> -> vector<8x8xf32>
    %cst_39 = arith.constant dense<0.000000e+00> : vector<8x8xf32>
    %74 = tpu.matmul %70, %73, %cst_39 {dimension_numbers = #tpu.dot_dimension_numbers<[1], [0], [0], [1], [0, 0, 1, 1], [], []>} : vector<8x8xf32>, vector<8x8xf32>, vector<8x8xf32> -> vector<8x8xf32>
    %cst_40 = arith.constant 0.000000e+00 : f32
    %75 = vector.broadcast %cst_40 : f32 to vector<8x8xf32>
    %76 = arith.cmpf oeq, %44, %75 : vector<8x8xf32>
    %cst_41 = arith.constant -1.000000e+09 : f32
    %77 = vector.broadcast %cst_41 : f32 to vector<8x8xf32>
    %78 = arith.select %76, %77, %74 : vector<8x8xi1>, vector<8x8xf32>
    %cst_42 = arith.constant dense<0xFF800000> : vector<8xf32>
    %79 = vector.multi_reduction <maximumf>, %78, %cst_42 [1] : vector<8x8xf32> to vector<8xf32>
    %80 = vector.shape_cast %79 : vector<8xf32> to vector<8x1xf32>
    %81 = vector.broadcast %80 : vector<8x1xf32> to vector<8x8xf32>
    %82 = arith.subf %78, %81 : vector<8x8xf32>
    %83 = math.exp %82 : vector<8x8xf32>
    %cst_43 = arith.constant dense<0.000000e+00> : vector<8xf32>
    %84 = vector.multi_reduction <add>, %83, %cst_43 [1] : vector<8x8xf32> to vector<8xf32>
    %85 = vector.shape_cast %84 : vector<8xf32> to vector<8x1xf32>
    %86 = tpu.reciprocal %85 {approx = true} : vector<8x1xf32> -> vector<8x1xf32>
    %87 = vector.broadcast %86 : vector<8x1xf32> to vector<8x8xf32>
    %88 = arith.mulf %83, %87 : vector<8x8xf32>
    %cst_44 = arith.constant dense<0.000000e+00> : vector<8x8xf32>
    %89 = tpu.matmul %88, %72, %cst_44 {dimension_numbers = #tpu.dot_dimension_numbers<[1], [0], [0], [1], [0, 0, 1, 1], [], []>} : vector<8x8xf32>, vector<8x8xf32>, vector<8x8xf32> -> vector<8x8xf32>
    %c0_45 = arith.constant 0 : index
    %c8 = arith.constant 8 : index
    %90 = vector.load %arg44[%c0_45, %c8] : memref<16x32xf32, #tpu.memory_space<vmem>>, vector<8x8xf32>
    tpu.vector_store %arg44[%c0_45, %c8], %89 {strides = array<i32>} : memref<16x32xf32, #tpu.memory_space<vmem>>, vector<8x8xf32>,
    %91 = vector.extract_strided_slice %40 {offsets = [0, 16], sizes = [8, 8], strides = [1, 1]} : vector<16x32xf32> to vector<8x8xf32>
    %cst_46 = arith.constant 0.353553385 : f32
    %92 = vector.broadcast %cst_46 : f32 to vector<8x8xf32>
    %93 = arith.mulf %91, %92 : vector<8x8xf32>
    %94 = vector.extract_strided_slice %41 {offsets = [0, 16], sizes = [8, 8], strides = [1, 1]} : vector<16x32xf32> to vector<8x8xf32>
    %95 = vector.extract_strided_slice %42 {offsets = [0, 16], sizes = [8, 8], strides = [1, 1]} : vector<16x32xf32> to vector<8x8xf32>
    %96 = tpu.transpose %94, [1, 0] : vector<8x8xf32> -> vector<8x8xf32>
    %cst_47 = arith.constant dense<0.000000e+00> : vector<8x8xf32>
    %97 = tpu.matmul %93, %96, %cst_47 {dimension_numbers = #tpu.dot_dimension_numbers<[1], [0], [0], [1], [0, 0, 1, 1], [], []>} : vector<8x8xf32>, vector<8x8xf32>, vector<8x8xf32> -> vector<8x8xf32>
    %cst_48 = arith.constant 0.000000e+00 : f32
    %98 = vector.broadcast %cst_48 : f32 to vector<8x8xf32>
    %99 = arith.cmpf oeq, %44, %98 : vector<8x8xf32>
    %cst_49 = arith.constant -1.000000e+09 : f32
    %100 = vector.broadcast %cst_49 : f32 to vector<8x8xf32>
    %101 = arith.select %99, %100, %97 : vector<8x8xi1>, vector<8x8xf32>
    %cst_50 = arith.constant dense<0xFF800000> : vector<8xf32>
    %102 = vector.multi_reduction <maximumf>, %101, %cst_50 [1] : vector<8x8xf32> to vector<8xf32>
    %103 = vector.shape_cast %102 : vector<8xf32> to vector<8x1xf32>
    %104 = vector.broadcast %103 : vector<8x1xf32> to vector<8x8xf32>
    %105 = arith.subf %101, %104 : vector<8x8xf32>
    %106 = math.exp %105 : vector<8x8xf32>
    %cst_51 = arith.constant dense<0.000000e+00> : vector<8xf32>
    %107 = vector.multi_reduction <add>, %106, %cst_51 [1] : vector<8x8xf32> to vector<8xf32>
    %108 = vector.shape_cast %107 : vector<8xf32> to vector<8x1xf32>
    %109 = tpu.reciprocal %108 {approx = true} : vector<8x1xf32> -> vector<8x1xf32>
    %110 = vector.broadcast %109 : vector<8x1xf32> to vector<8x8xf32>
    %111 = arith.mulf %106, %110 : vector<8x8xf32>
    %cst_52 = arith.constant dense<0.000000e+00> : vector<8x8xf32>
    %112 = tpu.matmul %111, %95, %cst_52 {dimension_numbers = #tpu.dot_dimension_numbers<[1], [0], [0], [1], [0, 0, 1, 1], [], []>} : vector<8x8xf32>, vector<8x8xf32>, vector<8x8xf32> -> vector<8x8xf32>
    %c0_53 = arith.constant 0 : index
    %c16 = arith.constant 16 : index
    %113 = vector.load %arg44[%c0_53, %c16] : memref<16x32xf32, #tpu.memory_space<vmem>>, vector<8x8xf32>
    tpu.vector_store %arg44[%c0_53, %c16], %112 {strides = array<i32>} : memref<16x32xf32, #tpu.memory_space<vmem>>, vector<8x8xf32>,
    %114 = vector.extract_strided_slice %40 {offsets = [0, 24], sizes = [8, 8], strides = [1, 1]} : vector<16x32xf32> to vector<8x8xf32>
    %cst_54 = arith.constant 0.353553385 : f32
    %115 = vector.broadcast %cst_54 : f32 to vector<8x8xf32>
    %116 = arith.mulf %114, %115 : vector<8x8xf32>
    %117 = vector.extract_strided_slice %41 {offsets = [0, 24], sizes = [8, 8], strides = [1, 1]} : vector<16x32xf32> to vector<8x8xf32>
    %118 = vector.extract_strided_slice %42 {offsets = [0, 24], sizes = [8, 8], strides = [1, 1]} : vector<16x32xf32> to vector<8x8xf32>
    %119 = tpu.transpose %117, [1, 0] : vector<8x8xf32> -> vector<8x8xf32>
    %cst_55 = arith.constant dense<0.000000e+00> : vector<8x8xf32>
    %120 = tpu.matmul %116, %119, %cst_55 {dimension_numbers = #tpu.dot_dimension_numbers<[1], [0], [0], [1], [0, 0, 1, 1], [], []>} : vector<8x8xf32>, vector<8x8xf32>, vector<8x8xf32> -> vector<8x8xf32>
    %cst_56 = arith.constant 0.000000e+00 : f32
    %121 = vector.broadcast %cst_56 : f32 to vector<8x8xf32>
    %122 = arith.cmpf oeq, %44, %121 : vector<8x8xf32>
    %cst_57 = arith.constant -1.000000e+09 : f32
    %123 = vector.broadcast %cst_57 : f32 to vector<8x8xf32>
    %124 = arith.select %122, %123, %120 : vector<8x8xi1>, vector<8x8xf32>
    %cst_58 = arith.constant dense<0xFF800000> : vector<8xf32>
    %125 = vector.multi_reduction <maximumf>, %124, %cst_58 [1] : vector<8x8xf32> to vector<8xf32>
    %126 = vector.shape_cast %125 : vector<8xf32> to vector<8x1xf32>
    %127 = vector.broadcast %126 : vector<8x1xf32> to vector<8x8xf32>
    %128 = arith.subf %124, %127 : vector<8x8xf32>
    %129 = math.exp %128 : vector<8x8xf32>
    %cst_59 = arith.constant dense<0.000000e+00> : vector<8xf32>
    %130 = vector.multi_reduction <add>, %129, %cst_59 [1] : vector<8x8xf32> to vector<8xf32>
    %131 = vector.shape_cast %130 : vector<8xf32> to vector<8x1xf32>
    %132 = tpu.reciprocal %131 {approx = true} : vector<8x1xf32> -> vector<8x1xf32>
    %133 = vector.broadcast %132 : vector<8x1xf32> to vector<8x8xf32>
    %134 = arith.mulf %129, %133 : vector<8x8xf32>
    %cst_60 = arith.constant dense<0.000000e+00> : vector<8x8xf32>
    %135 = tpu.matmul %134, %118, %cst_60 {dimension_numbers = #tpu.dot_dimension_numbers<[1], [0], [0], [1], [0, 0, 1, 1], [], []>} : vector<8x8xf32>, vector<8x8xf32>, vector<8x8xf32> -> vector<8x8xf32>
    %c0_61 = arith.constant 0 : index
    %c24 = arith.constant 24 : index
    %136 = vector.load %arg44[%c0_61, %c24] : memref<16x32xf32, #tpu.memory_space<vmem>>, vector<8x8xf32>
    tpu.vector_store %arg44[%c0_61, %c24], %135 {strides = array<i32>} : memref<16x32xf32, #tpu.memory_space<vmem>>, vector<8x8xf32>,
    %c1 = arith.constant 1 : index
    %c0_62 = arith.constant 0 : index
    %c0_63 = arith.constant 0 : index
    %137 = vector.load %arg4[%c1, %c0_62, %c0_63] : memref<2x8x8xf32, #tpu.memory_space<vmem>>, vector<1x8x8xf32>
    %138 = vector.shape_cast %137 : vector<1x8x8xf32> to vector<8x8xf32>
    %139 = vector.extract_strided_slice %40 {offsets = [8, 0], sizes = [8, 8], strides = [1, 1]} : vector<16x32xf32> to vector<8x8xf32>
    %cst_64 = arith.constant 0.353553385 : f32
    %140 = vector.broadcast %cst_64 : f32 to vector<8x8xf32>
    %141 = arith.mulf %139, %140 : vector<8x8xf32>
    %142 = vector.extract_strided_slice %41 {offsets = [8, 0], sizes = [8, 8], strides = [1, 1]} : vector<16x32xf32> to vector<8x8xf32>
    %143 = vector.extract_strided_slice %42 {offsets = [8, 0], sizes = [8, 8], strides = [1, 1]} : vector<16x32xf32> to vector<8x8xf32>
    %144 = tpu.transpose %142, [1, 0] : vector<8x8xf32> -> vector<8x8xf32>
    %cst_65 = arith.constant dense<0.000000e+00> : vector<8x8xf32>
    %145 = tpu.matmul %141, %144, %cst_65 {dimension_numbers = #tpu.dot_dimension_numbers<[1], [0], [0], [1], [0, 0, 1, 1], [], []>} : vector<8x8xf32>, vector<8x8xf32>, vector<8x8xf32> -> vector<8x8xf32>
    %cst_66 = arith.constant 0.000000e+00 : f32
    %146 = vector.broadcast %cst_66 : f32 to vector<8x8xf32>
    %147 = arith.cmpf oeq, %138, %146 : vector<8x8xf32>
    %cst_67 = arith.constant -1.000000e+09 : f32
    %148 = vector.broadcast %cst_67 : f32 to vector<8x8xf32>
    %149 = arith.select %147, %148, %145 : vector<8x8xi1>, vector<8x8xf32>
    %cst_68 = arith.constant dense<0xFF800000> : vector<8xf32>
    %150 = vector.multi_reduction <maximumf>, %149, %cst_68 [1] : vector<8x8xf32> to vector<8xf32>
    %151 = vector.shape_cast %150 : vector<8xf32> to vector<8x1xf32>
    %152 = vector.broadcast %151 : vector<8x1xf32> to vector<8x8xf32>
    %153 = arith.subf %149, %152 : vector<8x8xf32>
    %154 = math.exp %153 : vector<8x8xf32>
    %cst_69 = arith.constant dense<0.000000e+00> : vector<8xf32>
    %155 = vector.multi_reduction <add>, %154, %cst_69 [1] : vector<8x8xf32> to vector<8xf32>
    %156 = vector.shape_cast %155 : vector<8xf32> to vector<8x1xf32>
    %157 = tpu.reciprocal %156 {approx = true} : vector<8x1xf32> -> vector<8x1xf32>
    %158 = vector.broadcast %157 : vector<8x1xf32> to vector<8x8xf32>
    %159 = arith.mulf %154, %158 : vector<8x8xf32>
    %cst_70 = arith.constant dense<0.000000e+00> : vector<8x8xf32>
    %160 = tpu.matmul %159, %143, %cst_70 {dimension_numbers = #tpu.dot_dimension_numbers<[1], [0], [0], [1], [0, 0, 1, 1], [], []>} : vector<8x8xf32>, vector<8x8xf32>, vector<8x8xf32> -> vector<8x8xf32>
    %c8_71 = arith.constant 8 : index
    %c0_72 = arith.constant 0 : index
    %161 = vector.load %arg44[%c8_71, %c0_72] : memref<16x32xf32, #tpu.memory_space<vmem>>, vector<8x8xf32>
    tpu.vector_store %arg44[%c8_71, %c0_72], %160 {strides = array<i32>} : memref<16x32xf32, #tpu.memory_space<vmem>>, vector<8x8xf32>,
    %162 = vector.extract_strided_slice %40 {offsets = [8, 8], sizes = [8, 8], strides = [1, 1]} : vector<16x32xf32> to vector<8x8xf32>
    %cst_73 = arith.constant 0.353553385 : f32
    %163 = vector.broadcast %cst_73 : f32 to vector<8x8xf32>
    %164 = arith.mulf %162, %163 : vector<8x8xf32>
    %165 = vector.extract_strided_slice %41 {offsets = [8, 8], sizes = [8, 8], strides = [1, 1]} : vector<16x32xf32> to vector<8x8xf32>
    %166 = vector.extract_strided_slice %42 {offsets = [8, 8], sizes = [8, 8], strides = [1, 1]} : vector<16x32xf32> to vector<8x8xf32>
    %167 = tpu.transpose %165, [1, 0] : vector<8x8xf32> -> vector<8x8xf32>
    %cst_74 = arith.constant dense<0.000000e+00> : vector<8x8xf32>
    %168 = tpu.matmul %164, %167, %cst_74 {dimension_numbers = #tpu.dot_dimension_numbers<[1], [0], [0], [1], [0, 0, 1, 1], [], []>} : vector<8x8xf32>, vector<8x8xf32>, vector<8x8xf32> -> vector<8x8xf32>
    %cst_75 = arith.constant 0.000000e+00 : f32
    %169 = vector.broadcast %cst_75 : f32 to vector<8x8xf32>
    %170 = arith.cmpf oeq, %138, %169 : vector<8x8xf32>
    %cst_76 = arith.constant -1.000000e+09 : f32
    %171 = vector.broadcast %cst_76 : f32 to vector<8x8xf32>
    %172 = arith.select %170, %171, %168 : vector<8x8xi1>, vector<8x8xf32>
    %cst_77 = arith.constant dense<0xFF800000> : vector<8xf32>
    %173 = vector.multi_reduction <maximumf>, %172, %cst_77 [1] : vector<8x8xf32> to vector<8xf32>
    %174 = vector.shape_cast %173 : vector<8xf32> to vector<8x1xf32>
    %175 = vector.broadcast %174 : vector<8x1xf32> to vector<8x8xf32>
    %176 = arith.subf %172, %175 : vector<8x8xf32>
    %177 = math.exp %176 : vector<8x8xf32>
    %cst_78 = arith.constant dense<0.000000e+00> : vector<8xf32>
    %178 = vector.multi_reduction <add>, %177, %cst_78 [1] : vector<8x8xf32> to vector<8xf32>
    %179 = vector.shape_cast %178 : vector<8xf32> to vector<8x1xf32>
    %180 = tpu.reciprocal %179 {approx = true} : vector<8x1xf32> -> vector<8x1xf32>
    %181 = vector.broadcast %180 : vector<8x1xf32> to vector<8x8xf32>
    %182 = arith.mulf %177, %181 : vector<8x8xf32>
    %cst_79 = arith.constant dense<0.000000e+00> : vector<8x8xf32>
    %183 = tpu.matmul %182, %166, %cst_79 {dimension_numbers = #tpu.dot_dimension_numbers<[1], [0], [0], [1], [0, 0, 1, 1], [], []>} : vector<8x8xf32>, vector<8x8xf32>, vector<8x8xf32> -> vector<8x8xf32>
    %c8_80 = arith.constant 8 : index
    %c8_81 = arith.constant 8 : index
    %184 = vector.load %arg44[%c8_80, %c8_81] : memref<16x32xf32, #tpu.memory_space<vmem>>, vector<8x8xf32>
    tpu.vector_store %arg44[%c8_80, %c8_81], %183 {strides = array<i32>} : memref<16x32xf32, #tpu.memory_space<vmem>>, vector<8x8xf32>,
    %185 = vector.extract_strided_slice %40 {offsets = [8, 16], sizes = [8, 8], strides = [1, 1]} : vector<16x32xf32> to vector<8x8xf32>
    %cst_82 = arith.constant 0.353553385 : f32
    %186 = vector.broadcast %cst_82 : f32 to vector<8x8xf32>
    %187 = arith.mulf %185, %186 : vector<8x8xf32>
    %188 = vector.extract_strided_slice %41 {offsets = [8, 16], sizes = [8, 8], strides = [1, 1]} : vector<16x32xf32> to vector<8x8xf32>
    %189 = vector.extract_strided_slice %42 {offsets = [8, 16], sizes = [8, 8], strides = [1, 1]} : vector<16x32xf32> to vector<8x8xf32>
    %190 = tpu.transpose %188, [1, 0] : vector<8x8xf32> -> vector<8x8xf32>
    %cst_83 = arith.constant dense<0.000000e+00> : vector<8x8xf32>
    %191 = tpu.matmul %187, %190, %cst_83 {dimension_numbers = #tpu.dot_dimension_numbers<[1], [0], [0], [1], [0, 0, 1, 1], [], []>} : vector<8x8xf32>, vector<8x8xf32>, vector<8x8xf32> -> vector<8x8xf32>
    %cst_84 = arith.constant 0.000000e+00 : f32
    %192 = vector.broadcast %cst_84 : f32 to vector<8x8xf32>
    %193 = arith.cmpf oeq, %138, %192 : vector<8x8xf32>
    %cst_85 = arith.constant -1.000000e+09 : f32
    %194 = vector.broadcast %cst_85 : f32 to vector<8x8xf32>
    %195 = arith.select %193, %194, %191 : vector<8x8xi1>, vector<8x8xf32>
    %cst_86 = arith.constant dense<0xFF800000> : vector<8xf32>
    %196 = vector.multi_reduction <maximumf>, %195, %cst_86 [1] : vector<8x8xf32> to vector<8xf32>
    %197 = vector.shape_cast %196 : vector<8xf32> to vector<8x1xf32>
    %198 = vector.broadcast %197 : vector<8x1xf32> to vector<8x8xf32>
    %199 = arith.subf %195, %198 : vector<8x8xf32>
    %200 = math.exp %199 : vector<8x8xf32>
    %cst_87 = arith.constant dense<0.000000e+00> : vector<8xf32>
    %201 = vector.multi_reduction <add>, %200, %cst_87 [1] : vector<8x8xf32> to vector<8xf32>
    %202 = vector.shape_cast %201 : vector<8xf32> to vector<8x1xf32>
    %203 = tpu.reciprocal %202 {approx = true} : vector<8x1xf32> -> vector<8x1xf32>
    %204 = vector.broadcast %203 : vector<8x1xf32> to vector<8x8xf32>
    %205 = arith.mulf %200, %204 : vector<8x8xf32>
    %cst_88 = arith.constant dense<0.000000e+00> : vector<8x8xf32>
    %206 = tpu.matmul %205, %189, %cst_88 {dimension_numbers = #tpu.dot_dimension_numbers<[1], [0], [0], [1], [0, 0, 1, 1], [], []>} : vector<8x8xf32>, vector<8x8xf32>, vector<8x8xf32> -> vector<8x8xf32>
    %c8_89 = arith.constant 8 : index
    %c16_90 = arith.constant 16 : index
    %207 = vector.load %arg44[%c8_89, %c16_90] : memref<16x32xf32, #tpu.memory_space<vmem>>, vector<8x8xf32>
    tpu.vector_store %arg44[%c8_89, %c16_90], %206 {strides = array<i32>} : memref<16x32xf32, #tpu.memory_space<vmem>>, vector<8x8xf32>,
    %208 = vector.extract_strided_slice %40 {offsets = [8, 24], sizes = [8, 8], strides = [1, 1]} : vector<16x32xf32> to vector<8x8xf32>
    %cst_91 = arith.constant 0.353553385 : f32
    %209 = vector.broadcast %cst_91 : f32 to vector<8x8xf32>
    %210 = arith.mulf %208, %209 : vector<8x8xf32>
    %211 = vector.extract_strided_slice %41 {offsets = [8, 24], sizes = [8, 8], strides = [1, 1]} : vector<16x32xf32> to vector<8x8xf32>
    %212 = vector.extract_strided_slice %42 {offsets = [8, 24], sizes = [8, 8], strides = [1, 1]} : vector<16x32xf32> to vector<8x8xf32>
    %213 = tpu.transpose %211, [1, 0] : vector<8x8xf32> -> vector<8x8xf32>
    %cst_92 = arith.constant dense<0.000000e+00> : vector<8x8xf32>
    %214 = tpu.matmul %210, %213, %cst_92 {dimension_numbers = #tpu.dot_dimension_numbers<[1], [0], [0], [1], [0, 0, 1, 1], [], []>} : vector<8x8xf32>, vector<8x8xf32>, vector<8x8xf32> -> vector<8x8xf32>
    %cst_93 = arith.constant 0.000000e+00 : f32
    %215 = vector.broadcast %cst_93 : f32 to vector<8x8xf32>
    %216 = arith.cmpf oeq, %138, %215 : vector<8x8xf32>
    %cst_94 = arith.constant -1.000000e+09 : f32
    %217 = vector.broadcast %cst_94 : f32 to vector<8x8xf32>
    %218 = arith.select %216, %217, %214 : vector<8x8xi1>, vector<8x8xf32>
    %cst_95 = arith.constant dense<0xFF800000> : vector<8xf32>
    %219 = vector.multi_reduction <maximumf>, %218, %cst_95 [1] : vector<8x8xf32> to vector<8xf32>
    %220 = vector.shape_cast %219 : vector<8xf32> to vector<8x1xf32>
    %221 = vector.broadcast %220 : vector<8x1xf32> to vector<8x8xf32>
    %222 = arith.subf %218, %221 : vector<8x8xf32>
    %223 = math.exp %222 : vector<8x8xf32>
    %cst_96 = arith.constant dense<0.000000e+00> : vector<8xf32>
    %224 = vector.multi_reduction <add>, %223, %cst_96 [1] : vector<8x8xf32> to vector<8xf32>
    %225 = vector.shape_cast %224 : vector<8xf32> to vector<8x1xf32>
    %226 = tpu.reciprocal %225 {approx = true} : vector<8x1xf32> -> vector<8x1xf32>
    %227 = vector.broadcast %226 : vector<8x1xf32> to vector<8x8xf32>
    %228 = arith.mulf %223, %227 : vector<8x8xf32>
    %cst_97 = arith.constant dense<0.000000e+00> : vector<8x8xf32>
    %229 = tpu.matmul %228, %212, %cst_97 {dimension_numbers = #tpu.dot_dimension_numbers<[1], [0], [0], [1], [0, 0, 1, 1], [], []>} : vector<8x8xf32>, vector<8x8xf32>, vector<8x8xf32> -> vector<8x8xf32>
    %c8_98 = arith.constant 8 : index
    %c24_99 = arith.constant 24 : index
    %230 = vector.load %arg44[%c8_98, %c24_99] : memref<16x32xf32, #tpu.memory_space<vmem>>, vector<8x8xf32>
    tpu.vector_store %arg44[%c8_98, %c24_99], %229 {strides = array<i32>} : memref<16x32xf32, #tpu.memory_space<vmem>>, vector<8x8xf32>,
    %c0_100 = arith.constant 0 : index
    %c0_101 = arith.constant 0 : index
    %231 = vector.load %arg44[%c0_100, %c0_101] : memref<16x32xf32, #tpu.memory_space<vmem>>, vector<16x32xf32>
    %cst_102 = arith.constant dense<0.000000e+00> : vector<16x32xf32>
    %232 = tpu.matmul %231, %34, %cst_102 {dimension_numbers = #tpu.dot_dimension_numbers<[1], [0], [0], [1], [0, 0, 1, 1], [], []>} : vector<16x32xf32>, vector<32x32xf32>, vector<16x32xf32> -> vector<16x32xf32>
    %233 = vector.broadcast %36 : vector<1x32xf32> to vector<16x32xf32>
    %234 = arith.addf %232, %233 : vector<16x32xf32>
    %235 = arith.addf %2, %234 : vector<16x32xf32>
    %c0_103 = arith.constant 0 : index
    %c0_104 = arith.constant 0 : index
    %c0_105 = arith.constant 0 : index
    %236 = vector.load %arg17[%c0_103, %c0_104, %c0_105] : memref<2x1x32xf32, #tpu.memory_space<vmem>>, vector<1x1x32xf32>
    %237 = vector.shape_cast %236 : vector<1x1x32xf32> to vector<1x32xf32>
    %c0_106 = arith.constant 0 : index
    %c0_107 = arith.constant 0 : index
    %c0_108 = arith.constant 0 : index
    %238 = vector.load %arg18[%c0_106, %c0_107, %c0_108] : memref<2x1x32xf32, #tpu.memory_space<vmem>>, vector<1x1x32xf32>
    %239 = vector.shape_cast %238 : vector<1x1x32xf32> to vector<1x32xf32>
    %cst_109 = arith.constant dense<0.000000e+00> : vector<16xf32>
    %240 = vector.multi_reduction <add>, %235, %cst_109 [1] : vector<16x32xf32> to vector<16xf32>
    %241 = vector.shape_cast %240 : vector<16xf32> to vector<16x1xf32>
    %cst_110 = arith.constant 3.200000e+01 : f32
    %242 = vector.broadcast %cst_110 : f32 to vector<16x1xf32>
    %243 = arith.divf %241, %242 : vector<16x1xf32>
    %244 = vector.broadcast %243 : vector<16x1xf32> to vector<16x32xf32>
    %245 = arith.subf %235, %244 : vector<16x32xf32>
    %246 = arith.mulf %245, %245 : vector<16x32xf32>
    %cst_111 = arith.constant dense<0.000000e+00> : vector<16xf32>
    %247 = vector.multi_reduction <add>, %246, %cst_111 [1] : vector<16x32xf32> to vector<16xf32>
    %248 = vector.shape_cast %247 : vector<16xf32> to vector<16x1xf32>
    %cst_112 = arith.constant 3.100000e+01 : f32
    %249 = vector.broadcast %cst_112 : f32 to vector<16x1xf32>
    %250 = arith.divf %248, %249 : vector<16x1xf32>
    %251 = vector.broadcast %243 : vector<16x1xf32> to vector<16x32xf32>
    %252 = arith.subf %235, %251 : vector<16x32xf32>
    %253 = vector.broadcast %237 : vector<1x32xf32> to vector<16x32xf32>
    %254 = arith.mulf %253, %252 : vector<16x32xf32>
    %255 = math.sqrt %250 : vector<16x1xf32>
    %cst_113 = arith.constant 9.99999997E-7 : f32
    %256 = vector.broadcast %cst_113 : f32 to vector<16x1xf32>
    %257 = arith.addf %255, %256 : vector<16x1xf32>
    %258 = vector.broadcast %257 : vector<16x1xf32> to vector<16x32xf32>
    %259 = arith.divf %254, %258 : vector<16x32xf32>
    %260 = vector.broadcast %239 : vector<1x32xf32> to vector<16x32xf32>
    %261 = arith.addf %259, %260 : vector<16x32xf32>
    %c0_114 = arith.constant 0 : index
    %c0_115 = arith.constant 0 : index
    %c0_116 = arith.constant 0 : index
    %262 = vector.load %arg11[%c0_114, %c0_115, %c0_116] : memref<2x32x64xf32, #tpu.memory_space<vmem>>, vector<1x32x64xf32>
    %263 = vector.shape_cast %262 : vector<1x32x64xf32> to vector<32x64xf32>
    %c0_117 = arith.constant 0 : index
    %c0_118 = arith.constant 0 : index
    %c0_119 = arith.constant 0 : index
    %264 = vector.load %arg12[%c0_117, %c0_118, %c0_119] : memref<2x1x64xf32, #tpu.memory_space<vmem>>, vector<1x1x64xf32>
    %265 = vector.shape_cast %264 : vector<1x1x64xf32> to vector<1x64xf32>
    %c0_120 = arith.constant 0 : index
    %c0_121 = arith.constant 0 : index
    %c0_122 = arith.constant 0 : index
    %266 = vector.load %arg13[%c0_120, %c0_121, %c0_122] : memref<2x64x32xf32, #tpu.memory_space<vmem>>, vector<1x64x32xf32>
    %267 = vector.shape_cast %266 : vector<1x64x32xf32> to vector<64x32xf32>
    %c0_123 = arith.constant 0 : index
    %c0_124 = arith.constant 0 : index
    %c0_125 = arith.constant 0 : index
    %268 = vector.load %arg14[%c0_123, %c0_124, %c0_125] : memref<2x1x32xf32, #tpu.memory_space<vmem>>, vector<1x1x32xf32>
    %269 = vector.shape_cast %268 : vector<1x1x32xf32> to vector<1x32xf32>
    %cst_126 = arith.constant dense<0.000000e+00> : vector<16x64xf32>
    %270 = tpu.matmul %261, %263, %cst_126 {dimension_numbers = #tpu.dot_dimension_numbers<[1], [0], [0], [1], [0, 0, 1, 1], [], []>} : vector<16x32xf32>, vector<32x64xf32>, vector<16x64xf32> -> vector<16x64xf32>
    %271 = vector.broadcast %265 : vector<1x64xf32> to vector<16x64xf32>
    %272 = arith.addf %270, %271 : vector<16x64xf32>
    %cst_127 = arith.constant 0.000000e+00 : f32
    %273 = vector.broadcast %cst_127 : f32 to vector<16x64xf32>
    %274 = arith.maximumf %272, %273 : vector<16x64xf32>
    %cst_128 = arith.constant dense<0.000000e+00> : vector<16x32xf32>
    %275 = tpu.matmul %274, %267, %cst_128 {dimension_numbers = #tpu.dot_dimension_numbers<[1], [0], [0], [1], [0, 0, 1, 1], [], []>} : vector<16x64xf32>, vector<64x32xf32>, vector<16x32xf32> -> vector<16x32xf32>
    %276 = vector.broadcast %269 : vector<1x32xf32> to vector<16x32xf32>
    %277 = arith.addf %275, %276 : vector<16x32xf32>
    %278 = arith.addf %235, %277 : vector<16x32xf32>
    %c1_129 = arith.constant 1 : index
    %c0_130 = arith.constant 0 : index
    %c0_131 = arith.constant 0 : index
    %279 = vector.load %arg15[%c1_129, %c0_130, %c0_131] : memref<2x1x32xf32, #tpu.memory_space<vmem>>, vector<1x1x32xf32>
    %280 = vector.shape_cast %279 : vector<1x1x32xf32> to vector<1x32xf32>
    %c1_132 = arith.constant 1 : index
    %c0_133 = arith.constant 0 : index
    %c0_134 = arith.constant 0 : index
    %281 = vector.load %arg16[%c1_132, %c0_133, %c0_134] : memref<2x1x32xf32, #tpu.memory_space<vmem>>, vector<1x1x32xf32>
    %282 = vector.shape_cast %281 : vector<1x1x32xf32> to vector<1x32xf32>
    %cst_135 = arith.constant dense<0.000000e+00> : vector<16xf32>
    %283 = vector.multi_reduction <add>, %278, %cst_135 [1] : vector<16x32xf32> to vector<16xf32>
    %284 = vector.shape_cast %283 : vector<16xf32> to vector<16x1xf32>
    %cst_136 = arith.constant 3.200000e+01 : f32
    %285 = vector.broadcast %cst_136 : f32 to vector<16x1xf32>
    %286 = arith.divf %284, %285 : vector<16x1xf32>
    %287 = vector.broadcast %286 : vector<16x1xf32> to vector<16x32xf32>
    %288 = arith.subf %278, %287 : vector<16x32xf32>
    %289 = arith.mulf %288, %288 : vector<16x32xf32>
    %cst_137 = arith.constant dense<0.000000e+00> : vector<16xf32>
    %290 = vector.multi_reduction <add>, %289, %cst_137 [1] : vector<16x32xf32> to vector<16xf32>
    %291 = vector.shape_cast %290 : vector<16xf32> to vector<16x1xf32>
    %cst_138 = arith.constant 3.100000e+01 : f32
    %292 = vector.broadcast %cst_138 : f32 to vector<16x1xf32>
    %293 = arith.divf %291, %292 : vector<16x1xf32>
    %294 = vector.broadcast %286 : vector<16x1xf32> to vector<16x32xf32>
    %295 = arith.subf %278, %294 : vector<16x32xf32>
    %296 = vector.broadcast %280 : vector<1x32xf32> to vector<16x32xf32>
    %297 = arith.mulf %296, %295 : vector<16x32xf32>
    %298 = math.sqrt %293 : vector<16x1xf32>
    %cst_139 = arith.constant 9.99999997E-7 : f32
    %299 = vector.broadcast %cst_139 : f32 to vector<16x1xf32>
    %300 = arith.addf %298, %299 : vector<16x1xf32>
    %301 = vector.broadcast %300 : vector<16x1xf32> to vector<16x32xf32>
    %302 = arith.divf %297, %301 : vector<16x32xf32>
    %303 = vector.broadcast %282 : vector<1x32xf32> to vector<16x32xf32>
    %304 = arith.addf %302, %303 : vector<16x32xf32>
    %c1_140 = arith.constant 1 : index
    %c0_141 = arith.constant 0 : index
    %c0_142 = arith.constant 0 : index
    %305 = vector.load %arg7[%c1_140, %c0_141, %c0_142] : memref<2x32x96xf32, #tpu.memory_space<vmem>>, vector<1x32x96xf32>
    %306 = vector.shape_cast %305 : vector<1x32x96xf32> to vector<32x96xf32>
    %c1_143 = arith.constant 1 : index
    %c0_144 = arith.constant 0 : index
    %c0_145 = arith.constant 0 : index
    %307 = vector.load %arg8[%c1_143, %c0_144, %c0_145] : memref<2x1x96xf32, #tpu.memory_space<vmem>>, vector<1x1x96xf32>
    %308 = vector.shape_cast %307 : vector<1x1x96xf32> to vector<1x96xf32>
    %c1_146 = arith.constant 1 : index
    %c0_147 = arith.constant 0 : index
    %c0_148 = arith.constant 0 : index
    %309 = vector.load %arg9[%c1_146, %c0_147, %c0_148] : memref<2x32x32xf32, #tpu.memory_space<vmem>>, vector<1x32x32xf32>
    %310 = vector.shape_cast %309 : vector<1x32x32xf32> to vector<32x32xf32>
    %c1_149 = arith.constant 1 : index
    %c0_150 = arith.constant 0 : index
    %c0_151 = arith.constant 0 : index
    %311 = vector.load %arg10[%c1_149, %c0_150, %c0_151] : memref<2x1x32xf32, #tpu.memory_space<vmem>>, vector<1x1x32xf32>
    %312 = vector.shape_cast %311 : vector<1x1x32xf32> to vector<1x32xf32>
    %cst_152 = arith.constant dense<0.000000e+00> : vector<16x96xf32>
    %313 = tpu.matmul %304, %306, %cst_152 {dimension_numbers = #tpu.dot_dimension_numbers<[1], [0], [0], [1], [0, 0, 1, 1], [], []>} : vector<16x32xf32>, vector<32x96xf32>, vector<16x96xf32> -> vector<16x96xf32>
    %314 = vector.broadcast %308 : vector<1x96xf32> to vector<16x96xf32>
    %315 = arith.addf %313, %314 : vector<16x96xf32>
    %316 = vector.extract_strided_slice %315 {offsets = [0, 0], sizes = [16, 32], strides = [1, 1]} : vector<16x96xf32> to vector<16x32xf32>
    %317 = vector.extract_strided_slice %315 {offsets = [0, 32], sizes = [16, 32], strides = [1, 1]} : vector<16x96xf32> to vector<16x32xf32>
    %318 = vector.extract_strided_slice %315 {offsets = [0, 64], sizes = [16, 32], strides = [1, 1]} : vector<16x96xf32> to vector<16x32xf32>
    %c0_153 = arith.constant 0 : index
    %c0_154 = arith.constant 0 : index
    %c0_155 = arith.constant 0 : index
    %319 = vector.load %arg4[%c0_153, %c0_154, %c0_155] : memref<2x8x8xf32, #tpu.memory_space<vmem>>, vector<1x8x8xf32>
    %320 = vector.shape_cast %319 : vector<1x8x8xf32> to vector<8x8xf32>
    %321 = vector.extract_strided_slice %316 {offsets = [0, 0], sizes = [8, 8], strides = [1, 1]} : vector<16x32xf32> to vector<8x8xf32>
    %cst_156 = arith.constant 0.353553385 : f32
    %322 = vector.broadcast %cst_156 : f32 to vector<8x8xf32>
    %323 = arith.mulf %321, %322 : vector<8x8xf32>
    %324 = vector.extract_strided_slice %317 {offsets = [0, 0], sizes = [8, 8], strides = [1, 1]} : vector<16x32xf32> to vector<8x8xf32>
    %325 = vector.extract_strided_slice %318 {offsets = [0, 0], sizes = [8, 8], strides = [1, 1]} : vector<16x32xf32> to vector<8x8xf32>
    %326 = tpu.transpose %324, [1, 0] : vector<8x8xf32> -> vector<8x8xf32>
    %cst_157 = arith.constant dense<0.000000e+00> : vector<8x8xf32>
    %327 = tpu.matmul %323, %326, %cst_157 {dimension_numbers = #tpu.dot_dimension_numbers<[1], [0], [0], [1], [0, 0, 1, 1], [], []>} : vector<8x8xf32>, vector<8x8xf32>, vector<8x8xf32> -> vector<8x8xf32>
    %cst_158 = arith.constant 0.000000e+00 : f32
    %328 = vector.broadcast %cst_158 : f32 to vector<8x8xf32>
    %329 = arith.cmpf oeq, %320, %328 : vector<8x8xf32>
    %cst_159 = arith.constant -1.000000e+09 : f32
    %330 = vector.broadcast %cst_159 : f32 to vector<8x8xf32>
    %331 = arith.select %329, %330, %327 : vector<8x8xi1>, vector<8x8xf32>
    %cst_160 = arith.constant dense<0xFF800000> : vector<8xf32>
    %332 = vector.multi_reduction <maximumf>, %331, %cst_160 [1] : vector<8x8xf32> to vector<8xf32>
    %333 = vector.shape_cast %332 : vector<8xf32> to vector<8x1xf32>
    %334 = vector.broadcast %333 : vector<8x1xf32> to vector<8x8xf32>
    %335 = arith.subf %331, %334 : vector<8x8xf32>
    %336 = math.exp %335 : vector<8x8xf32>
    %cst_161 = arith.constant dense<0.000000e+00> : vector<8xf32>
    %337 = vector.multi_reduction <add>, %336, %cst_161 [1] : vector<8x8xf32> to vector<8xf32>
    %338 = vector.shape_cast %337 : vector<8xf32> to vector<8x1xf32>
    %339 = tpu.reciprocal %338 {approx = true} : vector<8x1xf32> -> vector<8x1xf32>
    %340 = vector.broadcast %339 : vector<8x1xf32> to vector<8x8xf32>
    %341 = arith.mulf %336, %340 : vector<8x8xf32>
    %cst_162 = arith.constant dense<0.000000e+00> : vector<8x8xf32>
    %342 = tpu.matmul %341, %325, %cst_162 {dimension_numbers = #tpu.dot_dimension_numbers<[1], [0], [0], [1], [0, 0, 1, 1], [], []>} : vector<8x8xf32>, vector<8x8xf32>, vector<8x8xf32> -> vector<8x8xf32>
    %c0_163 = arith.constant 0 : index
    %c0_164 = arith.constant 0 : index
    %343 = vector.load %arg44[%c0_163, %c0_164] : memref<16x32xf32, #tpu.memory_space<vmem>>, vector<8x8xf32>
    tpu.vector_store %arg44[%c0_163, %c0_164], %342 {strides = array<i32>} : memref<16x32xf32, #tpu.memory_space<vmem>>, vector<8x8xf32>,
    %344 = vector.extract_strided_slice %316 {offsets = [0, 8], sizes = [8, 8], strides = [1, 1]} : vector<16x32xf32> to vector<8x8xf32>
    %cst_165 = arith.constant 0.353553385 : f32
    %345 = vector.broadcast %cst_165 : f32 to vector<8x8xf32>
    %346 = arith.mulf %344, %345 : vector<8x8xf32>
    %347 = vector.extract_strided_slice %317 {offsets = [0, 8], sizes = [8, 8], strides = [1, 1]} : vector<16x32xf32> to vector<8x8xf32>
    %348 = vector.extract_strided_slice %318 {offsets = [0, 8], sizes = [8, 8], strides = [1, 1]} : vector<16x32xf32> to vector<8x8xf32>
    %349 = tpu.transpose %347, [1, 0] : vector<8x8xf32> -> vector<8x8xf32>
    %cst_166 = arith.constant dense<0.000000e+00> : vector<8x8xf32>
    %350 = tpu.matmul %346, %349, %cst_166 {dimension_numbers = #tpu.dot_dimension_numbers<[1], [0], [0], [1], [0, 0, 1, 1], [], []>} : vector<8x8xf32>, vector<8x8xf32>, vector<8x8xf32> -> vector<8x8xf32>
    %cst_167 = arith.constant 0.000000e+00 : f32
    %351 = vector.broadcast %cst_167 : f32 to vector<8x8xf32>
    %352 = arith.cmpf oeq, %320, %351 : vector<8x8xf32>
    %cst_168 = arith.constant -1.000000e+09 : f32
    %353 = vector.broadcast %cst_168 : f32 to vector<8x8xf32>
    %354 = arith.select %352, %353, %350 : vector<8x8xi1>, vector<8x8xf32>
    %cst_169 = arith.constant dense<0xFF800000> : vector<8xf32>
    %355 = vector.multi_reduction <maximumf>, %354, %cst_169 [1] : vector<8x8xf32> to vector<8xf32>
    %356 = vector.shape_cast %355 : vector<8xf32> to vector<8x1xf32>
    %357 = vector.broadcast %356 : vector<8x1xf32> to vector<8x8xf32>
    %358 = arith.subf %354, %357 : vector<8x8xf32>
    %359 = math.exp %358 : vector<8x8xf32>
    %cst_170 = arith.constant dense<0.000000e+00> : vector<8xf32>
    %360 = vector.multi_reduction <add>, %359, %cst_170 [1] : vector<8x8xf32> to vector<8xf32>
    %361 = vector.shape_cast %360 : vector<8xf32> to vector<8x1xf32>
    %362 = tpu.reciprocal %361 {approx = true} : vector<8x1xf32> -> vector<8x1xf32>
    %363 = vector.broadcast %362 : vector<8x1xf32> to vector<8x8xf32>
    %364 = arith.mulf %359, %363 : vector<8x8xf32>
    %cst_171 = arith.constant dense<0.000000e+00> : vector<8x8xf32>
    %365 = tpu.matmul %364, %348, %cst_171 {dimension_numbers = #tpu.dot_dimension_numbers<[1], [0], [0], [1], [0, 0, 1, 1], [], []>} : vector<8x8xf32>, vector<8x8xf32>, vector<8x8xf32> -> vector<8x8xf32>
    %c0_172 = arith.constant 0 : index
    %c8_173 = arith.constant 8 : index
    %366 = vector.load %arg44[%c0_172, %c8_173] : memref<16x32xf32, #tpu.memory_space<vmem>>, vector<8x8xf32>
    tpu.vector_store %arg44[%c0_172, %c8_173], %365 {strides = array<i32>} : memref<16x32xf32, #tpu.memory_space<vmem>>, vector<8x8xf32>,
    %367 = vector.extract_strided_slice %316 {offsets = [0, 16], sizes = [8, 8], strides = [1, 1]} : vector<16x32xf32> to vector<8x8xf32>
    %cst_174 = arith.constant 0.353553385 : f32
    %368 = vector.broadcast %cst_174 : f32 to vector<8x8xf32>
    %369 = arith.mulf %367, %368 : vector<8x8xf32>
    %370 = vector.extract_strided_slice %317 {offsets = [0, 16], sizes = [8, 8], strides = [1, 1]} : vector<16x32xf32> to vector<8x8xf32>
    %371 = vector.extract_strided_slice %318 {offsets = [0, 16], sizes = [8, 8], strides = [1, 1]} : vector<16x32xf32> to vector<8x8xf32>
    %372 = tpu.transpose %370, [1, 0] : vector<8x8xf32> -> vector<8x8xf32>
    %cst_175 = arith.constant dense<0.000000e+00> : vector<8x8xf32>
    %373 = tpu.matmul %369, %372, %cst_175 {dimension_numbers = #tpu.dot_dimension_numbers<[1], [0], [0], [1], [0, 0, 1, 1], [], []>} : vector<8x8xf32>, vector<8x8xf32>, vector<8x8xf32> -> vector<8x8xf32>
    %cst_176 = arith.constant 0.000000e+00 : f32
    %374 = vector.broadcast %cst_176 : f32 to vector<8x8xf32>
    %375 = arith.cmpf oeq, %320, %374 : vector<8x8xf32>
    %cst_177 = arith.constant -1.000000e+09 : f32
    %376 = vector.broadcast %cst_177 : f32 to vector<8x8xf32>
    %377 = arith.select %375, %376, %373 : vector<8x8xi1>, vector<8x8xf32>
    %cst_178 = arith.constant dense<0xFF800000> : vector<8xf32>
    %378 = vector.multi_reduction <maximumf>, %377, %cst_178 [1] : vector<8x8xf32> to vector<8xf32>
    %379 = vector.shape_cast %378 : vector<8xf32> to vector<8x1xf32>
    %380 = vector.broadcast %379 : vector<8x1xf32> to vector<8x8xf32>
    %381 = arith.subf %377, %380 : vector<8x8xf32>
    %382 = math.exp %381 : vector<8x8xf32>
    %cst_179 = arith.constant dense<0.000000e+00> : vector<8xf32>
    %383 = vector.multi_reduction <add>, %382, %cst_179 [1] : vector<8x8xf32> to vector<8xf32>
    %384 = vector.shape_cast %383 : vector<8xf32> to vector<8x1xf32>
    %385 = tpu.reciprocal %384 {approx = true} : vector<8x1xf32> -> vector<8x1xf32>
    %386 = vector.broadcast %385 : vector<8x1xf32> to vector<8x8xf32>
    %387 = arith.mulf %382, %386 : vector<8x8xf32>
    %cst_180 = arith.constant dense<0.000000e+00> : vector<8x8xf32>
    %388 = tpu.matmul %387, %371, %cst_180 {dimension_numbers = #tpu.dot_dimension_numbers<[1], [0], [0], [1], [0, 0, 1, 1], [], []>} : vector<8x8xf32>, vector<8x8xf32>, vector<8x8xf32> -> vector<8x8xf32>
    %c0_181 = arith.constant 0 : index
    %c16_182 = arith.constant 16 : index
    %389 = vector.load %arg44[%c0_181, %c16_182] : memref<16x32xf32, #tpu.memory_space<vmem>>, vector<8x8xf32>
    tpu.vector_store %arg44[%c0_181, %c16_182], %388 {strides = array<i32>} : memref<16x32xf32, #tpu.memory_space<vmem>>, vector<8x8xf32>,
    %390 = vector.extract_strided_slice %316 {offsets = [0, 24], sizes = [8, 8], strides = [1, 1]} : vector<16x32xf32> to vector<8x8xf32>
    %cst_183 = arith.constant 0.353553385 : f32
    %391 = vector.broadcast %cst_183 : f32 to vector<8x8xf32>
    %392 = arith.mulf %390, %391 : vector<8x8xf32>
    %393 = vector.extract_strided_slice %317 {offsets = [0, 24], sizes = [8, 8], strides = [1, 1]} : vector<16x32xf32> to vector<8x8xf32>
    %394 = vector.extract_strided_slice %318 {offsets = [0, 24], sizes = [8, 8], strides = [1, 1]} : vector<16x32xf32> to vector<8x8xf32>
    %395 = tpu.transpose %393, [1, 0] : vector<8x8xf32> -> vector<8x8xf32>
    %cst_184 = arith.constant dense<0.000000e+00> : vector<8x8xf32>
    %396 = tpu.matmul %392, %395, %cst_184 {dimension_numbers = #tpu.dot_dimension_numbers<[1], [0], [0], [1], [0, 0, 1, 1], [], []>} : vector<8x8xf32>, vector<8x8xf32>, vector<8x8xf32> -> vector<8x8xf32>
    %cst_185 = arith.constant 0.000000e+00 : f32
    %397 = vector.broadcast %cst_185 : f32 to vector<8x8xf32>
    %398 = arith.cmpf oeq, %320, %397 : vector<8x8xf32>
    %cst_186 = arith.constant -1.000000e+09 : f32
    %399 = vector.broadcast %cst_186 : f32 to vector<8x8xf32>
    %400 = arith.select %398, %399, %396 : vector<8x8xi1>, vector<8x8xf32>
    %cst_187 = arith.constant dense<0xFF800000> : vector<8xf32>
    %401 = vector.multi_reduction <maximumf>, %400, %cst_187 [1] : vector<8x8xf32> to vector<8xf32>
    %402 = vector.shape_cast %401 : vector<8xf32> to vector<8x1xf32>
    %403 = vector.broadcast %402 : vector<8x1xf32> to vector<8x8xf32>
    %404 = arith.subf %400, %403 : vector<8x8xf32>
    %405 = math.exp %404 : vector<8x8xf32>
    %cst_188 = arith.constant dense<0.000000e+00> : vector<8xf32>
    %406 = vector.multi_reduction <add>, %405, %cst_188 [1] : vector<8x8xf32> to vector<8xf32>
    %407 = vector.shape_cast %406 : vector<8xf32> to vector<8x1xf32>
    %408 = tpu.reciprocal %407 {approx = true} : vector<8x1xf32> -> vector<8x1xf32>
    %409 = vector.broadcast %408 : vector<8x1xf32> to vector<8x8xf32>
    %410 = arith.mulf %405, %409 : vector<8x8xf32>
    %cst_189 = arith.constant dense<0.000000e+00> : vector<8x8xf32>
    %411 = tpu.matmul %410, %394, %cst_189 {dimension_numbers = #tpu.dot_dimension_numbers<[1], [0], [0], [1], [0, 0, 1, 1], [], []>} : vector<8x8xf32>, vector<8x8xf32>, vector<8x8xf32> -> vector<8x8xf32>
    %c0_190 = arith.constant 0 : index
    %c24_191 = arith.constant 24 : index
    %412 = vector.load %arg44[%c0_190, %c24_191] : memref<16x32xf32, #tpu.memory_space<vmem>>, vector<8x8xf32>
    tpu.vector_store %arg44[%c0_190, %c24_191], %411 {strides = array<i32>} : memref<16x32xf32, #tpu.memory_space<vmem>>, vector<8x8xf32>,
    %c1_192 = arith.constant 1 : index
    %c0_193 = arith.constant 0 : index
    %c0_194 = arith.constant 0 : index
    %413 = vector.load %arg4[%c1_192, %c0_193, %c0_194] : memref<2x8x8xf32, #tpu.memory_space<vmem>>, vector<1x8x8xf32>
    %414 = vector.shape_cast %413 : vector<1x8x8xf32> to vector<8x8xf32>
    %415 = vector.extract_strided_slice %316 {offsets = [8, 0], sizes = [8, 8], strides = [1, 1]} : vector<16x32xf32> to vector<8x8xf32>
    %cst_195 = arith.constant 0.353553385 : f32
    %416 = vector.broadcast %cst_195 : f32 to vector<8x8xf32>
    %417 = arith.mulf %415, %416 : vector<8x8xf32>
    %418 = vector.extract_strided_slice %317 {offsets = [8, 0], sizes = [8, 8], strides = [1, 1]} : vector<16x32xf32> to vector<8x8xf32>
    %419 = vector.extract_strided_slice %318 {offsets = [8, 0], sizes = [8, 8], strides = [1, 1]} : vector<16x32xf32> to vector<8x8xf32>
    %420 = tpu.transpose %418, [1, 0] : vector<8x8xf32> -> vector<8x8xf32>
    %cst_196 = arith.constant dense<0.000000e+00> : vector<8x8xf32>
    %421 = tpu.matmul %417, %420, %cst_196 {dimension_numbers = #tpu.dot_dimension_numbers<[1], [0], [0], [1], [0, 0, 1, 1], [], []>} : vector<8x8xf32>, vector<8x8xf32>, vector<8x8xf32> -> vector<8x8xf32>
    %cst_197 = arith.constant 0.000000e+00 : f32
    %422 = vector.broadcast %cst_197 : f32 to vector<8x8xf32>
    %423 = arith.cmpf oeq, %414, %422 : vector<8x8xf32>
    %cst_198 = arith.constant -1.000000e+09 : f32
    %424 = vector.broadcast %cst_198 : f32 to vector<8x8xf32>
    %425 = arith.select %423, %424, %421 : vector<8x8xi1>, vector<8x8xf32>
    %cst_199 = arith.constant dense<0xFF800000> : vector<8xf32>
    %426 = vector.multi_reduction <maximumf>, %425, %cst_199 [1] : vector<8x8xf32> to vector<8xf32>
    %427 = vector.shape_cast %426 : vector<8xf32> to vector<8x1xf32>
    %428 = vector.broadcast %427 : vector<8x1xf32> to vector<8x8xf32>
    %429 = arith.subf %425, %428 : vector<8x8xf32>
    %430 = math.exp %429 : vector<8x8xf32>
    %cst_200 = arith.constant dense<0.000000e+00> : vector<8xf32>
    %431 = vector.multi_reduction <add>, %430, %cst_200 [1] : vector<8x8xf32> to vector<8xf32>
    %432 = vector.shape_cast %431 : vector<8xf32> to vector<8x1xf32>
    %433 = tpu.reciprocal %432 {approx = true} : vector<8x1xf32> -> vector<8x1xf32>
    %434 = vector.broadcast %433 : vector<8x1xf32> to vector<8x8xf32>
    %435 = arith.mulf %430, %434 : vector<8x8xf32>
    %cst_201 = arith.constant dense<0.000000e+00> : vector<8x8xf32>
    %436 = tpu.matmul %435, %419, %cst_201 {dimension_numbers = #tpu.dot_dimension_numbers<[1], [0], [0], [1], [0, 0, 1, 1], [], []>} : vector<8x8xf32>, vector<8x8xf32>, vector<8x8xf32> -> vector<8x8xf32>
    %c8_202 = arith.constant 8 : index
    %c0_203 = arith.constant 0 : index
    %437 = vector.load %arg44[%c8_202, %c0_203] : memref<16x32xf32, #tpu.memory_space<vmem>>, vector<8x8xf32>
    tpu.vector_store %arg44[%c8_202, %c0_203], %436 {strides = array<i32>} : memref<16x32xf32, #tpu.memory_space<vmem>>, vector<8x8xf32>,
    %438 = vector.extract_strided_slice %316 {offsets = [8, 8], sizes = [8, 8], strides = [1, 1]} : vector<16x32xf32> to vector<8x8xf32>
    %cst_204 = arith.constant 0.353553385 : f32
    %439 = vector.broadcast %cst_204 : f32 to vector<8x8xf32>
    %440 = arith.mulf %438, %439 : vector<8x8xf32>
    %441 = vector.extract_strided_slice %317 {offsets = [8, 8], sizes = [8, 8], strides = [1, 1]} : vector<16x32xf32> to vector<8x8xf32>
    %442 = vector.extract_strided_slice %318 {offsets = [8, 8], sizes = [8, 8], strides = [1, 1]} : vector<16x32xf32> to vector<8x8xf32>
    %443 = tpu.transpose %441, [1, 0] : vector<8x8xf32> -> vector<8x8xf32>
    %cst_205 = arith.constant dense<0.000000e+00> : vector<8x8xf32>
    %444 = tpu.matmul %440, %443, %cst_205 {dimension_numbers = #tpu.dot_dimension_numbers<[1], [0], [0], [1], [0, 0, 1, 1], [], []>} : vector<8x8xf32>, vector<8x8xf32>, vector<8x8xf32> -> vector<8x8xf32>
    %cst_206 = arith.constant 0.000000e+00 : f32
    %445 = vector.broadcast %cst_206 : f32 to vector<8x8xf32>
    %446 = arith.cmpf oeq, %414, %445 : vector<8x8xf32>
    %cst_207 = arith.constant -1.000000e+09 : f32
    %447 = vector.broadcast %cst_207 : f32 to vector<8x8xf32>
    %448 = arith.select %446, %447, %444 : vector<8x8xi1>, vector<8x8xf32>
    %cst_208 = arith.constant dense<0xFF800000> : vector<8xf32>
    %449 = vector.multi_reduction <maximumf>, %448, %cst_208 [1] : vector<8x8xf32> to vector<8xf32>
    %450 = vector.shape_cast %449 : vector<8xf32> to vector<8x1xf32>
    %451 = vector.broadcast %450 : vector<8x1xf32> to vector<8x8xf32>
    %452 = arith.subf %448, %451 : vector<8x8xf32>
    %453 = math.exp %452 : vector<8x8xf32>
    %cst_209 = arith.constant dense<0.000000e+00> : vector<8xf32>
    %454 = vector.multi_reduction <add>, %453, %cst_209 [1] : vector<8x8xf32> to vector<8xf32>
    %455 = vector.shape_cast %454 : vector<8xf32> to vector<8x1xf32>
    %456 = tpu.reciprocal %455 {approx = true} : vector<8x1xf32> -> vector<8x1xf32>
    %457 = vector.broadcast %456 : vector<8x1xf32> to vector<8x8xf32>
    %458 = arith.mulf %453, %457 : vector<8x8xf32>
    %cst_210 = arith.constant dense<0.000000e+00> : vector<8x8xf32>
    %459 = tpu.matmul %458, %442, %cst_210 {dimension_numbers = #tpu.dot_dimension_numbers<[1], [0], [0], [1], [0, 0, 1, 1], [], []>} : vector<8x8xf32>, vector<8x8xf32>, vector<8x8xf32> -> vector<8x8xf32>
    %c8_211 = arith.constant 8 : index
    %c8_212 = arith.constant 8 : index
    %460 = vector.load %arg44[%c8_211, %c8_212] : memref<16x32xf32, #tpu.memory_space<vmem>>, vector<8x8xf32>
    tpu.vector_store %arg44[%c8_211, %c8_212], %459 {strides = array<i32>} : memref<16x32xf32, #tpu.memory_space<vmem>>, vector<8x8xf32>,
    %461 = vector.extract_strided_slice %316 {offsets = [8, 16], sizes = [8, 8], strides = [1, 1]} : vector<16x32xf32> to vector<8x8xf32>
    %cst_213 = arith.constant 0.353553385 : f32
    %462 = vector.broadcast %cst_213 : f32 to vector<8x8xf32>
    %463 = arith.mulf %461, %462 : vector<8x8xf32>
    %464 = vector.extract_strided_slice %317 {offsets = [8, 16], sizes = [8, 8], strides = [1, 1]} : vector<16x32xf32> to vector<8x8xf32>
    %465 = vector.extract_strided_slice %318 {offsets = [8, 16], sizes = [8, 8], strides = [1, 1]} : vector<16x32xf32> to vector<8x8xf32>
    %466 = tpu.transpose %464, [1, 0] : vector<8x8xf32> -> vector<8x8xf32>
    %cst_214 = arith.constant dense<0.000000e+00> : vector<8x8xf32>
    %467 = tpu.matmul %463, %466, %cst_214 {dimension_numbers = #tpu.dot_dimension_numbers<[1], [0], [0], [1], [0, 0, 1, 1], [], []>} : vector<8x8xf32>, vector<8x8xf32>, vector<8x8xf32> -> vector<8x8xf32>
    %cst_215 = arith.constant 0.000000e+00 : f32
    %468 = vector.broadcast %cst_215 : f32 to vector<8x8xf32>
    %469 = arith.cmpf oeq, %414, %468 : vector<8x8xf32>
    %cst_216 = arith.constant -1.000000e+09 : f32
    %470 = vector.broadcast %cst_216 : f32 to vector<8x8xf32>
    %471 = arith.select %469, %470, %467 : vector<8x8xi1>, vector<8x8xf32>
    %cst_217 = arith.constant dense<0xFF800000> : vector<8xf32>
    %472 = vector.multi_reduction <maximumf>, %471, %cst_217 [1] : vector<8x8xf32> to vector<8xf32>
    %473 = vector.shape_cast %472 : vector<8xf32> to vector<8x1xf32>
    %474 = vector.broadcast %473 : vector<8x1xf32> to vector<8x8xf32>
    %475 = arith.subf %471, %474 : vector<8x8xf32>
    %476 = math.exp %475 : vector<8x8xf32>
    %cst_218 = arith.constant dense<0.000000e+00> : vector<8xf32>
    %477 = vector.multi_reduction <add>, %476, %cst_218 [1] : vector<8x8xf32> to vector<8xf32>
    %478 = vector.shape_cast %477 : vector<8xf32> to vector<8x1xf32>
    %479 = tpu.reciprocal %478 {approx = true} : vector<8x1xf32> -> vector<8x1xf32>
    %480 = vector.broadcast %479 : vector<8x1xf32> to vector<8x8xf32>
    %481 = arith.mulf %476, %480 : vector<8x8xf32>
    %cst_219 = arith.constant dense<0.000000e+00> : vector<8x8xf32>
    %482 = tpu.matmul %481, %465, %cst_219 {dimension_numbers = #tpu.dot_dimension_numbers<[1], [0], [0], [1], [0, 0, 1, 1], [], []>} : vector<8x8xf32>, vector<8x8xf32>, vector<8x8xf32> -> vector<8x8xf32>
    %c8_220 = arith.constant 8 : index
    %c16_221 = arith.constant 16 : index
    %483 = vector.load %arg44[%c8_220, %c16_221] : memref<16x32xf32, #tpu.memory_space<vmem>>, vector<8x8xf32>
    tpu.vector_store %arg44[%c8_220, %c16_221], %482 {strides = array<i32>} : memref<16x32xf32, #tpu.memory_space<vmem>>, vector<8x8xf32>,
    %484 = vector.extract_strided_slice %316 {offsets = [8, 24], sizes = [8, 8], strides = [1, 1]} : vector<16x32xf32> to vector<8x8xf32>
    %cst_222 = arith.constant 0.353553385 : f32
    %485 = vector.broadcast %cst_222 : f32 to vector<8x8xf32>
    %486 = arith.mulf %484, %485 : vector<8x8xf32>
    %487 = vector.extract_strided_slice %317 {offsets = [8, 24], sizes = [8, 8], strides = [1, 1]} : vector<16x32xf32> to vector<8x8xf32>
    %488 = vector.extract_strided_slice %318 {offsets = [8, 24], sizes = [8, 8], strides = [1, 1]} : vector<16x32xf32> to vector<8x8xf32>
    %489 = tpu.transpose %487, [1, 0] : vector<8x8xf32> -> vector<8x8xf32>
    %cst_223 = arith.constant dense<0.000000e+00> : vector<8x8xf32>
    %490 = tpu.matmul %486, %489, %cst_223 {dimension_numbers = #tpu.dot_dimension_numbers<[1], [0], [0], [1], [0, 0, 1, 1], [], []>} : vector<8x8xf32>, vector<8x8xf32>, vector<8x8xf32> -> vector<8x8xf32>
    %cst_224 = arith.constant 0.000000e+00 : f32
    %491 = vector.broadcast %cst_224 : f32 to vector<8x8xf32>
    %492 = arith.cmpf oeq, %414, %491 : vector<8x8xf32>
    %cst_225 = arith.constant -1.000000e+09 : f32
    %493 = vector.broadcast %cst_225 : f32 to vector<8x8xf32>
    %494 = arith.select %492, %493, %490 : vector<8x8xi1>, vector<8x8xf32>
    %cst_226 = arith.constant dense<0xFF800000> : vector<8xf32>
    %495 = vector.multi_reduction <maximumf>, %494, %cst_226 [1] : vector<8x8xf32> to vector<8xf32>
    %496 = vector.shape_cast %495 : vector<8xf32> to vector<8x1xf32>
    %497 = vector.broadcast %496 : vector<8x1xf32> to vector<8x8xf32>
    %498 = arith.subf %494, %497 : vector<8x8xf32>
    %499 = math.exp %498 : vector<8x8xf32>
    %cst_227 = arith.constant dense<0.000000e+00> : vector<8xf32>
    %500 = vector.multi_reduction <add>, %499, %cst_227 [1] : vector<8x8xf32> to vector<8xf32>
    %501 = vector.shape_cast %500 : vector<8xf32> to vector<8x1xf32>
    %502 = tpu.reciprocal %501 {approx = true} : vector<8x1xf32> -> vector<8x1xf32>
    %503 = vector.broadcast %502 : vector<8x1xf32> to vector<8x8xf32>
    %504 = arith.mulf %499, %503 : vector<8x8xf32>
    %cst_228 = arith.constant dense<0.000000e+00> : vector<8x8xf32>
    %505 = tpu.matmul %504, %488, %cst_228 {dimension_numbers = #tpu.dot_dimension_numbers<[1], [0], [0], [1], [0, 0, 1, 1], [], []>} : vector<8x8xf32>, vector<8x8xf32>, vector<8x8xf32> -> vector<8x8xf32>
    %c8_229 = arith.constant 8 : index
    %c24_230 = arith.constant 24 : index
    %506 = vector.load %arg44[%c8_229, %c24_230] : memref<16x32xf32, #tpu.memory_space<vmem>>, vector<8x8xf32>
    tpu.vector_store %arg44[%c8_229, %c24_230], %505 {strides = array<i32>} : memref<16x32xf32, #tpu.memory_space<vmem>>, vector<8x8xf32>,
    %c0_231 = arith.constant 0 : index
    %c0_232 = arith.constant 0 : index
    %507 = vector.load %arg44[%c0_231, %c0_232] : memref<16x32xf32, #tpu.memory_space<vmem>>, vector<16x32xf32>
    %cst_233 = arith.constant dense<0.000000e+00> : vector<16x32xf32>
    %508 = tpu.matmul %507, %310, %cst_233 {dimension_numbers = #tpu.dot_dimension_numbers<[1], [0], [0], [1], [0, 0, 1, 1], [], []>} : vector<16x32xf32>, vector<32x32xf32>, vector<16x32xf32> -> vector<16x32xf32>
    %509 = vector.broadcast %312 : vector<1x32xf32> to vector<16x32xf32>
    %510 = arith.addf %508, %509 : vector<16x32xf32>
    %511 = arith.addf %278, %510 : vector<16x32xf32>
    %c1_234 = arith.constant 1 : index
    %c0_235 = arith.constant 0 : index
    %c0_236 = arith.constant 0 : index
    %512 = vector.load %arg17[%c1_234, %c0_235, %c0_236] : memref<2x1x32xf32, #tpu.memory_space<vmem>>, vector<1x1x32xf32>
    %513 = vector.shape_cast %512 : vector<1x1x32xf32> to vector<1x32xf32>
    %c1_237 = arith.constant 1 : index
    %c0_238 = arith.constant 0 : index
    %c0_239 = arith.constant 0 : index
    %514 = vector.load %arg18[%c1_237, %c0_238, %c0_239] : memref<2x1x32xf32, #tpu.memory_space<vmem>>, vector<1x1x32xf32>
    %515 = vector.shape_cast %514 : vector<1x1x32xf32> to vector<1x32xf32>
    %cst_240 = arith.constant dense<0.000000e+00> : vector<16xf32>
    %516 = vector.multi_reduction <add>, %511, %cst_240 [1] : vector<16x32xf32> to vector<16xf32>
    %517 = vector.shape_cast %516 : vector<16xf32> to vector<16x1xf32>
    %cst_241 = arith.constant 3.200000e+01 : f32
    %518 = vector.broadcast %cst_241 : f32 to vector<16x1xf32>
    %519 = arith.divf %517, %518 : vector<16x1xf32>
    %520 = vector.broadcast %519 : vector<16x1xf32> to vector<16x32xf32>
    %521 = arith.subf %511, %520 : vector<16x32xf32>
    %522 = arith.mulf %521, %521 : vector<16x32xf32>
    %cst_242 = arith.constant dense<0.000000e+00> : vector<16xf32>
    %523 = vector.multi_reduction <add>, %522, %cst_242 [1] : vector<16x32xf32> to vector<16xf32>
    %524 = vector.shape_cast %523 : vector<16xf32> to vector<16x1xf32>
    %cst_243 = arith.constant 3.100000e+01 : f32
    %525 = vector.broadcast %cst_243 : f32 to vector<16x1xf32>
    %526 = arith.divf %524, %525 : vector<16x1xf32>
    %527 = vector.broadcast %519 : vector<16x1xf32> to vector<16x32xf32>
    %528 = arith.subf %511, %527 : vector<16x32xf32>
    %529 = vector.broadcast %513 : vector<1x32xf32> to vector<16x32xf32>
    %530 = arith.mulf %529, %528 : vector<16x32xf32>
    %531 = math.sqrt %526 : vector<16x1xf32>
    %cst_244 = arith.constant 9.99999997E-7 : f32
    %532 = vector.broadcast %cst_244 : f32 to vector<16x1xf32>
    %533 = arith.addf %531, %532 : vector<16x1xf32>
    %534 = vector.broadcast %533 : vector<16x1xf32> to vector<16x32xf32>
    %535 = arith.divf %530, %534 : vector<16x32xf32>
    %536 = vector.broadcast %515 : vector<1x32xf32> to vector<16x32xf32>
    %537 = arith.addf %535, %536 : vector<16x32xf32>
    %c1_245 = arith.constant 1 : index
    %c0_246 = arith.constant 0 : index
    %c0_247 = arith.constant 0 : index
    %538 = vector.load %arg11[%c1_245, %c0_246, %c0_247] : memref<2x32x64xf32, #tpu.memory_space<vmem>>, vector<1x32x64xf32>
    %539 = vector.shape_cast %538 : vector<1x32x64xf32> to vector<32x64xf32>
    %c1_248 = arith.constant 1 : index
    %c0_249 = arith.constant 0 : index
    %c0_250 = arith.constant 0 : index
    %540 = vector.load %arg12[%c1_248, %c0_249, %c0_250] : memref<2x1x64xf32, #tpu.memory_space<vmem>>, vector<1x1x64xf32>
    %541 = vector.shape_cast %540 : vector<1x1x64xf32> to vector<1x64xf32>
    %c1_251 = arith.constant 1 : index
    %c0_252 = arith.constant 0 : index
    %c0_253 = arith.constant 0 : index
    %542 = vector.load %arg13[%c1_251, %c0_252, %c0_253] : memref<2x64x32xf32, #tpu.memory_space<vmem>>, vector<1x64x32xf32>
    %543 = vector.shape_cast %542 : vector<1x64x32xf32> to vector<64x32xf32>
    %c1_254 = arith.constant 1 : index
    %c0_255 = arith.constant 0 : index
    %c0_256 = arith.constant 0 : index
    %544 = vector.load %arg14[%c1_254, %c0_255, %c0_256] : memref<2x1x32xf32, #tpu.memory_space<vmem>>, vector<1x1x32xf32>
    %545 = vector.shape_cast %544 : vector<1x1x32xf32> to vector<1x32xf32>
    %cst_257 = arith.constant dense<0.000000e+00> : vector<16x64xf32>
    %546 = tpu.matmul %537, %539, %cst_257 {dimension_numbers = #tpu.dot_dimension_numbers<[1], [0], [0], [1], [0, 0, 1, 1], [], []>} : vector<16x32xf32>, vector<32x64xf32>, vector<16x64xf32> -> vector<16x64xf32>
    %547 = vector.broadcast %541 : vector<1x64xf32> to vector<16x64xf32>
    %548 = arith.addf %546, %547 : vector<16x64xf32>
    %cst_258 = arith.constant 0.000000e+00 : f32
    %549 = vector.broadcast %cst_258 : f32 to vector<16x64xf32>
    %550 = arith.maximumf %548, %549 : vector<16x64xf32>
    %cst_259 = arith.constant dense<0.000000e+00> : vector<16x32xf32>
    %551 = tpu.matmul %550, %543, %cst_259 {dimension_numbers = #tpu.dot_dimension_numbers<[1], [0], [0], [1], [0, 0, 1, 1], [], []>} : vector<16x64xf32>, vector<64x32xf32>, vector<16x32xf32> -> vector<16x32xf32>
    %552 = vector.broadcast %545 : vector<1x32xf32> to vector<16x32xf32>
    %553 = arith.addf %551, %552 : vector<16x32xf32>
    %554 = arith.addf %511, %553 : vector<16x32xf32>
    %c0_260 = arith.constant 0 : index
    %c0_261 = arith.constant 0 : index
    %555 = vector.load %arg37[%c0_260, %c0_261] : memref<1x32xf32, #tpu.memory_space<vmem>>, vector<1x32xf32>
    %c0_262 = arith.constant 0 : index
    %c0_263 = arith.constant 0 : index
    %556 = vector.load %arg38[%c0_262, %c0_263] : memref<1x32xf32, #tpu.memory_space<vmem>>, vector<1x32xf32>
    %cst_264 = arith.constant dense<0.000000e+00> : vector<16xf32>
    %557 = vector.multi_reduction <add>, %554, %cst_264 [1] : vector<16x32xf32> to vector<16xf32>
    %558 = vector.shape_cast %557 : vector<16xf32> to vector<16x1xf32>
    %cst_265 = arith.constant 3.200000e+01 : f32
    %559 = vector.broadcast %cst_265 : f32 to vector<16x1xf32>
    %560 = arith.divf %558, %559 : vector<16x1xf32>
    %561 = vector.broadcast %560 : vector<16x1xf32> to vector<16x32xf32>
    %562 = arith.subf %554, %561 : vector<16x32xf32>
    %563 = arith.mulf %562, %562 : vector<16x32xf32>
    %cst_266 = arith.constant dense<0.000000e+00> : vector<16xf32>
    %564 = vector.multi_reduction <add>, %563, %cst_266 [1] : vector<16x32xf32> to vector<16xf32>
    %565 = vector.shape_cast %564 : vector<16xf32> to vector<16x1xf32>
    %cst_267 = arith.constant 3.100000e+01 : f32
    %566 = vector.broadcast %cst_267 : f32 to vector<16x1xf32>
    %567 = arith.divf %565, %566 : vector<16x1xf32>
    %568 = vector.broadcast %560 : vector<16x1xf32> to vector<16x32xf32>
    %569 = arith.subf %554, %568 : vector<16x32xf32>
    %570 = vector.broadcast %555 : vector<1x32xf32> to vector<16x32xf32>
    %571 = arith.mulf %570, %569 : vector<16x32xf32>
    %572 = math.sqrt %567 : vector<16x1xf32>
    %cst_268 = arith.constant 9.99999997E-7 : f32
    %573 = vector.broadcast %cst_268 : f32 to vector<16x1xf32>
    %574 = arith.addf %572, %573 : vector<16x1xf32>
    %575 = vector.broadcast %574 : vector<16x1xf32> to vector<16x32xf32>
    %576 = arith.divf %571, %575 : vector<16x32xf32>
    %577 = vector.broadcast %556 : vector<1x32xf32> to vector<16x32xf32>
    %578 = arith.addf %576, %577 : vector<16x32xf32>
    %c0_269 = arith.constant 0 : index
    %c0_270 = arith.constant 0 : index
    %579 = vector.load %arg1[%c0_269, %c0_270] : memref<16x32xf32, #tpu.memory_space<vmem>>, vector<16x32xf32>
    %c0_271 = arith.constant 0 : index
    %c0_272 = arith.constant 0 : index
    %580 = vector.load %arg3[%c0_271, %c0_272] : memref<16x32xf32, #tpu.memory_space<vmem>>, vector<16x32xf32>
    %581 = arith.addf %579, %580 : vector<16x32xf32>
    %c0_273 = arith.constant 0 : index
    %c0_274 = arith.constant 0 : index
    %c0_275 = arith.constant 0 : index
    %582 = vector.load %arg31[%c0_273, %c0_274, %c0_275] : memref<2x1x32xf32, #tpu.memory_space<vmem>>, vector<1x1x32xf32>
    %583 = vector.shape_cast %582 : vector<1x1x32xf32> to vector<1x32xf32>
    %c0_276 = arith.constant 0 : index
    %c0_277 = arith.constant 0 : index
    %c0_278 = arith.constant 0 : index
    %584 = vector.load %arg32[%c0_276, %c0_277, %c0_278] : memref<2x1x32xf32, #tpu.memory_space<vmem>>, vector<1x1x32xf32>
    %585 = vector.shape_cast %584 : vector<1x1x32xf32> to vector<1x32xf32>
    %cst_279 = arith.constant dense<0.000000e+00> : vector<16xf32>
    %586 = vector.multi_reduction <add>, %581, %cst_279 [1] : vector<16x32xf32> to vector<16xf32>
    %587 = vector.shape_cast %586 : vector<16xf32> to vector<16x1xf32>
    %cst_280 = arith.constant 3.200000e+01 : f32
    %588 = vector.broadcast %cst_280 : f32 to vector<16x1xf32>
    %589 = arith.divf %587, %588 : vector<16x1xf32>
    %590 = vector.broadcast %589 : vector<16x1xf32> to vector<16x32xf32>
    %591 = arith.subf %581, %590 : vector<16x32xf32>
    %592 = arith.mulf %591, %591 : vector<16x32xf32>
    %cst_281 = arith.constant dense<0.000000e+00> : vector<16xf32>
    %593 = vector.multi_reduction <add>, %592, %cst_281 [1] : vector<16x32xf32> to vector<16xf32>
    %594 = vector.shape_cast %593 : vector<16xf32> to vector<16x1xf32>
    %cst_282 = arith.constant 3.100000e+01 : f32
    %595 = vector.broadcast %cst_282 : f32 to vector<16x1xf32>
    %596 = arith.divf %594, %595 : vector<16x1xf32>
    %597 = vector.broadcast %589 : vector<16x1xf32> to vector<16x32xf32>
    %598 = arith.subf %581, %597 : vector<16x32xf32>
    %599 = vector.broadcast %583 : vector<1x32xf32> to vector<16x32xf32>
    %600 = arith.mulf %599, %598 : vector<16x32xf32>
    %601 = math.sqrt %596 : vector<16x1xf32>
    %cst_283 = arith.constant 9.99999997E-7 : f32
    %602 = vector.broadcast %cst_283 : f32 to vector<16x1xf32>
    %603 = arith.addf %601, %602 : vector<16x1xf32>
    %604 = vector.broadcast %603 : vector<16x1xf32> to vector<16x32xf32>
    %605 = arith.divf %600, %604 : vector<16x32xf32>
    %606 = vector.broadcast %585 : vector<1x32xf32> to vector<16x32xf32>
    %607 = arith.addf %605, %606 : vector<16x32xf32>
    %c0_284 = arith.constant 0 : index
    %c0_285 = arith.constant 0 : index
    %c0_286 = arith.constant 0 : index
    %608 = vector.load %arg19[%c0_284, %c0_285, %c0_286] : memref<2x32x96xf32, #tpu.memory_space<vmem>>, vector<1x32x96xf32>
    %609 = vector.shape_cast %608 : vector<1x32x96xf32> to vector<32x96xf32>
    %c0_287 = arith.constant 0 : index
    %c0_288 = arith.constant 0 : index
    %c0_289 = arith.constant 0 : index
    %610 = vector.load %arg20[%c0_287, %c0_288, %c0_289] : memref<2x1x96xf32, #tpu.memory_space<vmem>>, vector<1x1x96xf32>
    %611 = vector.shape_cast %610 : vector<1x1x96xf32> to vector<1x96xf32>
    %c0_290 = arith.constant 0 : index
    %c0_291 = arith.constant 0 : index
    %c0_292 = arith.constant 0 : index
    %612 = vector.load %arg21[%c0_290, %c0_291, %c0_292] : memref<2x32x32xf32, #tpu.memory_space<vmem>>, vector<1x32x32xf32>
    %613 = vector.shape_cast %612 : vector<1x32x32xf32> to vector<32x32xf32>
    %c0_293 = arith.constant 0 : index
    %c0_294 = arith.constant 0 : index
    %c0_295 = arith.constant 0 : index
    %614 = vector.load %arg22[%c0_293, %c0_294, %c0_295] : memref<2x1x32xf32, #tpu.memory_space<vmem>>, vector<1x1x32xf32>
    %615 = vector.shape_cast %614 : vector<1x1x32xf32> to vector<1x32xf32>
    %cst_296 = arith.constant dense<0.000000e+00> : vector<16x96xf32>
    %616 = tpu.matmul %607, %609, %cst_296 {dimension_numbers = #tpu.dot_dimension_numbers<[1], [0], [0], [1], [0, 0, 1, 1], [], []>} : vector<16x32xf32>, vector<32x96xf32>, vector<16x96xf32> -> vector<16x96xf32>
    %617 = vector.broadcast %611 : vector<1x96xf32> to vector<16x96xf32>
    %618 = arith.addf %616, %617 : vector<16x96xf32>
    %619 = vector.extract_strided_slice %618 {offsets = [0, 0], sizes = [16, 32], strides = [1, 1]} : vector<16x96xf32> to vector<16x32xf32>
    %620 = vector.extract_strided_slice %618 {offsets = [0, 32], sizes = [16, 32], strides = [1, 1]} : vector<16x96xf32> to vector<16x32xf32>
    %621 = vector.extract_strided_slice %618 {offsets = [0, 64], sizes = [16, 32], strides = [1, 1]} : vector<16x96xf32> to vector<16x32xf32>
    %c0_297 = arith.constant 0 : index
    %c0_298 = arith.constant 0 : index
    %c0_299 = arith.constant 0 : index
    %622 = vector.load %arg5[%c0_297, %c0_298, %c0_299] : memref<2x8x8xf32, #tpu.memory_space<vmem>>, vector<1x8x8xf32>
    %623 = vector.shape_cast %622 : vector<1x8x8xf32> to vector<8x8xf32>
    %624 = vector.extract_strided_slice %619 {offsets = [0, 0], sizes = [8, 8], strides = [1, 1]} : vector<16x32xf32> to vector<8x8xf32>
    %cst_300 = arith.constant 0.353553385 : f32
    %625 = vector.broadcast %cst_300 : f32 to vector<8x8xf32>
    %626 = arith.mulf %624, %625 : vector<8x8xf32>
    %627 = vector.extract_strided_slice %620 {offsets = [0, 0], sizes = [8, 8], strides = [1, 1]} : vector<16x32xf32> to vector<8x8xf32>
    %628 = vector.extract_strided_slice %621 {offsets = [0, 0], sizes = [8, 8], strides = [1, 1]} : vector<16x32xf32> to vector<8x8xf32>
    %629 = tpu.transpose %627, [1, 0] : vector<8x8xf32> -> vector<8x8xf32>
    %cst_301 = arith.constant dense<0.000000e+00> : vector<8x8xf32>
    %630 = tpu.matmul %626, %629, %cst_301 {dimension_numbers = #tpu.dot_dimension_numbers<[1], [0], [0], [1], [0, 0, 1, 1], [], []>} : vector<8x8xf32>, vector<8x8xf32>, vector<8x8xf32> -> vector<8x8xf32>
    %cst_302 = arith.constant 0.000000e+00 : f32
    %631 = vector.broadcast %cst_302 : f32 to vector<8x8xf32>
    %632 = arith.cmpf oeq, %623, %631 : vector<8x8xf32>
    %cst_303 = arith.constant -1.000000e+09 : f32
    %633 = vector.broadcast %cst_303 : f32 to vector<8x8xf32>
    %634 = arith.select %632, %633, %630 : vector<8x8xi1>, vector<8x8xf32>
    %cst_304 = arith.constant dense<0xFF800000> : vector<8xf32>
    %635 = vector.multi_reduction <maximumf>, %634, %cst_304 [1] : vector<8x8xf32> to vector<8xf32>
    %636 = vector.shape_cast %635 : vector<8xf32> to vector<8x1xf32>
    %637 = vector.broadcast %636 : vector<8x1xf32> to vector<8x8xf32>
    %638 = arith.subf %634, %637 : vector<8x8xf32>
    %639 = math.exp %638 : vector<8x8xf32>
    %cst_305 = arith.constant dense<0.000000e+00> : vector<8xf32>
    %640 = vector.multi_reduction <add>, %639, %cst_305 [1] : vector<8x8xf32> to vector<8xf32>
    %641 = vector.shape_cast %640 : vector<8xf32> to vector<8x1xf32>
    %642 = tpu.reciprocal %641 {approx = true} : vector<8x1xf32> -> vector<8x1xf32>
    %643 = vector.broadcast %642 : vector<8x1xf32> to vector<8x8xf32>
    %644 = arith.mulf %639, %643 : vector<8x8xf32>
    %cst_306 = arith.constant dense<0.000000e+00> : vector<8x8xf32>
    %645 = tpu.matmul %644, %628, %cst_306 {dimension_numbers = #tpu.dot_dimension_numbers<[1], [0], [0], [1], [0, 0, 1, 1], [], []>} : vector<8x8xf32>, vector<8x8xf32>, vector<8x8xf32> -> vector<8x8xf32>
    %c0_307 = arith.constant 0 : index
    %c0_308 = arith.constant 0 : index
    %646 = vector.load %arg45[%c0_307, %c0_308] : memref<16x32xf32, #tpu.memory_space<vmem>>, vector<8x8xf32>
    tpu.vector_store %arg45[%c0_307, %c0_308], %645 {strides = array<i32>} : memref<16x32xf32, #tpu.memory_space<vmem>>, vector<8x8xf32>,
    %647 = vector.extract_strided_slice %619 {offsets = [0, 8], sizes = [8, 8], strides = [1, 1]} : vector<16x32xf32> to vector<8x8xf32>
    %cst_309 = arith.constant 0.353553385 : f32
    %648 = vector.broadcast %cst_309 : f32 to vector<8x8xf32>
    %649 = arith.mulf %647, %648 : vector<8x8xf32>
    %650 = vector.extract_strided_slice %620 {offsets = [0, 8], sizes = [8, 8], strides = [1, 1]} : vector<16x32xf32> to vector<8x8xf32>
    %651 = vector.extract_strided_slice %621 {offsets = [0, 8], sizes = [8, 8], strides = [1, 1]} : vector<16x32xf32> to vector<8x8xf32>
    %652 = tpu.transpose %650, [1, 0] : vector<8x8xf32> -> vector<8x8xf32>
    %cst_310 = arith.constant dense<0.000000e+00> : vector<8x8xf32>
    %653 = tpu.matmul %649, %652, %cst_310 {dimension_numbers = #tpu.dot_dimension_numbers<[1], [0], [0], [1], [0, 0, 1, 1], [], []>} : vector<8x8xf32>, vector<8x8xf32>, vector<8x8xf32> -> vector<8x8xf32>
    %cst_311 = arith.constant 0.000000e+00 : f32
    %654 = vector.broadcast %cst_311 : f32 to vector<8x8xf32>
    %655 = arith.cmpf oeq, %623, %654 : vector<8x8xf32>
    %cst_312 = arith.constant -1.000000e+09 : f32
    %656 = vector.broadcast %cst_312 : f32 to vector<8x8xf32>
    %657 = arith.select %655, %656, %653 : vector<8x8xi1>, vector<8x8xf32>
    %cst_313 = arith.constant dense<0xFF800000> : vector<8xf32>
    %658 = vector.multi_reduction <maximumf>, %657, %cst_313 [1] : vector<8x8xf32> to vector<8xf32>
    %659 = vector.shape_cast %658 : vector<8xf32> to vector<8x1xf32>
    %660 = vector.broadcast %659 : vector<8x1xf32> to vector<8x8xf32>
    %661 = arith.subf %657, %660 : vector<8x8xf32>
    %662 = math.exp %661 : vector<8x8xf32>
    %cst_314 = arith.constant dense<0.000000e+00> : vector<8xf32>
    %663 = vector.multi_reduction <add>, %662, %cst_314 [1] : vector<8x8xf32> to vector<8xf32>
    %664 = vector.shape_cast %663 : vector<8xf32> to vector<8x1xf32>
    %665 = tpu.reciprocal %664 {approx = true} : vector<8x1xf32> -> vector<8x1xf32>
    %666 = vector.broadcast %665 : vector<8x1xf32> to vector<8x8xf32>
    %667 = arith.mulf %662, %666 : vector<8x8xf32>
    %cst_315 = arith.constant dense<0.000000e+00> : vector<8x8xf32>
    %668 = tpu.matmul %667, %651, %cst_315 {dimension_numbers = #tpu.dot_dimension_numbers<[1], [0], [0], [1], [0, 0, 1, 1], [], []>} : vector<8x8xf32>, vector<8x8xf32>, vector<8x8xf32> -> vector<8x8xf32>
    %c0_316 = arith.constant 0 : index
    %c8_317 = arith.constant 8 : index
    %669 = vector.load %arg45[%c0_316, %c8_317] : memref<16x32xf32, #tpu.memory_space<vmem>>, vector<8x8xf32>
    tpu.vector_store %arg45[%c0_316, %c8_317], %668 {strides = array<i32>} : memref<16x32xf32, #tpu.memory_space<vmem>>, vector<8x8xf32>,
    %670 = vector.extract_strided_slice %619 {offsets = [0, 16], sizes = [8, 8], strides = [1, 1]} : vector<16x32xf32> to vector<8x8xf32>
    %cst_318 = arith.constant 0.353553385 : f32
    %671 = vector.broadcast %cst_318 : f32 to vector<8x8xf32>
    %672 = arith.mulf %670, %671 : vector<8x8xf32>
    %673 = vector.extract_strided_slice %620 {offsets = [0, 16], sizes = [8, 8], strides = [1, 1]} : vector<16x32xf32> to vector<8x8xf32>
    %674 = vector.extract_strided_slice %621 {offsets = [0, 16], sizes = [8, 8], strides = [1, 1]} : vector<16x32xf32> to vector<8x8xf32>
    %675 = tpu.transpose %673, [1, 0] : vector<8x8xf32> -> vector<8x8xf32>
    %cst_319 = arith.constant dense<0.000000e+00> : vector<8x8xf32>
    %676 = tpu.matmul %672, %675, %cst_319 {dimension_numbers = #tpu.dot_dimension_numbers<[1], [0], [0], [1], [0, 0, 1, 1], [], []>} : vector<8x8xf32>, vector<8x8xf32>, vector<8x8xf32> -> vector<8x8xf32>
    %cst_320 = arith.constant 0.000000e+00 : f32
    %677 = vector.broadcast %cst_320 : f32 to vector<8x8xf32>
    %678 = arith.cmpf oeq, %623, %677 : vector<8x8xf32>
    %cst_321 = arith.constant -1.000000e+09 : f32
    %679 = vector.broadcast %cst_321 : f32 to vector<8x8xf32>
    %680 = arith.select %678, %679, %676 : vector<8x8xi1>, vector<8x8xf32>
    %cst_322 = arith.constant dense<0xFF800000> : vector<8xf32>
    %681 = vector.multi_reduction <maximumf>, %680, %cst_322 [1] : vector<8x8xf32> to vector<8xf32>
    %682 = vector.shape_cast %681 : vector<8xf32> to vector<8x1xf32>
    %683 = vector.broadcast %682 : vector<8x1xf32> to vector<8x8xf32>
    %684 = arith.subf %680, %683 : vector<8x8xf32>
    %685 = math.exp %684 : vector<8x8xf32>
    %cst_323 = arith.constant dense<0.000000e+00> : vector<8xf32>
    %686 = vector.multi_reduction <add>, %685, %cst_323 [1] : vector<8x8xf32> to vector<8xf32>
    %687 = vector.shape_cast %686 : vector<8xf32> to vector<8x1xf32>
    %688 = tpu.reciprocal %687 {approx = true} : vector<8x1xf32> -> vector<8x1xf32>
    %689 = vector.broadcast %688 : vector<8x1xf32> to vector<8x8xf32>
    %690 = arith.mulf %685, %689 : vector<8x8xf32>
    %cst_324 = arith.constant dense<0.000000e+00> : vector<8x8xf32>
    %691 = tpu.matmul %690, %674, %cst_324 {dimension_numbers = #tpu.dot_dimension_numbers<[1], [0], [0], [1], [0, 0, 1, 1], [], []>} : vector<8x8xf32>, vector<8x8xf32>, vector<8x8xf32> -> vector<8x8xf32>
    %c0_325 = arith.constant 0 : index
    %c16_326 = arith.constant 16 : index
    %692 = vector.load %arg45[%c0_325, %c16_326] : memref<16x32xf32, #tpu.memory_space<vmem>>, vector<8x8xf32>
    tpu.vector_store %arg45[%c0_325, %c16_326], %691 {strides = array<i32>} : memref<16x32xf32, #tpu.memory_space<vmem>>, vector<8x8xf32>,
    %693 = vector.extract_strided_slice %619 {offsets = [0, 24], sizes = [8, 8], strides = [1, 1]} : vector<16x32xf32> to vector<8x8xf32>
    %cst_327 = arith.constant 0.353553385 : f32
    %694 = vector.broadcast %cst_327 : f32 to vector<8x8xf32>
    %695 = arith.mulf %693, %694 : vector<8x8xf32>
    %696 = vector.extract_strided_slice %620 {offsets = [0, 24], sizes = [8, 8], strides = [1, 1]} : vector<16x32xf32> to vector<8x8xf32>
    %697 = vector.extract_strided_slice %621 {offsets = [0, 24], sizes = [8, 8], strides = [1, 1]} : vector<16x32xf32> to vector<8x8xf32>
    %698 = tpu.transpose %696, [1, 0] : vector<8x8xf32> -> vector<8x8xf32>
    %cst_328 = arith.constant dense<0.000000e+00> : vector<8x8xf32>
    %699 = tpu.matmul %695, %698, %cst_328 {dimension_numbers = #tpu.dot_dimension_numbers<[1], [0], [0], [1], [0, 0, 1, 1], [], []>} : vector<8x8xf32>, vector<8x8xf32>, vector<8x8xf32> -> vector<8x8xf32>
    %cst_329 = arith.constant 0.000000e+00 : f32
    %700 = vector.broadcast %cst_329 : f32 to vector<8x8xf32>
    %701 = arith.cmpf oeq, %623, %700 : vector<8x8xf32>
    %cst_330 = arith.constant -1.000000e+09 : f32
    %702 = vector.broadcast %cst_330 : f32 to vector<8x8xf32>
    %703 = arith.select %701, %702, %699 : vector<8x8xi1>, vector<8x8xf32>
    %cst_331 = arith.constant dense<0xFF800000> : vector<8xf32>
    %704 = vector.multi_reduction <maximumf>, %703, %cst_331 [1] : vector<8x8xf32> to vector<8xf32>
    %705 = vector.shape_cast %704 : vector<8xf32> to vector<8x1xf32>
    %706 = vector.broadcast %705 : vector<8x1xf32> to vector<8x8xf32>
    %707 = arith.subf %703, %706 : vector<8x8xf32>
    %708 = math.exp %707 : vector<8x8xf32>
    %cst_332 = arith.constant dense<0.000000e+00> : vector<8xf32>
    %709 = vector.multi_reduction <add>, %708, %cst_332 [1] : vector<8x8xf32> to vector<8xf32>
    %710 = vector.shape_cast %709 : vector<8xf32> to vector<8x1xf32>
    %711 = tpu.reciprocal %710 {approx = true} : vector<8x1xf32> -> vector<8x1xf32>
    %712 = vector.broadcast %711 : vector<8x1xf32> to vector<8x8xf32>
    %713 = arith.mulf %708, %712 : vector<8x8xf32>
    %cst_333 = arith.constant dense<0.000000e+00> : vector<8x8xf32>
    %714 = tpu.matmul %713, %697, %cst_333 {dimension_numbers = #tpu.dot_dimension_numbers<[1], [0], [0], [1], [0, 0, 1, 1], [], []>} : vector<8x8xf32>, vector<8x8xf32>, vector<8x8xf32> -> vector<8x8xf32>
    %c0_334 = arith.constant 0 : index
    %c24_335 = arith.constant 24 : index
    %715 = vector.load %arg45[%c0_334, %c24_335] : memref<16x32xf32, #tpu.memory_space<vmem>>, vector<8x8xf32>
    tpu.vector_store %arg45[%c0_334, %c24_335], %714 {strides = array<i32>} : memref<16x32xf32, #tpu.memory_space<vmem>>, vector<8x8xf32>,
    %c1_336 = arith.constant 1 : index
    %c0_337 = arith.constant 0 : index
    %c0_338 = arith.constant 0 : index
    %716 = vector.load %arg5[%c1_336, %c0_337, %c0_338] : memref<2x8x8xf32, #tpu.memory_space<vmem>>, vector<1x8x8xf32>
    %717 = vector.shape_cast %716 : vector<1x8x8xf32> to vector<8x8xf32>
    %718 = vector.extract_strided_slice %619 {offsets = [8, 0], sizes = [8, 8], strides = [1, 1]} : vector<16x32xf32> to vector<8x8xf32>
    %cst_339 = arith.constant 0.353553385 : f32
    %719 = vector.broadcast %cst_339 : f32 to vector<8x8xf32>
    %720 = arith.mulf %718, %719 : vector<8x8xf32>
    %721 = vector.extract_strided_slice %620 {offsets = [8, 0], sizes = [8, 8], strides = [1, 1]} : vector<16x32xf32> to vector<8x8xf32>
    %722 = vector.extract_strided_slice %621 {offsets = [8, 0], sizes = [8, 8], strides = [1, 1]} : vector<16x32xf32> to vector<8x8xf32>
    %723 = tpu.transpose %721, [1, 0] : vector<8x8xf32> -> vector<8x8xf32>
    %cst_340 = arith.constant dense<0.000000e+00> : vector<8x8xf32>
    %724 = tpu.matmul %720, %723, %cst_340 {dimension_numbers = #tpu.dot_dimension_numbers<[1], [0], [0], [1], [0, 0, 1, 1], [], []>} : vector<8x8xf32>, vector<8x8xf32>, vector<8x8xf32> -> vector<8x8xf32>
    %cst_341 = arith.constant 0.000000e+00 : f32
    %725 = vector.broadcast %cst_341 : f32 to vector<8x8xf32>
    %726 = arith.cmpf oeq, %717, %725 : vector<8x8xf32>
    %cst_342 = arith.constant -1.000000e+09 : f32
    %727 = vector.broadcast %cst_342 : f32 to vector<8x8xf32>
    %728 = arith.select %726, %727, %724 : vector<8x8xi1>, vector<8x8xf32>
    %cst_343 = arith.constant dense<0xFF800000> : vector<8xf32>
    %729 = vector.multi_reduction <maximumf>, %728, %cst_343 [1] : vector<8x8xf32> to vector<8xf32>
    %730 = vector.shape_cast %729 : vector<8xf32> to vector<8x1xf32>
    %731 = vector.broadcast %730 : vector<8x1xf32> to vector<8x8xf32>
    %732 = arith.subf %728, %731 : vector<8x8xf32>
    %733 = math.exp %732 : vector<8x8xf32>
    %cst_344 = arith.constant dense<0.000000e+00> : vector<8xf32>
    %734 = vector.multi_reduction <add>, %733, %cst_344 [1] : vector<8x8xf32> to vector<8xf32>
    %735 = vector.shape_cast %734 : vector<8xf32> to vector<8x1xf32>
    %736 = tpu.reciprocal %735 {approx = true} : vector<8x1xf32> -> vector<8x1xf32>
    %737 = vector.broadcast %736 : vector<8x1xf32> to vector<8x8xf32>
    %738 = arith.mulf %733, %737 : vector<8x8xf32>
    %cst_345 = arith.constant dense<0.000000e+00> : vector<8x8xf32>
    %739 = tpu.matmul %738, %722, %cst_345 {dimension_numbers = #tpu.dot_dimension_numbers<[1], [0], [0], [1], [0, 0, 1, 1], [], []>} : vector<8x8xf32>, vector<8x8xf32>, vector<8x8xf32> -> vector<8x8xf32>
    %c8_346 = arith.constant 8 : index
    %c0_347 = arith.constant 0 : index
    %740 = vector.load %arg45[%c8_346, %c0_347] : memref<16x32xf32, #tpu.memory_space<vmem>>, vector<8x8xf32>
    tpu.vector_store %arg45[%c8_346, %c0_347], %739 {strides = array<i32>} : memref<16x32xf32, #tpu.memory_space<vmem>>, vector<8x8xf32>,
    %741 = vector.extract_strided_slice %619 {offsets = [8, 8], sizes = [8, 8], strides = [1, 1]} : vector<16x32xf32> to vector<8x8xf32>
    %cst_348 = arith.constant 0.353553385 : f32
    %742 = vector.broadcast %cst_348 : f32 to vector<8x8xf32>
    %743 = arith.mulf %741, %742 : vector<8x8xf32>
    %744 = vector.extract_strided_slice %620 {offsets = [8, 8], sizes = [8, 8], strides = [1, 1]} : vector<16x32xf32> to vector<8x8xf32>
    %745 = vector.extract_strided_slice %621 {offsets = [8, 8], sizes = [8, 8], strides = [1, 1]} : vector<16x32xf32> to vector<8x8xf32>
    %746 = tpu.transpose %744, [1, 0] : vector<8x8xf32> -> vector<8x8xf32>
    %cst_349 = arith.constant dense<0.000000e+00> : vector<8x8xf32>
    %747 = tpu.matmul %743, %746, %cst_349 {dimension_numbers = #tpu.dot_dimension_numbers<[1], [0], [0], [1], [0, 0, 1, 1], [], []>} : vector<8x8xf32>, vector<8x8xf32>, vector<8x8xf32> -> vector<8x8xf32>
    %cst_350 = arith.constant 0.000000e+00 : f32
    %748 = vector.broadcast %cst_350 : f32 to vector<8x8xf32>
    %749 = arith.cmpf oeq, %717, %748 : vector<8x8xf32>
    %cst_351 = arith.constant -1.000000e+09 : f32
    %750 = vector.broadcast %cst_351 : f32 to vector<8x8xf32>
    %751 = arith.select %749, %750, %747 : vector<8x8xi1>, vector<8x8xf32>
    %cst_352 = arith.constant dense<0xFF800000> : vector<8xf32>
    %752 = vector.multi_reduction <maximumf>, %751, %cst_352 [1] : vector<8x8xf32> to vector<8xf32>
    %753 = vector.shape_cast %752 : vector<8xf32> to vector<8x1xf32>
    %754 = vector.broadcast %753 : vector<8x1xf32> to vector<8x8xf32>
    %755 = arith.subf %751, %754 : vector<8x8xf32>
    %756 = math.exp %755 : vector<8x8xf32>
    %cst_353 = arith.constant dense<0.000000e+00> : vector<8xf32>
    %757 = vector.multi_reduction <add>, %756, %cst_353 [1] : vector<8x8xf32> to vector<8xf32>
    %758 = vector.shape_cast %757 : vector<8xf32> to vector<8x1xf32>
    %759 = tpu.reciprocal %758 {approx = true} : vector<8x1xf32> -> vector<8x1xf32>
    %760 = vector.broadcast %759 : vector<8x1xf32> to vector<8x8xf32>
    %761 = arith.mulf %756, %760 : vector<8x8xf32>
    %cst_354 = arith.constant dense<0.000000e+00> : vector<8x8xf32>
    %762 = tpu.matmul %761, %745, %cst_354 {dimension_numbers = #tpu.dot_dimension_numbers<[1], [0], [0], [1], [0, 0, 1, 1], [], []>} : vector<8x8xf32>, vector<8x8xf32>, vector<8x8xf32> -> vector<8x8xf32>
    %c8_355 = arith.constant 8 : index
    %c8_356 = arith.constant 8 : index
    %763 = vector.load %arg45[%c8_355, %c8_356] : memref<16x32xf32, #tpu.memory_space<vmem>>, vector<8x8xf32>
    tpu.vector_store %arg45[%c8_355, %c8_356], %762 {strides = array<i32>} : memref<16x32xf32, #tpu.memory_space<vmem>>, vector<8x8xf32>,
    %764 = vector.extract_strided_slice %619 {offsets = [8, 16], sizes = [8, 8], strides = [1, 1]} : vector<16x32xf32> to vector<8x8xf32>
    %cst_357 = arith.constant 0.353553385 : f32
    %765 = vector.broadcast %cst_357 : f32 to vector<8x8xf32>
    %766 = arith.mulf %764, %765 : vector<8x8xf32>
    %767 = vector.extract_strided_slice %620 {offsets = [8, 16], sizes = [8, 8], strides = [1, 1]} : vector<16x32xf32> to vector<8x8xf32>
    %768 = vector.extract_strided_slice %621 {offsets = [8, 16], sizes = [8, 8], strides = [1, 1]} : vector<16x32xf32> to vector<8x8xf32>
    %769 = tpu.transpose %767, [1, 0] : vector<8x8xf32> -> vector<8x8xf32>
    %cst_358 = arith.constant dense<0.000000e+00> : vector<8x8xf32>
    %770 = tpu.matmul %766, %769, %cst_358 {dimension_numbers = #tpu.dot_dimension_numbers<[1], [0], [0], [1], [0, 0, 1, 1], [], []>} : vector<8x8xf32>, vector<8x8xf32>, vector<8x8xf32> -> vector<8x8xf32>
    %cst_359 = arith.constant 0.000000e+00 : f32
    %771 = vector.broadcast %cst_359 : f32 to vector<8x8xf32>
    %772 = arith.cmpf oeq, %717, %771 : vector<8x8xf32>
    %cst_360 = arith.constant -1.000000e+09 : f32
    %773 = vector.broadcast %cst_360 : f32 to vector<8x8xf32>
    %774 = arith.select %772, %773, %770 : vector<8x8xi1>, vector<8x8xf32>
    %cst_361 = arith.constant dense<0xFF800000> : vector<8xf32>
    %775 = vector.multi_reduction <maximumf>, %774, %cst_361 [1] : vector<8x8xf32> to vector<8xf32>
    %776 = vector.shape_cast %775 : vector<8xf32> to vector<8x1xf32>
    %777 = vector.broadcast %776 : vector<8x1xf32> to vector<8x8xf32>
    %778 = arith.subf %774, %777 : vector<8x8xf32>
    %779 = math.exp %778 : vector<8x8xf32>
    %cst_362 = arith.constant dense<0.000000e+00> : vector<8xf32>
    %780 = vector.multi_reduction <add>, %779, %cst_362 [1] : vector<8x8xf32> to vector<8xf32>
    %781 = vector.shape_cast %780 : vector<8xf32> to vector<8x1xf32>
    %782 = tpu.reciprocal %781 {approx = true} : vector<8x1xf32> -> vector<8x1xf32>
    %783 = vector.broadcast %782 : vector<8x1xf32> to vector<8x8xf32>
    %784 = arith.mulf %779, %783 : vector<8x8xf32>
    %cst_363 = arith.constant dense<0.000000e+00> : vector<8x8xf32>
    %785 = tpu.matmul %784, %768, %cst_363 {dimension_numbers = #tpu.dot_dimension_numbers<[1], [0], [0], [1], [0, 0, 1, 1], [], []>} : vector<8x8xf32>, vector<8x8xf32>, vector<8x8xf32> -> vector<8x8xf32>
    %c8_364 = arith.constant 8 : index
    %c16_365 = arith.constant 16 : index
    %786 = vector.load %arg45[%c8_364, %c16_365] : memref<16x32xf32, #tpu.memory_space<vmem>>, vector<8x8xf32>
    tpu.vector_store %arg45[%c8_364, %c16_365], %785 {strides = array<i32>} : memref<16x32xf32, #tpu.memory_space<vmem>>, vector<8x8xf32>,
    %787 = vector.extract_strided_slice %619 {offsets = [8, 24], sizes = [8, 8], strides = [1, 1]} : vector<16x32xf32> to vector<8x8xf32>
    %cst_366 = arith.constant 0.353553385 : f32
    %788 = vector.broadcast %cst_366 : f32 to vector<8x8xf32>
    %789 = arith.mulf %787, %788 : vector<8x8xf32>
    %790 = vector.extract_strided_slice %620 {offsets = [8, 24], sizes = [8, 8], strides = [1, 1]} : vector<16x32xf32> to vector<8x8xf32>
    %791 = vector.extract_strided_slice %621 {offsets = [8, 24], sizes = [8, 8], strides = [1, 1]} : vector<16x32xf32> to vector<8x8xf32>
    %792 = tpu.transpose %790, [1, 0] : vector<8x8xf32> -> vector<8x8xf32>
    %cst_367 = arith.constant dense<0.000000e+00> : vector<8x8xf32>
    %793 = tpu.matmul %789, %792, %cst_367 {dimension_numbers = #tpu.dot_dimension_numbers<[1], [0], [0], [1], [0, 0, 1, 1], [], []>} : vector<8x8xf32>, vector<8x8xf32>, vector<8x8xf32> -> vector<8x8xf32>
    %cst_368 = arith.constant 0.000000e+00 : f32
    %794 = vector.broadcast %cst_368 : f32 to vector<8x8xf32>
    %795 = arith.cmpf oeq, %717, %794 : vector<8x8xf32>
    %cst_369 = arith.constant -1.000000e+09 : f32
    %796 = vector.broadcast %cst_369 : f32 to vector<8x8xf32>
    %797 = arith.select %795, %796, %793 : vector<8x8xi1>, vector<8x8xf32>
    %cst_370 = arith.constant dense<0xFF800000> : vector<8xf32>
    %798 = vector.multi_reduction <maximumf>, %797, %cst_370 [1] : vector<8x8xf32> to vector<8xf32>
    %799 = vector.shape_cast %798 : vector<8xf32> to vector<8x1xf32>
    %800 = vector.broadcast %799 : vector<8x1xf32> to vector<8x8xf32>
    %801 = arith.subf %797, %800 : vector<8x8xf32>
    %802 = math.exp %801 : vector<8x8xf32>
    %cst_371 = arith.constant dense<0.000000e+00> : vector<8xf32>
    %803 = vector.multi_reduction <add>, %802, %cst_371 [1] : vector<8x8xf32> to vector<8xf32>
    %804 = vector.shape_cast %803 : vector<8xf32> to vector<8x1xf32>
    %805 = tpu.reciprocal %804 {approx = true} : vector<8x1xf32> -> vector<8x1xf32>
    %806 = vector.broadcast %805 : vector<8x1xf32> to vector<8x8xf32>
    %807 = arith.mulf %802, %806 : vector<8x8xf32>
    %cst_372 = arith.constant dense<0.000000e+00> : vector<8x8xf32>
    %808 = tpu.matmul %807, %791, %cst_372 {dimension_numbers = #tpu.dot_dimension_numbers<[1], [0], [0], [1], [0, 0, 1, 1], [], []>} : vector<8x8xf32>, vector<8x8xf32>, vector<8x8xf32> -> vector<8x8xf32>
    %c8_373 = arith.constant 8 : index
    %c24_374 = arith.constant 24 : index
    %809 = vector.load %arg45[%c8_373, %c24_374] : memref<16x32xf32, #tpu.memory_space<vmem>>, vector<8x8xf32>
    tpu.vector_store %arg45[%c8_373, %c24_374], %808 {strides = array<i32>} : memref<16x32xf32, #tpu.memory_space<vmem>>, vector<8x8xf32>,
    %c0_375 = arith.constant 0 : index
    %c0_376 = arith.constant 0 : index
    %810 = vector.load %arg45[%c0_375, %c0_376] : memref<16x32xf32, #tpu.memory_space<vmem>>, vector<16x32xf32>
    %cst_377 = arith.constant dense<0.000000e+00> : vector<16x32xf32>
    %811 = tpu.matmul %810, %613, %cst_377 {dimension_numbers = #tpu.dot_dimension_numbers<[1], [0], [0], [1], [0, 0, 1, 1], [], []>} : vector<16x32xf32>, vector<32x32xf32>, vector<16x32xf32> -> vector<16x32xf32>
    %812 = vector.broadcast %615 : vector<1x32xf32> to vector<16x32xf32>
    %813 = arith.addf %811, %812 : vector<16x32xf32>
    %814 = arith.addf %581, %813 : vector<16x32xf32>
    %c0_378 = arith.constant 0 : index
    %c0_379 = arith.constant 0 : index
    %c0_380 = arith.constant 0 : index
    %815 = vector.load %arg33[%c0_378, %c0_379, %c0_380] : memref<2x1x32xf32, #tpu.memory_space<vmem>>, vector<1x1x32xf32>
    %816 = vector.shape_cast %815 : vector<1x1x32xf32> to vector<1x32xf32>
    %c0_381 = arith.constant 0 : index
    %c0_382 = arith.constant 0 : index
    %c0_383 = arith.constant 0 : index
    %817 = vector.load %arg34[%c0_381, %c0_382, %c0_383] : memref<2x1x32xf32, #tpu.memory_space<vmem>>, vector<1x1x32xf32>
    %818 = vector.shape_cast %817 : vector<1x1x32xf32> to vector<1x32xf32>
    %cst_384 = arith.constant dense<0.000000e+00> : vector<16xf32>
    %819 = vector.multi_reduction <add>, %814, %cst_384 [1] : vector<16x32xf32> to vector<16xf32>
    %820 = vector.shape_cast %819 : vector<16xf32> to vector<16x1xf32>
    %cst_385 = arith.constant 3.200000e+01 : f32
    %821 = vector.broadcast %cst_385 : f32 to vector<16x1xf32>
    %822 = arith.divf %820, %821 : vector<16x1xf32>
    %823 = vector.broadcast %822 : vector<16x1xf32> to vector<16x32xf32>
    %824 = arith.subf %814, %823 : vector<16x32xf32>
    %825 = arith.mulf %824, %824 : vector<16x32xf32>
    %cst_386 = arith.constant dense<0.000000e+00> : vector<16xf32>
    %826 = vector.multi_reduction <add>, %825, %cst_386 [1] : vector<16x32xf32> to vector<16xf32>
    %827 = vector.shape_cast %826 : vector<16xf32> to vector<16x1xf32>
    %cst_387 = arith.constant 3.100000e+01 : f32
    %828 = vector.broadcast %cst_387 : f32 to vector<16x1xf32>
    %829 = arith.divf %827, %828 : vector<16x1xf32>
    %830 = vector.broadcast %822 : vector<16x1xf32> to vector<16x32xf32>
    %831 = arith.subf %814, %830 : vector<16x32xf32>
    %832 = vector.broadcast %816 : vector<1x32xf32> to vector<16x32xf32>
    %833 = arith.mulf %832, %831 : vector<16x32xf32>
    %834 = math.sqrt %829 : vector<16x1xf32>
    %cst_388 = arith.constant 9.99999997E-7 : f32
    %835 = vector.broadcast %cst_388 : f32 to vector<16x1xf32>
    %836 = arith.addf %834, %835 : vector<16x1xf32>
    %837 = vector.broadcast %836 : vector<16x1xf32> to vector<16x32xf32>
    %838 = arith.divf %833, %837 : vector<16x32xf32>
    %839 = vector.broadcast %818 : vector<1x32xf32> to vector<16x32xf32>
    %840 = arith.addf %838, %839 : vector<16x32xf32>
    %c0_389 = arith.constant 0 : index
    %c0_390 = arith.constant 0 : index
    %c0_391 = arith.constant 0 : index
    %841 = vector.load %arg23[%c0_389, %c0_390, %c0_391] : memref<2x32x96xf32, #tpu.memory_space<vmem>>, vector<1x32x96xf32>
    %842 = vector.shape_cast %841 : vector<1x32x96xf32> to vector<32x96xf32>
    %c0_392 = arith.constant 0 : index
    %c0_393 = arith.constant 0 : index
    %c0_394 = arith.constant 0 : index
    %843 = vector.load %arg24[%c0_392, %c0_393, %c0_394] : memref<2x1x96xf32, #tpu.memory_space<vmem>>, vector<1x1x96xf32>
    %844 = vector.shape_cast %843 : vector<1x1x96xf32> to vector<1x96xf32>
    %c0_395 = arith.constant 0 : index
    %c0_396 = arith.constant 0 : index
    %c0_397 = arith.constant 0 : index
    %845 = vector.load %arg25[%c0_395, %c0_396, %c0_397] : memref<2x32x32xf32, #tpu.memory_space<vmem>>, vector<1x32x32xf32>
    %846 = vector.shape_cast %845 : vector<1x32x32xf32> to vector<32x32xf32>
    %c0_398 = arith.constant 0 : index
    %c0_399 = arith.constant 0 : index
    %c0_400 = arith.constant 0 : index
    %847 = vector.load %arg26[%c0_398, %c0_399, %c0_400] : memref<2x1x32xf32, #tpu.memory_space<vmem>>, vector<1x1x32xf32>
    %848 = vector.shape_cast %847 : vector<1x1x32xf32> to vector<1x32xf32>
    %849 = vector.extract_strided_slice %842 {offsets = [0, 0], sizes = [32, 32], strides = [1, 1]} : vector<32x96xf32> to vector<32x32xf32>
    %cst_401 = arith.constant dense<0.000000e+00> : vector<16x32xf32>
    %850 = tpu.matmul %840, %849, %cst_401 {dimension_numbers = #tpu.dot_dimension_numbers<[1], [0], [0], [1], [0, 0, 1, 1], [], []>} : vector<16x32xf32>, vector<32x32xf32>, vector<16x32xf32> -> vector<16x32xf32>
    %851 = vector.extract_strided_slice %844 {offsets = [0, 0], sizes = [1, 32], strides = [1, 1]} : vector<1x96xf32> to vector<1x32xf32>
    %852 = vector.broadcast %851 : vector<1x32xf32> to vector<16x32xf32>
    %853 = arith.addf %850, %852 : vector<16x32xf32>
    %854 = vector.extract_strided_slice %842 {offsets = [0, 32], sizes = [32, 64], strides = [1, 1]} : vector<32x96xf32> to vector<32x64xf32>
    %cst_402 = arith.constant dense<0.000000e+00> : vector<16x64xf32>
    %855 = tpu.matmul %578, %854, %cst_402 {dimension_numbers = #tpu.dot_dimension_numbers<[1], [0], [0], [1], [0, 0, 1, 1], [], []>} : vector<16x32xf32>, vector<32x64xf32>, vector<16x64xf32> -> vector<16x64xf32>
    %856 = vector.extract_strided_slice %844 {offsets = [0, 32], sizes = [1, 64], strides = [1, 1]} : vector<1x96xf32> to vector<1x64xf32>
    %857 = vector.broadcast %856 : vector<1x64xf32> to vector<16x64xf32>
    %858 = arith.addf %855, %857 : vector<16x64xf32>
    %859 = vector.extract_strided_slice %858 {offsets = [0, 0], sizes = [16, 32], strides = [1, 1]} : vector<16x64xf32> to vector<16x32xf32>
    %860 = vector.extract_strided_slice %858 {offsets = [0, 32], sizes = [16, 32], strides = [1, 1]} : vector<16x64xf32> to vector<16x32xf32>
    %c0_403 = arith.constant 0 : index
    %c0_404 = arith.constant 0 : index
    %c0_405 = arith.constant 0 : index
    %861 = vector.load %arg6[%c0_403, %c0_404, %c0_405] : memref<2x8x8xf32, #tpu.memory_space<vmem>>, vector<1x8x8xf32>
    %862 = vector.shape_cast %861 : vector<1x8x8xf32> to vector<8x8xf32>
    %863 = vector.extract_strided_slice %853 {offsets = [0, 0], sizes = [8, 8], strides = [1, 1]} : vector<16x32xf32> to vector<8x8xf32>
    %cst_406 = arith.constant 0.353553385 : f32
    %864 = vector.broadcast %cst_406 : f32 to vector<8x8xf32>
    %865 = arith.mulf %863, %864 : vector<8x8xf32>
    %866 = vector.extract_strided_slice %859 {offsets = [0, 0], sizes = [8, 8], strides = [1, 1]} : vector<16x32xf32> to vector<8x8xf32>
    %867 = vector.extract_strided_slice %860 {offsets = [0, 0], sizes = [8, 8], strides = [1, 1]} : vector<16x32xf32> to vector<8x8xf32>
    %868 = tpu.transpose %866, [1, 0] : vector<8x8xf32> -> vector<8x8xf32>
    %cst_407 = arith.constant dense<0.000000e+00> : vector<8x8xf32>
    %869 = tpu.matmul %865, %868, %cst_407 {dimension_numbers = #tpu.dot_dimension_numbers<[1], [0], [0], [1], [0, 0, 1, 1], [], []>} : vector<8x8xf32>, vector<8x8xf32>, vector<8x8xf32> -> vector<8x8xf32>
    %cst_408 = arith.constant 0.000000e+00 : f32
    %870 = vector.broadcast %cst_408 : f32 to vector<8x8xf32>
    %871 = arith.cmpf oeq, %862, %870 : vector<8x8xf32>
    %cst_409 = arith.constant -1.000000e+09 : f32
    %872 = vector.broadcast %cst_409 : f32 to vector<8x8xf32>
    %873 = arith.select %871, %872, %869 : vector<8x8xi1>, vector<8x8xf32>
    %cst_410 = arith.constant dense<0xFF800000> : vector<8xf32>
    %874 = vector.multi_reduction <maximumf>, %873, %cst_410 [1] : vector<8x8xf32> to vector<8xf32>
    %875 = vector.shape_cast %874 : vector<8xf32> to vector<8x1xf32>
    %876 = vector.broadcast %875 : vector<8x1xf32> to vector<8x8xf32>
    %877 = arith.subf %873, %876 : vector<8x8xf32>
    %878 = math.exp %877 : vector<8x8xf32>
    %cst_411 = arith.constant dense<0.000000e+00> : vector<8xf32>
    %879 = vector.multi_reduction <add>, %878, %cst_411 [1] : vector<8x8xf32> to vector<8xf32>
    %880 = vector.shape_cast %879 : vector<8xf32> to vector<8x1xf32>
    %881 = tpu.reciprocal %880 {approx = true} : vector<8x1xf32> -> vector<8x1xf32>
    %882 = vector.broadcast %881 : vector<8x1xf32> to vector<8x8xf32>
    %883 = arith.mulf %878, %882 : vector<8x8xf32>
    %cst_412 = arith.constant dense<0.000000e+00> : vector<8x8xf32>
    %884 = tpu.matmul %883, %867, %cst_412 {dimension_numbers = #tpu.dot_dimension_numbers<[1], [0], [0], [1], [0, 0, 1, 1], [], []>} : vector<8x8xf32>, vector<8x8xf32>, vector<8x8xf32> -> vector<8x8xf32>
    %c0_413 = arith.constant 0 : index
    %c0_414 = arith.constant 0 : index
    %885 = vector.load %arg45[%c0_413, %c0_414] : memref<16x32xf32, #tpu.memory_space<vmem>>, vector<8x8xf32>
    tpu.vector_store %arg45[%c0_413, %c0_414], %884 {strides = array<i32>} : memref<16x32xf32, #tpu.memory_space<vmem>>, vector<8x8xf32>,
    %886 = vector.extract_strided_slice %853 {offsets = [0, 8], sizes = [8, 8], strides = [1, 1]} : vector<16x32xf32> to vector<8x8xf32>
    %cst_415 = arith.constant 0.353553385 : f32
    %887 = vector.broadcast %cst_415 : f32 to vector<8x8xf32>
    %888 = arith.mulf %886, %887 : vector<8x8xf32>
    %889 = vector.extract_strided_slice %859 {offsets = [0, 8], sizes = [8, 8], strides = [1, 1]} : vector<16x32xf32> to vector<8x8xf32>
    %890 = vector.extract_strided_slice %860 {offsets = [0, 8], sizes = [8, 8], strides = [1, 1]} : vector<16x32xf32> to vector<8x8xf32>
    %891 = tpu.transpose %889, [1, 0] : vector<8x8xf32> -> vector<8x8xf32>
    %cst_416 = arith.constant dense<0.000000e+00> : vector<8x8xf32>
    %892 = tpu.matmul %888, %891, %cst_416 {dimension_numbers = #tpu.dot_dimension_numbers<[1], [0], [0], [1], [0, 0, 1, 1], [], []>} : vector<8x8xf32>, vector<8x8xf32>, vector<8x8xf32> -> vector<8x8xf32>
    %cst_417 = arith.constant 0.000000e+00 : f32
    %893 = vector.broadcast %cst_417 : f32 to vector<8x8xf32>
    %894 = arith.cmpf oeq, %862, %893 : vector<8x8xf32>
    %cst_418 = arith.constant -1.000000e+09 : f32
    %895 = vector.broadcast %cst_418 : f32 to vector<8x8xf32>
    %896 = arith.select %894, %895, %892 : vector<8x8xi1>, vector<8x8xf32>
    %cst_419 = arith.constant dense<0xFF800000> : vector<8xf32>
    %897 = vector.multi_reduction <maximumf>, %896, %cst_419 [1] : vector<8x8xf32> to vector<8xf32>
    %898 = vector.shape_cast %897 : vector<8xf32> to vector<8x1xf32>
    %899 = vector.broadcast %898 : vector<8x1xf32> to vector<8x8xf32>
    %900 = arith.subf %896, %899 : vector<8x8xf32>
    %901 = math.exp %900 : vector<8x8xf32>
    %cst_420 = arith.constant dense<0.000000e+00> : vector<8xf32>
    %902 = vector.multi_reduction <add>, %901, %cst_420 [1] : vector<8x8xf32> to vector<8xf32>
    %903 = vector.shape_cast %902 : vector<8xf32> to vector<8x1xf32>
    %904 = tpu.reciprocal %903 {approx = true} : vector<8x1xf32> -> vector<8x1xf32>
    %905 = vector.broadcast %904 : vector<8x1xf32> to vector<8x8xf32>
    %906 = arith.mulf %901, %905 : vector<8x8xf32>
    %cst_421 = arith.constant dense<0.000000e+00> : vector<8x8xf32>
    %907 = tpu.matmul %906, %890, %cst_421 {dimension_numbers = #tpu.dot_dimension_numbers<[1], [0], [0], [1], [0, 0, 1, 1], [], []>} : vector<8x8xf32>, vector<8x8xf32>, vector<8x8xf32> -> vector<8x8xf32>
    %c0_422 = arith.constant 0 : index
    %c8_423 = arith.constant 8 : index
    %908 = vector.load %arg45[%c0_422, %c8_423] : memref<16x32xf32, #tpu.memory_space<vmem>>, vector<8x8xf32>
    tpu.vector_store %arg45[%c0_422, %c8_423], %907 {strides = array<i32>} : memref<16x32xf32, #tpu.memory_space<vmem>>, vector<8x8xf32>,
    %909 = vector.extract_strided_slice %853 {offsets = [0, 16], sizes = [8, 8], strides = [1, 1]} : vector<16x32xf32> to vector<8x8xf32>
    %cst_424 = arith.constant 0.353553385 : f32
    %910 = vector.broadcast %cst_424 : f32 to vector<8x8xf32>
    %911 = arith.mulf %909, %910 : vector<8x8xf32>
    %912 = vector.extract_strided_slice %859 {offsets = [0, 16], sizes = [8, 8], strides = [1, 1]} : vector<16x32xf32> to vector<8x8xf32>
    %913 = vector.extract_strided_slice %860 {offsets = [0, 16], sizes = [8, 8], strides = [1, 1]} : vector<16x32xf32> to vector<8x8xf32>
    %914 = tpu.transpose %912, [1, 0] : vector<8x8xf32> -> vector<8x8xf32>
    %cst_425 = arith.constant dense<0.000000e+00> : vector<8x8xf32>
    %915 = tpu.matmul %911, %914, %cst_425 {dimension_numbers = #tpu.dot_dimension_numbers<[1], [0], [0], [1], [0, 0, 1, 1], [], []>} : vector<8x8xf32>, vector<8x8xf32>, vector<8x8xf32> -> vector<8x8xf32>
    %cst_426 = arith.constant 0.000000e+00 : f32
    %916 = vector.broadcast %cst_426 : f32 to vector<8x8xf32>
    %917 = arith.cmpf oeq, %862, %916 : vector<8x8xf32>
    %cst_427 = arith.constant -1.000000e+09 : f32
    %918 = vector.broadcast %cst_427 : f32 to vector<8x8xf32>
    %919 = arith.select %917, %918, %915 : vector<8x8xi1>, vector<8x8xf32>
    %cst_428 = arith.constant dense<0xFF800000> : vector<8xf32>
    %920 = vector.multi_reduction <maximumf>, %919, %cst_428 [1] : vector<8x8xf32> to vector<8xf32>
    %921 = vector.shape_cast %920 : vector<8xf32> to vector<8x1xf32>
    %922 = vector.broadcast %921 : vector<8x1xf32> to vector<8x8xf32>
    %923 = arith.subf %919, %922 : vector<8x8xf32>
    %924 = math.exp %923 : vector<8x8xf32>
    %cst_429 = arith.constant dense<0.000000e+00> : vector<8xf32>
    %925 = vector.multi_reduction <add>, %924, %cst_429 [1] : vector<8x8xf32> to vector<8xf32>
    %926 = vector.shape_cast %925 : vector<8xf32> to vector<8x1xf32>
    %927 = tpu.reciprocal %926 {approx = true} : vector<8x1xf32> -> vector<8x1xf32>
    %928 = vector.broadcast %927 : vector<8x1xf32> to vector<8x8xf32>
    %929 = arith.mulf %924, %928 : vector<8x8xf32>
    %cst_430 = arith.constant dense<0.000000e+00> : vector<8x8xf32>
    %930 = tpu.matmul %929, %913, %cst_430 {dimension_numbers = #tpu.dot_dimension_numbers<[1], [0], [0], [1], [0, 0, 1, 1], [], []>} : vector<8x8xf32>, vector<8x8xf32>, vector<8x8xf32> -> vector<8x8xf32>
    %c0_431 = arith.constant 0 : index
    %c16_432 = arith.constant 16 : index
    %931 = vector.load %arg45[%c0_431, %c16_432] : memref<16x32xf32, #tpu.memory_space<vmem>>, vector<8x8xf32>
    tpu.vector_store %arg45[%c0_431, %c16_432], %930 {strides = array<i32>} : memref<16x32xf32, #tpu.memory_space<vmem>>, vector<8x8xf32>,
    %932 = vector.extract_strided_slice %853 {offsets = [0, 24], sizes = [8, 8], strides = [1, 1]} : vector<16x32xf32> to vector<8x8xf32>
    %cst_433 = arith.constant 0.353553385 : f32
    %933 = vector.broadcast %cst_433 : f32 to vector<8x8xf32>
    %934 = arith.mulf %932, %933 : vector<8x8xf32>
    %935 = vector.extract_strided_slice %859 {offsets = [0, 24], sizes = [8, 8], strides = [1, 1]} : vector<16x32xf32> to vector<8x8xf32>
    %936 = vector.extract_strided_slice %860 {offsets = [0, 24], sizes = [8, 8], strides = [1, 1]} : vector<16x32xf32> to vector<8x8xf32>
    %937 = tpu.transpose %935, [1, 0] : vector<8x8xf32> -> vector<8x8xf32>
    %cst_434 = arith.constant dense<0.000000e+00> : vector<8x8xf32>
    %938 = tpu.matmul %934, %937, %cst_434 {dimension_numbers = #tpu.dot_dimension_numbers<[1], [0], [0], [1], [0, 0, 1, 1], [], []>} : vector<8x8xf32>, vector<8x8xf32>, vector<8x8xf32> -> vector<8x8xf32>
    %cst_435 = arith.constant 0.000000e+00 : f32
    %939 = vector.broadcast %cst_435 : f32 to vector<8x8xf32>
    %940 = arith.cmpf oeq, %862, %939 : vector<8x8xf32>
    %cst_436 = arith.constant -1.000000e+09 : f32
    %941 = vector.broadcast %cst_436 : f32 to vector<8x8xf32>
    %942 = arith.select %940, %941, %938 : vector<8x8xi1>, vector<8x8xf32>
    %cst_437 = arith.constant dense<0xFF800000> : vector<8xf32>
    %943 = vector.multi_reduction <maximumf>, %942, %cst_437 [1] : vector<8x8xf32> to vector<8xf32>
    %944 = vector.shape_cast %943 : vector<8xf32> to vector<8x1xf32>
    %945 = vector.broadcast %944 : vector<8x1xf32> to vector<8x8xf32>
    %946 = arith.subf %942, %945 : vector<8x8xf32>
    %947 = math.exp %946 : vector<8x8xf32>
    %cst_438 = arith.constant dense<0.000000e+00> : vector<8xf32>
    %948 = vector.multi_reduction <add>, %947, %cst_438 [1] : vector<8x8xf32> to vector<8xf32>
    %949 = vector.shape_cast %948 : vector<8xf32> to vector<8x1xf32>
    %950 = tpu.reciprocal %949 {approx = true} : vector<8x1xf32> -> vector<8x1xf32>
    %951 = vector.broadcast %950 : vector<8x1xf32> to vector<8x8xf32>
    %952 = arith.mulf %947, %951 : vector<8x8xf32>
    %cst_439 = arith.constant dense<0.000000e+00> : vector<8x8xf32>
    %953 = tpu.matmul %952, %936, %cst_439 {dimension_numbers = #tpu.dot_dimension_numbers<[1], [0], [0], [1], [0, 0, 1, 1], [], []>} : vector<8x8xf32>, vector<8x8xf32>, vector<8x8xf32> -> vector<8x8xf32>
    %c0_440 = arith.constant 0 : index
    %c24_441 = arith.constant 24 : index
    %954 = vector.load %arg45[%c0_440, %c24_441] : memref<16x32xf32, #tpu.memory_space<vmem>>, vector<8x8xf32>
    tpu.vector_store %arg45[%c0_440, %c24_441], %953 {strides = array<i32>} : memref<16x32xf32, #tpu.memory_space<vmem>>, vector<8x8xf32>,
    %c1_442 = arith.constant 1 : index
    %c0_443 = arith.constant 0 : index
    %c0_444 = arith.constant 0 : index
    %955 = vector.load %arg6[%c1_442, %c0_443, %c0_444] : memref<2x8x8xf32, #tpu.memory_space<vmem>>, vector<1x8x8xf32>
    %956 = vector.shape_cast %955 : vector<1x8x8xf32> to vector<8x8xf32>
    %957 = vector.extract_strided_slice %853 {offsets = [8, 0], sizes = [8, 8], strides = [1, 1]} : vector<16x32xf32> to vector<8x8xf32>
    %cst_445 = arith.constant 0.353553385 : f32
    %958 = vector.broadcast %cst_445 : f32 to vector<8x8xf32>
    %959 = arith.mulf %957, %958 : vector<8x8xf32>
    %960 = vector.extract_strided_slice %859 {offsets = [8, 0], sizes = [8, 8], strides = [1, 1]} : vector<16x32xf32> to vector<8x8xf32>
    %961 = vector.extract_strided_slice %860 {offsets = [8, 0], sizes = [8, 8], strides = [1, 1]} : vector<16x32xf32> to vector<8x8xf32>
    %962 = tpu.transpose %960, [1, 0] : vector<8x8xf32> -> vector<8x8xf32>
    %cst_446 = arith.constant dense<0.000000e+00> : vector<8x8xf32>
    %963 = tpu.matmul %959, %962, %cst_446 {dimension_numbers = #tpu.dot_dimension_numbers<[1], [0], [0], [1], [0, 0, 1, 1], [], []>} : vector<8x8xf32>, vector<8x8xf32>, vector<8x8xf32> -> vector<8x8xf32>
    %cst_447 = arith.constant 0.000000e+00 : f32
    %964 = vector.broadcast %cst_447 : f32 to vector<8x8xf32>
    %965 = arith.cmpf oeq, %956, %964 : vector<8x8xf32>
    %cst_448 = arith.constant -1.000000e+09 : f32
    %966 = vector.broadcast %cst_448 : f32 to vector<8x8xf32>
    %967 = arith.select %965, %966, %963 : vector<8x8xi1>, vector<8x8xf32>
    %cst_449 = arith.constant dense<0xFF800000> : vector<8xf32>
    %968 = vector.multi_reduction <maximumf>, %967, %cst_449 [1] : vector<8x8xf32> to vector<8xf32>
    %969 = vector.shape_cast %968 : vector<8xf32> to vector<8x1xf32>
    %970 = vector.broadcast %969 : vector<8x1xf32> to vector<8x8xf32>
    %971 = arith.subf %967, %970 : vector<8x8xf32>
    %972 = math.exp %971 : vector<8x8xf32>
    %cst_450 = arith.constant dense<0.000000e+00> : vector<8xf32>
    %973 = vector.multi_reduction <add>, %972, %cst_450 [1] : vector<8x8xf32> to vector<8xf32>
    %974 = vector.shape_cast %973 : vector<8xf32> to vector<8x1xf32>
    %975 = tpu.reciprocal %974 {approx = true} : vector<8x1xf32> -> vector<8x1xf32>
    %976 = vector.broadcast %975 : vector<8x1xf32> to vector<8x8xf32>
    %977 = arith.mulf %972, %976 : vector<8x8xf32>
    %cst_451 = arith.constant dense<0.000000e+00> : vector<8x8xf32>
    %978 = tpu.matmul %977, %961, %cst_451 {dimension_numbers = #tpu.dot_dimension_numbers<[1], [0], [0], [1], [0, 0, 1, 1], [], []>} : vector<8x8xf32>, vector<8x8xf32>, vector<8x8xf32> -> vector<8x8xf32>
    %c8_452 = arith.constant 8 : index
    %c0_453 = arith.constant 0 : index
    %979 = vector.load %arg45[%c8_452, %c0_453] : memref<16x32xf32, #tpu.memory_space<vmem>>, vector<8x8xf32>
    tpu.vector_store %arg45[%c8_452, %c0_453], %978 {strides = array<i32>} : memref<16x32xf32, #tpu.memory_space<vmem>>, vector<8x8xf32>,
    %980 = vector.extract_strided_slice %853 {offsets = [8, 8], sizes = [8, 8], strides = [1, 1]} : vector<16x32xf32> to vector<8x8xf32>
    %cst_454 = arith.constant 0.353553385 : f32
    %981 = vector.broadcast %cst_454 : f32 to vector<8x8xf32>
    %982 = arith.mulf %980, %981 : vector<8x8xf32>
    %983 = vector.extract_strided_slice %859 {offsets = [8, 8], sizes = [8, 8], strides = [1, 1]} : vector<16x32xf32> to vector<8x8xf32>
    %984 = vector.extract_strided_slice %860 {offsets = [8, 8], sizes = [8, 8], strides = [1, 1]} : vector<16x32xf32> to vector<8x8xf32>
    %985 = tpu.transpose %983, [1, 0] : vector<8x8xf32> -> vector<8x8xf32>
    %cst_455 = arith.constant dense<0.000000e+00> : vector<8x8xf32>
    %986 = tpu.matmul %982, %985, %cst_455 {dimension_numbers = #tpu.dot_dimension_numbers<[1], [0], [0], [1], [0, 0, 1, 1], [], []>} : vector<8x8xf32>, vector<8x8xf32>, vector<8x8xf32> -> vector<8x8xf32>
    %cst_456 = arith.constant 0.000000e+00 : f32
    %987 = vector.broadcast %cst_456 : f32 to vector<8x8xf32>
    %988 = arith.cmpf oeq, %956, %987 : vector<8x8xf32>
    %cst_457 = arith.constant -1.000000e+09 : f32
    %989 = vector.broadcast %cst_457 : f32 to vector<8x8xf32>
    %990 = arith.select %988, %989, %986 : vector<8x8xi1>, vector<8x8xf32>
    %cst_458 = arith.constant dense<0xFF800000> : vector<8xf32>
    %991 = vector.multi_reduction <maximumf>, %990, %cst_458 [1] : vector<8x8xf32> to vector<8xf32>
    %992 = vector.shape_cast %991 : vector<8xf32> to vector<8x1xf32>
    %993 = vector.broadcast %992 : vector<8x1xf32> to vector<8x8xf32>
    %994 = arith.subf %990, %993 : vector<8x8xf32>
    %995 = math.exp %994 : vector<8x8xf32>
    %cst_459 = arith.constant dense<0.000000e+00> : vector<8xf32>
    %996 = vector.multi_reduction <add>, %995, %cst_459 [1] : vector<8x8xf32> to vector<8xf32>
    %997 = vector.shape_cast %996 : vector<8xf32> to vector<8x1xf32>
    %998 = tpu.reciprocal %997 {approx = true} : vector<8x1xf32> -> vector<8x1xf32>
    %999 = vector.broadcast %998 : vector<8x1xf32> to vector<8x8xf32>
    %1000 = arith.mulf %995, %999 : vector<8x8xf32>
    %cst_460 = arith.constant dense<0.000000e+00> : vector<8x8xf32>
    %1001 = tpu.matmul %1000, %984, %cst_460 {dimension_numbers = #tpu.dot_dimension_numbers<[1], [0], [0], [1], [0, 0, 1, 1], [], []>} : vector<8x8xf32>, vector<8x8xf32>, vector<8x8xf32> -> vector<8x8xf32>
    %c8_461 = arith.constant 8 : index
    %c8_462 = arith.constant 8 : index
    %1002 = vector.load %arg45[%c8_461, %c8_462] : memref<16x32xf32, #tpu.memory_space<vmem>>, vector<8x8xf32>
    tpu.vector_store %arg45[%c8_461, %c8_462], %1001 {strides = array<i32>} : memref<16x32xf32, #tpu.memory_space<vmem>>, vector<8x8xf32>,
    %1003 = vector.extract_strided_slice %853 {offsets = [8, 16], sizes = [8, 8], strides = [1, 1]} : vector<16x32xf32> to vector<8x8xf32>
    %cst_463 = arith.constant 0.353553385 : f32
    %1004 = vector.broadcast %cst_463 : f32 to vector<8x8xf32>
    %1005 = arith.mulf %1003, %1004 : vector<8x8xf32>
    %1006 = vector.extract_strided_slice %859 {offsets = [8, 16], sizes = [8, 8], strides = [1, 1]} : vector<16x32xf32> to vector<8x8xf32>
    %1007 = vector.extract_strided_slice %860 {offsets = [8, 16], sizes = [8, 8], strides = [1, 1]} : vector<16x32xf32> to vector<8x8xf32>
    %1008 = tpu.transpose %1006, [1, 0] : vector<8x8xf32> -> vector<8x8xf32>
    %cst_464 = arith.constant dense<0.000000e+00> : vector<8x8xf32>
    %1009 = tpu.matmul %1005, %1008, %cst_464 {dimension_numbers = #tpu.dot_dimension_numbers<[1], [0], [0], [1], [0, 0, 1, 1], [], []>} : vector<8x8xf32>, vector<8x8xf32>, vector<8x8xf32> -> vector<8x8xf32>
    %cst_465 = arith.constant 0.000000e+00 : f32
    %1010 = vector.broadcast %cst_465 : f32 to vector<8x8xf32>
    %1011 = arith.cmpf oeq, %956, %1010 : vector<8x8xf32>
    %cst_466 = arith.constant -1.000000e+09 : f32
    %1012 = vector.broadcast %cst_466 : f32 to vector<8x8xf32>
    %1013 = arith.select %1011, %1012, %1009 : vector<8x8xi1>, vector<8x8xf32>
    %cst_467 = arith.constant dense<0xFF800000> : vector<8xf32>
    %1014 = vector.multi_reduction <maximumf>, %1013, %cst_467 [1] : vector<8x8xf32> to vector<8xf32>
    %1015 = vector.shape_cast %1014 : vector<8xf32> to vector<8x1xf32>
    %1016 = vector.broadcast %1015 : vector<8x1xf32> to vector<8x8xf32>
    %1017 = arith.subf %1013, %1016 : vector<8x8xf32>
    %1018 = math.exp %1017 : vector<8x8xf32>
    %cst_468 = arith.constant dense<0.000000e+00> : vector<8xf32>
    %1019 = vector.multi_reduction <add>, %1018, %cst_468 [1] : vector<8x8xf32> to vector<8xf32>
    %1020 = vector.shape_cast %1019 : vector<8xf32> to vector<8x1xf32>
    %1021 = tpu.reciprocal %1020 {approx = true} : vector<8x1xf32> -> vector<8x1xf32>
    %1022 = vector.broadcast %1021 : vector<8x1xf32> to vector<8x8xf32>
    %1023 = arith.mulf %1018, %1022 : vector<8x8xf32>
    %cst_469 = arith.constant dense<0.000000e+00> : vector<8x8xf32>
    %1024 = tpu.matmul %1023, %1007, %cst_469 {dimension_numbers = #tpu.dot_dimension_numbers<[1], [0], [0], [1], [0, 0, 1, 1], [], []>} : vector<8x8xf32>, vector<8x8xf32>, vector<8x8xf32> -> vector<8x8xf32>
    %c8_470 = arith.constant 8 : index
    %c16_471 = arith.constant 16 : index
    %1025 = vector.load %arg45[%c8_470, %c16_471] : memref<16x32xf32, #tpu.memory_space<vmem>>, vector<8x8xf32>
    tpu.vector_store %arg45[%c8_470, %c16_471], %1024 {strides = array<i32>} : memref<16x32xf32, #tpu.memory_space<vmem>>, vector<8x8xf32>,
    %1026 = vector.extract_strided_slice %853 {offsets = [8, 24], sizes = [8, 8], strides = [1, 1]} : vector<16x32xf32> to vector<8x8xf32>
    %cst_472 = arith.constant 0.353553385 : f32
    %1027 = vector.broadcast %cst_472 : f32 to vector<8x8xf32>
    %1028 = arith.mulf %1026, %1027 : vector<8x8xf32>
    %1029 = vector.extract_strided_slice %859 {offsets = [8, 24], sizes = [8, 8], strides = [1, 1]} : vector<16x32xf32> to vector<8x8xf32>
    %1030 = vector.extract_strided_slice %860 {offsets = [8, 24], sizes = [8, 8], strides = [1, 1]} : vector<16x32xf32> to vector<8x8xf32>
    %1031 = tpu.transpose %1029, [1, 0] : vector<8x8xf32> -> vector<8x8xf32>
    %cst_473 = arith.constant dense<0.000000e+00> : vector<8x8xf32>
    %1032 = tpu.matmul %1028, %1031, %cst_473 {dimension_numbers = #tpu.dot_dimension_numbers<[1], [0], [0], [1], [0, 0, 1, 1], [], []>} : vector<8x8xf32>, vector<8x8xf32>, vector<8x8xf32> -> vector<8x8xf32>
    %cst_474 = arith.constant 0.000000e+00 : f32
    %1033 = vector.broadcast %cst_474 : f32 to vector<8x8xf32>
    %1034 = arith.cmpf oeq, %956, %1033 : vector<8x8xf32>
    %cst_475 = arith.constant -1.000000e+09 : f32
    %1035 = vector.broadcast %cst_475 : f32 to vector<8x8xf32>
    %1036 = arith.select %1034, %1035, %1032 : vector<8x8xi1>, vector<8x8xf32>
    %cst_476 = arith.constant dense<0xFF800000> : vector<8xf32>
    %1037 = vector.multi_reduction <maximumf>, %1036, %cst_476 [1] : vector<8x8xf32> to vector<8xf32>
    %1038 = vector.shape_cast %1037 : vector<8xf32> to vector<8x1xf32>
    %1039 = vector.broadcast %1038 : vector<8x1xf32> to vector<8x8xf32>
    %1040 = arith.subf %1036, %1039 : vector<8x8xf32>
    %1041 = math.exp %1040 : vector<8x8xf32>
    %cst_477 = arith.constant dense<0.000000e+00> : vector<8xf32>
    %1042 = vector.multi_reduction <add>, %1041, %cst_477 [1] : vector<8x8xf32> to vector<8xf32>
    %1043 = vector.shape_cast %1042 : vector<8xf32> to vector<8x1xf32>
    %1044 = tpu.reciprocal %1043 {approx = true} : vector<8x1xf32> -> vector<8x1xf32>
    %1045 = vector.broadcast %1044 : vector<8x1xf32> to vector<8x8xf32>
    %1046 = arith.mulf %1041, %1045 : vector<8x8xf32>
    %cst_478 = arith.constant dense<0.000000e+00> : vector<8x8xf32>
    %1047 = tpu.matmul %1046, %1030, %cst_478 {dimension_numbers = #tpu.dot_dimension_numbers<[1], [0], [0], [1], [0, 0, 1, 1], [], []>} : vector<8x8xf32>, vector<8x8xf32>, vector<8x8xf32> -> vector<8x8xf32>
    %c8_479 = arith.constant 8 : index
    %c24_480 = arith.constant 24 : index
    %1048 = vector.load %arg45[%c8_479, %c24_480] : memref<16x32xf32, #tpu.memory_space<vmem>>, vector<8x8xf32>
    tpu.vector_store %arg45[%c8_479, %c24_480], %1047 {strides = array<i32>} : memref<16x32xf32, #tpu.memory_space<vmem>>, vector<8x8xf32>,
    %c0_481 = arith.constant 0 : index
    %c0_482 = arith.constant 0 : index
    %1049 = vector.load %arg45[%c0_481, %c0_482] : memref<16x32xf32, #tpu.memory_space<vmem>>, vector<16x32xf32>
    %cst_483 = arith.constant dense<0.000000e+00> : vector<16x32xf32>
    %1050 = tpu.matmul %1049, %846, %cst_483 {dimension_numbers = #tpu.dot_dimension_numbers<[1], [0], [0], [1], [0, 0, 1, 1], [], []>} : vector<16x32xf32>, vector<32x32xf32>, vector<16x32xf32> -> vector<16x32xf32>
    %1051 = vector.broadcast %848 : vector<1x32xf32> to vector<16x32xf32>
    %1052 = arith.addf %1050, %1051 : vector<16x32xf32>
    %1053 = arith.addf %814, %1052 : vector<16x32xf32>
    %c0_484 = arith.constant 0 : index
    %c0_485 = arith.constant 0 : index
    %c0_486 = arith.constant 0 : index
    %1054 = vector.load %arg35[%c0_484, %c0_485, %c0_486] : memref<2x1x32xf32, #tpu.memory_space<vmem>>, vector<1x1x32xf32>
    %1055 = vector.shape_cast %1054 : vector<1x1x32xf32> to vector<1x32xf32>
    %c0_487 = arith.constant 0 : index
    %c0_488 = arith.constant 0 : index
    %c0_489 = arith.constant 0 : index
    %1056 = vector.load %arg36[%c0_487, %c0_488, %c0_489] : memref<2x1x32xf32, #tpu.memory_space<vmem>>, vector<1x1x32xf32>
    %1057 = vector.shape_cast %1056 : vector<1x1x32xf32> to vector<1x32xf32>
    %cst_490 = arith.constant dense<0.000000e+00> : vector<16xf32>
    %1058 = vector.multi_reduction <add>, %1053, %cst_490 [1] : vector<16x32xf32> to vector<16xf32>
    %1059 = vector.shape_cast %1058 : vector<16xf32> to vector<16x1xf32>
    %cst_491 = arith.constant 3.200000e+01 : f32
    %1060 = vector.broadcast %cst_491 : f32 to vector<16x1xf32>
    %1061 = arith.divf %1059, %1060 : vector<16x1xf32>
    %1062 = vector.broadcast %1061 : vector<16x1xf32> to vector<16x32xf32>
    %1063 = arith.subf %1053, %1062 : vector<16x32xf32>
    %1064 = arith.mulf %1063, %1063 : vector<16x32xf32>
    %cst_492 = arith.constant dense<0.000000e+00> : vector<16xf32>
    %1065 = vector.multi_reduction <add>, %1064, %cst_492 [1] : vector<16x32xf32> to vector<16xf32>
    %1066 = vector.shape_cast %1065 : vector<16xf32> to vector<16x1xf32>
    %cst_493 = arith.constant 3.100000e+01 : f32
    %1067 = vector.broadcast %cst_493 : f32 to vector<16x1xf32>
    %1068 = arith.divf %1066, %1067 : vector<16x1xf32>
    %1069 = vector.broadcast %1061 : vector<16x1xf32> to vector<16x32xf32>
    %1070 = arith.subf %1053, %1069 : vector<16x32xf32>
    %1071 = vector.broadcast %1055 : vector<1x32xf32> to vector<16x32xf32>
    %1072 = arith.mulf %1071, %1070 : vector<16x32xf32>
    %1073 = math.sqrt %1068 : vector<16x1xf32>
    %cst_494 = arith.constant 9.99999997E-7 : f32
    %1074 = vector.broadcast %cst_494 : f32 to vector<16x1xf32>
    %1075 = arith.addf %1073, %1074 : vector<16x1xf32>
    %1076 = vector.broadcast %1075 : vector<16x1xf32> to vector<16x32xf32>
    %1077 = arith.divf %1072, %1076 : vector<16x32xf32>
    %1078 = vector.broadcast %1057 : vector<1x32xf32> to vector<16x32xf32>
    %1079 = arith.addf %1077, %1078 : vector<16x32xf32>
    %c0_495 = arith.constant 0 : index
    %c0_496 = arith.constant 0 : index
    %c0_497 = arith.constant 0 : index
    %1080 = vector.load %arg27[%c0_495, %c0_496, %c0_497] : memref<2x32x64xf32, #tpu.memory_space<vmem>>, vector<1x32x64xf32>
    %1081 = vector.shape_cast %1080 : vector<1x32x64xf32> to vector<32x64xf32>
    %c0_498 = arith.constant 0 : index
    %c0_499 = arith.constant 0 : index
    %c0_500 = arith.constant 0 : index
    %1082 = vector.load %arg28[%c0_498, %c0_499, %c0_500] : memref<2x1x64xf32, #tpu.memory_space<vmem>>, vector<1x1x64xf32>
    %1083 = vector.shape_cast %1082 : vector<1x1x64xf32> to vector<1x64xf32>
    %c0_501 = arith.constant 0 : index
    %c0_502 = arith.constant 0 : index
    %c0_503 = arith.constant 0 : index
    %1084 = vector.load %arg29[%c0_501, %c0_502, %c0_503] : memref<2x64x32xf32, #tpu.memory_space<vmem>>, vector<1x64x32xf32>
    %1085 = vector.shape_cast %1084 : vector<1x64x32xf32> to vector<64x32xf32>
    %c0_504 = arith.constant 0 : index
    %c0_505 = arith.constant 0 : index
    %c0_506 = arith.constant 0 : index
    %1086 = vector.load %arg30[%c0_504, %c0_505, %c0_506] : memref<2x1x32xf32, #tpu.memory_space<vmem>>, vector<1x1x32xf32>
    %1087 = vector.shape_cast %1086 : vector<1x1x32xf32> to vector<1x32xf32>
    %cst_507 = arith.constant dense<0.000000e+00> : vector<16x64xf32>
    %1088 = tpu.matmul %1079, %1081, %cst_507 {dimension_numbers = #tpu.dot_dimension_numbers<[1], [0], [0], [1], [0, 0, 1, 1], [], []>} : vector<16x32xf32>, vector<32x64xf32>, vector<16x64xf32> -> vector<16x64xf32>
    %1089 = vector.broadcast %1083 : vector<1x64xf32> to vector<16x64xf32>
    %1090 = arith.addf %1088, %1089 : vector<16x64xf32>
    %cst_508 = arith.constant 0.000000e+00 : f32
    %1091 = vector.broadcast %cst_508 : f32 to vector<16x64xf32>
    %1092 = arith.maximumf %1090, %1091 : vector<16x64xf32>
    %cst_509 = arith.constant dense<0.000000e+00> : vector<16x32xf32>
    %1093 = tpu.matmul %1092, %1085, %cst_509 {dimension_numbers = #tpu.dot_dimension_numbers<[1], [0], [0], [1], [0, 0, 1, 1], [], []>} : vector<16x64xf32>, vector<64x32xf32>, vector<16x32xf32> -> vector<16x32xf32>
    %1094 = vector.broadcast %1087 : vector<1x32xf32> to vector<16x32xf32>
    %1095 = arith.addf %1093, %1094 : vector<16x32xf32>
    %1096 = arith.addf %1053, %1095 : vector<16x32xf32>
    %c1_510 = arith.constant 1 : index
    %c0_511 = arith.constant 0 : index
    %c0_512 = arith.constant 0 : index
    %1097 = vector.load %arg31[%c1_510, %c0_511, %c0_512] : memref<2x1x32xf32, #tpu.memory_space<vmem>>, vector<1x1x32xf32>
    %1098 = vector.shape_cast %1097 : vector<1x1x32xf32> to vector<1x32xf32>
    %c1_513 = arith.constant 1 : index
    %c0_514 = arith.constant 0 : index
    %c0_515 = arith.constant 0 : index
    %1099 = vector.load %arg32[%c1_513, %c0_514, %c0_515] : memref<2x1x32xf32, #tpu.memory_space<vmem>>, vector<1x1x32xf32>
    %1100 = vector.shape_cast %1099 : vector<1x1x32xf32> to vector<1x32xf32>
    %cst_516 = arith.constant dense<0.000000e+00> : vector<16xf32>
    %1101 = vector.multi_reduction <add>, %1096, %cst_516 [1] : vector<16x32xf32> to vector<16xf32>
    %1102 = vector.shape_cast %1101 : vector<16xf32> to vector<16x1xf32>
    %cst_517 = arith.constant 3.200000e+01 : f32
    %1103 = vector.broadcast %cst_517 : f32 to vector<16x1xf32>
    %1104 = arith.divf %1102, %1103 : vector<16x1xf32>
    %1105 = vector.broadcast %1104 : vector<16x1xf32> to vector<16x32xf32>
    %1106 = arith.subf %1096, %1105 : vector<16x32xf32>
    %1107 = arith.mulf %1106, %1106 : vector<16x32xf32>
    %cst_518 = arith.constant dense<0.000000e+00> : vector<16xf32>
    %1108 = vector.multi_reduction <add>, %1107, %cst_518 [1] : vector<16x32xf32> to vector<16xf32>
    %1109 = vector.shape_cast %1108 : vector<16xf32> to vector<16x1xf32>
    %cst_519 = arith.constant 3.100000e+01 : f32
    %1110 = vector.broadcast %cst_519 : f32 to vector<16x1xf32>
    %1111 = arith.divf %1109, %1110 : vector<16x1xf32>
    %1112 = vector.broadcast %1104 : vector<16x1xf32> to vector<16x32xf32>
    %1113 = arith.subf %1096, %1112 : vector<16x32xf32>
    %1114 = vector.broadcast %1098 : vector<1x32xf32> to vector<16x32xf32>
    %1115 = arith.mulf %1114, %1113 : vector<16x32xf32>
    %1116 = math.sqrt %1111 : vector<16x1xf32>
    %cst_520 = arith.constant 9.99999997E-7 : f32
    %1117 = vector.broadcast %cst_520 : f32 to vector<16x1xf32>
    %1118 = arith.addf %1116, %1117 : vector<16x1xf32>
    %1119 = vector.broadcast %1118 : vector<16x1xf32> to vector<16x32xf32>
    %1120 = arith.divf %1115, %1119 : vector<16x32xf32>
    %1121 = vector.broadcast %1100 : vector<1x32xf32> to vector<16x32xf32>
    %1122 = arith.addf %1120, %1121 : vector<16x32xf32>
    %c1_521 = arith.constant 1 : index
    %c0_522 = arith.constant 0 : index
    %c0_523 = arith.constant 0 : index
    %1123 = vector.load %arg19[%c1_521, %c0_522, %c0_523] : memref<2x32x96xf32, #tpu.memory_space<vmem>>, vector<1x32x96xf32>
    %1124 = vector.shape_cast %1123 : vector<1x32x96xf32> to vector<32x96xf32>
    %c1_524 = arith.constant 1 : index
    %c0_525 = arith.constant 0 : index
    %c0_526 = arith.constant 0 : index
    %1125 = vector.load %arg20[%c1_524, %c0_525, %c0_526] : memref<2x1x96xf32, #tpu.memory_space<vmem>>, vector<1x1x96xf32>
    %1126 = vector.shape_cast %1125 : vector<1x1x96xf32> to vector<1x96xf32>
    %c1_527 = arith.constant 1 : index
    %c0_528 = arith.constant 0 : index
    %c0_529 = arith.constant 0 : index
    %1127 = vector.load %arg21[%c1_527, %c0_528, %c0_529] : memref<2x32x32xf32, #tpu.memory_space<vmem>>, vector<1x32x32xf32>
    %1128 = vector.shape_cast %1127 : vector<1x32x32xf32> to vector<32x32xf32>
    %c1_530 = arith.constant 1 : index
    %c0_531 = arith.constant 0 : index
    %c0_532 = arith.constant 0 : index
    %1129 = vector.load %arg22[%c1_530, %c0_531, %c0_532] : memref<2x1x32xf32, #tpu.memory_space<vmem>>, vector<1x1x32xf32>
    %1130 = vector.shape_cast %1129 : vector<1x1x32xf32> to vector<1x32xf32>
    %cst_533 = arith.constant dense<0.000000e+00> : vector<16x96xf32>
    %1131 = tpu.matmul %1122, %1124, %cst_533 {dimension_numbers = #tpu.dot_dimension_numbers<[1], [0], [0], [1], [0, 0, 1, 1], [], []>} : vector<16x32xf32>, vector<32x96xf32>, vector<16x96xf32> -> vector<16x96xf32>
    %1132 = vector.broadcast %1126 : vector<1x96xf32> to vector<16x96xf32>
    %1133 = arith.addf %1131, %1132 : vector<16x96xf32>
    %1134 = vector.extract_strided_slice %1133 {offsets = [0, 0], sizes = [16, 32], strides = [1, 1]} : vector<16x96xf32> to vector<16x32xf32>
    %1135 = vector.extract_strided_slice %1133 {offsets = [0, 32], sizes = [16, 32], strides = [1, 1]} : vector<16x96xf32> to vector<16x32xf32>
    %1136 = vector.extract_strided_slice %1133 {offsets = [0, 64], sizes = [16, 32], strides = [1, 1]} : vector<16x96xf32> to vector<16x32xf32>
    %c0_534 = arith.constant 0 : index
    %c0_535 = arith.constant 0 : index
    %c0_536 = arith.constant 0 : index
    %1137 = vector.load %arg5[%c0_534, %c0_535, %c0_536] : memref<2x8x8xf32, #tpu.memory_space<vmem>>, vector<1x8x8xf32>
    %1138 = vector.shape_cast %1137 : vector<1x8x8xf32> to vector<8x8xf32>
    %1139 = vector.extract_strided_slice %1134 {offsets = [0, 0], sizes = [8, 8], strides = [1, 1]} : vector<16x32xf32> to vector<8x8xf32>
    %cst_537 = arith.constant 0.353553385 : f32
    %1140 = vector.broadcast %cst_537 : f32 to vector<8x8xf32>
    %1141 = arith.mulf %1139, %1140 : vector<8x8xf32>
    %1142 = vector.extract_strided_slice %1135 {offsets = [0, 0], sizes = [8, 8], strides = [1, 1]} : vector<16x32xf32> to vector<8x8xf32>
    %1143 = vector.extract_strided_slice %1136 {offsets = [0, 0], sizes = [8, 8], strides = [1, 1]} : vector<16x32xf32> to vector<8x8xf32>
    %1144 = tpu.transpose %1142, [1, 0] : vector<8x8xf32> -> vector<8x8xf32>
    %cst_538 = arith.constant dense<0.000000e+00> : vector<8x8xf32>
    %1145 = tpu.matmul %1141, %1144, %cst_538 {dimension_numbers = #tpu.dot_dimension_numbers<[1], [0], [0], [1], [0, 0, 1, 1], [], []>} : vector<8x8xf32>, vector<8x8xf32>, vector<8x8xf32> -> vector<8x8xf32>
    %cst_539 = arith.constant 0.000000e+00 : f32
    %1146 = vector.broadcast %cst_539 : f32 to vector<8x8xf32>
    %1147 = arith.cmpf oeq, %1138, %1146 : vector<8x8xf32>
    %cst_540 = arith.constant -1.000000e+09 : f32
    %1148 = vector.broadcast %cst_540 : f32 to vector<8x8xf32>
    %1149 = arith.select %1147, %1148, %1145 : vector<8x8xi1>, vector<8x8xf32>
    %cst_541 = arith.constant dense<0xFF800000> : vector<8xf32>
    %1150 = vector.multi_reduction <maximumf>, %1149, %cst_541 [1] : vector<8x8xf32> to vector<8xf32>
    %1151 = vector.shape_cast %1150 : vector<8xf32> to vector<8x1xf32>
    %1152 = vector.broadcast %1151 : vector<8x1xf32> to vector<8x8xf32>
    %1153 = arith.subf %1149, %1152 : vector<8x8xf32>
    %1154 = math.exp %1153 : vector<8x8xf32>
    %cst_542 = arith.constant dense<0.000000e+00> : vector<8xf32>
    %1155 = vector.multi_reduction <add>, %1154, %cst_542 [1] : vector<8x8xf32> to vector<8xf32>
    %1156 = vector.shape_cast %1155 : vector<8xf32> to vector<8x1xf32>
    %1157 = tpu.reciprocal %1156 {approx = true} : vector<8x1xf32> -> vector<8x1xf32>
    %1158 = vector.broadcast %1157 : vector<8x1xf32> to vector<8x8xf32>
    %1159 = arith.mulf %1154, %1158 : vector<8x8xf32>
    %cst_543 = arith.constant dense<0.000000e+00> : vector<8x8xf32>
    %1160 = tpu.matmul %1159, %1143, %cst_543 {dimension_numbers = #tpu.dot_dimension_numbers<[1], [0], [0], [1], [0, 0, 1, 1], [], []>} : vector<8x8xf32>, vector<8x8xf32>, vector<8x8xf32> -> vector<8x8xf32>
    %c0_544 = arith.constant 0 : index
    %c0_545 = arith.constant 0 : index
    %1161 = vector.load %arg45[%c0_544, %c0_545] : memref<16x32xf32, #tpu.memory_space<vmem>>, vector<8x8xf32>
    tpu.vector_store %arg45[%c0_544, %c0_545], %1160 {strides = array<i32>} : memref<16x32xf32, #tpu.memory_space<vmem>>, vector<8x8xf32>,
    %1162 = vector.extract_strided_slice %1134 {offsets = [0, 8], sizes = [8, 8], strides = [1, 1]} : vector<16x32xf32> to vector<8x8xf32>
    %cst_546 = arith.constant 0.353553385 : f32
    %1163 = vector.broadcast %cst_546 : f32 to vector<8x8xf32>
    %1164 = arith.mulf %1162, %1163 : vector<8x8xf32>
    %1165 = vector.extract_strided_slice %1135 {offsets = [0, 8], sizes = [8, 8], strides = [1, 1]} : vector<16x32xf32> to vector<8x8xf32>
    %1166 = vector.extract_strided_slice %1136 {offsets = [0, 8], sizes = [8, 8], strides = [1, 1]} : vector<16x32xf32> to vector<8x8xf32>
    %1167 = tpu.transpose %1165, [1, 0] : vector<8x8xf32> -> vector<8x8xf32>
    %cst_547 = arith.constant dense<0.000000e+00> : vector<8x8xf32>
    %1168 = tpu.matmul %1164, %1167, %cst_547 {dimension_numbers = #tpu.dot_dimension_numbers<[1], [0], [0], [1], [0, 0, 1, 1], [], []>} : vector<8x8xf32>, vector<8x8xf32>, vector<8x8xf32> -> vector<8x8xf32>
    %cst_548 = arith.constant 0.000000e+00 : f32
    %1169 = vector.broadcast %cst_548 : f32 to vector<8x8xf32>
    %1170 = arith.cmpf oeq, %1138, %1169 : vector<8x8xf32>
    %cst_549 = arith.constant -1.000000e+09 : f32
    %1171 = vector.broadcast %cst_549 : f32 to vector<8x8xf32>
    %1172 = arith.select %1170, %1171, %1168 : vector<8x8xi1>, vector<8x8xf32>
    %cst_550 = arith.constant dense<0xFF800000> : vector<8xf32>
    %1173 = vector.multi_reduction <maximumf>, %1172, %cst_550 [1] : vector<8x8xf32> to vector<8xf32>
    %1174 = vector.shape_cast %1173 : vector<8xf32> to vector<8x1xf32>
    %1175 = vector.broadcast %1174 : vector<8x1xf32> to vector<8x8xf32>
    %1176 = arith.subf %1172, %1175 : vector<8x8xf32>
    %1177 = math.exp %1176 : vector<8x8xf32>
    %cst_551 = arith.constant dense<0.000000e+00> : vector<8xf32>
    %1178 = vector.multi_reduction <add>, %1177, %cst_551 [1] : vector<8x8xf32> to vector<8xf32>
    %1179 = vector.shape_cast %1178 : vector<8xf32> to vector<8x1xf32>
    %1180 = tpu.reciprocal %1179 {approx = true} : vector<8x1xf32> -> vector<8x1xf32>
    %1181 = vector.broadcast %1180 : vector<8x1xf32> to vector<8x8xf32>
    %1182 = arith.mulf %1177, %1181 : vector<8x8xf32>
    %cst_552 = arith.constant dense<0.000000e+00> : vector<8x8xf32>
    %1183 = tpu.matmul %1182, %1166, %cst_552 {dimension_numbers = #tpu.dot_dimension_numbers<[1], [0], [0], [1], [0, 0, 1, 1], [], []>} : vector<8x8xf32>, vector<8x8xf32>, vector<8x8xf32> -> vector<8x8xf32>
    %c0_553 = arith.constant 0 : index
    %c8_554 = arith.constant 8 : index
    %1184 = vector.load %arg45[%c0_553, %c8_554] : memref<16x32xf32, #tpu.memory_space<vmem>>, vector<8x8xf32>
    tpu.vector_store %arg45[%c0_553, %c8_554], %1183 {strides = array<i32>} : memref<16x32xf32, #tpu.memory_space<vmem>>, vector<8x8xf32>,
    %1185 = vector.extract_strided_slice %1134 {offsets = [0, 16], sizes = [8, 8], strides = [1, 1]} : vector<16x32xf32> to vector<8x8xf32>
    %cst_555 = arith.constant 0.353553385 : f32
    %1186 = vector.broadcast %cst_555 : f32 to vector<8x8xf32>
    %1187 = arith.mulf %1185, %1186 : vector<8x8xf32>
    %1188 = vector.extract_strided_slice %1135 {offsets = [0, 16], sizes = [8, 8], strides = [1, 1]} : vector<16x32xf32> to vector<8x8xf32>
    %1189 = vector.extract_strided_slice %1136 {offsets = [0, 16], sizes = [8, 8], strides = [1, 1]} : vector<16x32xf32> to vector<8x8xf32>
    %1190 = tpu.transpose %1188, [1, 0] : vector<8x8xf32> -> vector<8x8xf32>
    %cst_556 = arith.constant dense<0.000000e+00> : vector<8x8xf32>
    %1191 = tpu.matmul %1187, %1190, %cst_556 {dimension_numbers = #tpu.dot_dimension_numbers<[1], [0], [0], [1], [0, 0, 1, 1], [], []>} : vector<8x8xf32>, vector<8x8xf32>, vector<8x8xf32> -> vector<8x8xf32>
    %cst_557 = arith.constant 0.000000e+00 : f32
    %1192 = vector.broadcast %cst_557 : f32 to vector<8x8xf32>
    %1193 = arith.cmpf oeq, %1138, %1192 : vector<8x8xf32>
    %cst_558 = arith.constant -1.000000e+09 : f32
    %1194 = vector.broadcast %cst_558 : f32 to vector<8x8xf32>
    %1195 = arith.select %1193, %1194, %1191 : vector<8x8xi1>, vector<8x8xf32>
    %cst_559 = arith.constant dense<0xFF800000> : vector<8xf32>
    %1196 = vector.multi_reduction <maximumf>, %1195, %cst_559 [1] : vector<8x8xf32> to vector<8xf32>
    %1197 = vector.shape_cast %1196 : vector<8xf32> to vector<8x1xf32>
    %1198 = vector.broadcast %1197 : vector<8x1xf32> to vector<8x8xf32>
    %1199 = arith.subf %1195, %1198 : vector<8x8xf32>
    %1200 = math.exp %1199 : vector<8x8xf32>
    %cst_560 = arith.constant dense<0.000000e+00> : vector<8xf32>
    %1201 = vector.multi_reduction <add>, %1200, %cst_560 [1] : vector<8x8xf32> to vector<8xf32>
    %1202 = vector.shape_cast %1201 : vector<8xf32> to vector<8x1xf32>
    %1203 = tpu.reciprocal %1202 {approx = true} : vector<8x1xf32> -> vector<8x1xf32>
    %1204 = vector.broadcast %1203 : vector<8x1xf32> to vector<8x8xf32>
    %1205 = arith.mulf %1200, %1204 : vector<8x8xf32>
    %cst_561 = arith.constant dense<0.000000e+00> : vector<8x8xf32>
    %1206 = tpu.matmul %1205, %1189, %cst_561 {dimension_numbers = #tpu.dot_dimension_numbers<[1], [0], [0], [1], [0, 0, 1, 1], [], []>} : vector<8x8xf32>, vector<8x8xf32>, vector<8x8xf32> -> vector<8x8xf32>
    %c0_562 = arith.constant 0 : index
    %c16_563 = arith.constant 16 : index
    %1207 = vector.load %arg45[%c0_562, %c16_563] : memref<16x32xf32, #tpu.memory_space<vmem>>, vector<8x8xf32>
    tpu.vector_store %arg45[%c0_562, %c16_563], %1206 {strides = array<i32>} : memref<16x32xf32, #tpu.memory_space<vmem>>, vector<8x8xf32>,
    %1208 = vector.extract_strided_slice %1134 {offsets = [0, 24], sizes = [8, 8], strides = [1, 1]} : vector<16x32xf32> to vector<8x8xf32>
    %cst_564 = arith.constant 0.353553385 : f32
    %1209 = vector.broadcast %cst_564 : f32 to vector<8x8xf32>
    %1210 = arith.mulf %1208, %1209 : vector<8x8xf32>
    %1211 = vector.extract_strided_slice %1135 {offsets = [0, 24], sizes = [8, 8], strides = [1, 1]} : vector<16x32xf32> to vector<8x8xf32>
    %1212 = vector.extract_strided_slice %1136 {offsets = [0, 24], sizes = [8, 8], strides = [1, 1]} : vector<16x32xf32> to vector<8x8xf32>
    %1213 = tpu.transpose %1211, [1, 0] : vector<8x8xf32> -> vector<8x8xf32>
    %cst_565 = arith.constant dense<0.000000e+00> : vector<8x8xf32>
    %1214 = tpu.matmul %1210, %1213, %cst_565 {dimension_numbers = #tpu.dot_dimension_numbers<[1], [0], [0], [1], [0, 0, 1, 1], [], []>} : vector<8x8xf32>, vector<8x8xf32>, vector<8x8xf32> -> vector<8x8xf32>
    %cst_566 = arith.constant 0.000000e+00 : f32
    %1215 = vector.broadcast %cst_566 : f32 to vector<8x8xf32>
    %1216 = arith.cmpf oeq, %1138, %1215 : vector<8x8xf32>
    %cst_567 = arith.constant -1.000000e+09 : f32
    %1217 = vector.broadcast %cst_567 : f32 to vector<8x8xf32>
    %1218 = arith.select %1216, %1217, %1214 : vector<8x8xi1>, vector<8x8xf32>
    %cst_568 = arith.constant dense<0xFF800000> : vector<8xf32>
    %1219 = vector.multi_reduction <maximumf>, %1218, %cst_568 [1] : vector<8x8xf32> to vector<8xf32>
    %1220 = vector.shape_cast %1219 : vector<8xf32> to vector<8x1xf32>
    %1221 = vector.broadcast %1220 : vector<8x1xf32> to vector<8x8xf32>
    %1222 = arith.subf %1218, %1221 : vector<8x8xf32>
    %1223 = math.exp %1222 : vector<8x8xf32>
    %cst_569 = arith.constant dense<0.000000e+00> : vector<8xf32>
    %1224 = vector.multi_reduction <add>, %1223, %cst_569 [1] : vector<8x8xf32> to vector<8xf32>
    %1225 = vector.shape_cast %1224 : vector<8xf32> to vector<8x1xf32>
    %1226 = tpu.reciprocal %1225 {approx = true} : vector<8x1xf32> -> vector<8x1xf32>
    %1227 = vector.broadcast %1226 : vector<8x1xf32> to vector<8x8xf32>
    %1228 = arith.mulf %1223, %1227 : vector<8x8xf32>
    %cst_570 = arith.constant dense<0.000000e+00> : vector<8x8xf32>
    %1229 = tpu.matmul %1228, %1212, %cst_570 {dimension_numbers = #tpu.dot_dimension_numbers<[1], [0], [0], [1], [0, 0, 1, 1], [], []>} : vector<8x8xf32>, vector<8x8xf32>, vector<8x8xf32> -> vector<8x8xf32>
    %c0_571 = arith.constant 0 : index
    %c24_572 = arith.constant 24 : index
    %1230 = vector.load %arg45[%c0_571, %c24_572] : memref<16x32xf32, #tpu.memory_space<vmem>>, vector<8x8xf32>
    tpu.vector_store %arg45[%c0_571, %c24_572], %1229 {strides = array<i32>} : memref<16x32xf32, #tpu.memory_space<vmem>>, vector<8x8xf32>,
    %c1_573 = arith.constant 1 : index
    %c0_574 = arith.constant 0 : index
    %c0_575 = arith.constant 0 : index
    %1231 = vector.load %arg5[%c1_573, %c0_574, %c0_575] : memref<2x8x8xf32, #tpu.memory_space<vmem>>, vector<1x8x8xf32>
    %1232 = vector.shape_cast %1231 : vector<1x8x8xf32> to vector<8x8xf32>
    %1233 = vector.extract_strided_slice %1134 {offsets = [8, 0], sizes = [8, 8], strides = [1, 1]} : vector<16x32xf32> to vector<8x8xf32>
    %cst_576 = arith.constant 0.353553385 : f32
    %1234 = vector.broadcast %cst_576 : f32 to vector<8x8xf32>
    %1235 = arith.mulf %1233, %1234 : vector<8x8xf32>
    %1236 = vector.extract_strided_slice %1135 {offsets = [8, 0], sizes = [8, 8], strides = [1, 1]} : vector<16x32xf32> to vector<8x8xf32>
    %1237 = vector.extract_strided_slice %1136 {offsets = [8, 0], sizes = [8, 8], strides = [1, 1]} : vector<16x32xf32> to vector<8x8xf32>
    %1238 = tpu.transpose %1236, [1, 0] : vector<8x8xf32> -> vector<8x8xf32>
    %cst_577 = arith.constant dense<0.000000e+00> : vector<8x8xf32>
    %1239 = tpu.matmul %1235, %1238, %cst_577 {dimension_numbers = #tpu.dot_dimension_numbers<[1], [0], [0], [1], [0, 0, 1, 1], [], []>} : vector<8x8xf32>, vector<8x8xf32>, vector<8x8xf32> -> vector<8x8xf32>
    %cst_578 = arith.constant 0.000000e+00 : f32
    %1240 = vector.broadcast %cst_578 : f32 to vector<8x8xf32>
    %1241 = arith.cmpf oeq, %1232, %1240 : vector<8x8xf32>
    %cst_579 = arith.constant -1.000000e+09 : f32
    %1242 = vector.broadcast %cst_579 : f32 to vector<8x8xf32>
    %1243 = arith.select %1241, %1242, %1239 : vector<8x8xi1>, vector<8x8xf32>
    %cst_580 = arith.constant dense<0xFF800000> : vector<8xf32>
    %1244 = vector.multi_reduction <maximumf>, %1243, %cst_580 [1] : vector<8x8xf32> to vector<8xf32>
    %1245 = vector.shape_cast %1244 : vector<8xf32> to vector<8x1xf32>
    %1246 = vector.broadcast %1245 : vector<8x1xf32> to vector<8x8xf32>
    %1247 = arith.subf %1243, %1246 : vector<8x8xf32>
    %1248 = math.exp %1247 : vector<8x8xf32>
    %cst_581 = arith.constant dense<0.000000e+00> : vector<8xf32>
    %1249 = vector.multi_reduction <add>, %1248, %cst_581 [1] : vector<8x8xf32> to vector<8xf32>
    %1250 = vector.shape_cast %1249 : vector<8xf32> to vector<8x1xf32>
    %1251 = tpu.reciprocal %1250 {approx = true} : vector<8x1xf32> -> vector<8x1xf32>
    %1252 = vector.broadcast %1251 : vector<8x1xf32> to vector<8x8xf32>
    %1253 = arith.mulf %1248, %1252 : vector<8x8xf32>
    %cst_582 = arith.constant dense<0.000000e+00> : vector<8x8xf32>
    %1254 = tpu.matmul %1253, %1237, %cst_582 {dimension_numbers = #tpu.dot_dimension_numbers<[1], [0], [0], [1], [0, 0, 1, 1], [], []>} : vector<8x8xf32>, vector<8x8xf32>, vector<8x8xf32> -> vector<8x8xf32>
    %c8_583 = arith.constant 8 : index
    %c0_584 = arith.constant 0 : index
    %1255 = vector.load %arg45[%c8_583, %c0_584] : memref<16x32xf32, #tpu.memory_space<vmem>>, vector<8x8xf32>
    tpu.vector_store %arg45[%c8_583, %c0_584], %1254 {strides = array<i32>} : memref<16x32xf32, #tpu.memory_space<vmem>>, vector<8x8xf32>,
    %1256 = vector.extract_strided_slice %1134 {offsets = [8, 8], sizes = [8, 8], strides = [1, 1]} : vector<16x32xf32> to vector<8x8xf32>
    %cst_585 = arith.constant 0.353553385 : f32
    %1257 = vector.broadcast %cst_585 : f32 to vector<8x8xf32>
    %1258 = arith.mulf %1256, %1257 : vector<8x8xf32>
    %1259 = vector.extract_strided_slice %1135 {offsets = [8, 8], sizes = [8, 8], strides = [1, 1]} : vector<16x32xf32> to vector<8x8xf32>
    %1260 = vector.extract_strided_slice %1136 {offsets = [8, 8], sizes = [8, 8], strides = [1, 1]} : vector<16x32xf32> to vector<8x8xf32>
    %1261 = tpu.transpose %1259, [1, 0] : vector<8x8xf32> -> vector<8x8xf32>
    %cst_586 = arith.constant dense<0.000000e+00> : vector<8x8xf32>
    %1262 = tpu.matmul %1258, %1261, %cst_586 {dimension_numbers = #tpu.dot_dimension_numbers<[1], [0], [0], [1], [0, 0, 1, 1], [], []>} : vector<8x8xf32>, vector<8x8xf32>, vector<8x8xf32> -> vector<8x8xf32>
    %cst_587 = arith.constant 0.000000e+00 : f32
    %1263 = vector.broadcast %cst_587 : f32 to vector<8x8xf32>
    %1264 = arith.cmpf oeq, %1232, %1263 : vector<8x8xf32>
    %cst_588 = arith.constant -1.000000e+09 : f32
    %1265 = vector.broadcast %cst_588 : f32 to vector<8x8xf32>
    %1266 = arith.select %1264, %1265, %1262 : vector<8x8xi1>, vector<8x8xf32>
    %cst_589 = arith.constant dense<0xFF800000> : vector<8xf32>
    %1267 = vector.multi_reduction <maximumf>, %1266, %cst_589 [1] : vector<8x8xf32> to vector<8xf32>
    %1268 = vector.shape_cast %1267 : vector<8xf32> to vector<8x1xf32>
    %1269 = vector.broadcast %1268 : vector<8x1xf32> to vector<8x8xf32>
    %1270 = arith.subf %1266, %1269 : vector<8x8xf32>
    %1271 = math.exp %1270 : vector<8x8xf32>
    %cst_590 = arith.constant dense<0.000000e+00> : vector<8xf32>
    %1272 = vector.multi_reduction <add>, %1271, %cst_590 [1] : vector<8x8xf32> to vector<8xf32>
    %1273 = vector.shape_cast %1272 : vector<8xf32> to vector<8x1xf32>
    %1274 = tpu.reciprocal %1273 {approx = true} : vector<8x1xf32> -> vector<8x1xf32>
    %1275 = vector.broadcast %1274 : vector<8x1xf32> to vector<8x8xf32>
    %1276 = arith.mulf %1271, %1275 : vector<8x8xf32>
    %cst_591 = arith.constant dense<0.000000e+00> : vector<8x8xf32>
    %1277 = tpu.matmul %1276, %1260, %cst_591 {dimension_numbers = #tpu.dot_dimension_numbers<[1], [0], [0], [1], [0, 0, 1, 1], [], []>} : vector<8x8xf32>, vector<8x8xf32>, vector<8x8xf32> -> vector<8x8xf32>
    %c8_592 = arith.constant 8 : index
    %c8_593 = arith.constant 8 : index
    %1278 = vector.load %arg45[%c8_592, %c8_593] : memref<16x32xf32, #tpu.memory_space<vmem>>, vector<8x8xf32>
    tpu.vector_store %arg45[%c8_592, %c8_593], %1277 {strides = array<i32>} : memref<16x32xf32, #tpu.memory_space<vmem>>, vector<8x8xf32>,
    %1279 = vector.extract_strided_slice %1134 {offsets = [8, 16], sizes = [8, 8], strides = [1, 1]} : vector<16x32xf32> to vector<8x8xf32>
    %cst_594 = arith.constant 0.353553385 : f32
    %1280 = vector.broadcast %cst_594 : f32 to vector<8x8xf32>
    %1281 = arith.mulf %1279, %1280 : vector<8x8xf32>
    %1282 = vector.extract_strided_slice %1135 {offsets = [8, 16], sizes = [8, 8], strides = [1, 1]} : vector<16x32xf32> to vector<8x8xf32>
    %1283 = vector.extract_strided_slice %1136 {offsets = [8, 16], sizes = [8, 8], strides = [1, 1]} : vector<16x32xf32> to vector<8x8xf32>
    %1284 = tpu.transpose %1282, [1, 0] : vector<8x8xf32> -> vector<8x8xf32>
    %cst_595 = arith.constant dense<0.000000e+00> : vector<8x8xf32>
    %1285 = tpu.matmul %1281, %1284, %cst_595 {dimension_numbers = #tpu.dot_dimension_numbers<[1], [0], [0], [1], [0, 0, 1, 1], [], []>} : vector<8x8xf32>, vector<8x8xf32>, vector<8x8xf32> -> vector<8x8xf32>
    %cst_596 = arith.constant 0.000000e+00 : f32
    %1286 = vector.broadcast %cst_596 : f32 to vector<8x8xf32>
    %1287 = arith.cmpf oeq, %1232, %1286 : vector<8x8xf32>
    %cst_597 = arith.constant -1.000000e+09 : f32
    %1288 = vector.broadcast %cst_597 : f32 to vector<8x8xf32>
    %1289 = arith.select %1287, %1288, %1285 : vector<8x8xi1>, vector<8x8xf32>
    %cst_598 = arith.constant dense<0xFF800000> : vector<8xf32>
    %1290 = vector.multi_reduction <maximumf>, %1289, %cst_598 [1] : vector<8x8xf32> to vector<8xf32>
    %1291 = vector.shape_cast %1290 : vector<8xf32> to vector<8x1xf32>
    %1292 = vector.broadcast %1291 : vector<8x1xf32> to vector<8x8xf32>
    %1293 = arith.subf %1289, %1292 : vector<8x8xf32>
    %1294 = math.exp %1293 : vector<8x8xf32>
    %cst_599 = arith.constant dense<0.000000e+00> : vector<8xf32>
    %1295 = vector.multi_reduction <add>, %1294, %cst_599 [1] : vector<8x8xf32> to vector<8xf32>
    %1296 = vector.shape_cast %1295 : vector<8xf32> to vector<8x1xf32>
    %1297 = tpu.reciprocal %1296 {approx = true} : vector<8x1xf32> -> vector<8x1xf32>
    %1298 = vector.broadcast %1297 : vector<8x1xf32> to vector<8x8xf32>
    %1299 = arith.mulf %1294, %1298 : vector<8x8xf32>
    %cst_600 = arith.constant dense<0.000000e+00> : vector<8x8xf32>
    %1300 = tpu.matmul %1299, %1283, %cst_600 {dimension_numbers = #tpu.dot_dimension_numbers<[1], [0], [0], [1], [0, 0, 1, 1], [], []>} : vector<8x8xf32>, vector<8x8xf32>, vector<8x8xf32> -> vector<8x8xf32>
    %c8_601 = arith.constant 8 : index
    %c16_602 = arith.constant 16 : index
    %1301 = vector.load %arg45[%c8_601, %c16_602] : memref<16x32xf32, #tpu.memory_space<vmem>>, vector<8x8xf32>
    tpu.vector_store %arg45[%c8_601, %c16_602], %1300 {strides = array<i32>} : memref<16x32xf32, #tpu.memory_space<vmem>>, vector<8x8xf32>,
    %1302 = vector.extract_strided_slice %1134 {offsets = [8, 24], sizes = [8, 8], strides = [1, 1]} : vector<16x32xf32> to vector<8x8xf32>
    %cst_603 = arith.constant 0.353553385 : f32
    %1303 = vector.broadcast %cst_603 : f32 to vector<8x8xf32>
    %1304 = arith.mulf %1302, %1303 : vector<8x8xf32>
    %1305 = vector.extract_strided_slice %1135 {offsets = [8, 24], sizes = [8, 8], strides = [1, 1]} : vector<16x32xf32> to vector<8x8xf32>
    %1306 = vector.extract_strided_slice %1136 {offsets = [8, 24], sizes = [8, 8], strides = [1, 1]} : vector<16x32xf32> to vector<8x8xf32>
    %1307 = tpu.transpose %1305, [1, 0] : vector<8x8xf32> -> vector<8x8xf32>
    %cst_604 = arith.constant dense<0.000000e+00> : vector<8x8xf32>
    %1308 = tpu.matmul %1304, %1307, %cst_604 {dimension_numbers = #tpu.dot_dimension_numbers<[1], [0], [0], [1], [0, 0, 1, 1], [], []>} : vector<8x8xf32>, vector<8x8xf32>, vector<8x8xf32> -> vector<8x8xf32>
    %cst_605 = arith.constant 0.000000e+00 : f32
    %1309 = vector.broadcast %cst_605 : f32 to vector<8x8xf32>
    %1310 = arith.cmpf oeq, %1232, %1309 : vector<8x8xf32>
    %cst_606 = arith.constant -1.000000e+09 : f32
    %1311 = vector.broadcast %cst_606 : f32 to vector<8x8xf32>
    %1312 = arith.select %1310, %1311, %1308 : vector<8x8xi1>, vector<8x8xf32>
    %cst_607 = arith.constant dense<0xFF800000> : vector<8xf32>
    %1313 = vector.multi_reduction <maximumf>, %1312, %cst_607 [1] : vector<8x8xf32> to vector<8xf32>
    %1314 = vector.shape_cast %1313 : vector<8xf32> to vector<8x1xf32>
    %1315 = vector.broadcast %1314 : vector<8x1xf32> to vector<8x8xf32>
    %1316 = arith.subf %1312, %1315 : vector<8x8xf32>
    %1317 = math.exp %1316 : vector<8x8xf32>
    %cst_608 = arith.constant dense<0.000000e+00> : vector<8xf32>
    %1318 = vector.multi_reduction <add>, %1317, %cst_608 [1] : vector<8x8xf32> to vector<8xf32>
    %1319 = vector.shape_cast %1318 : vector<8xf32> to vector<8x1xf32>
    %1320 = tpu.reciprocal %1319 {approx = true} : vector<8x1xf32> -> vector<8x1xf32>
    %1321 = vector.broadcast %1320 : vector<8x1xf32> to vector<8x8xf32>
    %1322 = arith.mulf %1317, %1321 : vector<8x8xf32>
    %cst_609 = arith.constant dense<0.000000e+00> : vector<8x8xf32>
    %1323 = tpu.matmul %1322, %1306, %cst_609 {dimension_numbers = #tpu.dot_dimension_numbers<[1], [0], [0], [1], [0, 0, 1, 1], [], []>} : vector<8x8xf32>, vector<8x8xf32>, vector<8x8xf32> -> vector<8x8xf32>
    %c8_610 = arith.constant 8 : index
    %c24_611 = arith.constant 24 : index
    %1324 = vector.load %arg45[%c8_610, %c24_611] : memref<16x32xf32, #tpu.memory_space<vmem>>, vector<8x8xf32>
    tpu.vector_store %arg45[%c8_610, %c24_611], %1323 {strides = array<i32>} : memref<16x32xf32, #tpu.memory_space<vmem>>, vector<8x8xf32>,
    %c0_612 = arith.constant 0 : index
    %c0_613 = arith.constant 0 : index
    %1325 = vector.load %arg45[%c0_612, %c0_613] : memref<16x32xf32, #tpu.memory_space<vmem>>, vector<16x32xf32>
    %cst_614 = arith.constant dense<0.000000e+00> : vector<16x32xf32>
    %1326 = tpu.matmul %1325, %1128, %cst_614 {dimension_numbers = #tpu.dot_dimension_numbers<[1], [0], [0], [1], [0, 0, 1, 1], [], []>} : vector<16x32xf32>, vector<32x32xf32>, vector<16x32xf32> -> vector<16x32xf32>
    %1327 = vector.broadcast %1130 : vector<1x32xf32> to vector<16x32xf32>
    %1328 = arith.addf %1326, %1327 : vector<16x32xf32>
    %1329 = arith.addf %1096, %1328 : vector<16x32xf32>
    %c1_615 = arith.constant 1 : index
    %c0_616 = arith.constant 0 : index
    %c0_617 = arith.constant 0 : index
    %1330 = vector.load %arg33[%c1_615, %c0_616, %c0_617] : memref<2x1x32xf32, #tpu.memory_space<vmem>>, vector<1x1x32xf32>
    %1331 = vector.shape_cast %1330 : vector<1x1x32xf32> to vector<1x32xf32>
    %c1_618 = arith.constant 1 : index
    %c0_619 = arith.constant 0 : index
    %c0_620 = arith.constant 0 : index
    %1332 = vector.load %arg34[%c1_618, %c0_619, %c0_620] : memref<2x1x32xf32, #tpu.memory_space<vmem>>, vector<1x1x32xf32>
    %1333 = vector.shape_cast %1332 : vector<1x1x32xf32> to vector<1x32xf32>
    %cst_621 = arith.constant dense<0.000000e+00> : vector<16xf32>
    %1334 = vector.multi_reduction <add>, %1329, %cst_621 [1] : vector<16x32xf32> to vector<16xf32>
    %1335 = vector.shape_cast %1334 : vector<16xf32> to vector<16x1xf32>
    %cst_622 = arith.constant 3.200000e+01 : f32
    %1336 = vector.broadcast %cst_622 : f32 to vector<16x1xf32>
    %1337 = arith.divf %1335, %1336 : vector<16x1xf32>
    %1338 = vector.broadcast %1337 : vector<16x1xf32> to vector<16x32xf32>
    %1339 = arith.subf %1329, %1338 : vector<16x32xf32>
    %1340 = arith.mulf %1339, %1339 : vector<16x32xf32>
    %cst_623 = arith.constant dense<0.000000e+00> : vector<16xf32>
    %1341 = vector.multi_reduction <add>, %1340, %cst_623 [1] : vector<16x32xf32> to vector<16xf32>
    %1342 = vector.shape_cast %1341 : vector<16xf32> to vector<16x1xf32>
    %cst_624 = arith.constant 3.100000e+01 : f32
    %1343 = vector.broadcast %cst_624 : f32 to vector<16x1xf32>
    %1344 = arith.divf %1342, %1343 : vector<16x1xf32>
    %1345 = vector.broadcast %1337 : vector<16x1xf32> to vector<16x32xf32>
    %1346 = arith.subf %1329, %1345 : vector<16x32xf32>
    %1347 = vector.broadcast %1331 : vector<1x32xf32> to vector<16x32xf32>
    %1348 = arith.mulf %1347, %1346 : vector<16x32xf32>
    %1349 = math.sqrt %1344 : vector<16x1xf32>
    %cst_625 = arith.constant 9.99999997E-7 : f32
    %1350 = vector.broadcast %cst_625 : f32 to vector<16x1xf32>
    %1351 = arith.addf %1349, %1350 : vector<16x1xf32>
    %1352 = vector.broadcast %1351 : vector<16x1xf32> to vector<16x32xf32>
    %1353 = arith.divf %1348, %1352 : vector<16x32xf32>
    %1354 = vector.broadcast %1333 : vector<1x32xf32> to vector<16x32xf32>
    %1355 = arith.addf %1353, %1354 : vector<16x32xf32>
    %c1_626 = arith.constant 1 : index
    %c0_627 = arith.constant 0 : index
    %c0_628 = arith.constant 0 : index
    %1356 = vector.load %arg23[%c1_626, %c0_627, %c0_628] : memref<2x32x96xf32, #tpu.memory_space<vmem>>, vector<1x32x96xf32>
    %1357 = vector.shape_cast %1356 : vector<1x32x96xf32> to vector<32x96xf32>
    %c1_629 = arith.constant 1 : index
    %c0_630 = arith.constant 0 : index
    %c0_631 = arith.constant 0 : index
    %1358 = vector.load %arg24[%c1_629, %c0_630, %c0_631] : memref<2x1x96xf32, #tpu.memory_space<vmem>>, vector<1x1x96xf32>
    %1359 = vector.shape_cast %1358 : vector<1x1x96xf32> to vector<1x96xf32>
    %c1_632 = arith.constant 1 : index
    %c0_633 = arith.constant 0 : index
    %c0_634 = arith.constant 0 : index
    %1360 = vector.load %arg25[%c1_632, %c0_633, %c0_634] : memref<2x32x32xf32, #tpu.memory_space<vmem>>, vector<1x32x32xf32>
    %1361 = vector.shape_cast %1360 : vector<1x32x32xf32> to vector<32x32xf32>
    %c1_635 = arith.constant 1 : index
    %c0_636 = arith.constant 0 : index
    %c0_637 = arith.constant 0 : index
    %1362 = vector.load %arg26[%c1_635, %c0_636, %c0_637] : memref<2x1x32xf32, #tpu.memory_space<vmem>>, vector<1x1x32xf32>
    %1363 = vector.shape_cast %1362 : vector<1x1x32xf32> to vector<1x32xf32>
    %1364 = vector.extract_strided_slice %1357 {offsets = [0, 0], sizes = [32, 32], strides = [1, 1]} : vector<32x96xf32> to vector<32x32xf32>
    %cst_638 = arith.constant dense<0.000000e+00> : vector<16x32xf32>
    %1365 = tpu.matmul %1355, %1364, %cst_638 {dimension_numbers = #tpu.dot_dimension_numbers<[1], [0], [0], [1], [0, 0, 1, 1], [], []>} : vector<16x32xf32>, vector<32x32xf32>, vector<16x32xf32> -> vector<16x32xf32>
    %1366 = vector.extract_strided_slice %1359 {offsets = [0, 0], sizes = [1, 32], strides = [1, 1]} : vector<1x96xf32> to vector<1x32xf32>
    %1367 = vector.broadcast %1366 : vector<1x32xf32> to vector<16x32xf32>
    %1368 = arith.addf %1365, %1367 : vector<16x32xf32>
    %1369 = vector.extract_strided_slice %1357 {offsets = [0, 32], sizes = [32, 64], strides = [1, 1]} : vector<32x96xf32> to vector<32x64xf32>
    %cst_639 = arith.constant dense<0.000000e+00> : vector<16x64xf32>
    %1370 = tpu.matmul %578, %1369, %cst_639 {dimension_numbers = #tpu.dot_dimension_numbers<[1], [0], [0], [1], [0, 0, 1, 1], [], []>} : vector<16x32xf32>, vector<32x64xf32>, vector<16x64xf32> -> vector<16x64xf32>
    %1371 = vector.extract_strided_slice %1359 {offsets = [0, 32], sizes = [1, 64], strides = [1, 1]} : vector<1x96xf32> to vector<1x64xf32>
    %1372 = vector.broadcast %1371 : vector<1x64xf32> to vector<16x64xf32>
    %1373 = arith.addf %1370, %1372 : vector<16x64xf32>
    %1374 = vector.extract_strided_slice %1373 {offsets = [0, 0], sizes = [16, 32], strides = [1, 1]} : vector<16x64xf32> to vector<16x32xf32>
    %1375 = vector.extract_strided_slice %1373 {offsets = [0, 32], sizes = [16, 32], strides = [1, 1]} : vector<16x64xf32> to vector<16x32xf32>
    %c0_640 = arith.constant 0 : index
    %c0_641 = arith.constant 0 : index
    %c0_642 = arith.constant 0 : index
    %1376 = vector.load %arg6[%c0_640, %c0_641, %c0_642] : memref<2x8x8xf32, #tpu.memory_space<vmem>>, vector<1x8x8xf32>
    %1377 = vector.shape_cast %1376 : vector<1x8x8xf32> to vector<8x8xf32>
    %1378 = vector.extract_strided_slice %1368 {offsets = [0, 0], sizes = [8, 8], strides = [1, 1]} : vector<16x32xf32> to vector<8x8xf32>
    %cst_643 = arith.constant 0.353553385 : f32
    %1379 = vector.broadcast %cst_643 : f32 to vector<8x8xf32>
    %1380 = arith.mulf %1378, %1379 : vector<8x8xf32>
    %1381 = vector.extract_strided_slice %1374 {offsets = [0, 0], sizes = [8, 8], strides = [1, 1]} : vector<16x32xf32> to vector<8x8xf32>
    %1382 = vector.extract_strided_slice %1375 {offsets = [0, 0], sizes = [8, 8], strides = [1, 1]} : vector<16x32xf32> to vector<8x8xf32>
    %1383 = tpu.transpose %1381, [1, 0] : vector<8x8xf32> -> vector<8x8xf32>
    %cst_644 = arith.constant dense<0.000000e+00> : vector<8x8xf32>
    %1384 = tpu.matmul %1380, %1383, %cst_644 {dimension_numbers = #tpu.dot_dimension_numbers<[1], [0], [0], [1], [0, 0, 1, 1], [], []>} : vector<8x8xf32>, vector<8x8xf32>, vector<8x8xf32> -> vector<8x8xf32>
    %cst_645 = arith.constant 0.000000e+00 : f32
    %1385 = vector.broadcast %cst_645 : f32 to vector<8x8xf32>
    %1386 = arith.cmpf oeq, %1377, %1385 : vector<8x8xf32>
    %cst_646 = arith.constant -1.000000e+09 : f32
    %1387 = vector.broadcast %cst_646 : f32 to vector<8x8xf32>
    %1388 = arith.select %1386, %1387, %1384 : vector<8x8xi1>, vector<8x8xf32>
    %cst_647 = arith.constant dense<0xFF800000> : vector<8xf32>
    %1389 = vector.multi_reduction <maximumf>, %1388, %cst_647 [1] : vector<8x8xf32> to vector<8xf32>
    %1390 = vector.shape_cast %1389 : vector<8xf32> to vector<8x1xf32>
    %1391 = vector.broadcast %1390 : vector<8x1xf32> to vector<8x8xf32>
    %1392 = arith.subf %1388, %1391 : vector<8x8xf32>
    %1393 = math.exp %1392 : vector<8x8xf32>
    %cst_648 = arith.constant dense<0.000000e+00> : vector<8xf32>
    %1394 = vector.multi_reduction <add>, %1393, %cst_648 [1] : vector<8x8xf32> to vector<8xf32>
    %1395 = vector.shape_cast %1394 : vector<8xf32> to vector<8x1xf32>
    %1396 = tpu.reciprocal %1395 {approx = true} : vector<8x1xf32> -> vector<8x1xf32>
    %1397 = vector.broadcast %1396 : vector<8x1xf32> to vector<8x8xf32>
    %1398 = arith.mulf %1393, %1397 : vector<8x8xf32>
    %cst_649 = arith.constant dense<0.000000e+00> : vector<8x8xf32>
    %1399 = tpu.matmul %1398, %1382, %cst_649 {dimension_numbers = #tpu.dot_dimension_numbers<[1], [0], [0], [1], [0, 0, 1, 1], [], []>} : vector<8x8xf32>, vector<8x8xf32>, vector<8x8xf32> -> vector<8x8xf32>
    %c0_650 = arith.constant 0 : index
    %c0_651 = arith.constant 0 : index
    %1400 = vector.load %arg45[%c0_650, %c0_651] : memref<16x32xf32, #tpu.memory_space<vmem>>, vector<8x8xf32>
    tpu.vector_store %arg45[%c0_650, %c0_651], %1399 {strides = array<i32>} : memref<16x32xf32, #tpu.memory_space<vmem>>, vector<8x8xf32>,
    %1401 = vector.extract_strided_slice %1368 {offsets = [0, 8], sizes = [8, 8], strides = [1, 1]} : vector<16x32xf32> to vector<8x8xf32>
    %cst_652 = arith.constant 0.353553385 : f32
    %1402 = vector.broadcast %cst_652 : f32 to vector<8x8xf32>
    %1403 = arith.mulf %1401, %1402 : vector<8x8xf32>
    %1404 = vector.extract_strided_slice %1374 {offsets = [0, 8], sizes = [8, 8], strides = [1, 1]} : vector<16x32xf32> to vector<8x8xf32>
    %1405 = vector.extract_strided_slice %1375 {offsets = [0, 8], sizes = [8, 8], strides = [1, 1]} : vector<16x32xf32> to vector<8x8xf32>
    %1406 = tpu.transpose %1404, [1, 0] : vector<8x8xf32> -> vector<8x8xf32>
    %cst_653 = arith.constant dense<0.000000e+00> : vector<8x8xf32>
    %1407 = tpu.matmul %1403, %1406, %cst_653 {dimension_numbers = #tpu.dot_dimension_numbers<[1], [0], [0], [1], [0, 0, 1, 1], [], []>} : vector<8x8xf32>, vector<8x8xf32>, vector<8x8xf32> -> vector<8x8xf32>
    %cst_654 = arith.constant 0.000000e+00 : f32
    %1408 = vector.broadcast %cst_654 : f32 to vector<8x8xf32>
    %1409 = arith.cmpf oeq, %1377, %1408 : vector<8x8xf32>
    %cst_655 = arith.constant -1.000000e+09 : f32
    %1410 = vector.broadcast %cst_655 : f32 to vector<8x8xf32>
    %1411 = arith.select %1409, %1410, %1407 : vector<8x8xi1>, vector<8x8xf32>
    %cst_656 = arith.constant dense<0xFF800000> : vector<8xf32>
    %1412 = vector.multi_reduction <maximumf>, %1411, %cst_656 [1] : vector<8x8xf32> to vector<8xf32>
    %1413 = vector.shape_cast %1412 : vector<8xf32> to vector<8x1xf32>
    %1414 = vector.broadcast %1413 : vector<8x1xf32> to vector<8x8xf32>
    %1415 = arith.subf %1411, %1414 : vector<8x8xf32>
    %1416 = math.exp %1415 : vector<8x8xf32>
    %cst_657 = arith.constant dense<0.000000e+00> : vector<8xf32>
    %1417 = vector.multi_reduction <add>, %1416, %cst_657 [1] : vector<8x8xf32> to vector<8xf32>
    %1418 = vector.shape_cast %1417 : vector<8xf32> to vector<8x1xf32>
    %1419 = tpu.reciprocal %1418 {approx = true} : vector<8x1xf32> -> vector<8x1xf32>
    %1420 = vector.broadcast %1419 : vector<8x1xf32> to vector<8x8xf32>
    %1421 = arith.mulf %1416, %1420 : vector<8x8xf32>
    %cst_658 = arith.constant dense<0.000000e+00> : vector<8x8xf32>
    %1422 = tpu.matmul %1421, %1405, %cst_658 {dimension_numbers = #tpu.dot_dimension_numbers<[1], [0], [0], [1], [0, 0, 1, 1], [], []>} : vector<8x8xf32>, vector<8x8xf32>, vector<8x8xf32> -> vector<8x8xf32>
    %c0_659 = arith.constant 0 : index
    %c8_660 = arith.constant 8 : index
    %1423 = vector.load %arg45[%c0_659, %c8_660] : memref<16x32xf32, #tpu.memory_space<vmem>>, vector<8x8xf32>
    tpu.vector_store %arg45[%c0_659, %c8_660], %1422 {strides = array<i32>} : memref<16x32xf32, #tpu.memory_space<vmem>>, vector<8x8xf32>,
    %1424 = vector.extract_strided_slice %1368 {offsets = [0, 16], sizes = [8, 8], strides = [1, 1]} : vector<16x32xf32> to vector<8x8xf32>
    %cst_661 = arith.constant 0.353553385 : f32
    %1425 = vector.broadcast %cst_661 : f32 to vector<8x8xf32>
    %1426 = arith.mulf %1424, %1425 : vector<8x8xf32>
    %1427 = vector.extract_strided_slice %1374 {offsets = [0, 16], sizes = [8, 8], strides = [1, 1]} : vector<16x32xf32> to vector<8x8xf32>
    %1428 = vector.extract_strided_slice %1375 {offsets = [0, 16], sizes = [8, 8], strides = [1, 1]} : vector<16x32xf32> to vector<8x8xf32>
    %1429 = tpu.transpose %1427, [1, 0] : vector<8x8xf32> -> vector<8x8xf32>
    %cst_662 = arith.constant dense<0.000000e+00> : vector<8x8xf32>
    %1430 = tpu.matmul %1426, %1429, %cst_662 {dimension_numbers = #tpu.dot_dimension_numbers<[1], [0], [0], [1], [0, 0, 1, 1], [], []>} : vector<8x8xf32>, vector<8x8xf32>, vector<8x8xf32> -> vector<8x8xf32>
    %cst_663 = arith.constant 0.000000e+00 : f32
    %1431 = vector.broadcast %cst_663 : f32 to vector<8x8xf32>
    %1432 = arith.cmpf oeq, %1377, %1431 : vector<8x8xf32>
    %cst_664 = arith.constant -1.000000e+09 : f32
    %1433 = vector.broadcast %cst_664 : f32 to vector<8x8xf32>
    %1434 = arith.select %1432, %1433, %1430 : vector<8x8xi1>, vector<8x8xf32>
    %cst_665 = arith.constant dense<0xFF800000> : vector<8xf32>
    %1435 = vector.multi_reduction <maximumf>, %1434, %cst_665 [1] : vector<8x8xf32> to vector<8xf32>
    %1436 = vector.shape_cast %1435 : vector<8xf32> to vector<8x1xf32>
    %1437 = vector.broadcast %1436 : vector<8x1xf32> to vector<8x8xf32>
    %1438 = arith.subf %1434, %1437 : vector<8x8xf32>
    %1439 = math.exp %1438 : vector<8x8xf32>
    %cst_666 = arith.constant dense<0.000000e+00> : vector<8xf32>
    %1440 = vector.multi_reduction <add>, %1439, %cst_666 [1] : vector<8x8xf32> to vector<8xf32>
    %1441 = vector.shape_cast %1440 : vector<8xf32> to vector<8x1xf32>
    %1442 = tpu.reciprocal %1441 {approx = true} : vector<8x1xf32> -> vector<8x1xf32>
    %1443 = vector.broadcast %1442 : vector<8x1xf32> to vector<8x8xf32>
    %1444 = arith.mulf %1439, %1443 : vector<8x8xf32>
    %cst_667 = arith.constant dense<0.000000e+00> : vector<8x8xf32>
    %1445 = tpu.matmul %1444, %1428, %cst_667 {dimension_numbers = #tpu.dot_dimension_numbers<[1], [0], [0], [1], [0, 0, 1, 1], [], []>} : vector<8x8xf32>, vector<8x8xf32>, vector<8x8xf32> -> vector<8x8xf32>
    %c0_668 = arith.constant 0 : index
    %c16_669 = arith.constant 16 : index
    %1446 = vector.load %arg45[%c0_668, %c16_669] : memref<16x32xf32, #tpu.memory_space<vmem>>, vector<8x8xf32>
    tpu.vector_store %arg45[%c0_668, %c16_669], %1445 {strides = array<i32>} : memref<16x32xf32, #tpu.memory_space<vmem>>, vector<8x8xf32>,
    %1447 = vector.extract_strided_slice %1368 {offsets = [0, 24], sizes = [8, 8], strides = [1, 1]} : vector<16x32xf32> to vector<8x8xf32>
    %cst_670 = arith.constant 0.353553385 : f32
    %1448 = vector.broadcast %cst_670 : f32 to vector<8x8xf32>
    %1449 = arith.mulf %1447, %1448 : vector<8x8xf32>
    %1450 = vector.extract_strided_slice %1374 {offsets = [0, 24], sizes = [8, 8], strides = [1, 1]} : vector<16x32xf32> to vector<8x8xf32>
    %1451 = vector.extract_strided_slice %1375 {offsets = [0, 24], sizes = [8, 8], strides = [1, 1]} : vector<16x32xf32> to vector<8x8xf32>
    %1452 = tpu.transpose %1450, [1, 0] : vector<8x8xf32> -> vector<8x8xf32>
    %cst_671 = arith.constant dense<0.000000e+00> : vector<8x8xf32>
    %1453 = tpu.matmul %1449, %1452, %cst_671 {dimension_numbers = #tpu.dot_dimension_numbers<[1], [0], [0], [1], [0, 0, 1, 1], [], []>} : vector<8x8xf32>, vector<8x8xf32>, vector<8x8xf32> -> vector<8x8xf32>
    %cst_672 = arith.constant 0.000000e+00 : f32
    %1454 = vector.broadcast %cst_672 : f32 to vector<8x8xf32>
    %1455 = arith.cmpf oeq, %1377, %1454 : vector<8x8xf32>
    %cst_673 = arith.constant -1.000000e+09 : f32
    %1456 = vector.broadcast %cst_673 : f32 to vector<8x8xf32>
    %1457 = arith.select %1455, %1456, %1453 : vector<8x8xi1>, vector<8x8xf32>
    %cst_674 = arith.constant dense<0xFF800000> : vector<8xf32>
    %1458 = vector.multi_reduction <maximumf>, %1457, %cst_674 [1] : vector<8x8xf32> to vector<8xf32>
    %1459 = vector.shape_cast %1458 : vector<8xf32> to vector<8x1xf32>
    %1460 = vector.broadcast %1459 : vector<8x1xf32> to vector<8x8xf32>
    %1461 = arith.subf %1457, %1460 : vector<8x8xf32>
    %1462 = math.exp %1461 : vector<8x8xf32>
    %cst_675 = arith.constant dense<0.000000e+00> : vector<8xf32>
    %1463 = vector.multi_reduction <add>, %1462, %cst_675 [1] : vector<8x8xf32> to vector<8xf32>
    %1464 = vector.shape_cast %1463 : vector<8xf32> to vector<8x1xf32>
    %1465 = tpu.reciprocal %1464 {approx = true} : vector<8x1xf32> -> vector<8x1xf32>
    %1466 = vector.broadcast %1465 : vector<8x1xf32> to vector<8x8xf32>
    %1467 = arith.mulf %1462, %1466 : vector<8x8xf32>
    %cst_676 = arith.constant dense<0.000000e+00> : vector<8x8xf32>
    %1468 = tpu.matmul %1467, %1451, %cst_676 {dimension_numbers = #tpu.dot_dimension_numbers<[1], [0], [0], [1], [0, 0, 1, 1], [], []>} : vector<8x8xf32>, vector<8x8xf32>, vector<8x8xf32> -> vector<8x8xf32>
    %c0_677 = arith.constant 0 : index
    %c24_678 = arith.constant 24 : index
    %1469 = vector.load %arg45[%c0_677, %c24_678] : memref<16x32xf32, #tpu.memory_space<vmem>>, vector<8x8xf32>
    tpu.vector_store %arg45[%c0_677, %c24_678], %1468 {strides = array<i32>} : memref<16x32xf32, #tpu.memory_space<vmem>>, vector<8x8xf32>,
    %c1_679 = arith.constant 1 : index
    %c0_680 = arith.constant 0 : index
    %c0_681 = arith.constant 0 : index
    %1470 = vector.load %arg6[%c1_679, %c0_680, %c0_681] : memref<2x8x8xf32, #tpu.memory_space<vmem>>, vector<1x8x8xf32>
    %1471 = vector.shape_cast %1470 : vector<1x8x8xf32> to vector<8x8xf32>
    %1472 = vector.extract_strided_slice %1368 {offsets = [8, 0], sizes = [8, 8], strides = [1, 1]} : vector<16x32xf32> to vector<8x8xf32>
    %cst_682 = arith.constant 0.353553385 : f32
    %1473 = vector.broadcast %cst_682 : f32 to vector<8x8xf32>
    %1474 = arith.mulf %1472, %1473 : vector<8x8xf32>
    %1475 = vector.extract_strided_slice %1374 {offsets = [8, 0], sizes = [8, 8], strides = [1, 1]} : vector<16x32xf32> to vector<8x8xf32>
    %1476 = vector.extract_strided_slice %1375 {offsets = [8, 0], sizes = [8, 8], strides = [1, 1]} : vector<16x32xf32> to vector<8x8xf32>
    %1477 = tpu.transpose %1475, [1, 0] : vector<8x8xf32> -> vector<8x8xf32>
    %cst_683 = arith.constant dense<0.000000e+00> : vector<8x8xf32>
    %1478 = tpu.matmul %1474, %1477, %cst_683 {dimension_numbers = #tpu.dot_dimension_numbers<[1], [0], [0], [1], [0, 0, 1, 1], [], []>} : vector<8x8xf32>, vector<8x8xf32>, vector<8x8xf32> -> vector<8x8xf32>
    %cst_684 = arith.constant 0.000000e+00 : f32
    %1479 = vector.broadcast %cst_684 : f32 to vector<8x8xf32>
    %1480 = arith.cmpf oeq, %1471, %1479 : vector<8x8xf32>
    %cst_685 = arith.constant -1.000000e+09 : f32
    %1481 = vector.broadcast %cst_685 : f32 to vector<8x8xf32>
    %1482 = arith.select %1480, %1481, %1478 : vector<8x8xi1>, vector<8x8xf32>
    %cst_686 = arith.constant dense<0xFF800000> : vector<8xf32>
    %1483 = vector.multi_reduction <maximumf>, %1482, %cst_686 [1] : vector<8x8xf32> to vector<8xf32>
    %1484 = vector.shape_cast %1483 : vector<8xf32> to vector<8x1xf32>
    %1485 = vector.broadcast %1484 : vector<8x1xf32> to vector<8x8xf32>
    %1486 = arith.subf %1482, %1485 : vector<8x8xf32>
    %1487 = math.exp %1486 : vector<8x8xf32>
    %cst_687 = arith.constant dense<0.000000e+00> : vector<8xf32>
    %1488 = vector.multi_reduction <add>, %1487, %cst_687 [1] : vector<8x8xf32> to vector<8xf32>
    %1489 = vector.shape_cast %1488 : vector<8xf32> to vector<8x1xf32>
    %1490 = tpu.reciprocal %1489 {approx = true} : vector<8x1xf32> -> vector<8x1xf32>
    %1491 = vector.broadcast %1490 : vector<8x1xf32> to vector<8x8xf32>
    %1492 = arith.mulf %1487, %1491 : vector<8x8xf32>
    %cst_688 = arith.constant dense<0.000000e+00> : vector<8x8xf32>
    %1493 = tpu.matmul %1492, %1476, %cst_688 {dimension_numbers = #tpu.dot_dimension_numbers<[1], [0], [0], [1], [0, 0, 1, 1], [], []>} : vector<8x8xf32>, vector<8x8xf32>, vector<8x8xf32> -> vector<8x8xf32>
    %c8_689 = arith.constant 8 : index
    %c0_690 = arith.constant 0 : index
    %1494 = vector.load %arg45[%c8_689, %c0_690] : memref<16x32xf32, #tpu.memory_space<vmem>>, vector<8x8xf32>
    tpu.vector_store %arg45[%c8_689, %c0_690], %1493 {strides = array<i32>} : memref<16x32xf32, #tpu.memory_space<vmem>>, vector<8x8xf32>,
    %1495 = vector.extract_strided_slice %1368 {offsets = [8, 8], sizes = [8, 8], strides = [1, 1]} : vector<16x32xf32> to vector<8x8xf32>
    %cst_691 = arith.constant 0.353553385 : f32
    %1496 = vector.broadcast %cst_691 : f32 to vector<8x8xf32>
    %1497 = arith.mulf %1495, %1496 : vector<8x8xf32>
    %1498 = vector.extract_strided_slice %1374 {offsets = [8, 8], sizes = [8, 8], strides = [1, 1]} : vector<16x32xf32> to vector<8x8xf32>
    %1499 = vector.extract_strided_slice %1375 {offsets = [8, 8], sizes = [8, 8], strides = [1, 1]} : vector<16x32xf32> to vector<8x8xf32>
    %1500 = tpu.transpose %1498, [1, 0] : vector<8x8xf32> -> vector<8x8xf32>
    %cst_692 = arith.constant dense<0.000000e+00> : vector<8x8xf32>
    %1501 = tpu.matmul %1497, %1500, %cst_692 {dimension_numbers = #tpu.dot_dimension_numbers<[1], [0], [0], [1], [0, 0, 1, 1], [], []>} : vector<8x8xf32>, vector<8x8xf32>, vector<8x8xf32> -> vector<8x8xf32>
    %cst_693 = arith.constant 0.000000e+00 : f32
    %1502 = vector.broadcast %cst_693 : f32 to vector<8x8xf32>
    %1503 = arith.cmpf oeq, %1471, %1502 : vector<8x8xf32>
    %cst_694 = arith.constant -1.000000e+09 : f32
    %1504 = vector.broadcast %cst_694 : f32 to vector<8x8xf32>
    %1505 = arith.select %1503, %1504, %1501 : vector<8x8xi1>, vector<8x8xf32>
    %cst_695 = arith.constant dense<0xFF800000> : vector<8xf32>
    %1506 = vector.multi_reduction <maximumf>, %1505, %cst_695 [1] : vector<8x8xf32> to vector<8xf32>
    %1507 = vector.shape_cast %1506 : vector<8xf32> to vector<8x1xf32>
    %1508 = vector.broadcast %1507 : vector<8x1xf32> to vector<8x8xf32>
    %1509 = arith.subf %1505, %1508 : vector<8x8xf32>
    %1510 = math.exp %1509 : vector<8x8xf32>
    %cst_696 = arith.constant dense<0.000000e+00> : vector<8xf32>
    %1511 = vector.multi_reduction <add>, %1510, %cst_696 [1] : vector<8x8xf32> to vector<8xf32>
    %1512 = vector.shape_cast %1511 : vector<8xf32> to vector<8x1xf32>
    %1513 = tpu.reciprocal %1512 {approx = true} : vector<8x1xf32> -> vector<8x1xf32>
    %1514 = vector.broadcast %1513 : vector<8x1xf32> to vector<8x8xf32>
    %1515 = arith.mulf %1510, %1514 : vector<8x8xf32>
    %cst_697 = arith.constant dense<0.000000e+00> : vector<8x8xf32>
    %1516 = tpu.matmul %1515, %1499, %cst_697 {dimension_numbers = #tpu.dot_dimension_numbers<[1], [0], [0], [1], [0, 0, 1, 1], [], []>} : vector<8x8xf32>, vector<8x8xf32>, vector<8x8xf32> -> vector<8x8xf32>
    %c8_698 = arith.constant 8 : index
    %c8_699 = arith.constant 8 : index
    %1517 = vector.load %arg45[%c8_698, %c8_699] : memref<16x32xf32, #tpu.memory_space<vmem>>, vector<8x8xf32>
    tpu.vector_store %arg45[%c8_698, %c8_699], %1516 {strides = array<i32>} : memref<16x32xf32, #tpu.memory_space<vmem>>, vector<8x8xf32>,
    %1518 = vector.extract_strided_slice %1368 {offsets = [8, 16], sizes = [8, 8], strides = [1, 1]} : vector<16x32xf32> to vector<8x8xf32>
    %cst_700 = arith.constant 0.353553385 : f32
    %1519 = vector.broadcast %cst_700 : f32 to vector<8x8xf32>
    %1520 = arith.mulf %1518, %1519 : vector<8x8xf32>
    %1521 = vector.extract_strided_slice %1374 {offsets = [8, 16], sizes = [8, 8], strides = [1, 1]} : vector<16x32xf32> to vector<8x8xf32>
    %1522 = vector.extract_strided_slice %1375 {offsets = [8, 16], sizes = [8, 8], strides = [1, 1]} : vector<16x32xf32> to vector<8x8xf32>
    %1523 = tpu.transpose %1521, [1, 0] : vector<8x8xf32> -> vector<8x8xf32>
    %cst_701 = arith.constant dense<0.000000e+00> : vector<8x8xf32>
    %1524 = tpu.matmul %1520, %1523, %cst_701 {dimension_numbers = #tpu.dot_dimension_numbers<[1], [0], [0], [1], [0, 0, 1, 1], [], []>} : vector<8x8xf32>, vector<8x8xf32>, vector<8x8xf32> -> vector<8x8xf32>
    %cst_702 = arith.constant 0.000000e+00 : f32
    %1525 = vector.broadcast %cst_702 : f32 to vector<8x8xf32>
    %1526 = arith.cmpf oeq, %1471, %1525 : vector<8x8xf32>
    %cst_703 = arith.constant -1.000000e+09 : f32
    %1527 = vector.broadcast %cst_703 : f32 to vector<8x8xf32>
    %1528 = arith.select %1526, %1527, %1524 : vector<8x8xi1>, vector<8x8xf32>
    %cst_704 = arith.constant dense<0xFF800000> : vector<8xf32>
    %1529 = vector.multi_reduction <maximumf>, %1528, %cst_704 [1] : vector<8x8xf32> to vector<8xf32>
    %1530 = vector.shape_cast %1529 : vector<8xf32> to vector<8x1xf32>
    %1531 = vector.broadcast %1530 : vector<8x1xf32> to vector<8x8xf32>
    %1532 = arith.subf %1528, %1531 : vector<8x8xf32>
    %1533 = math.exp %1532 : vector<8x8xf32>
    %cst_705 = arith.constant dense<0.000000e+00> : vector<8xf32>
    %1534 = vector.multi_reduction <add>, %1533, %cst_705 [1] : vector<8x8xf32> to vector<8xf32>
    %1535 = vector.shape_cast %1534 : vector<8xf32> to vector<8x1xf32>
    %1536 = tpu.reciprocal %1535 {approx = true} : vector<8x1xf32> -> vector<8x1xf32>
    %1537 = vector.broadcast %1536 : vector<8x1xf32> to vector<8x8xf32>
    %1538 = arith.mulf %1533, %1537 : vector<8x8xf32>
    %cst_706 = arith.constant dense<0.000000e+00> : vector<8x8xf32>
    %1539 = tpu.matmul %1538, %1522, %cst_706 {dimension_numbers = #tpu.dot_dimension_numbers<[1], [0], [0], [1], [0, 0, 1, 1], [], []>} : vector<8x8xf32>, vector<8x8xf32>, vector<8x8xf32> -> vector<8x8xf32>
    %c8_707 = arith.constant 8 : index
    %c16_708 = arith.constant 16 : index
    %1540 = vector.load %arg45[%c8_707, %c16_708] : memref<16x32xf32, #tpu.memory_space<vmem>>, vector<8x8xf32>
    tpu.vector_store %arg45[%c8_707, %c16_708], %1539 {strides = array<i32>} : memref<16x32xf32, #tpu.memory_space<vmem>>, vector<8x8xf32>,
    %1541 = vector.extract_strided_slice %1368 {offsets = [8, 24], sizes = [8, 8], strides = [1, 1]} : vector<16x32xf32> to vector<8x8xf32>
    %cst_709 = arith.constant 0.353553385 : f32
    %1542 = vector.broadcast %cst_709 : f32 to vector<8x8xf32>
    %1543 = arith.mulf %1541, %1542 : vector<8x8xf32>
    %1544 = vector.extract_strided_slice %1374 {offsets = [8, 24], sizes = [8, 8], strides = [1, 1]} : vector<16x32xf32> to vector<8x8xf32>
    %1545 = vector.extract_strided_slice %1375 {offsets = [8, 24], sizes = [8, 8], strides = [1, 1]} : vector<16x32xf32> to vector<8x8xf32>
    %1546 = tpu.transpose %1544, [1, 0] : vector<8x8xf32> -> vector<8x8xf32>
    %cst_710 = arith.constant dense<0.000000e+00> : vector<8x8xf32>
    %1547 = tpu.matmul %1543, %1546, %cst_710 {dimension_numbers = #tpu.dot_dimension_numbers<[1], [0], [0], [1], [0, 0, 1, 1], [], []>} : vector<8x8xf32>, vector<8x8xf32>, vector<8x8xf32> -> vector<8x8xf32>
    %cst_711 = arith.constant 0.000000e+00 : f32
    %1548 = vector.broadcast %cst_711 : f32 to vector<8x8xf32>
    %1549 = arith.cmpf oeq, %1471, %1548 : vector<8x8xf32>
    %cst_712 = arith.constant -1.000000e+09 : f32
    %1550 = vector.broadcast %cst_712 : f32 to vector<8x8xf32>
    %1551 = arith.select %1549, %1550, %1547 : vector<8x8xi1>, vector<8x8xf32>
    %cst_713 = arith.constant dense<0xFF800000> : vector<8xf32>
    %1552 = vector.multi_reduction <maximumf>, %1551, %cst_713 [1] : vector<8x8xf32> to vector<8xf32>
    %1553 = vector.shape_cast %1552 : vector<8xf32> to vector<8x1xf32>
    %1554 = vector.broadcast %1553 : vector<8x1xf32> to vector<8x8xf32>
    %1555 = arith.subf %1551, %1554 : vector<8x8xf32>
    %1556 = math.exp %1555 : vector<8x8xf32>
    %cst_714 = arith.constant dense<0.000000e+00> : vector<8xf32>
    %1557 = vector.multi_reduction <add>, %1556, %cst_714 [1] : vector<8x8xf32> to vector<8xf32>
    %1558 = vector.shape_cast %1557 : vector<8xf32> to vector<8x1xf32>
    %1559 = tpu.reciprocal %1558 {approx = true} : vector<8x1xf32> -> vector<8x1xf32>
    %1560 = vector.broadcast %1559 : vector<8x1xf32> to vector<8x8xf32>
    %1561 = arith.mulf %1556, %1560 : vector<8x8xf32>
    %cst_715 = arith.constant dense<0.000000e+00> : vector<8x8xf32>
    %1562 = tpu.matmul %1561, %1545, %cst_715 {dimension_numbers = #tpu.dot_dimension_numbers<[1], [0], [0], [1], [0, 0, 1, 1], [], []>} : vector<8x8xf32>, vector<8x8xf32>, vector<8x8xf32> -> vector<8x8xf32>
    %c8_716 = arith.constant 8 : index
    %c24_717 = arith.constant 24 : index
    %1563 = vector.load %arg45[%c8_716, %c24_717] : memref<16x32xf32, #tpu.memory_space<vmem>>, vector<8x8xf32>
    tpu.vector_store %arg45[%c8_716, %c24_717], %1562 {strides = array<i32>} : memref<16x32xf32, #tpu.memory_space<vmem>>, vector<8x8xf32>,
    %c0_718 = arith.constant 0 : index
    %c0_719 = arith.constant 0 : index
    %1564 = vector.load %arg45[%c0_718, %c0_719] : memref<16x32xf32, #tpu.memory_space<vmem>>, vector<16x32xf32>
    %cst_720 = arith.constant dense<0.000000e+00> : vector<16x32xf32>
    %1565 = tpu.matmul %1564, %1361, %cst_720 {dimension_numbers = #tpu.dot_dimension_numbers<[1], [0], [0], [1], [0, 0, 1, 1], [], []>} : vector<16x32xf32>, vector<32x32xf32>, vector<16x32xf32> -> vector<16x32xf32>
    %1566 = vector.broadcast %1363 : vector<1x32xf32> to vector<16x32xf32>
    %1567 = arith.addf %1565, %1566 : vector<16x32xf32>
    %1568 = arith.addf %1329, %1567 : vector<16x32xf32>
    %c1_721 = arith.constant 1 : index
    %c0_722 = arith.constant 0 : index
    %c0_723 = arith.constant 0 : index
    %1569 = vector.load %arg35[%c1_721, %c0_722, %c0_723] : memref<2x1x32xf32, #tpu.memory_space<vmem>>, vector<1x1x32xf32>
    %1570 = vector.shape_cast %1569 : vector<1x1x32xf32> to vector<1x32xf32>
    %c1_724 = arith.constant 1 : index
    %c0_725 = arith.constant 0 : index
    %c0_726 = arith.constant 0 : index
    %1571 = vector.load %arg36[%c1_724, %c0_725, %c0_726] : memref<2x1x32xf32, #tpu.memory_space<vmem>>, vector<1x1x32xf32>
    %1572 = vector.shape_cast %1571 : vector<1x1x32xf32> to vector<1x32xf32>
    %cst_727 = arith.constant dense<0.000000e+00> : vector<16xf32>
    %1573 = vector.multi_reduction <add>, %1568, %cst_727 [1] : vector<16x32xf32> to vector<16xf32>
    %1574 = vector.shape_cast %1573 : vector<16xf32> to vector<16x1xf32>
    %cst_728 = arith.constant 3.200000e+01 : f32
    %1575 = vector.broadcast %cst_728 : f32 to vector<16x1xf32>
    %1576 = arith.divf %1574, %1575 : vector<16x1xf32>
    %1577 = vector.broadcast %1576 : vector<16x1xf32> to vector<16x32xf32>
    %1578 = arith.subf %1568, %1577 : vector<16x32xf32>
    %1579 = arith.mulf %1578, %1578 : vector<16x32xf32>
    %cst_729 = arith.constant dense<0.000000e+00> : vector<16xf32>
    %1580 = vector.multi_reduction <add>, %1579, %cst_729 [1] : vector<16x32xf32> to vector<16xf32>
    %1581 = vector.shape_cast %1580 : vector<16xf32> to vector<16x1xf32>
    %cst_730 = arith.constant 3.100000e+01 : f32
    %1582 = vector.broadcast %cst_730 : f32 to vector<16x1xf32>
    %1583 = arith.divf %1581, %1582 : vector<16x1xf32>
    %1584 = vector.broadcast %1576 : vector<16x1xf32> to vector<16x32xf32>
    %1585 = arith.subf %1568, %1584 : vector<16x32xf32>
    %1586 = vector.broadcast %1570 : vector<1x32xf32> to vector<16x32xf32>
    %1587 = arith.mulf %1586, %1585 : vector<16x32xf32>
    %1588 = math.sqrt %1583 : vector<16x1xf32>
    %cst_731 = arith.constant 9.99999997E-7 : f32
    %1589 = vector.broadcast %cst_731 : f32 to vector<16x1xf32>
    %1590 = arith.addf %1588, %1589 : vector<16x1xf32>
    %1591 = vector.broadcast %1590 : vector<16x1xf32> to vector<16x32xf32>
    %1592 = arith.divf %1587, %1591 : vector<16x32xf32>
    %1593 = vector.broadcast %1572 : vector<1x32xf32> to vector<16x32xf32>
    %1594 = arith.addf %1592, %1593 : vector<16x32xf32>
    %c1_732 = arith.constant 1 : index
    %c0_733 = arith.constant 0 : index
    %c0_734 = arith.constant 0 : index
    %1595 = vector.load %arg27[%c1_732, %c0_733, %c0_734] : memref<2x32x64xf32, #tpu.memory_space<vmem>>, vector<1x32x64xf32>
    %1596 = vector.shape_cast %1595 : vector<1x32x64xf32> to vector<32x64xf32>
    %c1_735 = arith.constant 1 : index
    %c0_736 = arith.constant 0 : index
    %c0_737 = arith.constant 0 : index
    %1597 = vector.load %arg28[%c1_735, %c0_736, %c0_737] : memref<2x1x64xf32, #tpu.memory_space<vmem>>, vector<1x1x64xf32>
    %1598 = vector.shape_cast %1597 : vector<1x1x64xf32> to vector<1x64xf32>
    %c1_738 = arith.constant 1 : index
    %c0_739 = arith.constant 0 : index
    %c0_740 = arith.constant 0 : index
    %1599 = vector.load %arg29[%c1_738, %c0_739, %c0_740] : memref<2x64x32xf32, #tpu.memory_space<vmem>>, vector<1x64x32xf32>
    %1600 = vector.shape_cast %1599 : vector<1x64x32xf32> to vector<64x32xf32>
    %c1_741 = arith.constant 1 : index
    %c0_742 = arith.constant 0 : index
    %c0_743 = arith.constant 0 : index
    %1601 = vector.load %arg30[%c1_741, %c0_742, %c0_743] : memref<2x1x32xf32, #tpu.memory_space<vmem>>, vector<1x1x32xf32>
    %1602 = vector.shape_cast %1601 : vector<1x1x32xf32> to vector<1x32xf32>
    %cst_744 = arith.constant dense<0.000000e+00> : vector<16x64xf32>
    %1603 = tpu.matmul %1594, %1596, %cst_744 {dimension_numbers = #tpu.dot_dimension_numbers<[1], [0], [0], [1], [0, 0, 1, 1], [], []>} : vector<16x32xf32>, vector<32x64xf32>, vector<16x64xf32> -> vector<16x64xf32>
    %1604 = vector.broadcast %1598 : vector<1x64xf32> to vector<16x64xf32>
    %1605 = arith.addf %1603, %1604 : vector<16x64xf32>
    %cst_745 = arith.constant 0.000000e+00 : f32
    %1606 = vector.broadcast %cst_745 : f32 to vector<16x64xf32>
    %1607 = arith.maximumf %1605, %1606 : vector<16x64xf32>
    %cst_746 = arith.constant dense<0.000000e+00> : vector<16x32xf32>
    %1608 = tpu.matmul %1607, %1600, %cst_746 {dimension_numbers = #tpu.dot_dimension_numbers<[1], [0], [0], [1], [0, 0, 1, 1], [], []>} : vector<16x64xf32>, vector<64x32xf32>, vector<16x32xf32> -> vector<16x32xf32>
    %1609 = vector.broadcast %1602 : vector<1x32xf32> to vector<16x32xf32>
    %1610 = arith.addf %1608, %1609 : vector<16x32xf32>
    %1611 = arith.addf %1568, %1610 : vector<16x32xf32>
    %c0_747 = arith.constant 0 : index
    %c0_748 = arith.constant 0 : index
    %1612 = vector.load %arg39[%c0_747, %c0_748] : memref<1x32xf32, #tpu.memory_space<vmem>>, vector<1x32xf32>
    %c0_749 = arith.constant 0 : index
    %c0_750 = arith.constant 0 : index
    %1613 = vector.load %arg40[%c0_749, %c0_750] : memref<1x32xf32, #tpu.memory_space<vmem>>, vector<1x32xf32>
    %cst_751 = arith.constant dense<0.000000e+00> : vector<16xf32>
    %1614 = vector.multi_reduction <add>, %1611, %cst_751 [1] : vector<16x32xf32> to vector<16xf32>
    %1615 = vector.shape_cast %1614 : vector<16xf32> to vector<16x1xf32>
    %cst_752 = arith.constant 3.200000e+01 : f32
    %1616 = vector.broadcast %cst_752 : f32 to vector<16x1xf32>
    %1617 = arith.divf %1615, %1616 : vector<16x1xf32>
    %1618 = vector.broadcast %1617 : vector<16x1xf32> to vector<16x32xf32>
    %1619 = arith.subf %1611, %1618 : vector<16x32xf32>
    %1620 = arith.mulf %1619, %1619 : vector<16x32xf32>
    %cst_753 = arith.constant dense<0.000000e+00> : vector<16xf32>
    %1621 = vector.multi_reduction <add>, %1620, %cst_753 [1] : vector<16x32xf32> to vector<16xf32>
    %1622 = vector.shape_cast %1621 : vector<16xf32> to vector<16x1xf32>
    %cst_754 = arith.constant 3.100000e+01 : f32
    %1623 = vector.broadcast %cst_754 : f32 to vector<16x1xf32>
    %1624 = arith.divf %1622, %1623 : vector<16x1xf32>
    %1625 = vector.broadcast %1617 : vector<16x1xf32> to vector<16x32xf32>
    %1626 = arith.subf %1611, %1625 : vector<16x32xf32>
    %1627 = vector.broadcast %1612 : vector<1x32xf32> to vector<16x32xf32>
    %1628 = arith.mulf %1627, %1626 : vector<16x32xf32>
    %1629 = math.sqrt %1624 : vector<16x1xf32>
    %cst_755 = arith.constant 9.99999997E-7 : f32
    %1630 = vector.broadcast %cst_755 : f32 to vector<16x1xf32>
    %1631 = arith.addf %1629, %1630 : vector<16x1xf32>
    %1632 = vector.broadcast %1631 : vector<16x1xf32> to vector<16x32xf32>
    %1633 = arith.divf %1628, %1632 : vector<16x32xf32>
    %1634 = vector.broadcast %1613 : vector<1x32xf32> to vector<16x32xf32>
    %1635 = arith.addf %1633, %1634 : vector<16x32xf32>
    %c0_756 = arith.constant 0 : index
    %c0_757 = arith.constant 0 : index
    %1636 = vector.load %arg41[%c0_756, %c0_757] : memref<32x32xf32, #tpu.memory_space<vmem>>, vector<32x32xf32>
    %cst_758 = arith.constant dense<0.000000e+00> : vector<16x32xf32>
    %1637 = tpu.matmul %1635, %1636, %cst_758 {dimension_numbers = #tpu.dot_dimension_numbers<[1], [0], [0], [1], [0, 0, 1, 1], [], []>} : vector<16x32xf32>, vector<32x32xf32>, vector<16x32xf32> -> vector<16x32xf32>
    %c0_759 = arith.constant 0 : index
    %c0_760 = arith.constant 0 : index
    %1638 = vector.load %arg42[%c0_759, %c0_760] : memref<1x32xf32, #tpu.memory_space<vmem>>, vector<1x32xf32>
    %1639 = vector.broadcast %1638 : vector<1x32xf32> to vector<16x32xf32>
    %1640 = arith.addf %1637, %1639 : vector<16x32xf32>
    %cst_761 = arith.constant 0.000000e+00 : f32
    %1641 = vector.broadcast %cst_761 : f32 to vector<16x32xf32>
    %1642 = arith.maximumf %1640, %1641 : vector<16x32xf32>
    %c0_762 = arith.constant 0 : index
    %c0_763 = arith.constant 0 : index
    %1643 = vector.load %arg43[%c0_762, %c0_763] : memref<16x32xf32, #tpu.memory_space<vmem>>, vector<16x32xf32>
    tpu.vector_store %arg43[%c0_762, %c0_763], %1642 {strides = array<i32>} : memref<16x32xf32, #tpu.memory_space<vmem>>, vector<16x32xf32>,
    return
  }
}

</mosaic_0001>

<bundles_post_ra>
// kernel: my_transformer_forward.1
= control target key start
LH: loop header
LB: loop body
LE: loop exit
PB: predicated region body
PF: predicated region fallthrough
CT: control target
= control target key end

     0   :  { %s14204_s6 = smov 1   ;;  %s14205_s10 = smov 2   ;;  %s16195_s0 = inlined_call_operand.smem [shape: u32[44], index: -1, kind: input, shape index: {}] }
   0x1   :  { %s14296_s5 = sld [smem:[%s16195_s0]]   ;;  %s14206_s14 = smov 3  }
   0x2   :  { %s14301_s9 = sld [smem:[%s16195_s0 + %s14204_s6]]   ;;  %s14207_s18 = smov 4  }
   0x3   :  { %s14306_s13 = sld [smem:[%s16195_s0 + %s14205_s10]]   ;;  %s14208_s22 = smov 5  }
   0x4   :  { %s14311_s17 = sld [smem:[%s16195_s0 + %s14206_s14]]   ;;  %s14209_s26 = smov 6  }
   0x5   :  { %s14316_s21 = sld [smem:[%s16195_s0 + %s14207_s18]]   ;;  %s14210_s30 = smov 7  }
   0x6   :  { %s14321_s25 = sld [smem:[%s16195_s0 + %s14208_s22]]   ;;  %s14211_s4 = smov 8  }
   0x7   :  { %16220 = sst [smem:[#allocation53_spill]] %s14296_s5  ;;  %s14212_s10 = smov 9  }
   0x8   :  { %16221 = sst [smem:[#allocation54_spill]] %s14301_s9  ;;  %s14213_s15 = smov 10  }
   0x9   :  { %16222 = sst [smem:[#allocation55_spill]] %s14306_s13  ;;  %s14214_s20 = smov 11  }
   0xa   :  { %16223 = sst [smem:[#allocation56_spill]] %s14311_s17  ;;  %s14216_s1 = smov 13  }
   0xb   :  { %16224 = sst [smem:[#allocation57_spill]] %s14316_s21  ;;  %s14217_s7 = smov 14  }
   0xc   :  { %16225 = sst [smem:[#allocation58_spill]] %s14321_s25  ;;  %s14219_s22 = smov 16  }
   0xd   :  { %s14326_s29 = sld [smem:[%s16195_s0 + %s14209_s26]]   ;;  %s14215_s26 = smov 12  }
   0xe   :  { %s14331_s3 = sld [smem:[%s16195_s0 + %s14210_s30]]   ;;  %s14220_s28 = smov 17  }
   0xf   :  { %s14336_s8 = sld [smem:[%s16195_s0 + %s14211_s4]]  }
  0x10   :  { %s14341_s14 = sld [smem:[%s16195_s0 + %s14212_s10]]  }
  0x11   :  { %s14346_s19 = sld [smem:[%s16195_s0 + %s14213_s15]]   ;;  %s14218_s15 = smov 15  }
  0x12   :  { %s14351_s24 = sld [smem:[%s16195_s0 + %s14214_s20]]  }
  0x13   :  { %16226 = sst [smem:[#allocation59_spill]] %s14326_s29 }
  0x14   :  { %16227 = sst [smem:[#allocation60_spill]] %s14331_s3 }
  0x15   :  { %16228 = sst [smem:[#allocation61_spill]] %s14336_s8 }
  0x16   :  { %16229 = sst [smem:[#allocation62_spill]] %s14341_s14 }
  0x17   :  { %s14356_s30 = sld [smem:[%s16195_s0 + %s14215_s26]]  }
  0x18   :  { %16230 = sst [smem:[#allocation63_spill]] %s14351_s24 }
  0x19   :  { %s14361_s6 = sld [smem:[%s16195_s0 + %s14216_s1]]  }
  0x1a   :  { %s14366_s12 = sld [smem:[%s16195_s0 + %s14217_s7]]   ;;  %s14221_s7 = smov 18  }
  0x1b   :  { %s14371_s20 = sld [smem:[%s16195_s0 + %s14218_s15]]   ;;  %s14222_s15 = smov 19  }
  0x1c   :  { %s14376_s27 = sld [smem:[%s16195_s0 + %s14219_s22]]   ;;  %s14223_s22 = smov 20  }
  0x1d   :  { %s14381_s4 = sld [smem:[%s16195_s0 + %s14220_s28]]   ;;  %s14224_s28 = smov 21  }
  0x1e   :  { %s14386_s29 = sld [smem:[%s16195_s0 + %s14221_s7]]   ;;  %s14225_s7 = smov 22  }
  0x1f   :  { %16231 = sst [smem:[#allocation64_spill]] %s14361_s6 }
  0x20   :  { %s14391_s25 = sld [smem:[%s16195_s0 + %s14222_s15]]   ;;  %s14226_s15 = smov 23  }
  0x21   :  { %s14396_s17 = sld [smem:[%s16195_s0 + %s14223_s22]]   ;;  %s14227_s22 = smov 24  }
  0x22   :  { %s14401_s9 = sld [smem:[%s16195_s0 + %s14224_s28]]   ;;  %s14228_s28 = smov 25  }
  0x23   :  { %s14406_s6 = sld [smem:[%s16195_s0 + %s14225_s7]]   ;;  %s14229_s7 = smov 26  }
  0x24   :  { %s14416_s24 = sld [smem:[%s16195_s0 + %s14227_s22]]   ;;  %s14231_s22 = smov 28  }
  0x25   :  { %s14426_s14 = sld [smem:[%s16195_s0 + %s14229_s7]]   ;;  %s14233_s7 = smov 30  }
  0x26   :  { %16232 = sst [smem:[#allocation65_spill]] %s14391_s25 }
  0x27   :  { %s14411_s25 = sld [smem:[%s16195_s0 + %s14226_s15]]   ;;  %s14230_s15 = smov 27  }
  0x28   :  { %16233 = sst [smem:[#allocation66_spill]] %s14401_s9 }
  0x29   :  { %16234 = sst [smem:[#allocation67_spill]] %s14406_s6 }
  0x2a   :  { %s14421_s9 = sld [smem:[%s16195_s0 + %s14228_s28]]   ;;  %s14232_s28 = smov 29  }
  0x2b   :  { %s14436_s21 = sld [smem:[%s16195_s0 + %s14231_s22]]   ;;  %s14235_s22 = smov 32  }
  0x2c   :  { %s14441_s8 = sld [smem:[%s16195_s0 + %s14232_s28]]   ;;  %s14236_s28 = smov 33  }
  0x2d   :  { %16235 = sst [smem:[#allocation68_spill]] %s14411_s25 }
  0x2e   :  { %s14431_s25 = sld [smem:[%s16195_s0 + %s14230_s15]]   ;;  %s14234_s15 = smov 31  }
  0x2f   :  { %s14446_s3 = sld [smem:[%s16195_s0 + %s14233_s7]]   ;;  %s14237_s7 = smov 34  }
  0x30   :  { %16236 = sst [smem:[#allocation69_spill]] %s14421_s9 }
  0x31   :  { %16238 = sst [smem:[#allocation71_spill]] %s14436_s21 }
  0x32   :  { %16239 = sst [smem:[#allocation72_spill]] %s14441_s8 }
  0x33   :  { %s14456_s13 = sld [smem:[%s16195_s0 + %s14235_s22]]   ;;  %s14239_s22 = smov 36  }
  0x34   :  { %16237 = sst [smem:[#allocation70_spill]] %s14431_s25 }
  0x35   :  { %s14451_s25 = sld [smem:[%s16195_s0 + %s14234_s15]]   ;;  %s14238_s15 = smov 35  }
  0x36   :  { %s14461_s8 = sld [smem:[%s16195_s0 + %s14236_s28]]   ;;  %s14240_s28 = smov 37  }
  0x37   :  { %s14466_s5 = sld [smem:[%s16195_s0 + %s14237_s7]]   ;;  %s14241_s7 = smov 38  }
  0x38   :  { %s14476_s21 = sld [smem:[%s16195_s0 + %s14239_s22]]   ;;  %s14243_s22 = smov 40  }
  0x39   :  { %s14486_s9 = sld [smem:[%s16195_s0 + %s14241_s7]]   ;;  %s14245_s7 = smov 42  }
  0x3a   :  { %s14496_s6 = sld [smem:[%s16195_s0 + %s14243_s22]]  }
  0x3b   :  { %16240 = sst [smem:[#allocation73_spill]] %s14451_s25 }
  0x3c   :  { %16241 = sst [smem:[#allocation74_spill]] %s14461_s8 }
  0x3d   :  { %s14471_s25 = sld [smem:[%s16195_s0 + %s14238_s15]]   ;;  %s14242_s15 = smov 39  }
  0x3e   :  { %s14481_s8 = sld [smem:[%s16195_s0 + %s14240_s28]]   ;;  %s14244_s28 = smov 41  }
  0x3f   :  { %16244 = sst [smem:[#allocation77_spill]] %s14486_s9 }
  0x40   :  { %s14506_s9 = sld [smem:[%s16195_s0 + %s14245_s7]]  }
  0x43   :  { %16242 = sst [smem:[#allocation75_spill]] %s14471_s25 }
  0x44   :  { %16243 = sst [smem:[#allocation76_spill]] %s14481_s8 }
  0x45   :  { %s14491_s25 = sld [smem:[%s16195_s0 + %s14242_s15]]   ;;  %s14246_s15 = smov 43  }
  0x46   :  { %s14501_s8 = sld [smem:[%s16195_s0 + %s14244_s28]]  }
  0x4b   :  { %16245 = sst [smem:[#allocation78_spill]] %s14491_s25 }
  0x4c   :  { %s14511_s25 = sld [smem:[%s16195_s0 + %s14246_s15]]  }
  0x4d   :  { %92 = vsyncpa [#allocation5], 0 }
  0x4e   :  { %93 = vsyncpa [#allocation8], 0 }
  0x4f   :  { %94 = vsyncpa [#allocation11], 0 }
  0x50   :  { %95 = vsyncpa [#allocation14], 0 }
  0x51   :  { %96 = vsyncpa [#allocation17], 0 }
  0x52   :  { %97 = vsyncpa [#allocation20], 0 }
  0x53   :  { %98 = vsyncpa [#allocation23], 0 }
  0x54   :  { %99 = vsyncpa [#allocation26], 0 }
  0x55   :  { %100 = vsyncpa [#allocation29], 0 }
  0x56   :  { %101 = vsyncpa [#allocation32], 0 }
  0x57   :  { %102 = vsyncpa [#allocation35], 0 }
  0x58   :  { %103 = vsyncpa [#allocation38], 0 }
  0x59   :  { %104 = vsyncpa [#allocation6], 0  ;;  %s14247_s22 = smov [#allocation7]   ;;  %s14248_s0 = smov [#allocation10]  }
  0x5a   :  { %s144_s23 = sshll.u32 %s14247_s22, 4  ;;  %s170_s26 = sshll.u32 %s14248_s0, 4  ;;  %s145_s23 = int_to_ptr.vmem [resolvable:$true] %s144_s23  ;;  %s14513_s26 = int_to_ptr.vmem [resolvable:$true] %s170_s26 }
  0x5b   :  { %s13672_s28 = scalar_lea.hbm %s14356_s30, 32 }
  0x5c   :  { %p13673_p0 = scmp.ne.s32.totalorder %s14356_s30, %s13672_s28  ;;  %p13676_p1 = scmp.lt.u32.totalorder %s13672_s28, %s14356_s30 }
  0x5e   :  { %p13678_p2 = pnand %p13676_p1, %p13673_p0 }
  0x60   :  { %13681 = shalt.err (!%p13678_p2)
}
  0x61   :  { %s13682_s1 = scalar_lea.vmem %s145_s23, 32  ;;  %p13687_p4 = scmp.lt.s32.totalorder %s145_s23, %s145_s23 }
  0x62   :  { %p13683_p3 = scmp.ne.s32.totalorder %s145_s23, %s13682_s1  ;;  %p13688_p5 = scmp.lt.s32.totalorder %s13682_s1, %s13682_s1 }
  0x64   :  { %p13689_p6 = por %p13688_p5, %p13687_p4 }
  0x66   :  { %p13690_p7 = pnand %p13689_p6, %p13683_p3 }
  0x68   :  { %13693 = shalt.err (!%p13690_p7)
}
  0x69   :  { %s14249_s2 = smov 16   ;;  %s14250_s7 = smov 1  }
  0x6a   :  { %150 = dma.hbm_to_vmem [thread:$0]  %s14356_s30, 32, %s145_s23, [#allocation8], %s14249_s2, %s14249_s2, %s14250_s7  }
  0x6b   :  { %s13694_s10 = scalar_lea.hbm %s14371_s20, 32 }
  0x6c   :  { %p13695_p8 = scmp.ne.s32.totalorder %s14371_s20, %s13694_s10  ;;  %p13698_p9 = scmp.lt.u32.totalorder %s13694_s10, %s14371_s20 }
  0x6e   :  { %p13700_p10 = pnand %p13698_p9, %p13695_p8 }
  0x70   :  { %13703 = shalt.err (!%p13700_p10)
}
  0x71   :  { %s13704_s11 = scalar_lea.vmem %s14513_s26, 32  ;;  %p13709_p12 = scmp.lt.s32.totalorder %s14513_s26, %s14513_s26 }
  0x72   :  { %p13705_p11 = scmp.ne.s32.totalorder %s14513_s26, %s13704_s11  ;;  %p13710_p13 = scmp.lt.s32.totalorder %s13704_s11, %s13704_s11 }
  0x74   :  { %p13711_p0 = por %p13710_p13, %p13709_p12 }
  0x76   :  { %p13712_p1 = pnand %p13711_p0, %p13705_p11 }
  0x78   :  { %13715 = shalt.err (!%p13712_p1)
}
  0x79   :  { %176 = dma.hbm_to_vmem [thread:$0]  %s14371_s20, 32, %s14513_s26, [#allocation11], %s14249_s2, %s14249_s2, %s14250_s7  }
  0x7a   :  { %s14251_s30 = smov [#allocation13]   ;;  %s14252_s16 = smov [#allocation16]  }
  0x7b   :  { %s194_s15 = sshll.u32 %s14251_s30, 4  ;;  %s220_s18 = sshll.u32 %s14252_s16, 4  ;;  %s195_s15 = int_to_ptr.vmem [resolvable:$true] %s194_s15  ;;  %s14534_s18 = int_to_ptr.vmem [resolvable:$true] %s220_s18 }
  0x7c   :  { %s13716_s22 = scalar_lea.hbm %s14381_s4, 32 }
  0x7d   :  { %p13717_p2 = scmp.ne.s32.totalorder %s14381_s4, %s13716_s22  ;;  %p13720_p3 = scmp.lt.u32.totalorder %s13716_s22, %s14381_s4 }
  0x7f   :  { %p13722_p4 = pnand %p13720_p3, %p13717_p2 }
  0x81   :  { %13725 = shalt.err (!%p13722_p4)
}
  0x82   :  { %s13726_s23 = scalar_lea.vmem %s195_s15, 32  ;;  %p13731_p6 = scmp.lt.s32.totalorder %s195_s15, %s195_s15 }
  0x83   :  { %p13727_p5 = scmp.ne.s32.totalorder %s195_s15, %s13726_s23  ;;  %p13732_p7 = scmp.lt.s32.totalorder %s13726_s23, %s13726_s23 }
  0x85   :  { %p13733_p8 = por %p13732_p7, %p13731_p6 }
  0x87   :  { %p13734_p9 = pnand %p13733_p8, %p13727_p5 }
  0x89   :  { %13737 = shalt.err (!%p13734_p9)
}
  0x8a   :  { %200 = dma.hbm_to_vmem [thread:$0]  %s14381_s4, 32, %s195_s15, [#allocation14], %s14249_s2, %s14249_s2, %s14250_s7  }
  0x8b   :  { %s13738_s20 = scalar_lea.hbm %s14396_s17, 32 }
  0x8c   :  { %p13739_p10 = scmp.ne.s32.totalorder %s14396_s17, %s13738_s20  ;;  %p13742_p11 = scmp.lt.u32.totalorder %s13738_s20, %s14396_s17 }
  0x8e   :  { %p13744_p12 = pnand %p13742_p11, %p13739_p10 }
  0x90   :  { %13747 = shalt.err (!%p13744_p12)
}
  0x91   :  { %s13748_s0 = scalar_lea.vmem %s14534_s18, 32  ;;  %p13753_p0 = scmp.lt.s32.totalorder %s14534_s18, %s14534_s18 }
  0x92   :  { %p13749_p13 = scmp.ne.s32.totalorder %s14534_s18, %s13748_s0  ;;  %p13754_p1 = scmp.lt.s32.totalorder %s13748_s0, %s13748_s0 }
  0x94   :  { %p13755_p2 = por %p13754_p1, %p13753_p0 }
  0x96   :  { %p13756_p3 = pnand %p13755_p2, %p13749_p13 }
  0x98   :  { %13759 = shalt.err (!%p13756_p3)
}
  0x99   :  { %226 = dma.hbm_to_vmem [thread:$0]  %s14396_s17, 32, %s14534_s18, [#allocation17], %s14249_s2, %s14249_s2, %s14250_s7  }
  0x9a   :  { %s14253_s4 = smov [#allocation19]   ;;  %s14254_s28 = smov [#allocation22]  }
  0x9b   :  { %s248_s26 = sshll.u32 %s14253_s4, 4  ;;  %s272_s1 = sshll.u32 %s14254_s28, 4  ;;  %s249_s26 = int_to_ptr.vmem [resolvable:$true] %s248_s26  ;;  %s14555_s1 = int_to_ptr.vmem [resolvable:$true] %s272_s1 }
  0x9c   :  { %s13760_s10 = scalar_lea.hbm %s14416_s24, 32 }
  0x9d   :  { %p13761_p4 = scmp.ne.s32.totalorder %s14416_s24, %s13760_s10  ;;  %p13764_p5 = scmp.lt.u32.totalorder %s13760_s10, %s14416_s24 }
  0x9f   :  { %p13766_p6 = pnand %p13764_p5, %p13761_p4 }
  0xa1   :  { %13769 = shalt.err (!%p13766_p6)
}
  0xa2   :  { %s13770_s11 = scalar_lea.vmem %s249_s26, 32  ;;  %p13775_p8 = scmp.lt.s32.totalorder %s249_s26, %s249_s26 }
  0xa3   :  { %p13771_p7 = scmp.ne.s32.totalorder %s249_s26, %s13770_s11  ;;  %p13776_p9 = scmp.lt.s32.totalorder %s13770_s11, %s13770_s11 }
  0xa5   :  { %p13777_p10 = por %p13776_p9, %p13775_p8 }
  0xa7   :  { %p13778_p11 = pnand %p13777_p10, %p13771_p7 }
  0xa9   :  { %13781 = shalt.err (!%p13778_p11)
}
  0xaa   :  { %254 = dma.hbm_to_vmem [thread:$0]  %s14416_s24, 32, %s249_s26, [#allocation20], %s14249_s2, %s14249_s2, %s14250_s7  }
  0xab   :  { %s13782_s17 = scalar_lea.hbm %s14426_s14, 32 }
  0xac   :  { %p13783_p12 = scmp.ne.s32.totalorder %s14426_s14, %s13782_s17  ;;  %p13786_p13 = scmp.lt.u32.totalorder %s13782_s17, %s14426_s14 }
  0xae   :  { %p13788_p0 = pnand %p13786_p13, %p13783_p12 }
  0xb0   :  { %13791 = shalt.err (!%p13788_p0)
}
  0xb1   :  { %s13792_s30 = scalar_lea.vmem %s14555_s1, 32  ;;  %p13797_p2 = scmp.lt.s32.totalorder %s14555_s1, %s14555_s1 }
  0xb2   :  { %p13793_p1 = scmp.ne.s32.totalorder %s14555_s1, %s13792_s30  ;;  %p13798_p3 = scmp.lt.s32.totalorder %s13792_s30, %s13792_s30 }
  0xb4   :  { %p13799_p4 = por %p13798_p3, %p13797_p2 }
  0xb6   :  { %p13800_p5 = pnand %p13799_p4, %p13793_p1 }
  0xb8   :  { %13803 = shalt.err (!%p13800_p5)
}
  0xb9   :  { %278 = dma.hbm_to_vmem [thread:$0]  %s14426_s14, 32, %s14555_s1, [#allocation23], %s14249_s2, %s14249_s2, %s14250_s7  }
  0xba   :  { %s14255_s24 = smov [#allocation25]   ;;  %s14256_s16 = smov [#allocation28]  }
  0xbb   :  { %s300_s15 = sshll.u32 %s14255_s24, 4  ;;  %s324_s18 = sshll.u32 %s14256_s16, 4  ;;  %s301_s15 = int_to_ptr.vmem [resolvable:$true] %s300_s15  ;;  %s14576_s18 = int_to_ptr.vmem [resolvable:$true] %s324_s18 }
  0xbc   :  { %s13804_s22 = scalar_lea.hbm %s14446_s3, 32 }
  0xbd   :  { %p13805_p6 = scmp.ne.s32.totalorder %s14446_s3, %s13804_s22  ;;  %p13808_p7 = scmp.lt.u32.totalorder %s13804_s22, %s14446_s3 }
  0xbf   :  { %p13810_p8 = pnand %p13808_p7, %p13805_p6 }
  0xc1   :  { %13813 = shalt.err (!%p13810_p8)
}
  0xc2   :  { %s13814_s23 = scalar_lea.vmem %s301_s15, 32  ;;  %p13819_p10 = scmp.lt.s32.totalorder %s301_s15, %s301_s15 }
  0xc3   :  { %p13815_p9 = scmp.ne.s32.totalorder %s301_s15, %s13814_s23  ;;  %p13820_p11 = scmp.lt.s32.totalorder %s13814_s23, %s13814_s23 }
  0xc5   :  { %p13821_p12 = por %p13820_p11, %p13819_p10 }
  0xc7   :  { %p13822_p13 = pnand %p13821_p12, %p13815_p9 }
  0xc9   :  { %13825 = shalt.err (!%p13822_p13)
}
  0xca   :  { %306 = dma.hbm_to_vmem [thread:$0]  %s14446_s3, 32, %s301_s15, [#allocation26], %s14249_s2, %s14249_s2, %s14250_s7  }
  0xcb   :  { %s13826_s14 = scalar_lea.hbm %s14456_s13, 32 }
  0xcc   :  { %p13827_p0 = scmp.ne.s32.totalorder %s14456_s13, %s13826_s14  ;;  %p13830_p1 = scmp.lt.u32.totalorder %s13826_s14, %s14456_s13 }
  0xce   :  { %p13832_p2 = pnand %p13830_p1, %p13827_p0 }
  0xd0   :  { %13835 = shalt.err (!%p13832_p2)
}
  0xd1   :  { %s13836_s20 = scalar_lea.vmem %s14576_s18, 32  ;;  %p13841_p4 = scmp.lt.s32.totalorder %s14576_s18, %s14576_s18 }
  0xd2   :  { %p13837_p3 = scmp.ne.s32.totalorder %s14576_s18, %s13836_s20  ;;  %p13842_p5 = scmp.lt.s32.totalorder %s13836_s20, %s13836_s20 }
  0xd4   :  { %p13843_p6 = por %p13842_p5, %p13841_p4 }
  0xd6   :  { %p13844_p7 = pnand %p13843_p6, %p13837_p3 }
  0xd8   :  { %13847 = shalt.err (!%p13844_p7)
}
  0xd9   :  { %330 = dma.hbm_to_vmem [thread:$0]  %s14456_s13, 32, %s14576_s18, [#allocation29], %s14249_s2, %s14249_s2, %s14250_s7  }
  0xda   :  { %s14257_s3 = smov [#allocation31]   ;;  %s14258_s4 = smov [#allocation34]  }
  0xdb   :  { %s348_s0 = sshll.u32 %s14257_s3, 4  ;;  %s372_s26 = sshll.u32 %s14258_s4, 4  ;;  %s349_s0 = int_to_ptr.vmem [resolvable:$true] %s348_s0  ;;  %s14597_s26 = int_to_ptr.vmem [resolvable:$true] %s372_s26 }
  0xdc   :  { %s13848_s28 = scalar_lea.hbm %s14466_s5, 32 }
  0xdd   :  { %p13849_p8 = scmp.ne.s32.totalorder %s14466_s5, %s13848_s28  ;;  %p13852_p9 = scmp.lt.u32.totalorder %s13848_s28, %s14466_s5 }
  0xdf   :  { %p13854_p10 = pnand %p13852_p9, %p13849_p8 }
  0xe1   :  { %13857 = shalt.err (!%p13854_p10)
}
  0xe2   :  { %s13858_s1 = scalar_lea.vmem %s349_s0, 32  ;;  %p13863_p12 = scmp.lt.s32.totalorder %s349_s0, %s349_s0 }
  0xe3   :  { %p13859_p11 = scmp.ne.s32.totalorder %s349_s0, %s13858_s1  ;;  %p13864_p13 = scmp.lt.s32.totalorder %s13858_s1, %s13858_s1 }
  0xe5   :  { %p13865_p0 = por %p13864_p13, %p13863_p12 }
  0xe7   :  { %p13866_p1 = pnand %p13865_p0, %p13859_p11 }
  0xe9   :  { %13869 = shalt.err (!%p13866_p1)
}
  0xea   :  { %354 = dma.hbm_to_vmem [thread:$0]  %s14466_s5, 32, %s349_s0, [#allocation32], %s14249_s2, %s14249_s2, %s14250_s7  }
  0xeb   :  { %s13870_s13 = scalar_lea.hbm %s14476_s21, 32 }
  0xec   :  { %p13871_p2 = scmp.ne.s32.totalorder %s14476_s21, %s13870_s13  ;;  %p13874_p3 = scmp.lt.u32.totalorder %s13870_s13, %s14476_s21 }
  0xee   :  { %p13876_p4 = pnand %p13874_p3, %p13871_p2 }
  0xf0   :  { %13879 = shalt.err (!%p13876_p4)
}
  0xf1   :  { %s13880_s10 = scalar_lea.vmem %s14597_s26, 32  ;;  %p13885_p6 = scmp.lt.s32.totalorder %s14597_s26, %s14597_s26 }
  0xf2   :  { %p13881_p5 = scmp.ne.s32.totalorder %s14597_s26, %s13880_s10  ;;  %p13886_p7 = scmp.lt.s32.totalorder %s13880_s10, %s13880_s10 }
  0xf4   :  { %p13887_p8 = por %p13886_p7, %p13885_p6 }
  0xf6   :  { %p13888_p9 = pnand %p13887_p8, %p13881_p5 }
  0xf8   :  { %13891 = shalt.err (!%p13888_p9)
}
  0xf9   :  { %378 = dma.hbm_to_vmem [thread:$0]  %s14476_s21, 32, %s14597_s26, [#allocation35], %s14249_s2, %s14249_s2, %s14250_s7  }
  0xfa   :  { %s14259_s5 = smov [#allocation4]   ;;  %s14260_s17 = smov [#allocation9]  }
  0xfb   :  { %s130_s11 = sshll.u32 %s14259_s5, 4  ;;  %s158_s30 = sshll.u32 %s14260_s17, 4  ;;  %s131_s11 = int_to_ptr.vmem [resolvable:$true] %s130_s11  ;;  %s14618_s30 = int_to_ptr.vmem [resolvable:$true] %s158_s30 }
  0xfc   :  { %s13892_s24 = scalar_lea.hbm %s14346_s19, 32 }
  0xfd   :  { %p13893_p10 = scmp.ne.s32.totalorder %s14346_s19, %s13892_s24  ;;  %p13896_p11 = scmp.lt.u32.totalorder %s13892_s24, %s14346_s19 }
  0xff   :  { %p13898_p12 = pnand %p13896_p11, %p13893_p10 }
 0x101   :  { %13901 = shalt.err (!%p13898_p12)
}
 0x102   :  { %s13902_s15 = scalar_lea.vmem %s131_s11, 32  ;;  %p13907_p0 = scmp.lt.s32.totalorder %s131_s11, %s131_s11 }
 0x103   :  { %p13903_p13 = scmp.ne.s32.totalorder %s131_s11, %s13902_s15  ;;  %p13908_p1 = scmp.lt.s32.totalorder %s13902_s15, %s13902_s15 }
 0x105   :  { %p13909_p2 = por %p13908_p1, %p13907_p0 }
 0x107   :  { %p13910_p3 = pnand %p13909_p2, %p13903_p13 }
 0x109   :  { %13913 = shalt.err (!%p13910_p3)
}
 0x10a   :  { %136 = dma.hbm_to_vmem [thread:$0]  %s14346_s19, 32, %s131_s11, [#allocation5], %s14249_s2, %s14249_s2, %s14250_s7  }
 0x10b   :  { %s13914_s21 = scalar_lea.hbm %s14366_s12, 32 }
 0x10c   :  { %p13915_p4 = scmp.ne.s32.totalorder %s14366_s12, %s13914_s21  ;;  %p13918_p5 = scmp.lt.u32.totalorder %s13914_s21, %s14366_s12 }
 0x10e   :  { %p13920_p6 = pnand %p13918_p5, %p13915_p4 }
 0x110   :  { %13923 = shalt.err (!%p13920_p6)
}
 0x111   :  { %s13924_s16 = scalar_lea.vmem %s14618_s30, 32  ;;  %p13929_p8 = scmp.lt.s32.totalorder %s14618_s30, %s14618_s30 }
 0x112   :  { %p13925_p7 = scmp.ne.s32.totalorder %s14618_s30, %s13924_s16  ;;  %p13930_p9 = scmp.lt.s32.totalorder %s13924_s16, %s13924_s16 }
 0x114   :  { %p13931_p10 = por %p13930_p9, %p13929_p8 }
 0x116   :  { %p13932_p11 = pnand %p13931_p10, %p13925_p7 }
 0x118   :  { %13935 = shalt.err (!%p13932_p11)
}
 0x119   :  { %164 = dma.hbm_to_vmem [thread:$0]  %s14366_s12, 32, %s14618_s30, [#allocation8], %s14249_s2, %s14249_s2, %s14250_s7  }
 0x11a   :  { %s14261_s19 = smov [#allocation12]   ;;  %s14262_s22 = smov [#allocation15]  }
 0x11b   :  { %s182_s18 = sshll.u32 %s14261_s19, 4  ;;  %s206_s23 = sshll.u32 %s14262_s22, 4  ;;  %s183_s18 = int_to_ptr.vmem [resolvable:$true] %s182_s18  ;;  %s14639_s23 = int_to_ptr.vmem [resolvable:$true] %s206_s23 }
 0x11c   :  { %s13936_s14 = scalar_lea.hbm %s14376_s27, 32 }
 0x11d   :  { %p13937_p12 = scmp.ne.s32.totalorder %s14376_s27, %s13936_s14  ;;  %p13940_p13 = scmp.lt.u32.totalorder %s13936_s14, %s14376_s27 }
 0x11f   :  { %p13942_p0 = pnand %p13940_p13, %p13937_p12 }
 0x121   :  { %13945 = shalt.err (!%p13942_p0)
}
 0x122   :  { %s13946_s20 = scalar_lea.vmem %s183_s18, 32  ;;  %p13951_p2 = scmp.lt.s32.totalorder %s183_s18, %s183_s18 }
 0x123   :  { %p13947_p1 = scmp.ne.s32.totalorder %s183_s18, %s13946_s20  ;;  %p13952_p3 = scmp.lt.s32.totalorder %s13946_s20, %s13946_s20 }
 0x125   :  { %p13953_p4 = por %p13952_p3, %p13951_p2 }
 0x127   :  { %p13954_p5 = pnand %p13953_p4, %p13947_p1 }
 0x129   :  { %13957 = shalt.err (!%p13954_p5)
}
 0x12a   :  { %188 = dma.hbm_to_vmem [thread:$0]  %s14376_s27, 32, %s183_s18, [#allocation11], %s14249_s2, %s14249_s2, %s14250_s7  }
 0x12b   :  { %s13958_s12 = scalar_lea.hbm %s14386_s29, 32 }
 0x12c   :  { %p13959_p6 = scmp.ne.s32.totalorder %s14386_s29, %s13958_s12  ;;  %p13962_p7 = scmp.lt.u32.totalorder %s13958_s12, %s14386_s29 }
 0x12e   :  { %p13964_p8 = pnand %p13962_p7, %p13959_p6 }
 0x130   :  { %13967 = shalt.err (!%p13964_p8)
}
 0x131   :  { %s13968_s3 = scalar_lea.vmem %s14639_s23, 32  ;;  %p13973_p10 = scmp.lt.s32.totalorder %s14639_s23, %s14639_s23 }
 0x132   :  { %p13969_p9 = scmp.ne.s32.totalorder %s14639_s23, %s13968_s3  ;;  %p13974_p11 = scmp.lt.s32.totalorder %s13968_s3, %s13968_s3 }
 0x134   :  { %p13975_p12 = por %p13974_p11, %p13973_p10 }
 0x136   :  { %p13976_p13 = pnand %p13975_p12, %p13969_p9 }
 0x138   :  { %13979 = shalt.err (!%p13976_p13)
}
 0x139   :  { %s16246_s27 = sld [smem:[#allocation67_spill]]  ;;  %s14263_s0 = smov [#allocation18]  }
 0x13a   :  { %212 = dma.hbm_to_vmem [thread:$0]  %s14386_s29, 32, %s14639_s23, [#allocation14], %s14249_s2, %s14249_s2, %s14250_s7  }
 0x13b   :  { %s234_s4 = sshll.u32 %s14263_s0, 4  ;;  %s14264_s26 = smov [#allocation21]   ;;  %s235_s4 = int_to_ptr.vmem [resolvable:$true] %s234_s4 }
 0x13c   :  { %s260_s28 = sshll.u32 %s14264_s26, 4  ;;  %s14660_s28 = int_to_ptr.vmem [resolvable:$true] %s260_s28 }
 0x13f   :  { %s13980_s1 = scalar_lea.hbm %s16246_s27, 32 }
 0x140   :  { %p13981_p0 = scmp.ne.s32.totalorder %s16246_s27, %s13980_s1  ;;  %p13984_p1 = scmp.lt.u32.totalorder %s13980_s1, %s16246_s27 }
 0x142   :  { %p13986_p2 = pnand %p13984_p1, %p13981_p0 }
 0x144   :  { %13989 = shalt.err (!%p13986_p2)
}
 0x145   :  { %s13990_s13 = scalar_lea.vmem %s235_s4, 32  ;;  %p13995_p4 = scmp.lt.s32.totalorder %s235_s4, %s235_s4 }
 0x146   :  { %p13991_p3 = scmp.ne.s32.totalorder %s235_s4, %s13990_s13  ;;  %p13996_p5 = scmp.lt.s32.totalorder %s13990_s13, %s13990_s13 }
 0x148   :  { %p13997_p6 = por %p13996_p5, %p13995_p4 }
 0x14a   :  { %p13998_p7 = pnand %p13997_p6, %p13991_p3 }
 0x14c   :  { %14001 = shalt.err (!%p13998_p7)
}
 0x14d   :  { %s16247_s29 = sld [smem:[#allocation69_spill]] }
 0x14e   :  { %240 = dma.hbm_to_vmem [thread:$0]  %s16246_s27, 32, %s235_s4, [#allocation17], %s14249_s2, %s14249_s2, %s14250_s7  }
 0x153   :  { %s14002_s10 = scalar_lea.hbm %s16247_s29, 1024 }
 0x154   :  { %p14003_p8 = scmp.ne.s32.totalorder %s16247_s29, %s14002_s10  ;;  %p14006_p9 = scmp.lt.u32.totalorder %s14002_s10, %s16247_s29 }
 0x156   :  { %p14008_p10 = pnand %p14006_p9, %p14003_p8 }
 0x158   :  { %14011 = shalt.err (!%p14008_p10)
}
 0x159   :  { %s14012_s5 = scalar_lea.vmem %s14660_s28, 1024  ;;  %p14017_p12 = scmp.lt.s32.totalorder %s14660_s28, %s14660_s28 }
 0x15a   :  { %p14013_p11 = scmp.ne.s32.totalorder %s14660_s28, %s14012_s5  ;;  %p14018_p13 = scmp.lt.s32.totalorder %s14012_s5, %s14012_s5 }
 0x15c   :  { %p14019_p0 = por %p14018_p13, %p14017_p12 }
 0x15e   :  { %p14020_p1 = pnand %p14019_p0, %p14013_p11 }
 0x160   :  { %14023 = shalt.err (!%p14020_p1)
}
 0x161   :  { %s14265_s11 = smov 128   ;;  %s16248_s17 = sld [smem:[#allocation71_spill]] }
 0x162   :  { %s14266_s30 = smov 8   ;;  %s14267_s24 = smov [#allocation24]  }
 0x163   :  { %266 = dma.hbm_to_vmem [thread:$0]  %s16247_s29, 1024, %s14660_s28, [#allocation20], %s14265_s11, %s14265_s11, %s14266_s30  }
 0x164   :  { %s286_s15 = sshll.u32 %s14267_s24, 4  ;;  %s14268_s21 = smov [#allocation27]   ;;  %s287_s15 = int_to_ptr.vmem [resolvable:$true] %s286_s15 }
 0x165   :  { %s312_s16 = sshll.u32 %s14268_s21, 4  ;;  %s14681_s16 = int_to_ptr.vmem [resolvable:$true] %s312_s16 }
 0x167   :  { %s14024_s19 = scalar_lea.hbm %s16248_s17, 32 }
 0x168   :  { %p14025_p2 = scmp.ne.s32.totalorder %s16248_s17, %s14024_s19  ;;  %p14028_p3 = scmp.lt.u32.totalorder %s14024_s19, %s16248_s17 }
 0x16a   :  { %p14030_p4 = pnand %p14028_p3, %p14025_p2 }
 0x16c   :  { %14033 = shalt.err (!%p14030_p4)
}
 0x16d   :  { %s14034_s18 = scalar_lea.vmem %s287_s15, 32  ;;  %p14039_p6 = scmp.lt.s32.totalorder %s287_s15, %s287_s15 }
 0x16e   :  { %p14035_p5 = scmp.ne.s32.totalorder %s287_s15, %s14034_s18  ;;  %p14040_p7 = scmp.lt.s32.totalorder %s14034_s18, %s14034_s18 }
 0x170   :  { %p14041_p8 = por %p14040_p7, %p14039_p6 }
 0x172   :  { %p14042_p9 = pnand %p14041_p8, %p14035_p5 }
 0x174   :  { %14045 = shalt.err (!%p14042_p9)
}
 0x175   :  { %s16249_s22 = sld [smem:[#allocation73_spill]] }
 0x176   :  { %292 = dma.hbm_to_vmem [thread:$0]  %s16248_s17, 32, %s287_s15, [#allocation23], %s14249_s2, %s14249_s2, %s14250_s7  }
 0x17b   :  { %s14046_s23 = scalar_lea.hbm %s16249_s22, 32 }
 0x17c   :  { %p14047_p10 = scmp.ne.s32.totalorder %s16249_s22, %s14046_s23  ;;  %p14050_p11 = scmp.lt.u32.totalorder %s14046_s23, %s16249_s22 }
 0x17e   :  { %p14052_p12 = pnand %p14050_p11, %p14047_p10 }
 0x180   :  { %14055 = shalt.err (!%p14052_p12)
}
 0x181   :  { %s14056_s14 = scalar_lea.vmem %s14681_s16, 32  ;;  %p14061_p0 = scmp.lt.s32.totalorder %s14681_s16, %s14681_s16 }
 0x182   :  { %p14057_p13 = scmp.ne.s32.totalorder %s14681_s16, %s14056_s14  ;;  %p14062_p1 = scmp.lt.s32.totalorder %s14056_s14, %s14056_s14 }
 0x184   :  { %p14063_p2 = por %p14062_p1, %p14061_p0 }
 0x186   :  { %p14064_p3 = pnand %p14063_p2, %p14057_p13 }
 0x188   :  { %14067 = shalt.err (!%p14064_p3)
}
 0x189   :  { %s16250_s20 = sld [smem:[#allocation74_spill]]  ;;  %s14269_s12 = smov [#allocation30]  }
 0x18a   :  { %318 = dma.hbm_to_vmem [thread:$0]  %s16249_s22, 32, %s14681_s16, [#allocation26], %s14249_s2, %s14249_s2, %s14250_s7  }
 0x18b   :  { %s336_s3 = sshll.u32 %s14269_s12, 4  ;;  %s14270_s27 = smov [#allocation33]   ;;  %s337_s3 = int_to_ptr.vmem [resolvable:$true] %s336_s3 }
 0x18c   :  { %s360_s0 = sshll.u32 %s14270_s27, 4  ;;  %s14702_s0 = int_to_ptr.vmem [resolvable:$true] %s360_s0 }
 0x18f   :  { %s14068_s4 = scalar_lea.hbm %s16250_s20, 32 }
 0x190   :  { %p14069_p4 = scmp.ne.s32.totalorder %s16250_s20, %s14068_s4  ;;  %p14072_p5 = scmp.lt.u32.totalorder %s14068_s4, %s16250_s20 }
 0x192   :  { %p14074_p6 = pnand %p14072_p5, %p14069_p4 }
 0x194   :  { %14077 = shalt.err (!%p14074_p6)
}
 0x195   :  { %s14078_s26 = scalar_lea.vmem %s337_s3, 32  ;;  %p14083_p8 = scmp.lt.s32.totalorder %s337_s3, %s337_s3 }
 0x196   :  { %p14079_p7 = scmp.ne.s32.totalorder %s337_s3, %s14078_s26  ;;  %p14084_p9 = scmp.lt.s32.totalorder %s14078_s26, %s14078_s26 }
 0x198   :  { %p14085_p10 = por %p14084_p9, %p14083_p8 }
 0x19a   :  { %p14086_p11 = pnand %p14085_p10, %p14079_p7 }
 0x19c   :  { %14089 = shalt.err (!%p14086_p11)
}
 0x19d   :  { %s16251_s28 = sld [smem:[#allocation75_spill]] }
 0x19e   :  { %342 = dma.hbm_to_vmem [thread:$0]  %s16250_s20, 32, %s337_s3, [#allocation29], %s14249_s2, %s14249_s2, %s14250_s7  }
 0x1a3   :  { %s14090_s1 = scalar_lea.hbm %s16251_s28, 32 }
 0x1a4   :  { %p14091_p12 = scmp.ne.s32.totalorder %s16251_s28, %s14090_s1  ;;  %p14094_p13 = scmp.lt.u32.totalorder %s14090_s1, %s16251_s28 }
 0x1a6   :  { %p14096_p0 = pnand %p14094_p13, %p14091_p12 }
 0x1a8   :  { %14099 = shalt.err (!%p14096_p0)
}
 0x1a9   :  { %s14100_s13 = scalar_lea.vmem %s14702_s0, 32  ;;  %p14105_p2 = scmp.lt.s32.totalorder %s14702_s0, %s14702_s0 }
 0x1aa   :  { %p14101_p1 = scmp.ne.s32.totalorder %s14702_s0, %s14100_s13  ;;  %p14106_p3 = scmp.lt.s32.totalorder %s14100_s13, %s14100_s13 }
 0x1ac   :  { %p14107_p4 = por %p14106_p3, %p14105_p2 }
 0x1ae   :  { %p14108_p5 = pnand %p14107_p4, %p14101_p1 }
 0x1b0   :  { %14111 = shalt.err (!%p14108_p5)
}
 0x1b1   :  { %s16252_s29 = sld [smem:[#allocation78_spill]]  ;;  %s14271_s10 = smov [#allocation36]  }
 0x1b2   :  { %366 = dma.hbm_to_vmem [thread:$0]  %s16251_s28, 32, %s14702_s0, [#allocation32], %s14249_s2, %s14249_s2, %s14250_s7  }
 0x1b3   :  { %s389_s5 = sshll.u32 %s14271_s10, 4  ;;  %s14272_s17 = smov [#allocation37]   ;;  %s390_s5 = int_to_ptr.vmem [resolvable:$true] %s389_s5 }
 0x1b4   :  { %s399_s24 = sshll.u32 %s14272_s17, 4  ;;  %s400_s24 = int_to_ptr.vmem [resolvable:$true] %s399_s24 }
 0x1b7   :  { %s14112_s15 = scalar_lea.hbm %s16252_s29, 16 }
 0x1b8   :  { %p14113_p6 = scmp.ne.s32.totalorder %s16252_s29, %s14112_s15  ;;  %p14116_p7 = scmp.lt.u32.totalorder %s14112_s15, %s16252_s29 }
 0x1ba   :  { %p14118_p8 = pnand %p14116_p7, %p14113_p6 }
 0x1bc   :  { %14121 = shalt.err (!%p14118_p8)
}
 0x1bd   :  { %s14122_s21 = scalar_lea.vmem %s390_s5, 16  ;;  %s14126_s16 = scalar_lea.vmem %s390_s5, 32 }
 0x1be   :  { %p14123_p9 = scmp.ne.s32.totalorder %s390_s5, %s14122_s21  ;;  %p14127_p10 = scmp.lt.s32.totalorder %s390_s5, %s390_s5 }
 0x1bf   :  { %p14128_p11 = scmp.lt.s32.totalorder %s14126_s16, %s14122_s21 }
 0x1c1   :  { %p14129_p12 = por %p14128_p11, %p14127_p10 }
 0x1c3   :  { %p14130_p13 = pnand %p14129_p12, %p14123_p9 }
 0x1c5   :  { %14133 = shalt.err (!%p14130_p13)
}
 0x1c6   :  { %392 = dma.hbm_to_vmem [thread:$0]  %s16252_s29, 16, %s390_s5, [#allocation35]  }
 0x1c7   :  { %s14134_s7 = scalar_lea.hbm %s14496_s6, 16 }
 0x1c8   :  { %p14135_p0 = scmp.ne.s32.totalorder %s14496_s6, %s14134_s7  ;;  %p14138_p1 = scmp.lt.u32.totalorder %s14134_s7, %s14496_s6 }
 0x1ca   :  { %p14140_p2 = pnand %p14138_p1, %p14135_p0 }
 0x1cc   :  { %14143 = shalt.err (!%p14140_p2)
}
 0x1cd   :  { %s14144_s19 = scalar_lea.vmem %s400_s24, 16  ;;  %s14148_s18 = scalar_lea.vmem %s400_s24, 32 }
 0x1ce   :  { %p14145_p3 = scmp.ne.s32.totalorder %s400_s24, %s14144_s19  ;;  %p14149_p4 = scmp.lt.s32.totalorder %s400_s24, %s400_s24 }
 0x1cf   :  { %p14150_p5 = scmp.lt.s32.totalorder %s14148_s18, %s14144_s19 }
 0x1d1   :  { %p14151_p6 = por %p14150_p5, %p14149_p4 }
 0x1d3   :  { %p14152_p7 = pnand %p14151_p6, %p14145_p3 }
 0x1d5   :  { %14155 = shalt.err (!%p14152_p7)
}
 0x1d6   :  { %402 = dma.hbm_to_vmem [thread:$0]  %s14496_s6, 16, %s400_s24, [#allocation38]  }
 0x1d7   :  { %14178 = dma.done.wait [#allocation5], 32  }
 0x1d8   :  { %14179 = vsyncadd [#allocation5], 4294967264 }
 0x1d9   :  { %14180 = dma.done.wait [#allocation8], 64  }
 0x1da   :  { %14181 = vsyncadd [#allocation8], 4294967232 }
 0x1db   :  { %14182 = dma.done.wait [#allocation11], 64  }
 0x1dc   :  { %14183 = vsyncadd [#allocation11], 4294967232 }
 0x1dd   :  { %14184 = dma.done.wait [#allocation14], 64  }
 0x1de   :  { %14185 = vsyncadd [#allocation14], 4294967232 }
 0x1df   :  { %14186 = dma.done.wait [#allocation17], 64  }
 0x1e0   :  { %14187 = vsyncadd [#allocation17], 4294967232 }
 0x1e1   :  { %14188 = dma.done.wait [#allocation20], 1056  }
 0x1e2   :  { %14189 = vsyncadd [#allocation20], 4294966240 }
 0x1e3   :  { %14190 = dma.done.wait [#allocation23], 64  }
 0x1e4   :  { %14191 = vsyncadd [#allocation23], 4294967232 }
 0x1e5   :  { %14192 = dma.done.wait [#allocation26], 64  }
 0x1e6   :  { %14193 = vsyncadd [#allocation26], 4294967232 }
 0x1e7   :  { %14194 = dma.done.wait [#allocation29], 64  }
 0x1e8   :  { %14195 = vsyncadd [#allocation29], 4294967232 }
 0x1e9   :  { %14196 = dma.done.wait [#allocation32], 64  }
 0x1ea   :  { %14197 = vsyncadd [#allocation32], 4294967232 }
 0x1eb   :  { %14198 = dma.done.wait [#allocation35], 48  }
 0x1ec   :  { %14199 = vsyncadd [#allocation35], 4294967248 }
 0x1ed   :  { %14200 = dma.done.wait [#allocation38], 16  }
 0x1ee   :  { %14201 = vsyncadd [#allocation38], 4294967280  ;;  %s16253_s6 = sld [smem:[#allocation53_spill]]  ;;  %s16254_s22 = sld [smem:[#allocation55_spill]]  ;;  %vm481_vm0 = vcmask 261120   ;;  %v14273_v50 = vmov 0.0  }
 0x1ef   :  { %s16255_s23 = sld [smem:[#allocation60_spill]]  ;;  %v11667_v40 = vld [vmem:[#allocation10] ss:$0 sm:$0xff]  ;;  %s16256_s14 = sld [smem:[#allocation61_spill]]  ;;  %v11668_v43 = vld [vmem:[#allocation12] ss:$0 sm:$0xff]  ;;  %12310 = vmatprep.subr.mxu1 %v14273_v50 }
 0x1f0   :  { %vm14274_vm5 = vmmov 0   ;;  %s14275_s20 = smov 96   ;;  %s14276_s12 = smov 88   ;;  %vm642_vm6 = vcmask 64512   ;;  %vm978_vm9 = vcmask 130112   ;;  %vm1150_vm10 = vcmask 195712  }
 0x1f1   :  { %12312 = vmatprep.mubr.msk.f32.mxu1 %vm14274_vm5, %v14273_v50  ;;  %s14277_s3 = smov 80   ;;  %s14278_s27 = smov 72   ;;  %vm1322_vm11 = vcmask 261312  }
 0x1f2   :  { %s14279_s0 = smov 120   ;;  %s16257_s4 = sld [smem:[#allocation57_spill]] }
 0x1f3   :  { %s14280_s26 = smov 112   ;;  %s14281_s28 = smov 104  }
 0x1f4   :  { %v473_v0 = vld [vmem:[%s16253_s6] sm:$0xff]  ;;  %v474_v2 = vld [vmem:[%s16253_s6 + $0x8] sm:$0xff]  ;;  %s14282_s1 = smov 64   ;;  %s14283_s13 = smov 56  }
 0x1f5   :  { %v475_v1 = vld [vmem:[%s16254_s22] sm:$0xff]  ;;  %v476_v4 = vld [vmem:[%s16254_s22 + $0x8] sm:$0xff]  ;;  %v542_v20 = vld [vmem:[%s16255_s23 + $0x10] sm:$0xff]  ;;  %s14284_s29 = smov 40   ;;  %s14285_s10 = smov 48  }
 0x1f6   :  { %v14734_v3 = vadd.f32 %v475_v1, %v473_v0  ;;  %v14737_v5 = vadd.f32 %v476_v4, %v474_v2  ;;  %v540_v18 = vld [vmem:[%s16255_s23] sm:$0xff]  ;;  %v541_v19 = vld [vmem:[%s16255_s23 + $0x8] sm:$0xff]  ;;  %v543_v22 = vld [vmem:[%s16255_s23 + $0x18] sm:$0xff]  ;;  %s16258_s5 = sld [smem:[#allocation62_spill]]  ;;  %s14286_s17 = smov 24  }
 0x1f7   :  { %v13064_v21 = vpack.c.bf16 %v541_v19, %v540_v18  ;;  %v13068_v23 = vpack.c.bf16 %v543_v22, %v542_v20  ;;  %v11669_v51 = vld [vmem:[%s16256_s14] ss:$0 sm:$0xff]  ;;  %s16259_s24 = sld [smem:[#allocation63_spill]]  ;;  %s16260_s15 = sld [smem:[#allocation64_spill]] }
 0x1f8   :  { %v482_v6 = vsel %vm481_vm0, %v14734_v3, 0.0  ;;  %v485_v7 = vsel %vm481_vm0, %v14737_v5, 0.0  ;;  %v14787_v61 = vld [vmem:[%s16257_s4] sm:$0xff]  ;;  %s16261_s21 = sld [smem:[#allocation54_spill]]  ;;  %s16262_s16 = sld [smem:[#allocation56_spill]] }
 0x1f9   :  { %483 = vadd.xlane.f32.xlu0 %v482_v6  ;;  %13065 = vmatprep.subr.bf16.mxu0 %v13064_v21  ;;  %vm718_vm7 = vcmp.eq.f32.partialorder %v14787_v61, 0.0  ;;  %s16263_s7 = sld [smem:[#allocation65_spill]]  ;;  %s16264_s19 = sld [smem:[#allocation58_spill]] }
 0x1fa   :  { %13067 = vmatpush3.bf16.msra.mxu0 %v13064_v21  ;;  %s16265_s18 = sld [smem:[#allocation66_spill]]  ;;  %s16266_s6 = sld [smem:[#allocation76_spill]] }
 0x1fb   :  { %13069 = vmatprep.subr.bf16.mxu0 %v13068_v23  ;;  %s16267_s22 = sld [smem:[#allocation68_spill]] }
 0x1fd   :  { %486 = vadd.xlane.f32.xlu0 %v485_v7 }
 0x1fe   :  { %13071 = vmatpush3.bf16.msra.mxu0 %v13068_v23 }
 0x1ff   :  { %12330 = vmatprep.subr.mxu0 %v14273_v50 }
 0x286   :  { %v484_v8 = vpop.xlane.xlu0 %483 }
 0x287   :  { %v489_v9 = vmul.f32 0.03125, %v484_v8 }
 0x289   :  { %v491_v10 = vsub.f32 %v14734_v3, %v489_v9 }
 0x28a   :  { %v487_v11 = vpop.xlane.xlu0 %486 }
 0x28b   :  { %v490_v12 = vmul.f32 0.03125, %v487_v11  ;;  %v493_v13 = vmul.f32 %v491_v10, %v491_v10  ;;  %v510_v41 = vmul.f32 %v11667_v40, %v491_v10 }
 0x28d   :  { %v492_v14 = vsub.f32 %v14737_v5, %v490_v12  ;;  %v495_v15 = vsel %vm481_vm0, %v493_v13, 0.0 }
 0x28e   :  { %496 = vadd.xlane.f32.xlu1 %v495_v15 }
 0x28f   :  { %v494_v16 = vmul.f32 %v492_v14, %v492_v14  ;;  %v511_v45 = vmul.f32 %v11667_v40, %v492_v14 }
 0x291   :  { %v498_v17 = vsel %vm481_vm0, %v494_v16, 0.0 }
 0x292   :  { %499 = vadd.xlane.f32.xlu1 %v498_v17 }
 0x31b   :  { %v497_v24 = vpop.xlane.xlu1 %496 }
 0x31c   :  { %v502_v25 = vmul.f32 0.032258064, %v497_v24 }
 0x31e   :  { %13384 = vrsqrt.f32 %v502_v25  ;;  %vm514_vm1 = vcmp.eq.f32.partialorder %v502_v25, inf  ;;  %v517_v30 = vand.u32 2147483648, %v502_v25  ;;  %vm516_vm2 = vcmp.eq.f32.partialorder %v502_v25, 0.0 }
 0x31f   :  { %v500_v26 = vpop.xlane.xlu1 %499 }
 0x320   :  { %v503_v27 = vmul.f32 0.032258064, %v500_v26 }
 0x322   :  { %13386 = vrsqrt.f32 %v503_v27  ;;  %vm521_vm3 = vcmp.eq.f32.partialorder %v503_v27, inf  ;;  %v524_v36 = vand.u32 2147483648, %v503_v27  ;;  %vm523_vm4 = vcmp.eq.f32.partialorder %v503_v27, 0.0 }
 0x328   :  { %v13385_v28 = vpop.eup %13384 }
 0x329   :  { %v513_v29 = vmul.f32 %v13385_v28, %v502_v25  ;;  %v14843_v28 = vld [vmem:[%s16257_s4 + $0x8] sm:$0xff]  ;;  %s16270_s4 = sld [smem:[#allocation70_spill]] }
 0x32a   :  { %vm1405_vm8 = vcmp.eq.f32.partialorder %v14843_v28, 0.0 }
 0x32b   :  { %v515_v31 = vsel %vm514_vm1, %v502_v25, %v513_v29  ;;  %vm2266_vm1 = vcmask 523264  }
 0x32c   :  { %v13387_v32 = vpop.eup %13386  ;;  %v518_v33 = vsel %vm516_vm2, %v517_v30, %v515_v31 }
 0x32d   :  { %v520_v34 = vmul.f32 %v13387_v32, %v503_v27  ;;  %v526_v35 = vadd.f32 1e-06, %v518_v33 }
 0x32f   :  { %v522_v37 = vsel %vm521_vm3, %v503_v27, %v520_v34  ;;  %13388 = vrcp.f32 %v526_v35 }
 0x330   :  { %v525_v38 = vsel %vm523_vm4, %v524_v36, %v522_v37 }
 0x331   :  { %v527_v39 = vadd.f32 1e-06, %v525_v38 }
 0x333   :  { %13390 = vrcp.f32 %v527_v39 }
 0x339   :  { %v13389_v42 = vpop.eup %13388 }
 0x33a   :  { %v529_v44 = vmul.f32 %v13389_v42, %v510_v41 }
 0x33c   :  { %v538_v46 = vadd.f32 %v11668_v43, %v529_v44 }
 0x33d   :  { %v13391_v47 = vpop.eup %13390 }
 0x33e   :  { %v531_v48 = vmul.f32 %v13391_v47, %v511_v45  ;;  %12307 = vmatprep.mubr.msk.f32.mxu0 %vm481_vm0, %v538_v46 }
 0x340   :  { %v539_v49 = vadd.f32 %v11668_v43, %v531_v48 }
 0x342   :  { %12308 = vmatmul.mubr.msk.f32.vlgmr.msra.gmra.mrb[0].mxu0 %vm481_vm0, %v539_v49 }
 0x343   :  { %12332 = vmatprep.mubr.msk.f32.mxu0 %vm14274_vm5, %v14273_v50 }
 0x415   :  { %v12309_v52 = vpop.f32.mrb[0].mxu0 }
 0x416   :  { %v628_v53 = vpop.f32.mrb[1].mxu0  ;;  %v14770_v55 = vadd.f32 %v12309_v52, %v11669_v51 }
 0x417   :  { %v14760_v54 = vadd.f32 %v11669_v51, %v628_v53 }
 0x418   :  { %v1326_v56 = vmul.f32 0.35355338, %v14770_v55 }
 0x419   :  { %640 = vrot.lane.b32.xlu0 %v14760_v54, %s14275_s20  ;;  %v638_v58 = vmul.f32 0.35355338, %v14760_v54 }
 0x41d   :  { %810 = vrot.lane.b32.xlu0 %v14760_v54, %s14276_s12 }
 0x421   :  { %982 = vrot.lane.b32.xlu0 %v14760_v54, %s14277_s3 }
 0x425   :  { %1154 = vrot.lane.b32.xlu0 %v14760_v54, %s14278_s27 }
 0x429   :  { %1328 = vrot.lane.b32.xlu0 %v14770_v55, %s14275_s20 }
 0x42d   :  { %1495 = vrot.lane.b32.xlu0 %v1326_v56, %s14279_s0 }
 0x431   :  { %1666 = vrot.lane.b32.xlu0 %v1326_v56, %s14280_s26 }
 0x435   :  { %1837 = vrot.lane.b32.xlu0 %v1326_v56, %s14281_s28 }
 0x48b   :  { %v641_v57 = vpop.permute.xlu0 %640 }
 0x48c   :  { %12311 = vmatpush3.xpose.msk.msra.mxu1 %vm642_vm6, %v641_v57 }
 0x48d   :  { %12315 = vmatprep.subr.mxu1 %v14273_v50 }
 0x48f   :  { %v811_v59 = vpop.permute.xlu0 %810  ;;  %12313 = vmatmul.mubr.msk.f32.vlgmr.msra.gmra.mrb[0].mxu1 %vm642_vm6, %v638_v58 }
 0x490   :  { %12317 = vmatprep.mubr.msk.f32.mxu1 %vm14274_vm5, %v14273_v50 }
 0x493   :  { %v983_v60 = vpop.permute.xlu0 %982 }
 0x494   :  { %12331 = vmatpush3.xpose.msk.msra.mxu0 %vm642_vm6, %v983_v60 }
 0x495   :  { %12340 = vmatprep.subr.mxu0 %v14273_v50 }
 0x497   :  { %v1155_v11 = vpop.permute.xlu0 %1154 }
 0x49b   :  { %v1329_v14 = vpop.permute.xlu0 %1328 }
 0x49f   :  { %v1496_v17 = vpop.permute.xlu0 %1495 }
 0x4a3   :  { %v1667_v21 = vpop.permute.xlu0 %1666 }
 0x4a7   :  { %v1838_v23 = vpop.permute.xlu0 %1837 }
 0x562   :  { %v714_v62 = vpop.f32.mrb[0].mxu1 }
 0x563   :  { %v719_v63 = vsel %vm718_vm7, -1e+09, %v714_v62  ;;  %v12314_v0 = vpop.f32.mrb[1].mxu1 }
 0x564   :  { %v720_v1 = vsel %vm642_vm6, %v719_v63, -inf }
 0x565   :  { %721 = vmax.xlane.f32.xlu1 %v720_v1 }
 0x576   :  { %731 = vrot.lane.b32.xlu1 %v14760_v54, %s14282_s1 }
 0x57a   :  { %808 = vrot.lane.b32.xlu1 %v638_v58, %s14279_s0 }
 0x5f2   :  { %v722_v2 = vpop.xlane.xlu1 %721 }
 0x5f3   :  { %v723_v4 = vsub.f32 %v719_v63, %v722_v2 }
 0x5f5   :  { %v724_v6 = vmul.f32 1.442695, %v723_v4 }
 0x5f6   :  { %v732_v7 = vpop.permute.xlu1 %731 }
 0x5f7   :  { %13392 = vpow2.f32 %v724_v6  ;;  %12316 = vmatpush3.msra.mxu1 %v732_v7 }
 0x5f8   :  { %12320 = vmatprep.subr.mxu1 %v14273_v50 }
 0x5fa   :  { %v809_v10 = vpop.permute.xlu1 %808 }
 0x601   :  { %v13393_v8 = vpop.eup %13392 }
 0x602   :  { %v726_v9 = vsel %vm642_vm6, %v13393_v8, 0.0 }
 0x603   :  { %727 = vadd.xlane.f32.xlu1 %v726_v9 }
 0x614   :  { %980 = vrot.lane.b32.xlu1 %v638_v58, %s14280_s26 }
 0x618   :  { %1152 = vrot.lane.b32.xlu1 %v638_v58, %s14281_s28 }
 0x61c   :  { %1497 = vrot.lane.b32.xlu1 %v14770_v55, %s14276_s12 }
 0x620   :  { %1668 = vrot.lane.b32.xlu1 %v14770_v55, %s14277_s3 }
 0x624   :  { %1839 = vrot.lane.b32.xlu1 %v14770_v55, %s14278_s27 }
 0x690   :  { %v728_v12 = vpop.xlane.xlu1 %727 }
 0x691   :  { %13394 = vrcp.f32 %v728_v12 }
 0x694   :  { %v981_v13 = vpop.permute.xlu1 %980 }
 0x695   :  { %12333 = vmatmul.mubr.msk.f32.vlgmr.msra.gmra.mrb[2].mxu0 %vm642_vm6, %v981_v13 }
 0x696   :  { %12341 = vmatpush3.xpose.msk.msra.mxu0 %vm642_vm6, %v1155_v11  ;;  %12342 = vmatprep.mubr.msk.f32.mxu0 %vm14274_vm5, %v14273_v50 }
 0x697   :  { %12350 = vmatprep.subr.mxu0 %v14273_v50 }
 0x698   :  { %v1153_v15 = vpop.permute.xlu1 %1152 }
 0x699   :  { %12343 = vmatmul.mubr.msk.f32.vlgmr.msra.gmra.mrb[4].mxu0 %vm642_vm6, %v1153_v15 }
 0x69a   :  { %12351 = vmatpush3.xpose.msk.msra.mxu0 %vm642_vm6, %v1329_v14  ;;  %12352 = vmatprep.mubr.msk.f32.mxu0 %vm14274_vm5, %v14273_v50 }
 0x69b   :  { %v13395_v16 = vpop.eup %13394  ;;  %12360 = vmatprep.subr.mxu0 %v14273_v50 }
 0x69c   :  { %v1498_v18 = vpop.permute.xlu1 %1497  ;;  %v730_v19 = vmul.f32 %v13395_v16, %v13393_v8 }
 0x69d   :  { %12353 = vmatmul.mubr.msk.f32.vlgmr.msra.gmra.mrb[6].mxu0 %vm642_vm6, %v1326_v56 }
 0x69e   :  { %12361 = vmatpush3.xpose.msk.msra.mxu0 %vm642_vm6, %v1498_v18  ;;  %12318 = vmatmul.mubr.msk.f32.vlgmr.msra.gmra.mrb[2].mxu1 %vm642_vm6, %v730_v19 }
 0x69f   :  { %12321 = vmatpush3.xpose.msk.msra.mxu1 %vm642_vm6, %v811_v59  ;;  %12362 = vmatprep.mubr.msk.f32.mxu0 %vm14274_vm5, %v14273_v50 }
 0x6a0   :  { %12370 = vmatprep.subr.mxu0 %v14273_v50  ;;  %v1669_v20 = vpop.permute.xlu1 %1668  ;;  %12322 = vmatprep.mubr.msk.f32.mxu1 %vm14274_vm5, %v14273_v50 }
 0x6a1   :  { %12363 = vmatmul.mubr.msk.f32.vlgmr.msra.gmra.mrb[8].mxu0 %vm642_vm6, %v1496_v17  ;;  %12325 = vmatprep.subr.mxu1 %v14273_v50 }
 0x6a2   :  { %12371 = vmatpush3.xpose.msk.msra.mxu0 %vm642_vm6, %v1669_v20  ;;  %12323 = vmatmul.mubr.msk.f32.vlgmr.msra.gmra.mrb[4].mxu1 %vm642_vm6, %v809_v10 }
 0x6a3   :  { %12372 = vmatprep.mubr.msk.f32.mxu0 %vm14274_vm5, %v14273_v50  ;;  %12380 = vmatprep.subr.mxu0 %v14273_v50 }
 0x6a4   :  { %v1840_v22 = vpop.permute.xlu1 %1839  ;;  %12327 = vmatprep.mubr.msk.f32.mxu1 %vm14274_vm5, %v14273_v50 }
 0x6a5   :  { %12373 = vmatmul.mubr.msk.f32.vlgmr.msra.gmra.mrb[10].mxu0 %vm642_vm6, %v1667_v21 }
 0x6a6   :  { %12381 = vmatpush3.xpose.msk.msra.mxu0 %vm642_vm6, %v1840_v22  ;;  %12382 = vmatprep.mubr.msk.f32.mxu0 %vm14274_vm5, %v14273_v50 }
 0x6a9   :  { %12383 = vmatmul.mubr.msk.f32.vlgmr.msra.gmra.mrb[12].mxu0 %vm642_vm6, %v1838_v23 }
 0x768   :  { %v1054_v24 = vpop.f32.mrb[2].mxu0 }
 0x769   :  { %v1058_v25 = vsel %vm718_vm7, -1e+09, %v1054_v24  ;;  %v12334_v26 = vpop.f32.mrb[3].mxu0 }
 0x76a   :  { %v1059_v27 = vsel %vm642_vm6, %v1058_v25, -inf }
 0x76b   :  { %1060 = vmax.xlane.f32.xlu0 %v1059_v27 }
 0x76c   :  { %v1226_v29 = vpop.f32.mrb[4].mxu0 }
 0x76d   :  { %v1230_v30 = vsel %vm718_vm7, -1e+09, %v1226_v29  ;;  %v12344_v31 = vpop.f32.mrb[5].mxu0 }
 0x76e   :  { %v1231_v32 = vsel %vm642_vm6, %v1230_v30, -inf }
 0x76f   :  { %1232 = vmax.xlane.f32.xlu0 %v1231_v32 }
 0x770   :  { %v1401_v33 = vpop.f32.mrb[6].mxu0 }
 0x771   :  { %v1406_v34 = vsel %vm1405_vm8, -1e+09, %v1401_v33  ;;  %v803_v35 = vpop.f32.mrb[2].mxu1  ;;  %v12354_v36 = vpop.f32.mrb[7].mxu0 }
 0x772   :  { %807 = vst.msk [vmem:[#allocation2] sm:$0xff] %vm642_vm6, %v803_v35  ;;  %v12319_v37 = vpop.f32.mrb[3].mxu1  ;;  %v1407_v38 = vsel %vm642_vm6, %v1406_v34, -inf }
 0x773   :  { %1408 = vmax.xlane.f32.xlu0 %v1407_v38 }
 0x774   :  { %v1569_v39 = vpop.f32.mrb[8].mxu0 }
 0x775   :  { %v882_v40 = vpop.f32.mrb[4].mxu1  ;;  %v12364_v41 = vpop.f32.mrb[9].mxu0  ;;  %v1573_v45 = vsel %vm1405_vm8, -1e+09, %v1569_v39 }
 0x776   :  { %v886_v42 = vsel %vm718_vm7, -1e+09, %v882_v40  ;;  %v12324_v43 = vpop.f32.mrb[5].mxu1  ;;  %v1574_v51 = vsel %vm642_vm6, %v1573_v45, -inf }
 0x777   :  { %v887_v44 = vsel %vm642_vm6, %v886_v42, -inf }
 0x778   :  { %v1740_v46 = vpop.f32.mrb[10].mxu0  ;;  %888 = vmax.xlane.f32.xlu1 %v887_v44 }
 0x779   :  { %v1744_v47 = vsel %vm1405_vm8, -1e+09, %v1740_v46  ;;  %v12374_v48 = vpop.f32.mrb[11].mxu0 }
 0x77a   :  { %v1745_v49 = vsel %vm642_vm6, %v1744_v47, -inf }
 0x77b   :  { %1746 = vmax.xlane.f32.xlu0 %v1745_v49 }
 0x77c   :  { %v1911_v52 = vpop.f32.mrb[12].mxu0  ;;  %1575 = vmax.xlane.f32.xlu1 %v1574_v51 }
 0x77d   :  { %v1915_v53 = vsel %vm1405_vm8, -1e+09, %v1911_v52  ;;  %v12384_v56 = vpop.f32.mrb[13].mxu0 }
 0x77e   :  { %v1916_v57 = vsel %vm642_vm6, %v1915_v53, -inf }
 0x780   :  { %1917 = vmax.xlane.f32.xlu1 %v1916_v57 }
 0x7f8   :  { %v1061_v58 = vpop.xlane.xlu0 %1060 }
 0x7f9   :  { %v1062_v59 = vsub.f32 %v1058_v25, %v1061_v58 }
 0x7fb   :  { %v1063_v60 = vmul.f32 1.442695, %v1062_v59 }
 0x7fc   :  { %v1233_v62 = vpop.xlane.xlu0 %1232 }
 0x7fd   :  { %13396 = vpow2.f32 %v1063_v60  ;;  %v1234_v63 = vsub.f32 %v1230_v30, %v1233_v62 }
 0x7ff   :  { %v1235_v0 = vmul.f32 1.442695, %v1234_v63 }
 0x800   :  { %v1409_v1 = vpop.xlane.xlu0 %1408 }
 0x801   :  { %13398 = vpow2.f32 %v1235_v0  ;;  %v1410_v2 = vsub.f32 %v1406_v34, %v1409_v1 }
 0x803   :  { %v1411_v4 = vmul.f32 1.442695, %v1410_v2 }
 0x805   :  { %13400 = vpow2.f32 %v1411_v4  ;;  %v889_v6 = vpop.xlane.xlu1 %888 }
 0x806   :  { %v890_v15 = vsub.f32 %v886_v42, %v889_v6 }
 0x807   :  { %v14865_v7 = vpop.eup %13396 }
 0x808   :  { %v1747_v8 = vpop.xlane.xlu0 %1746  ;;  %v1065_v9 = vsel %vm642_vm6, %v14865_v7, 0.0  ;;  %v891_v21 = vmul.f32 1.442695, %v890_v15 }
 0x809   :  { %v1748_v10 = vsub.f32 %v1744_v47, %v1747_v8  ;;  %1066 = vadd.xlane.f32.xlu1 %v1065_v9  ;;  %v1576_v11 = vpop.xlane.xlu1 %1575  ;;  %v546_v8 = vld [vmem:[%s16258_s5 + $0x8] sm:$0xff] }
 0x80a   :  { %v1577_v12 = vsub.f32 %v1573_v45, %v1576_v11  ;;  %v547_v11 = vld [vmem:[%s16258_s5 + $0x10] sm:$0xff] }
 0x80b   :  { %v14869_v13 = vpop.eup %13398  ;;  %v1749_v14 = vmul.f32 1.442695, %v1748_v10 }
 0x80c   :  { %v1578_v16 = vmul.f32 1.442695, %v1577_v12  ;;  %v1237_v17 = vsel %vm642_vm6, %v14869_v13, 0.0  ;;  %v548_v12 = vld [vmem:[%s16258_s5 + $0x18] sm:$0xff] }
 0x80d   :  { %13402 = vpow2.f32 %v1749_v14  ;;  %1238 = vadd.xlane.f32.xlu0 %v1237_v17  ;;  %v1918_v18 = vpop.xlane.xlu1 %1917  ;;  %v13076_v14 = vpack.c.bf16 %v548_v12, %v547_v11 }
 0x80e   :  { %13404 = vpow2.f32 %v1578_v16  ;;  %v1919_v19 = vsub.f32 %v1915_v53, %v1918_v18 }
 0x80f   :  { %v14873_v20 = vpop.eup %13400 }
 0x810   :  { %v1920_v22 = vmul.f32 1.442695, %v1919_v19  ;;  %v1413_v23 = vsel %vm642_vm6, %v14873_v20, 0.0 }
 0x811   :  { %1414 = vadd.xlane.f32.xlu1 %v1413_v23 }
 0x812   :  { %13406 = vpow2.f32 %v1920_v22 }
 0x813   :  { %13408 = vpow2.f32 %v891_v21 }
 0x817   :  { %v14877_v24 = vpop.eup %13402 }
 0x818   :  { %v14879_v25 = vpop.eup %13404  ;;  %v1751_v26 = vsel %vm642_vm6, %v14877_v24, 0.0 }
 0x819   :  { %1752 = vadd.xlane.f32.xlu1 %v1751_v26  ;;  %v1580_v27 = vsel %vm642_vm6, %v14879_v25, 0.0 }
 0x81a   :  { %1581 = vadd.xlane.f32.xlu0 %v1580_v27 }
 0x81c   :  { %v14885_v29 = vpop.eup %13406 }
 0x81d   :  { %v1922_v30 = vsel %vm642_vm6, %v14885_v29, 0.0  ;;  %v13409_v31 = vpop.eup %13408 }
 0x81e   :  { %1923 = vadd.xlane.f32.xlu0 %v1922_v30  ;;  %v893_v32 = vsel %vm642_vm6, %v13409_v31, 0.0  ;;  %v11697_v30 = vld [vmem:[#allocation4] ss:$0 sm:$0xff] }
 0x822   :  { %894 = vadd.xlane.f32.xlu0 %v893_v32 }
 0x82a   :  { %898 = vrot.lane.b32.xlu1 %v14760_v54, %s14283_s13 }
 0x82e   :  { %1242 = vrot.lane.b32.xlu1 %v14760_v54, %s14284_s29 }
 0x832   :  { %1418 = vrot.lane.b32.xlu1 %v14770_v55, %s14282_s1 }
 0x836   :  { %1585 = vrot.lane.b32.xlu1 %v14770_v55, %s14283_s13 }
 0x838   :  { %1070 = vrot.lane.b32.xlu0 %v14760_v54, %s14285_s10 }
 0x83a   :  { %1927 = vrot.lane.b32.xlu1 %v14770_v55, %s14284_s29 }
 0x83c   :  { %1756 = vrot.lane.b32.xlu0 %v14770_v55, %s14285_s10 }
 0x896   :  { %v1067_v33 = vpop.xlane.xlu1 %1066 }
 0x89a   :  { %v1239_v35 = vpop.xlane.xlu0 %1238 }
 0x89e   :  { %v1415_v34 = vpop.xlane.xlu1 %1414 }
 0x8a6   :  { %v1753_v36 = vpop.xlane.xlu1 %1752 }
 0x8a7   :  { %v1582_v37 = vpop.xlane.xlu0 %1581 }
 0x8aa   :  { %v899_v38 = vpop.permute.xlu1 %898 }
 0x8ab   :  { %v1924_v39 = vpop.xlane.xlu0 %1923  ;;  %12326 = vmatpush3.msra.mxu1 %v899_v38 }
 0x8ac   :  { %12335 = vmatprep.subr.mxu1 %v14273_v50 }
 0x8ae   :  { %v1243_v43 = vpop.permute.xlu1 %1242 }
 0x8af   :  { %v895_v40 = vpop.xlane.xlu0 %894 }
 0x8b0   :  { %13410 = vrcp.f32 %v895_v40 }
 0x8b1   :  { %13412 = vrcp.f32 %v1067_v33 }
 0x8b2   :  { %13414 = vrcp.f32 %v1239_v35  ;;  %v1419_v46 = vpop.permute.xlu1 %1418 }
 0x8b3   :  { %13416 = vrcp.f32 %v1415_v34  ;;  %v1071_v55 = vpop.permute.xlu0 %1070 }
 0x8b4   :  { %13418 = vrcp.f32 %v1582_v37 }
 0x8b5   :  { %13420 = vrcp.f32 %v1753_v36 }
 0x8b6   :  { %13422 = vrcp.f32 %v1924_v39  ;;  %v1586_v52 = vpop.permute.xlu1 %1585 }
 0x8b7   :  { %v1757_v57 = vpop.permute.xlu0 %1756 }
 0x8ba   :  { %v13411_v54 = vpop.eup %13410  ;;  %v1928_v60 = vpop.permute.xlu1 %1927 }
 0x8bb   :  { %v897_v41 = vmul.f32 %v13411_v54, %v13409_v31  ;;  %v13413_v42 = vpop.eup %13412 }
 0x8bc   :  { %v1069_v44 = vmul.f32 %v13413_v42, %v14865_v7  ;;  %v13415_v45 = vpop.eup %13414  ;;  %v545_v7 = vld [vmem:[%s16258_s5] sm:$0xff] }
 0x8bd   :  { %12328 = vmatmul.mubr.msk.f32.vlgmr.msra.gmra.mrb[6].mxu1 %vm642_vm6, %v897_v41  ;;  %v1241_v47 = vmul.f32 %v13415_v45, %v14869_v13  ;;  %v13417_v48 = vpop.eup %13416  ;;  %v13072_v9 = vpack.c.bf16 %v546_v8, %v545_v7  ;;  %v2157_v45 = vld [vmem:[%s16259_s24] sm:$0xff] }
 0x8be   :  { %12336 = vmatpush3.msra.mxu1 %v1071_v55  ;;  %12337 = vmatprep.mubr.msk.f32.mxu1 %vm14274_vm5, %v14273_v50  ;;  %v1417_v49 = vmul.f32 %v13417_v48, %v14873_v20  ;;  %v13419_v51 = vpop.eup %13418 }
 0x8bf   :  { %12345 = vmatprep.subr.mxu1 %v14273_v50  ;;  %v1584_v53 = vmul.f32 %v13419_v51, %v14879_v25  ;;  %v13421_v56 = vpop.eup %13420  ;;  %13073 = vmatprep.subr.bf16.mxu0 %v13072_v9 }
 0x8c0   :  { %v1755_v58 = vmul.f32 %v13421_v56, %v14877_v24  ;;  %v13423_v59 = vpop.eup %13422  ;;  %13075 = vmatpush3.bf16.msra.mxu0 %v13072_v9  ;;  %v2164_v56 = vld [vmem:[%s16260_s15 + $0x10] sm:$0xff] }
 0x8c1   :  { %12338 = vmatmul.mubr.msk.f32.vlgmr.msra.gmra.mrb[8].mxu1 %vm642_vm6, %v1069_v44  ;;  %v1926_v62 = vmul.f32 %v13423_v59, %v14885_v29  ;;  %13077 = vmatprep.subr.bf16.mxu0 %v13076_v14 }
 0x8c2   :  { %12346 = vmatpush3.msra.mxu1 %v1243_v43  ;;  %12347 = vmatprep.mubr.msk.f32.mxu1 %vm14274_vm5, %v14273_v50 }
 0x8c3   :  { %12355 = vmatprep.subr.mxu1 %v14273_v50 }
 0x8c4   :  { %13079 = vmatpush3.bf16.msra.mxu0 %v13076_v14 }
 0x8c5   :  { %12348 = vmatmul.mubr.msk.f32.vlgmr.msra.gmra.mrb[10].mxu1 %vm642_vm6, %v1241_v47  ;;  %v2159_v47 = vld [vmem:[%s16259_s24 + $0x10] sm:$0xff] }
 0x8c6   :  { %12356 = vmatpush3.msra.mxu1 %v1419_v46  ;;  %12357 = vmatprep.mubr.msk.f32.mxu1 %vm14274_vm5, %v14273_v50  ;;  %v2158_v46 = vld [vmem:[%s16259_s24 + $0x8] sm:$0xff] }
 0x8c7   :  { %12365 = vmatprep.subr.mxu1 %v14273_v50  ;;  %v13080_v48 = vpack.c.bf16 %v2158_v46, %v2157_v45 }
 0x8c9   :  { %12358 = vmatmul.mubr.msk.f32.vlgmr.msra.gmra.mrb[12].mxu1 %vm642_vm6, %v1417_v49  ;;  %v2160_v49 = vld [vmem:[%s16259_s24 + $0x18] sm:$0xff] }
 0x8ca   :  { %12366 = vmatpush3.msra.mxu1 %v1586_v52  ;;  %12367 = vmatprep.mubr.msk.f32.mxu1 %vm14274_vm5, %v14273_v50  ;;  %v13084_v51 = vpack.c.bf16 %v2160_v49, %v2159_v47  ;;  %v2162_v52 = vld [vmem:[%s16260_s15] sm:$0xff] }
 0x8cb   :  { %12375 = vmatprep.subr.mxu1 %v14273_v50 }
 0x8cd   :  { %12368 = vmatmul.mubr.msk.f32.vlgmr.msra.gmra.mrb[14].mxu1 %vm642_vm6, %v1584_v53  ;;  %v2163_v53 = vld [vmem:[%s16260_s15 + $0x8] sm:$0xff] }
 0x8ce   :  { %12376 = vmatpush3.msra.mxu1 %v1757_v57  ;;  %12377 = vmatprep.mubr.msk.f32.mxu1 %vm14274_vm5, %v14273_v50  ;;  %v13088_v57 = vpack.c.bf16 %v2163_v53, %v2162_v52 }
 0x8cf   :  { %12385 = vmatprep.subr.mxu1 %v14273_v50 }
 0x8d0   :  { %13089 = vmatprep.subr.bf16.mxu0 %v13088_v57 }
 0x8d1   :  { %12378 = vmatmul.mubr.msk.f32.vlgmr.msra.gmra.mrb[16].mxu1 %vm642_vm6, %v1755_v58  ;;  %v2165_v58 = vld [vmem:[%s16260_s15 + $0x18] sm:$0xff] }
 0x8d2   :  { %12386 = vmatpush3.msra.mxu1 %v1928_v60  ;;  %12387 = vmatprep.mubr.msk.f32.mxu1 %vm14274_vm5, %v14273_v50  ;;  %v13092_v59 = vpack.c.bf16 %v2165_v58, %v2164_v56  ;;  %v2166_v60 = vld [vmem:[%s16260_s15 + $0x20] sm:$0xff]  ;;  %v11711_v58 = vld [vmem:[%s16255_s23 + $0x28] sm:$0xff] }
 0x8d3   :  { %13081 = vmatprep.subr.bf16.mxu1 %v13080_v48 }
 0x8d5   :  { %12388 = vmatmul.mubr.msk.f32.vlgmr.msra.gmra.mrb[18].mxu1 %vm642_vm6, %v1926_v62  ;;  %v2167_v62 = vld [vmem:[%s16260_s15 + $0x28] sm:$0xff] }
 0x8d6   :  { %13083 = vmatpush3.bf16.msra.mxu1 %v13080_v48 }
 0x8d7   :  { %13085 = vmatprep.subr.bf16.mxu1 %v13084_v51 }
 0x8da   :  { %13087 = vmatpush3.bf16.msra.mxu1 %v13084_v51 }
 0x990   :  { %v970_v63 = vpop.f32.mrb[6].mxu1 }
 0x991   :  { %975 = vrot.lane.b32.xlu0 %v970_v63, %s14266_s30  ;;  %v12329_v0 = vpop.f32.mrb[7].mxu1  ;;  %v13096_v63 = vpack.c.bf16 %v2167_v62, %v2166_v60  ;;  %v11713_v62 = vld [vmem:[%s16255_s23 + $0x38] sm:$0xff] }
 0x994   :  { %v1142_v1 = vpop.f32.mrb[8].mxu1 }
 0x995   :  { %1147 = vrot.lane.b32.xlu1 %v1142_v1, %s14249_s2  ;;  %v12339_v2 = vpop.f32.mrb[9].mxu1 }
 0x998   :  { %v1314_v4 = vpop.f32.mrb[10].mxu1 }
 0x999   :  { %1319 = vrot.lane.b32.xlu1 %v1314_v4, %s14286_s17  ;;  %v12349_v6 = vpop.f32.mrb[11].mxu1 }
 0x99c   :  { %v1490_v10 = vpop.f32.mrb[12].mxu1 }
 0x99d   :  { %1494 = vst.msk [vmem:[#allocation2 + $0x8] sm:$0xff] %vm642_vm6, %v1490_v10  ;;  %v12359_v13 = vpop.f32.mrb[13].mxu1 }
 0x9a0   :  { %v1657_v15 = vpop.f32.mrb[14].mxu1 }
 0x9a1   :  { %1662 = vrot.lane.b32.xlu0 %v1657_v15, %s14266_s30  ;;  %v12369_v16 = vpop.f32.mrb[15].mxu1 }
 0x9a4   :  { %v1828_v17 = vpop.f32.mrb[16].mxu1 }
 0x9a5   :  { %1833 = vrot.lane.b32.xlu0 %v1828_v17, %s14249_s2  ;;  %v12379_v18 = vpop.f32.mrb[17].mxu1 }
 0x9a6   :  { %v11700_v18 = vld [vmem:[#allocation13] ss:$0 sm:$0xff] }
 0x9a8   :  { %v1999_v19 = vpop.f32.mrb[18].mxu1 }
 0x9a9   :  { %2004 = vrot.lane.b32.xlu1 %v1999_v19, %s14286_s17  ;;  %v12389_v20 = vpop.f32.mrb[19].mxu1 }
 0xa03   :  { %v976_v21 = vpop.permute.xlu0 %975 }
 0xa04   :  { %979 = vst.msk [vmem:[#allocation2] sm:$0xff] %vm978_vm9, %v976_v21  ;;  %v11701_v21 = vld [vmem:[#allocation15] ss:$0 sm:$0xff] }
 0xa07   :  { %v1148_v22 = vpop.permute.xlu1 %1147 }
 0xa08   :  { %1151 = vst.msk [vmem:[#allocation2] sm:$0xff] %vm1150_vm10, %v1148_v22 }
 0xa0b   :  { %v1320_v23 = vpop.permute.xlu1 %1319 }
 0xa0c   :  { %1323 = vst.msk [vmem:[#allocation2] sm:$0xff] %vm1322_vm11, %v1320_v23 }
 0xa13   :  { %v1663_v24 = vpop.permute.xlu0 %1662  ;;  %v2008_v25 = vld [vmem:[#allocation2] sm:$0xff] }
 0xa14   :  { %1665 = vst.msk [vmem:[#allocation2 + $0x8] sm:$0xff] %vm978_vm9, %v1663_v24  ;;  %12398 = vmatprep.mubr.msk.f32.mxu0 %vm481_vm0, %v2008_v25 }
 0xa17   :  { %v1834_v26 = vpop.permute.xlu0 %1833 }
 0xa18   :  { %1836 = vst.msk [vmem:[#allocation2 + $0x8] sm:$0xff] %vm1150_vm10, %v1834_v26 }
 0xa1b   :  { %v2005_v27 = vpop.permute.xlu1 %2004 }
 0xa1c   :  { %2007 = vst.msk [vmem:[#allocation2 + $0x8] sm:$0xff] %vm1322_vm11, %v2005_v27 }
 0xa23   :  { %v2009_v29 = vld [vmem:[#allocation2 + $0x8] sm:$0xff] }
 0xa24   :  { %12399 = vmatmul.mubr.msk.f32.vlgmr.msra.gmra.mrb[14].mxu0 %vm481_vm0, %v2009_v29  ;;  %v2168_v29 = vld [vmem:[%s16260_s15 + $0x30] sm:$0xff] }
 0xa25   :  { %13091 = vmatpush3.bf16.msra.mxu0 %v13088_v57  ;;  %v11710_v57 = vld [vmem:[%s16255_s23 + $0x20] sm:$0xff] }
 0xa26   :  { %13093 = vmatprep.subr.bf16.mxu0 %v13092_v59  ;;  %v13104_v60 = vpack.c.bf16 %v11711_v58, %v11710_v57 }
 0xa28   :  { %13105 = vmatprep.subr.bf16.mxu1 %v13104_v60 }
 0xa29   :  { %13095 = vmatpush3.bf16.msra.mxu0 %v13092_v59  ;;  %v11712_v59 = vld [vmem:[%s16255_s23 + $0x30] sm:$0xff]  ;;  %s16268_s23 = sld [smem:[#allocation77_spill]] }
 0xa2a   :  { %13097 = vmatprep.subr.bf16.mxu0 %v13096_v63 }
 0xa2d   :  { %13099 = vmatpush3.bf16.msra.mxu0 %v13096_v63  ;;  %v13108_v63 = vpack.c.bf16 %v11713_v62, %v11712_v59 }
 0xaf7   :  { %v12400_v31 = vpop.f32.mrb[14].mxu0 }
 0xaf8   :  { %v2094_v32 = vadd.f32 %v12400_v31, %v11697_v30  ;;  %v2088_v33 = vpop.f32.mrb[15].mxu0 }
 0xaf9   :  { %v2089_v34 = vadd.f32 %v11697_v30, %v2088_v33  ;;  %v2169_v30 = vld [vmem:[%s16260_s15 + $0x38] sm:$0xff] }
 0xafa   :  { %v14955_v35 = vadd.f32 %v2094_v32, %v14737_v5  ;;  %v13100_v31 = vpack.c.bf16 %v2169_v30, %v2168_v29  ;;  %v11702_v32 = vld [vmem:[#allocation7] ss:$0 sm:$0xff]  ;;  %v11719_v29 = vld [vmem:[%s16256_s14 + $0x1] ss:$0 sm:$0xff]  ;;  %s16269_s14 = sld [smem:[#allocation59_spill]] }
 0xafb   :  { %v14958_v36 = vadd.f32 %v2089_v34, %v14734_v3 }
 0xafc   :  { %v2104_v37 = vsel %vm481_vm0, %v14955_v35, 0.0  ;;  %13101 = vmatprep.subr.bf16.mxu0 %v13100_v31 }
 0xafd   :  { %2105 = vadd.xlane.f32.xlu1 %v2104_v37  ;;  %v2101_v38 = vsel %vm481_vm0, %v14958_v36, 0.0  ;;  %13103 = vmatpush3.bf16.msra.mxu0 %v13100_v31 }
 0xafe   :  { %2102 = vadd.xlane.f32.xlu0 %v2101_v38  ;;  %12452 = vmatprep.subr.mxu0 %v14273_v50 }
 0xb8a   :  { %v2106_v39 = vpop.xlane.xlu1 %2105 }
 0xb8b   :  { %v2108_v40 = vmul.f32 0.03125, %v2106_v39  ;;  %v2103_v54 = vpop.xlane.xlu0 %2102 }
 0xb8c   :  { %v2107_v5 = vmul.f32 0.03125, %v2103_v54  ;;  %v11705_v54 = vld [vmem:[#allocation9] ss:$0 sm:$0xff] }
 0xb8d   :  { %v2110_v41 = vsub.f32 %v14955_v35, %v2108_v40 }
 0xb8e   :  { %v2109_v3 = vsub.f32 %v14958_v36, %v2107_v5 }
 0xb8f   :  { %v2112_v55 = vmul.f32 %v2110_v41, %v2110_v41  ;;  %v2128_v23 = vmul.f32 %v11700_v18, %v2110_v41 }
 0xb90   :  { %v2111_v42 = vmul.f32 %v2109_v3, %v2109_v3  ;;  %v2127_v19 = vmul.f32 %v11700_v18, %v2109_v3  ;;  %v11708_v18 = vld [vmem:[#allocation10 + $0x1] ss:$0 sm:$0xff] }
 0xb91   :  { %v2116_v44 = vsel %vm481_vm0, %v2112_v55, 0.0 }
 0xb92   :  { %v2113_v43 = vsel %vm481_vm0, %v2111_v42, 0.0 }
 0xb93   :  { %2114 = vadd.xlane.f32.xlu0 %v2113_v43 }
 0xb97   :  { %2117 = vadd.xlane.f32.xlu0 %v2116_v44 }
 0xc20   :  { %v2115_v0 = vpop.xlane.xlu0 %2114 }
 0xc21   :  { %v2119_v1 = vmul.f32 0.032258064, %v2115_v0 }
 0xc23   :  { %13424 = vrsqrt.f32 %v2119_v1  ;;  %vm2131_vm12 = vcmp.eq.f32.partialorder %v2119_v1, inf  ;;  %v2134_v8 = vand.u32 2147483648, %v2119_v1  ;;  %vm2133_vm13 = vcmp.eq.f32.partialorder %v2119_v1, 0.0 }
 0xc24   :  { %v2118_v2 = vpop.xlane.xlu0 %2117 }
 0xc25   :  { %v2120_v4 = vmul.f32 0.032258064, %v2118_v2 }
 0xc27   :  { %13426 = vrsqrt.f32 %v2120_v4  ;;  %vm2138_vm14 = vcmp.eq.f32.partialorder %v2120_v4, inf  ;;  %v2141_v14 = vand.u32 2147483648, %v2120_v4  ;;  %vm2140_vm15 = vcmp.eq.f32.partialorder %v2120_v4, 0.0 }
 0xc2d   :  { %v13425_v6 = vpop.eup %13424 }
 0xc2e   :  { %v2130_v7 = vmul.f32 %v13425_v6, %v2119_v1 }
 0xc30   :  { %v2132_v9 = vsel %vm2131_vm12, %v2119_v1, %v2130_v7 }
 0xc31   :  { %v13427_v10 = vpop.eup %13426  ;;  %v2135_v11 = vsel %vm2133_vm13, %v2134_v8, %v2132_v9 }
 0xc32   :  { %v2137_v12 = vmul.f32 %v13427_v10, %v2120_v4  ;;  %v2143_v13 = vadd.f32 1e-06, %v2135_v11 }
 0xc34   :  { %v2139_v15 = vsel %vm2138_vm14, %v2120_v4, %v2137_v12  ;;  %13428 = vrcp.f32 %v2143_v13 }
 0xc35   :  { %v2142_v16 = vsel %vm2140_vm15, %v2141_v14, %v2139_v15 }
 0xc36   :  { %v2144_v17 = vadd.f32 1e-06, %v2142_v16 }
 0xc38   :  { %13430 = vrcp.f32 %v2144_v17 }
 0xc3e   :  { %v13429_v20 = vpop.eup %13428 }
 0xc3f   :  { %v2146_v22 = vmul.f32 %v13429_v20, %v2127_v19 }
 0xc41   :  { %v2155_v24 = vadd.f32 %v11701_v21, %v2146_v22 }
 0xc42   :  { %v13431_v25 = vpop.eup %13430 }
 0xc43   :  { %v2148_v26 = vmul.f32 %v13431_v25, %v2128_v23  ;;  %12409 = vmatprep.mubr.msk.f32.mxu1 %vm481_vm0, %v2155_v24  ;;  %v11709_v23 = vld [vmem:[#allocation12 + $0x1] ss:$0 sm:$0xff] }
 0xc45   :  { %v2156_v27 = vadd.f32 %v11701_v21, %v2148_v26 }
 0xc47   :  { %12410 = vmatmul.mubr.msk.f32.vlgmr.msra.gmra.mrb[20].mxu1 %vm481_vm0, %v2156_v27 }
 0xc48   :  { %13107 = vmatpush3.bf16.msra.mxu1 %v13104_v60 }
 0xc49   :  { %13109 = vmatprep.subr.bf16.mxu1 %v13108_v63 }
 0xc4c   :  { %13111 = vmatpush3.bf16.msra.mxu1 %v13108_v63 }
 0xc4d   :  { %12442 = vmatprep.subr.mxu1 %v14273_v50 }
 0xd1a   :  { %v12411_v33 = vpop.f32.mrb[20].mxu1 }
 0xd1b   :  { %v2255_v34 = vadd.f32 %v12411_v33, %v11702_v32  ;;  %v2249_v37 = vpop.f32.mrb[21].mxu1 }
 0xd1c   :  { %v2250_v38 = vadd.f32 %v11702_v32, %v2249_v37 }
 0xd1d   :  { %v2259_v40 = vmax.f32 %v2255_v34, 0.0 }
 0xd1e   :  { %v2258_v39 = vmax.f32 %v2250_v38, 0.0 }
 0xd20   :  { %12428 = vmatprep.mubr.msk.f32.mxu0 %vm2266_vm1, %v2258_v39 }
 0xd21   :  { %12429 = vmatmul.mubr.msk.f32.vlgmr.msra.gmra.mrb[16].mxu0 %vm2266_vm1, %v2259_v40 }
 0xd22   :  { %12454 = vmatprep.mubr.msk.f32.mxu0 %vm14274_vm5, %v14273_v50 }
 0xdf4   :  { %v12430_v5 = vpop.f32.mrb[16].mxu0 }
 0xdf5   :  { %v2345_v41 = vadd.f32 %v12430_v5, %v11705_v54  ;;  %v2339_v3 = vpop.f32.mrb[17].mxu0 }
 0xdf6   :  { %v2340_v42 = vadd.f32 %v11705_v54, %v2339_v3 }
 0xdf7   :  { %v14988_v43 = vadd.f32 %v2345_v41, %v14955_v35 }
 0xdf8   :  { %v14991_v55 = vadd.f32 %v2340_v42, %v14958_v36 }
 0xdf9   :  { %v2357_v44 = vsel %vm481_vm0, %v14988_v43, 0.0 }
 0xdfa   :  { %2358 = vadd.xlane.f32.xlu1 %v2357_v44  ;;  %v2354_v45 = vsel %vm481_vm0, %v14991_v55, 0.0 }
 0xdfb   :  { %2355 = vadd.xlane.f32.xlu0 %v2354_v45 }
 0xe87   :  { %v2359_v46 = vpop.xlane.xlu1 %2358 }
 0xe88   :  { %v2361_v47 = vmul.f32 0.03125, %v2359_v46  ;;  %v2356_v48 = vpop.xlane.xlu0 %2355 }
 0xe89   :  { %v2360_v35 = vmul.f32 0.03125, %v2356_v48 }
 0xe8a   :  { %v2363_v49 = vsub.f32 %v14988_v43, %v2361_v47 }
 0xe8b   :  { %v2362_v36 = vsub.f32 %v14991_v55, %v2360_v35 }
 0xe8c   :  { %v2365_v51 = vmul.f32 %v2363_v49, %v2363_v49  ;;  %v2381_v19 = vmul.f32 %v11708_v18, %v2363_v49 }
 0xe8d   :  { %v2364_v52 = vmul.f32 %v2362_v36, %v2362_v36  ;;  %v2380_v21 = vmul.f32 %v11708_v18, %v2362_v36 }
 0xe8e   :  { %v2369_v53 = vsel %vm481_vm0, %v2365_v51, 0.0 }
 0xe8f   :  { %2370 = vadd.xlane.f32.xlu1 %v2369_v53  ;;  %v2366_v56 = vsel %vm481_vm0, %v2364_v52, 0.0 }
 0xe90   :  { %2367 = vadd.xlane.f32.xlu0 %v2366_v56 }
 0xf1c   :  { %v2371_v0 = vpop.xlane.xlu1 %2370 }
 0xf1d   :  { %v2373_v1 = vmul.f32 0.032258064, %v2371_v0  ;;  %v2368_v2 = vpop.xlane.xlu0 %2367 }
 0xf1e   :  { %v2372_v4 = vmul.f32 0.032258064, %v2368_v2 }
 0xf1f   :  { %13432 = vrsqrt.f32 %v2373_v1  ;;  %vm2391_vm2 = vcmp.eq.f32.partialorder %v2373_v1, inf  ;;  %v2394_v9 = vand.u32 2147483648, %v2373_v1  ;;  %vm2393_vm3 = vcmp.eq.f32.partialorder %v2373_v1, 0.0 }
 0xf20   :  { %13434 = vrsqrt.f32 %v2372_v4  ;;  %vm2384_vm4 = vcmp.eq.f32.partialorder %v2372_v4, inf  ;;  %v2387_v12 = vand.u32 2147483648, %v2372_v4  ;;  %vm2386_vm12 = vcmp.eq.f32.partialorder %v2372_v4, 0.0 }
 0xf29   :  { %v13433_v6 = vpop.eup %13432 }
 0xf2a   :  { %v13435_v7 = vpop.eup %13434  ;;  %v2390_v8 = vmul.f32 %v13433_v6, %v2373_v1 }
 0xf2b   :  { %v2383_v10 = vmul.f32 %v13435_v7, %v2372_v4 }
 0xf2c   :  { %v2392_v11 = vsel %vm2391_vm2, %v2373_v1, %v2390_v8 }
 0xf2d   :  { %v2395_v13 = vsel %vm2393_vm3, %v2394_v9, %v2392_v11  ;;  %v2385_v14 = vsel %vm2384_vm4, %v2372_v4, %v2383_v10 }
 0xf2e   :  { %v2397_v15 = vadd.f32 1e-06, %v2395_v13  ;;  %v2388_v16 = vsel %vm2386_vm12, %v2387_v12, %v2385_v14 }
 0xf2f   :  { %v2396_v17 = vadd.f32 1e-06, %v2388_v16 }
 0xf30   :  { %13436 = vrcp.f32 %v2397_v15 }
 0xf31   :  { %13438 = vrcp.f32 %v2396_v17 }
 0xf3a   :  { %v13437_v20 = vpop.eup %13436 }
 0xf3b   :  { %v13439_v22 = vpop.eup %13438  ;;  %v2401_v24 = vmul.f32 %v13437_v20, %v2381_v19 }
 0xf3c   :  { %v2399_v25 = vmul.f32 %v13439_v22, %v2380_v21 }
 0xf3d   :  { %v2409_v27 = vadd.f32 %v11709_v23, %v2401_v24 }
 0xf3e   :  { %v2408_v26 = vadd.f32 %v11709_v23, %v2399_v25 }
 0xf40   :  { %12439 = vmatprep.mubr.msk.f32.mxu1 %vm481_vm0, %v2408_v26 }
 0xf41   :  { %12440 = vmatmul.mubr.msk.f32.vlgmr.msra.gmra.mrb[22].mxu1 %vm481_vm0, %v2409_v27 }
 0xf42   :  { %12444 = vmatprep.mubr.msk.f32.mxu1 %vm14274_vm5, %v14273_v50 }
0x1014   :  { %v12441_v30 = vpop.f32.mrb[22].mxu1 }
0x1015   :  { %v2502_v31 = vpop.f32.mrb[23].mxu1  ;;  %v15023_v34 = vadd.f32 %v12441_v30, %v11719_v29 }
0x1016   :  { %v15011_v32 = vadd.f32 %v11719_v29, %v2502_v31 }
0x1017   :  { %v3195_v37 = vmul.f32 0.35355338, %v15023_v34 }
0x1018   :  { %2683 = vrot.lane.b32.xlu1 %v15011_v32, %s14276_s12  ;;  %2514 = vrot.lane.b32.xlu0 %v15011_v32, %s14275_s20  ;;  %v2512_v33 = vmul.f32 0.35355338, %v15011_v32 }
0x101c   :  { %2852 = vrot.lane.b32.xlu0 %v2512_v33, %s14280_s26  ;;  %2681 = vrot.lane.b32.xlu1 %v2512_v33, %s14279_s0 }
0x1020   :  { %3023 = vrot.lane.b32.xlu0 %v2512_v33, %s14281_s28  ;;  %2854 = vrot.lane.b32.xlu1 %v15011_v32, %s14277_s3 }
0x1024   :  { %3366 = vrot.lane.b32.xlu0 %v15023_v34, %s14276_s12  ;;  %3025 = vrot.lane.b32.xlu1 %v15011_v32, %s14278_s27 }
0x1028   :  { %3537 = vrot.lane.b32.xlu0 %v15023_v34, %s14277_s3  ;;  %3197 = vrot.lane.b32.xlu1 %v15023_v34, %s14275_s20 }
0x102c   :  { %3708 = vrot.lane.b32.xlu0 %v15023_v34, %s14278_s27  ;;  %3364 = vrot.lane.b32.xlu1 %v3195_v37, %s14279_s0 }
0x1030   :  { %3535 = vrot.lane.b32.xlu1 %v3195_v37, %s14280_s26 }
0x1034   :  { %3706 = vrot.lane.b32.xlu1 %v3195_v37, %s14281_s28 }
0x108a   :  { %v2684_v38 = vpop.permute.xlu1 %2683  ;;  %v2515_v39 = vpop.permute.xlu0 %2514 }
0x108b   :  { %12443 = vmatpush3.xpose.msk.msra.mxu1 %vm642_vm6, %v2515_v39  ;;  %12453 = vmatpush3.xpose.msk.msra.mxu0 %vm642_vm6, %v2684_v38 }
0x108c   :  { %12462 = vmatprep.subr.mxu0 %v14273_v50  ;;  %12447 = vmatprep.subr.mxu1 %v14273_v50 }
0x108e   :  { %v2853_v40 = vpop.permute.xlu0 %2852  ;;  %v2682_v54 = vpop.permute.xlu1 %2681  ;;  %12445 = vmatmul.mubr.msk.f32.vlgmr.msra.gmra.mrb[24].mxu1 %vm642_vm6, %v2512_v33 }
0x108f   :  { %12455 = vmatmul.mubr.msk.f32.vlgmr.msra.gmra.mrb[18].mxu0 %vm642_vm6, %v2682_v54  ;;  %12449 = vmatprep.mubr.msk.f32.mxu1 %vm14274_vm5, %v14273_v50 }
0x1090   :  { %12464 = vmatprep.mubr.msk.f32.mxu0 %vm14274_vm5, %v14273_v50 }
0x1092   :  { %v2855_v5 = vpop.permute.xlu1 %2854  ;;  %v3024_v41 = vpop.permute.xlu0 %3023 }
0x1093   :  { %12463 = vmatpush3.xpose.msk.msra.mxu0 %vm642_vm6, %v2855_v5 }
0x1094   :  { %12472 = vmatprep.subr.mxu0 %v14273_v50 }
0x1096   :  { %12465 = vmatmul.mubr.msk.f32.vlgmr.msra.gmra.mrb[20].mxu0 %vm642_vm6, %v2853_v40  ;;  %v3026_v3 = vpop.permute.xlu1 %3025  ;;  %v3367_v42 = vpop.permute.xlu0 %3366 }
0x1097   :  { %12473 = vmatpush3.xpose.msk.msra.mxu0 %vm642_vm6, %v3026_v3  ;;  %12474 = vmatprep.mubr.msk.f32.mxu0 %vm14274_vm5, %v14273_v50 }
0x1098   :  { %12482 = vmatprep.subr.mxu0 %v14273_v50 }
0x109a   :  { %12475 = vmatmul.mubr.msk.f32.vlgmr.msra.gmra.mrb[22].mxu0 %vm642_vm6, %v3024_v41  ;;  %v3198_v44 = vpop.permute.xlu1 %3197  ;;  %v3538_v46 = vpop.permute.xlu0 %3537 }
0x109b   :  { %12483 = vmatpush3.xpose.msk.msra.mxu0 %vm642_vm6, %v3198_v44  ;;  %12484 = vmatprep.mubr.msk.f32.mxu0 %vm14274_vm5, %v14273_v50 }
0x109c   :  { %12492 = vmatprep.subr.mxu0 %v14273_v50 }
0x109e   :  { %12485 = vmatmul.mubr.msk.f32.vlgmr.msra.gmra.mrb[24].mxu0 %vm642_vm6, %v3195_v37  ;;  %v3365_v45 = vpop.permute.xlu1 %3364  ;;  %v3709_v48 = vpop.permute.xlu0 %3708 }
0x109f   :  { %12493 = vmatpush3.xpose.msk.msra.mxu0 %vm642_vm6, %v3367_v42  ;;  %12494 = vmatprep.mubr.msk.f32.mxu0 %vm14274_vm5, %v14273_v50 }
0x10a0   :  { %12502 = vmatprep.subr.mxu0 %v14273_v50 }
0x10a2   :  { %12495 = vmatmul.mubr.msk.f32.vlgmr.msra.gmra.mrb[26].mxu0 %vm642_vm6, %v3365_v45  ;;  %v3536_v47 = vpop.permute.xlu1 %3535 }
0x10a3   :  { %12503 = vmatpush3.xpose.msk.msra.mxu0 %vm642_vm6, %v3538_v46  ;;  %12504 = vmatprep.mubr.msk.f32.mxu0 %vm14274_vm5, %v14273_v50 }
0x10a4   :  { %12512 = vmatprep.subr.mxu0 %v14273_v50 }
0x10a6   :  { %12505 = vmatmul.mubr.msk.f32.vlgmr.msra.gmra.mrb[28].mxu0 %vm642_vm6, %v3536_v47  ;;  %v3707_v35 = vpop.permute.xlu1 %3706 }
0x10a7   :  { %12513 = vmatpush3.xpose.msk.msra.mxu0 %vm642_vm6, %v3709_v48  ;;  %12514 = vmatprep.mubr.msk.f32.mxu0 %vm14274_vm5, %v14273_v50 }
0x10aa   :  { %12515 = vmatmul.mubr.msk.f32.vlgmr.msra.gmra.mrb[30].mxu0 %vm642_vm6, %v3707_v35 }
0x1161   :  { %v2587_v49 = vpop.f32.mrb[24].mxu1 }
0x1162   :  { %v2592_v36 = vsel %vm718_vm7, -1e+09, %v2587_v49  ;;  %v12446_v51 = vpop.f32.mrb[25].mxu1  ;;  %v2755_v52 = vpop.f32.mrb[18].mxu0 }
0x1163   :  { %v2759_v53 = vsel %vm718_vm7, -1e+09, %v2755_v52  ;;  %v12456_v56 = vpop.f32.mrb[19].mxu0  ;;  %v2593_v57 = vsel %vm642_vm6, %v2592_v36, -inf }
0x1164   :  { %2594 = vmax.xlane.f32.xlu0 %v2593_v57  ;;  %v2760_v58 = vsel %vm642_vm6, %v2759_v53, -inf }
0x1165   :  { %2761 = vmax.xlane.f32.xlu1 %v2760_v58 }
0x1169   :  { %v2926_v59 = vpop.f32.mrb[20].mxu0 }
0x116a   :  { %v15084_v60 = vsel %vm718_vm7, -1e+09, %v2926_v59  ;;  %v12466_v62 = vpop.f32.mrb[21].mxu0 }
0x116b   :  { %v2931_v63 = vsel %vm642_vm6, %v15084_v60, -inf }
0x116c   :  { %2932 = vmax.xlane.f32.xlu0 %v2931_v63 }
0x116d   :  { %v3097_v0 = vpop.f32.mrb[22].mxu0 }
0x116e   :  { %v3101_v1 = vsel %vm718_vm7, -1e+09, %v3097_v0  ;;  %v12476_v2 = vpop.f32.mrb[23].mxu0 }
0x116f   :  { %v3102_v4 = vsel %vm642_vm6, %v3101_v1, -inf }
0x1170   :  { %3103 = vmax.xlane.f32.xlu0 %v3102_v4 }
0x1171   :  { %v3270_v6 = vpop.f32.mrb[24].mxu0 }
0x1172   :  { %v3275_v7 = vsel %vm1405_vm8, -1e+09, %v3270_v6  ;;  %v12486_v8 = vpop.f32.mrb[25].mxu0 }
0x1173   :  { %v3276_v9 = vsel %vm642_vm6, %v3275_v7, -inf }
0x1174   :  { %3277 = vmax.xlane.f32.xlu0 %v3276_v9 }
0x1175   :  { %v3438_v10 = vpop.f32.mrb[26].mxu0 }
0x1176   :  { %v3442_v11 = vsel %vm1405_vm8, -1e+09, %v3438_v10  ;;  %v12496_v12 = vpop.f32.mrb[27].mxu0 }
0x1177   :  { %v3443_v61 = vsel %vm642_vm6, %v3442_v11, -inf }
0x1178   :  { %3444 = vmax.xlane.f32.xlu1 %v3443_v61 }
0x1179   :  { %v3609_v13 = vpop.f32.mrb[28].mxu0 }
0x117a   :  { %v3613_v14 = vsel %vm1405_vm8, -1e+09, %v3609_v13  ;;  %v12506_v15 = vpop.f32.mrb[29].mxu0 }
0x117b   :  { %v3614_v16 = vsel %vm642_vm6, %v3613_v14, -inf }
0x117c   :  { %3615 = vmax.xlane.f32.xlu0 %v3614_v16 }
0x117d   :  { %v3780_v17 = vpop.f32.mrb[30].mxu0 }
0x117e   :  { %v12516_v18 = vpop.f32.mrb[31].mxu0  ;;  %v3784_v19 = vsel %vm1405_vm8, -1e+09, %v3780_v17 }
0x117f   :  { %v3785_v20 = vsel %vm642_vm6, %v3784_v19, -inf }
0x1189   :  { %2604 = vrot.lane.b32.xlu1 %v15011_v32, %s14282_s1 }
0x11ad   :  { %3786 = vmax.xlane.f32.xlu1 %v3785_v20 }
0x11be   :  { %2942 = vrot.lane.b32.xlu1 %v15011_v32, %s14285_s10 }
0x11c2   :  { %3113 = vrot.lane.b32.xlu1 %v15011_v32, %s14284_s29 }
0x11c6   :  { %3287 = vrot.lane.b32.xlu1 %v15023_v34, %s14282_s1 }
0x11f1   :  { %v2595_v21 = vpop.xlane.xlu0 %2594 }
0x11f2   :  { %v2596_v22 = vsub.f32 %v2592_v36, %v2595_v21  ;;  %v2762_v23 = vpop.xlane.xlu1 %2761 }
0x11f3   :  { %v2763_v24 = vsub.f32 %v2759_v53, %v2762_v23 }
0x11f4   :  { %v2597_v25 = vmul.f32 1.442695, %v2596_v22 }
0x11f5   :  { %v2764_v26 = vmul.f32 1.442695, %v2763_v24 }
0x11f6   :  { %13440 = vpow2.f32 %v2597_v25 }
0x11f7   :  { %13442 = vpow2.f32 %v2764_v26 }
0x11f9   :  { %v2933_v28 = vpop.xlane.xlu0 %2932 }
0x11fa   :  { %v2934_v41 = vsub.f32 %v15084_v60, %v2933_v28 }
0x11fc   :  { %v2935_v42 = vmul.f32 1.442695, %v2934_v41 }
0x11fd   :  { %v3104_v27 = vpop.xlane.xlu0 %3103 }
0x11fe   :  { %v3105_v29 = vsub.f32 %v3101_v1, %v3104_v27 }
0x1200   :  { %v13441_v30 = vpop.eup %13440  ;;  %v3106_v31 = vmul.f32 1.442695, %v3105_v29 }
0x1201   :  { %v15111_v33 = vpop.eup %13442  ;;  %v2599_v37 = vsel %vm642_vm6, %v13441_v30, 0.0  ;;  %v3278_v3 = vpop.xlane.xlu0 %3277 }
0x1202   :  { %13444 = vpow2.f32 %v3106_v31  ;;  %2600 = vadd.xlane.f32.xlu0 %v2599_v37  ;;  %v2766_v38 = vsel %vm642_vm6, %v15111_v33, 0.0  ;;  %v3279_v44 = vsub.f32 %v3275_v7, %v3278_v3  ;;  %v11715_v3 = vld [vmem:[%s16258_s5 + $0x20] sm:$0xff] }
0x1203   :  { %2767 = vadd.xlane.f32.xlu1 %v2766_v38  ;;  %13446 = vpow2.f32 %v2935_v42  ;;  %v11716_v42 = vld [vmem:[%s16258_s5 + $0x28] sm:$0xff] }
0x1204   :  { %v3280_v46 = vmul.f32 1.442695, %v3279_v44  ;;  %v13112_v44 = vpack.c.bf16 %v11716_v42, %v11715_v3  ;;  %v11755_v3 = vld [vmem:[%s16259_s24 + $0x38] sm:$0xff] }
0x1205   :  { %v3445_v39 = vpop.xlane.xlu1 %3444 }
0x1206   :  { %13448 = vpow2.f32 %v3280_v46  ;;  %v3446_v48 = vsub.f32 %v3442_v11, %v3445_v39  ;;  %v11717_v46 = vld [vmem:[%s16258_s5 + $0x30] sm:$0xff]  ;;  %13113 = vmatprep.subr.bf16.mxu0 %v13112_v44 }
0x1207   :  { %13115 = vmatpush3.bf16.msra.mxu0 %v13112_v44  ;;  %v4346_v44 = vld [vmem:[%s16263_s7] sm:$0xff] }
0x1208   :  { %v3447_v49 = vmul.f32 1.442695, %v3446_v48 }
0x1209   :  { %v2605_v40 = vpop.permute.xlu1 %2604  ;;  %v3616_v45 = vpop.xlane.xlu0 %3615 }
0x120a   :  { %12448 = vmatpush3.msra.mxu1 %v2605_v40  ;;  %v3617_v47 = vsub.f32 %v3613_v14, %v3616_v45 }
0x120b   :  { %12457 = vmatprep.subr.mxu1 %v14273_v50 }
0x120c   :  { %v15117_v54 = vpop.eup %13444  ;;  %v3618_v35 = vmul.f32 1.442695, %v3617_v47  ;;  %v11718_v47 = vld [vmem:[%s16258_s5 + $0x38] sm:$0xff]  ;;  %s16271_s5 = sld [smem:[#allocation72_spill]] }
0x120d   :  { %v3108_v5 = vsel %vm642_vm6, %v15117_v54, 0.0  ;;  %v13447_v36 = vpop.eup %13446 }
0x120e   :  { %3109 = vadd.xlane.f32.xlu1 %v3108_v5  ;;  %13450 = vpow2.f32 %v3618_v35  ;;  %v13116_v35 = vpack.c.bf16 %v11718_v47, %v11717_v46  ;;  %v11756_v47 = vld [vmem:[%s16260_s15 + $0x40] sm:$0xff] }
0x120f   :  { %13452 = vpow2.f32 %v3447_v49 }
0x1210   :  { %v15127_v51 = vpop.eup %13448  ;;  %13117 = vmatprep.subr.bf16.mxu0 %v13116_v35 }
0x1211   :  { %v3282_v53 = vsel %vm642_vm6, %v15127_v51, 0.0  ;;  %13119 = vmatpush3.bf16.msra.mxu0 %v13116_v35  ;;  %v11758_v35 = vld [vmem:[%s16260_s15 + $0x50] sm:$0xff] }
0x1218   :  { %2771 = vrot.lane.b32.xlu0 %v15011_v32, %s14283_s13  ;;  %v2937_v32 = vsel %vm642_vm6, %v13447_v36, 0.0  ;;  %v15131_v56 = vpop.eup %13450 }
0x1219   :  { %v3620_v59 = vsel %vm642_vm6, %v15131_v56, 0.0  ;;  %v15135_v60 = vpop.eup %13452 }
0x121a   :  { %v3449_v62 = vsel %vm642_vm6, %v15135_v60, 0.0 }
0x121f   :  { %3454 = vrot.lane.b32.xlu1 %v15023_v34, %s14283_s13 }
0x1237   :  { %2938 = vadd.xlane.f32.xlu0 %v2937_v32 }
0x123a   :  { %v3787_v52 = vpop.xlane.xlu1 %3786 }
0x123b   :  { %v3788_v57 = vsub.f32 %v3784_v19, %v3787_v52  ;;  %3283 = vadd.xlane.f32.xlu0 %v3282_v53 }
0x123d   :  { %v3789_v58 = vmul.f32 1.442695, %v3788_v57 }
0x123e   :  { %v2943_v1 = vpop.permute.xlu1 %2942 }
0x123f   :  { %13454 = vpow2.f32 %v3789_v58  ;;  %3621 = vadd.xlane.f32.xlu0 %v3620_v59 }
0x1242   :  { %v3114_v2 = vpop.permute.xlu1 %3113 }
0x1243   :  { %3450 = vadd.xlane.f32.xlu1 %v3449_v62 }
0x1246   :  { %v3288_v4 = vpop.permute.xlu1 %3287 }
0x1249   :  { %v15139_v63 = vpop.eup %13454 }
0x124a   :  { %v3791_v0 = vsel %vm642_vm6, %v15139_v63, 0.0 }
0x124b   :  { %3792 = vadd.xlane.f32.xlu0 %v3791_v0 }
0x1254   :  { %3796 = vrot.lane.b32.xlu1 %v15023_v34, %s14284_s29 }
0x1261   :  { %3625 = vrot.lane.b32.xlu0 %v15023_v34, %s14285_s10 }
0x128f   :  { %v2601_v6 = vpop.xlane.xlu0 %2600 }
0x1290   :  { %13456 = vrcp.f32 %v2601_v6  ;;  %v2768_v7 = vpop.xlane.xlu1 %2767 }
0x1291   :  { %13458 = vrcp.f32 %v2768_v7  ;;  %v4282_v7 = vld [vmem:[%s16261_s21] sm:$0xff] }
0x1293   :  { %v2772_v11 = vpop.permute.xlu0 %2771 }
0x129a   :  { %v13457_v8 = vpop.eup %13456 }
0x129b   :  { %v2603_v9 = vmul.f32 %v13457_v8, %v13441_v30  ;;  %v13459_v10 = vpop.eup %13458  ;;  %v3110_v12 = vpop.xlane.xlu1 %3109  ;;  %v4284_v8 = vld [vmem:[%s16262_s16] sm:$0xff] }
0x129c   :  { %v2770_v34 = vmul.f32 %v13459_v10, %v15111_v33 }
0x129d   :  { %12450 = vmatmul.mubr.msk.f32.vlgmr.msra.gmra.mrb[26].mxu1 %vm642_vm6, %v2603_v9 }
0x129e   :  { %12458 = vmatpush3.msra.mxu1 %v2772_v11  ;;  %12459 = vmatprep.mubr.msk.f32.mxu1 %vm14274_vm5, %v14273_v50 }
0x129f   :  { %12467 = vmatprep.subr.mxu1 %v14273_v50  ;;  %v3455_v14 = vpop.permute.xlu1 %3454 }
0x12a1   :  { %12460 = vmatmul.mubr.msk.f32.vlgmr.msra.gmra.mrb[28].mxu1 %vm642_vm6, %v2770_v34  ;;  %v15209_v34 = vadd.f32 %v4284_v8, %v4282_v7 }
0x12a2   :  { %12468 = vmatpush3.msra.mxu1 %v2943_v1  ;;  %12469 = vmatprep.mubr.msk.f32.mxu1 %vm14274_vm5, %v14273_v50  ;;  %v11747_v1 = vld [vmem:[#allocation4 + $0x1] ss:$0 sm:$0xff] }
0x12a3   :  { %12477 = vmatprep.subr.mxu1 %v14273_v50 }
0x12c4   :  { %v2939_v61 = vpop.xlane.xlu0 %2938 }
0x12c5   :  { %13460 = vrcp.f32 %v2939_v61  ;;  %v4283_v61 = vld [vmem:[%s16261_s21 + $0x8] sm:$0xff] }
0x12c6   :  { %13462 = vrcp.f32 %v3110_v12 }
0x12c8   :  { %v3284_v13 = vpop.xlane.xlu0 %3283 }
0x12c9   :  { %13464 = vrcp.f32 %v3284_v13  ;;  %v4285_v13 = vld [vmem:[%s16262_s16 + $0x8] sm:$0xff] }
0x12cc   :  { %v3622_v16 = vpop.xlane.xlu0 %3621 }
0x12cf   :  { %v13461_v15 = vpop.eup %13460 }
0x12d0   :  { %v3451_v17 = vpop.xlane.xlu1 %3450  ;;  %v2941_v18 = vmul.f32 %v13461_v15, %v13447_v36  ;;  %v13463_v19 = vpop.eup %13462  ;;  %v4290_v15 = vsel %vm481_vm0, %v15209_v34, 0.0 }
0x12d1   :  { %13466 = vrcp.f32 %v3451_v17  ;;  %v3112_v20 = vmul.f32 %v13463_v19, %v15117_v54 }
0x12d2   :  { %12470 = vmatmul.mubr.msk.f32.vlgmr.msra.gmra.mrb[30].mxu1 %vm642_vm6, %v2941_v18  ;;  %13468 = vrcp.f32 %v3622_v16 }
0x12d3   :  { %12478 = vmatpush3.msra.mxu1 %v3114_v2  ;;  %12479 = vmatprep.mubr.msk.f32.mxu1 %vm14274_vm5, %v14273_v50  ;;  %v13465_v21 = vpop.eup %13464 }
0x12d4   :  { %12487 = vmatprep.subr.mxu1 %v14273_v50  ;;  %v3286_v23 = vmul.f32 %v13465_v21, %v15127_v51  ;;  %v3797_v29 = vpop.permute.xlu1 %3796 }
0x12d6   :  { %12480 = vmatmul.mubr.msk.f32.vlgmr.msra.gmra.mrb[32].mxu1 %vm642_vm6, %v3112_v20 }
0x12d7   :  { %12488 = vmatpush3.msra.mxu1 %v3288_v4  ;;  %12489 = vmatprep.mubr.msk.f32.mxu1 %vm14274_vm5, %v14273_v50 }
0x12d8   :  { %v3793_v22 = vpop.xlane.xlu0 %3792  ;;  %12497 = vmatprep.subr.mxu1 %v14273_v50 }
0x12d9   :  { %13470 = vrcp.f32 %v3793_v22 }
0x12da   :  { %12490 = vmatmul.mubr.msk.f32.vlgmr.msra.gmra.mrb[34].mxu1 %vm642_vm6, %v3286_v23 }
0x12db   :  { %v13467_v24 = vpop.eup %13466  ;;  %12498 = vmatpush3.msra.mxu1 %v3455_v14  ;;  %12499 = vmatprep.mubr.msk.f32.mxu1 %vm14274_vm5, %v14273_v50 }
0x12dc   :  { %v3626_v25 = vpop.permute.xlu0 %3625  ;;  %12507 = vmatprep.subr.mxu1 %v14273_v50  ;;  %v3453_v26 = vmul.f32 %v13467_v24, %v15135_v60  ;;  %v13469_v28 = vpop.eup %13468 }
0x12dd   :  { %v3624_v27 = vmul.f32 %v13469_v28, %v15131_v56 }
0x12de   :  { %12500 = vmatmul.mubr.msk.f32.vlgmr.msra.gmra.mrb[36].mxu1 %vm642_vm6, %v3453_v26 }
0x12df   :  { %12508 = vmatpush3.msra.mxu1 %v3626_v25  ;;  %12509 = vmatprep.mubr.msk.f32.mxu1 %vm14274_vm5, %v14273_v50 }
0x12e0   :  { %12517 = vmatprep.subr.mxu1 %v14273_v50 }
0x12e2   :  { %12510 = vmatmul.mubr.msk.f32.vlgmr.msra.gmra.mrb[38].mxu1 %vm642_vm6, %v3624_v27 }
0x12e3   :  { %v13471_v30 = vpop.eup %13470  ;;  %12518 = vmatpush3.msra.mxu1 %v3797_v29  ;;  %12519 = vmatprep.mubr.msk.f32.mxu1 %vm14274_vm5, %v14273_v50 }
0x12e4   :  { %v3795_v31 = vmul.f32 %v13471_v30, %v15139_v63 }
0x12e6   :  { %12520 = vmatmul.mubr.msk.f32.vlgmr.msra.gmra.mrb[40].mxu1 %vm642_vm6, %v3795_v31 }
0x1370   :  { %v2676_v33 = vpop.f32.mrb[26].mxu1 }
0x1371   :  { %2680 = vst.msk [vmem:[#allocation2] sm:$0xff] %vm642_vm6, %v2676_v33  ;;  %v12451_v37 = vpop.f32.mrb[27].mxu1 }
0x1374   :  { %v2843_v38 = vpop.f32.mrb[28].mxu1 }
0x1375   :  { %2848 = vrot.lane.b32.xlu0 %v2843_v38, %s14266_s30  ;;  %v12461_v39 = vpop.f32.mrb[29].mxu1 }
0x13a5   :  { %v3014_v40 = vpop.f32.mrb[30].mxu1 }
0x13a6   :  { %3019 = vrot.lane.b32.xlu1 %v3014_v40, %s14249_s2  ;;  %v12471_v54 = vpop.f32.mrb[31].mxu1  ;;  %v11752_v40 = vld [vmem:[%s16259_s24 + $0x20] sm:$0xff] }
0x13a7   :  { %v11753_v54 = vld [vmem:[%s16259_s24 + $0x28] sm:$0xff] }
0x13a9   :  { %v3185_v5 = vpop.f32.mrb[32].mxu1 }
0x13aa   :  { %3190 = vrot.lane.b32.xlu1 %v3185_v5, %s14286_s17  ;;  %v12481_v41 = vpop.f32.mrb[33].mxu1  ;;  %v13120_v5 = vpack.c.bf16 %v11753_v54, %v11752_v40  ;;  %v11772_v40 = vld [vmem:[#allocation27] ss:$0 sm:$0xff]  ;;  %v11751_v54 = vld [vmem:[#allocation15 + $0x1] ss:$0 sm:$0xff] }
0x13ab   :  { %v11754_v41 = vld [vmem:[%s16259_s24 + $0x30] sm:$0xff] }
0x13ac   :  { %v13124_v42 = vpack.c.bf16 %v11755_v3, %v11754_v41  ;;  %13121 = vmatprep.subr.bf16.mxu1 %v13120_v5  ;;  %v4348_v3 = vld [vmem:[%s16263_s7 + $0x10] sm:$0xff] }
0x13ad   :  { %v3359_v45 = vpop.f32.mrb[34].mxu1  ;;  %13123 = vmatpush3.bf16.msra.mxu1 %v13120_v5 }
0x13ae   :  { %3363 = vst.msk [vmem:[#allocation2 + $0x8] sm:$0xff] %vm642_vm6, %v3359_v45  ;;  %v12491_v48 = vpop.f32.mrb[35].mxu1  ;;  %13125 = vmatprep.subr.bf16.mxu1 %v13124_v42  ;;  %v4347_v45 = vld [vmem:[%s16263_s7 + $0x8] sm:$0xff] }
0x13af   :  { %v15253_v46 = vpack.c.bf16 %v4347_v45, %v4346_v44  ;;  %v11757_v48 = vld [vmem:[%s16260_s15 + $0x48] sm:$0xff] }
0x13b1   :  { %v3526_v49 = vpop.f32.mrb[36].mxu1  ;;  %13127 = vmatpush3.bf16.msra.mxu1 %v13124_v42  ;;  %v4349_v42 = vld [vmem:[%s16263_s7 + $0x18] sm:$0xff] }
0x13b2   :  { %3531 = vrot.lane.b32.xlu0 %v3526_v49, %s14266_s30  ;;  %v12501_v36 = vpop.f32.mrb[37].mxu1  ;;  %13145 = vmatprep.subr.bf16.mxu1 %v15253_v46  ;;  %v13128_v49 = vpack.c.bf16 %v11757_v48, %v11756_v47 }
0x13b3   :  { %v11759_v36 = vld [vmem:[%s16260_s15 + $0x58] sm:$0xff] }
0x13b4   :  { %13129 = vmatprep.subr.bf16.mxu0 %v13128_v49 }
0x13b5   :  { %v3697_v32 = vpop.f32.mrb[38].mxu1 }
0x13b6   :  { %3702 = vrot.lane.b32.xlu0 %v3697_v32, %s14249_s2  ;;  %v12511_v51 = vpop.f32.mrb[39].mxu1  ;;  %v13132_v32 = vpack.c.bf16 %v11759_v36, %v11758_v35  ;;  %v13148_v35 = vpack.c.bf16 %v4349_v42, %v4348_v3  ;;  %v11789_v42 = vld [vmem:[%s16264_s19 + $0x8] sm:$0xff] }
0x13b7   :  { %v11760_v51 = vld [vmem:[%s16260_s15 + $0x60] sm:$0xff] }
0x13b9   :  { %v3868_v52 = vpop.f32.mrb[40].mxu1 }
0x13ba   :  { %3873 = vrot.lane.b32.xlu1 %v3868_v52, %s14286_s17  ;;  %v12521_v53 = vpop.f32.mrb[41].mxu1  ;;  %v11761_v52 = vld [vmem:[%s16260_s15 + $0x68] sm:$0xff] }
0x13bb   :  { %v13136_v53 = vpack.c.bf16 %v11761_v52, %v11760_v51  ;;  %v11762_v52 = vld [vmem:[%s16260_s15 + $0x70] sm:$0xff] }
0x13e7   :  { %v2849_v56 = vpop.permute.xlu0 %2848 }
0x13e8   :  { %2851 = vst.msk [vmem:[#allocation2] sm:$0xff] %vm978_vm9, %v2849_v56 }
0x1418   :  { %v3020_v57 = vpop.permute.xlu1 %3019 }
0x1419   :  { %3022 = vst.msk [vmem:[#allocation2] sm:$0xff] %vm1150_vm10, %v3020_v57 }
0x141c   :  { %v3191_v58 = vpop.permute.xlu1 %3190 }
0x141d   :  { %3193 = vst.msk [vmem:[#allocation2] sm:$0xff] %vm1322_vm11, %v3191_v58 }
0x1424   :  { %v3532_v59 = vpop.permute.xlu0 %3531  ;;  %v3877_v60 = vld [vmem:[#allocation2] sm:$0xff] }
0x1425   :  { %3534 = vst.msk [vmem:[#allocation2 + $0x8] sm:$0xff] %vm978_vm9, %v3532_v59  ;;  %12530 = vmatprep.mubr.msk.f32.mxu0 %vm481_vm0, %v3877_v60 }
0x1428   :  { %v3703_v62 = vpop.permute.xlu0 %3702 }
0x1429   :  { %3705 = vst.msk [vmem:[#allocation2 + $0x8] sm:$0xff] %vm1150_vm10, %v3703_v62 }
0x142c   :  { %v3874_v63 = vpop.permute.xlu1 %3873 }
0x142d   :  { %3876 = vst.msk [vmem:[#allocation2 + $0x8] sm:$0xff] %vm1322_vm11, %v3874_v63 }
0x1434   :  { %v3878_v0 = vld [vmem:[#allocation2 + $0x8] sm:$0xff] }
0x1435   :  { %12531 = vmatmul.mubr.msk.f32.vlgmr.msra.gmra.mrb[32].mxu0 %vm481_vm0, %v3878_v0 }
0x1436   :  { %13131 = vmatpush3.bf16.msra.mxu0 %v13128_v49  ;;  %v11773_v49 = vld [vmem:[#allocation28] ss:$0 sm:$0xff] }
0x1437   :  { %13133 = vmatprep.subr.bf16.mxu0 %v13132_v32 }
0x143a   :  { %13135 = vmatpush3.bf16.msra.mxu0 %v13132_v32 }
0x143b   :  { %13137 = vmatprep.subr.bf16.mxu0 %v13136_v53 }
0x143e   :  { %13139 = vmatpush3.bf16.msra.mxu0 %v13136_v53  ;;  %v11763_v53 = vld [vmem:[%s16260_s15 + $0x78] sm:$0xff] }
0x1508   :  { %v12532_v2 = vpop.f32.mrb[32].mxu0 }
0x1509   :  { %v3963_v4 = vadd.f32 %v12532_v2, %v11747_v1  ;;  %v3957_v6 = vpop.f32.mrb[33].mxu0 }
0x150a   :  { %v3958_v9 = vadd.f32 %v11747_v1, %v3957_v6 }
0x150b   :  { %v15204_v10 = vadd.f32 %v3963_v4, %v14988_v43  ;;  %v15219_v43 = vadd.f32 %v4285_v13, %v4283_v61 }
0x150c   :  { %v15207_v11 = vadd.f32 %v3958_v9, %v14991_v55 }
0x150d   :  { %v3975_v12 = vsel %vm481_vm0, %v15204_v10, 0.0  ;;  %v4293_v55 = vsel %vm481_vm0, %v15219_v43, 0.0 }
0x150e   :  { %3976 = vadd.xlane.f32.xlu1 %v3975_v12  ;;  %v3972_v14 = vsel %vm481_vm0, %v15207_v11, 0.0 }
0x150f   :  { %3973 = vadd.xlane.f32.xlu0 %v3972_v14 }
0x1513   :  { %4291 = vadd.xlane.f32.xlu0 %v4290_v15 }
0x1517   :  { %4294 = vadd.xlane.f32.xlu0 %v4293_v55 }
0x159b   :  { %v3977_v16 = vpop.xlane.xlu1 %3976 }
0x159c   :  { %v3979_v17 = vmul.f32 0.03125, %v3977_v16  ;;  %v3974_v18 = vpop.xlane.xlu0 %3973 }
0x159d   :  { %v3978_v19 = vmul.f32 0.03125, %v3974_v18 }
0x159e   :  { %v15224_v20 = vsub.f32 %v15204_v10, %v3979_v17 }
0x159f   :  { %v15227_v21 = vsub.f32 %v15207_v11, %v3978_v19 }
0x15a0   :  { %v4292_v22 = vpop.xlane.xlu0 %4291  ;;  %v3983_v23 = vmul.f32 %v15224_v20, %v15224_v20 }
0x15a1   :  { %v4296_v24 = vmul.f32 0.03125, %v4292_v22  ;;  %v3982_v25 = vmul.f32 %v15227_v21, %v15227_v21 }
0x15a2   :  { %v3987_v26 = vsel %vm481_vm0, %v3983_v23, 0.0 }
0x15a3   :  { %v15235_v28 = vsub.f32 %v15209_v34, %v4296_v24  ;;  %3988 = vadd.xlane.f32.xlu1 %v3987_v26  ;;  %v3984_v27 = vsel %vm481_vm0, %v3982_v25, 0.0 }
0x15a4   :  { %3985 = vadd.xlane.f32.xlu0 %v3984_v27  ;;  %v4295_v29 = vpop.xlane.xlu0 %4294  ;;  %v11750_v27 = vld [vmem:[#allocation13 + $0x1] ss:$0 sm:$0xff] }
0x15a5   :  { %v4297_v30 = vmul.f32 0.03125, %v4295_v29  ;;  %v4300_v31 = vmul.f32 %v15235_v28, %v15235_v28  ;;  %v4316_v44 = vmul.f32 %v11772_v40, %v15235_v28 }
0x15a7   :  { %v15241_v33 = vsub.f32 %v15219_v43, %v4297_v30  ;;  %v4302_v37 = vsel %vm481_vm0, %v4300_v31, 0.0  ;;  %v3999_v31 = vmul.f32 %v11750_v27, %v15224_v20 }
0x15a8   :  { %4303 = vadd.xlane.f32.xlu0 %v4302_v37 }
0x15a9   :  { %v4301_v38 = vmul.f32 %v15241_v33, %v15241_v33 }
0x15ab   :  { %v4305_v39 = vsel %vm481_vm0, %v4301_v38, 0.0  ;;  %v3998_v38 = vmul.f32 %v11750_v27, %v15227_v21  ;;  %v4317_v21 = vmul.f32 %v11772_v40, %v15241_v33  ;;  %v13140_v33 = vpack.c.bf16 %v11763_v53, %v11762_v52 }
0x15ac   :  { %4306 = vadd.xlane.f32.xlu1 %v4305_v39 }
0x15ad   :  { %13141 = vmatprep.subr.bf16.mxu0 %v13140_v33 }
0x15ae   :  { %13143 = vmatpush3.bf16.msra.mxu0 %v13140_v33 }
0x15af   :  { %12584 = vmatprep.subr.mxu0 %v14273_v50 }
0x1630   :  { %v3989_v56 = vpop.xlane.xlu1 %3988 }
0x1631   :  { %v3991_v57 = vmul.f32 0.032258064, %v3989_v56  ;;  %v3986_v58 = vpop.xlane.xlu0 %3985 }
0x1632   :  { %v3990_v59 = vmul.f32 0.032258064, %v3986_v58 }
0x1633   :  { %13472 = vrsqrt.f32 %v3991_v57  ;;  %vm4009_vm7 = vcmp.eq.f32.partialorder %v3991_v57, inf  ;;  %v4012_v6 = vand.u32 2147483648, %v3991_v57  ;;  %vm4011_vm8 = vcmp.eq.f32.partialorder %v3991_v57, 0.0 }
0x1634   :  { %13474 = vrsqrt.f32 %v3990_v59  ;;  %vm4002_vm13 = vcmp.eq.f32.partialorder %v3990_v59, inf  ;;  %v4005_v9 = vand.u32 2147483648, %v3990_v59  ;;  %vm4004_vm14 = vcmp.eq.f32.partialorder %v3990_v59, 0.0 }
0x1635   :  { %v4304_v60 = vpop.xlane.xlu0 %4303 }
0x1636   :  { %v4308_v62 = vmul.f32 0.032258064, %v4304_v60 }
0x1638   :  { %13476 = vrsqrt.f32 %v4308_v62  ;;  %vm4320_vm15 = vcmp.eq.f32.partialorder %v4308_v62, inf  ;;  %v4323_v17 = vand.u32 2147483648, %v4308_v62  ;;  %vm4322_vm2 = vcmp.eq.f32.partialorder %v4308_v62, 0.0 }
0x1639   :  { %v4307_v63 = vpop.xlane.xlu1 %4306 }
0x163a   :  { %v4309_v0 = vmul.f32 0.032258064, %v4307_v63  ;;  %v11774_v63 = vld [vmem:[#allocation16] ss:$0 sm:$0xff] }
0x163c   :  { %13478 = vrsqrt.f32 %v4309_v0  ;;  %vm4327_vm3 = vcmp.eq.f32.partialorder %v4309_v0, inf  ;;  %v4330_v25 = vand.u32 2147483648, %v4309_v0  ;;  %vm4329_vm4 = vcmp.eq.f32.partialorder %v4309_v0, 0.0 }
0x163d   :  { %v13473_v1 = vpop.eup %13472 }
0x163e   :  { %v13475_v2 = vpop.eup %13474  ;;  %v4008_v4 = vmul.f32 %v13473_v1, %v3991_v57 }
0x163f   :  { %v4001_v7 = vmul.f32 %v13475_v2, %v3990_v59 }
0x1640   :  { %v4010_v8 = vsel %vm4009_vm7, %v3991_v57, %v4008_v4  ;;  %vm5207_vm7 = vcmp.eq.f32.partialorder %v11789_v42, 0.0 }
0x1641   :  { %v4013_v12 = vsel %vm4011_vm8, %v4012_v6, %v4010_v8  ;;  %v4003_v61 = vsel %vm4002_vm13, %v3990_v59, %v4001_v7 }
0x1642   :  { %v13477_v13 = vpop.eup %13476  ;;  %v4015_v14 = vadd.f32 1e-06, %v4013_v12  ;;  %v4006_v15 = vsel %vm4004_vm14, %v4005_v9, %v4003_v61 }
0x1643   :  { %v4319_v55 = vmul.f32 %v13477_v13, %v4308_v62  ;;  %v4014_v16 = vadd.f32 1e-06, %v4006_v15 }
0x1644   :  { %13480 = vrcp.f32 %v4015_v14 }
0x1645   :  { %v4321_v18 = vsel %vm4320_vm15, %v4308_v62, %v4319_v55  ;;  %13482 = vrcp.f32 %v4014_v16 }
0x1646   :  { %v13479_v19 = vpop.eup %13478  ;;  %v4324_v22 = vsel %vm4322_vm2, %v4323_v17, %v4321_v18 }
0x1647   :  { %v4326_v23 = vmul.f32 %v13479_v19, %v4309_v0  ;;  %v4332_v24 = vadd.f32 1e-06, %v4324_v22 }
0x1649   :  { %v4328_v26 = vsel %vm4327_vm3, %v4309_v0, %v4326_v23  ;;  %13484 = vrcp.f32 %v4332_v24 }
0x164a   :  { %v4331_v29 = vsel %vm4329_vm4, %v4330_v25, %v4328_v26  ;;  %v4443_v26 = vld [vmem:[%s16264_s19] sm:$0xff] }
0x164b   :  { %v4333_v30 = vadd.f32 1e-06, %v4331_v29  ;;  %vm4523_vm12 = vcmp.eq.f32.partialorder %v4443_v26, 0.0 }
0x164d   :  { %13486 = vrcp.f32 %v4333_v30 }
0x164e   :  { %v13481_v37 = vpop.eup %13480 }
0x164f   :  { %v13483_v39 = vpop.eup %13482  ;;  %v4019_v5 = vmul.f32 %v13481_v37, %v3999_v31 }
0x1650   :  { %v4017_v41 = vmul.f32 %v13483_v39, %v3998_v38 }
0x1651   :  { %v4027_v48 = vadd.f32 %v11751_v54, %v4019_v5 }
0x1652   :  { %v4026_v45 = vadd.f32 %v11751_v54, %v4017_v41 }
0x1653   :  { %v13485_v47 = vpop.eup %13484 }
0x1654   :  { %12541 = vmatprep.mubr.msk.f32.mxu1 %vm481_vm0, %v4026_v45  ;;  %v4335_v20 = vmul.f32 %v13485_v47, %v4316_v44 }
0x1655   :  { %12542 = vmatmul.mubr.msk.f32.vlgmr.msra.gmra.mrb[42].mxu1 %vm481_vm0, %v4027_v48 }
0x1656   :  { %13147 = vmatpush3.bf16.msra.mxu1 %v15253_v46  ;;  %v4344_v36 = vadd.f32 %v11773_v49, %v4335_v20  ;;  %v11764_v46 = vld [vmem:[#allocation7 + $0x1] ss:$0 sm:$0xff] }
0x1657   :  { %v13487_v32 = vpop.eup %13486  ;;  %13149 = vmatprep.subr.bf16.mxu1 %v13148_v35 }
0x1658   :  { %v4337_v28 = vmul.f32 %v13487_v32, %v4317_v21  ;;  %12571 = vmatprep.mubr.msk.f32.mxu1 %vm481_vm0, %v4344_v36 }
0x165a   :  { %v4345_v51 = vadd.f32 %v11773_v49, %v4337_v28  ;;  %13151 = vmatpush3.bf16.msra.mxu1 %v13148_v35 }
0x165b   :  { %12574 = vmatprep.subr.mxu1 %v14273_v50 }
0x165d   :  { %12572 = vmatmul.mubr.msk.f32.vlgmr.msra.gmra.mrb[44].mxu1 %vm481_vm0, %v4345_v51 }
0x165e   :  { %12576 = vmatprep.mubr.msk.f32.mxu1 %vm14274_vm5, %v14273_v50 }
0x1728   :  { %v12543_v56 = vpop.f32.mrb[42].mxu1 }
0x1729   :  { %v4130_v57 = vadd.f32 %v12543_v56, %v11764_v46  ;;  %v4124_v58 = vpop.f32.mrb[43].mxu1 }
0x172a   :  { %v4125_v59 = vadd.f32 %v11764_v46, %v4124_v58 }
0x172b   :  { %v4134_v62 = vmax.f32 %v4130_v57, 0.0 }
0x172c   :  { %v4133_v60 = vmax.f32 %v4125_v59, 0.0 }
0x172e   :  { %12560 = vmatprep.mubr.msk.f32.mxu0 %vm2266_vm1, %v4133_v60 }
0x172f   :  { %12561 = vmatmul.mubr.msk.f32.vlgmr.msra.gmra.mrb[34].mxu0 %vm2266_vm1, %v4134_v62 }
0x1730   :  { %v12573_v0 = vpop.f32.mrb[44].mxu1  ;;  %12586 = vmatprep.mubr.msk.f32.mxu0 %vm14274_vm5, %v14273_v50 }
0x1731   :  { %v4434_v1 = vpop.f32.mrb[45].mxu1  ;;  %v15295_v6 = vadd.f32 %v12573_v0, %v11774_v63 }
0x1732   :  { %v15283_v2 = vadd.f32 %v11774_v63, %v4434_v1 }
0x1733   :  { %v5128_v7 = vmul.f32 0.35355338, %v15295_v6 }
0x1734   :  { %4615 = vrot.lane.b32.xlu1 %v15283_v2, %s14276_s12  ;;  %4446 = vrot.lane.b32.xlu0 %v15283_v2, %s14275_s20  ;;  %v4444_v4 = vmul.f32 0.35355338, %v15283_v2 }
0x1738   :  { %4784 = vrot.lane.b32.xlu0 %v4444_v4, %s14280_s26  ;;  %4613 = vrot.lane.b32.xlu1 %v4444_v4, %s14279_s0 }
0x173c   :  { %4955 = vrot.lane.b32.xlu0 %v4444_v4, %s14281_s28  ;;  %4786 = vrot.lane.b32.xlu1 %v15283_v2, %s14277_s3 }
0x1740   :  { %5299 = vrot.lane.b32.xlu0 %v15295_v6, %s14276_s12  ;;  %4957 = vrot.lane.b32.xlu1 %v15283_v2, %s14278_s27 }
0x1744   :  { %5470 = vrot.lane.b32.xlu0 %v15295_v6, %s14277_s3  ;;  %5130 = vrot.lane.b32.xlu1 %v15295_v6, %s14275_s20 }
0x1748   :  { %5641 = vrot.lane.b32.xlu0 %v15295_v6, %s14278_s27  ;;  %5297 = vrot.lane.b32.xlu1 %v5128_v7, %s14279_s0 }
0x174c   :  { %5468 = vrot.lane.b32.xlu1 %v5128_v7, %s14280_s26 }
0x1750   :  { %5639 = vrot.lane.b32.xlu1 %v5128_v7, %s14281_s28 }
0x17a6   :  { %v4616_v8 = vpop.permute.xlu1 %4615  ;;  %v4447_v9 = vpop.permute.xlu0 %4446 }
0x17a7   :  { %12575 = vmatpush3.xpose.msk.msra.mxu1 %vm642_vm6, %v4447_v9  ;;  %12585 = vmatpush3.xpose.msk.msra.mxu0 %vm642_vm6, %v4616_v8 }
0x17a8   :  { %12594 = vmatprep.subr.mxu0 %v14273_v50  ;;  %12579 = vmatprep.subr.mxu1 %v14273_v50 }
0x17aa   :  { %v4785_v12 = vpop.permute.xlu0 %4784  ;;  %v4614_v61 = vpop.permute.xlu1 %4613  ;;  %12577 = vmatmul.mubr.msk.f32.vlgmr.msra.gmra.mrb[46].mxu1 %vm642_vm6, %v4444_v4 }
0x17ab   :  { %12587 = vmatmul.mubr.msk.f32.vlgmr.msra.gmra.mrb[36].mxu0 %vm642_vm6, %v4614_v61  ;;  %12581 = vmatprep.mubr.msk.f32.mxu1 %vm14274_vm5, %v14273_v50 }
0x17ac   :  { %12596 = vmatprep.mubr.msk.f32.mxu0 %vm14274_vm5, %v14273_v50 }
0x17ae   :  { %v4787_v13 = vpop.permute.xlu1 %4786  ;;  %v4956_v14 = vpop.permute.xlu0 %4955 }
0x17af   :  { %12595 = vmatpush3.xpose.msk.msra.mxu0 %vm642_vm6, %v4787_v13 }
0x17b0   :  { %12604 = vmatprep.subr.mxu0 %v14273_v50 }
0x17b2   :  { %v4958_v15 = vpop.permute.xlu1 %4957  ;;  %12597 = vmatmul.mubr.msk.f32.vlgmr.msra.gmra.mrb[38].mxu0 %vm642_vm6, %v4785_v12  ;;  %v5300_v55 = vpop.permute.xlu0 %5299 }
0x17b3   :  { %12605 = vmatpush3.xpose.msk.msra.mxu0 %vm642_vm6, %v4958_v15  ;;  %12606 = vmatprep.mubr.msk.f32.mxu0 %vm14274_vm5, %v14273_v50 }
0x17b4   :  { %12614 = vmatprep.subr.mxu0 %v14273_v50 }
0x17b6   :  { %v5131_v16 = vpop.permute.xlu1 %5130  ;;  %12607 = vmatmul.mubr.msk.f32.vlgmr.msra.gmra.mrb[40].mxu0 %vm642_vm6, %v4956_v14  ;;  %v5471_v18 = vpop.permute.xlu0 %5470 }
0x17b7   :  { %12615 = vmatpush3.xpose.msk.msra.mxu0 %vm642_vm6, %v5131_v16  ;;  %12616 = vmatprep.mubr.msk.f32.mxu0 %vm14274_vm5, %v14273_v50 }
0x17b8   :  { %12624 = vmatprep.subr.mxu0 %v14273_v50 }
0x17ba   :  { %v5298_v17 = vpop.permute.xlu1 %5297  ;;  %12617 = vmatmul.mubr.msk.f32.vlgmr.msra.gmra.mrb[42].mxu0 %vm642_vm6, %v5128_v7  ;;  %v5642_v22 = vpop.permute.xlu0 %5641 }
0x17bb   :  { %12625 = vmatpush3.xpose.msk.msra.mxu0 %vm642_vm6, %v5300_v55  ;;  %12626 = vmatprep.mubr.msk.f32.mxu0 %vm14274_vm5, %v14273_v50 }
0x17bc   :  { %12634 = vmatprep.subr.mxu0 %v14273_v50 }
0x17be   :  { %12627 = vmatmul.mubr.msk.f32.vlgmr.msra.gmra.mrb[44].mxu0 %vm642_vm6, %v5298_v17  ;;  %v5469_v19 = vpop.permute.xlu1 %5468 }
0x17bf   :  { %12635 = vmatpush3.xpose.msk.msra.mxu0 %vm642_vm6, %v5471_v18  ;;  %12636 = vmatprep.mubr.msk.f32.mxu0 %vm14274_vm5, %v14273_v50 }
0x17c0   :  { %12644 = vmatprep.subr.mxu0 %v14273_v50 }
0x17c2   :  { %12637 = vmatmul.mubr.msk.f32.vlgmr.msra.gmra.mrb[46].mxu0 %vm642_vm6, %v5469_v19  ;;  %v5640_v23 = vpop.permute.xlu1 %5639 }
0x17c3   :  { %12645 = vmatpush3.xpose.msk.msra.mxu0 %vm642_vm6, %v5642_v22  ;;  %12646 = vmatprep.mubr.msk.f32.mxu0 %vm14274_vm5, %v14273_v50 }
0x17c6   :  { %12647 = vmatmul.mubr.msk.f32.vlgmr.msra.gmra.mrb[48].mxu0 %vm642_vm6, %v5640_v23 }
0x1802   :  { %v15348_v24 = vpop.f32.mrb[34].mxu0 }
0x1803   :  { %v15350_v25 = vpop.f32.mrb[35].mxu0 }
0x187d   :  { %v4519_v27 = vpop.f32.mrb[46].mxu1 }
0x187e   :  { %v4524_v29 = vsel %vm4523_vm12, -1e+09, %v4519_v27  ;;  %v12578_v30 = vpop.f32.mrb[47].mxu1  ;;  %v4687_v31 = vpop.f32.mrb[36].mxu0 }
0x187f   :  { %v4525_v37 = vsel %vm642_vm6, %v4524_v29, -inf  ;;  %v4691_v38 = vsel %vm4523_vm12, -1e+09, %v4687_v31  ;;  %v12588_v39 = vpop.f32.mrb[37].mxu0 }
0x1880   :  { %v4692_v40 = vsel %vm642_vm6, %v4691_v38, -inf  ;;  %4526 = vmax.xlane.f32.xlu0 %v4525_v37 }
0x1881   :  { %4693 = vmax.xlane.f32.xlu1 %v4692_v40 }
0x1885   :  { %v4858_v54 = vpop.f32.mrb[38].mxu0 }
0x1886   :  { %v15358_v5 = vsel %vm4523_vm12, -1e+09, %v4858_v54  ;;  %v12598_v41 = vpop.f32.mrb[39].mxu0 }
0x1887   :  { %v4863_v3 = vsel %vm642_vm6, %v15358_v5, -inf }
0x1888   :  { %4864 = vmax.xlane.f32.xlu0 %v4863_v3 }
0x1889   :  { %v5029_v44 = vpop.f32.mrb[40].mxu0 }
0x188a   :  { %v5033_v45 = vsel %vm4523_vm12, -1e+09, %v5029_v44  ;;  %v12608_v47 = vpop.f32.mrb[41].mxu0 }
0x188b   :  { %v5034_v48 = vsel %vm642_vm6, %v5033_v45, -inf }
0x188c   :  { %5035 = vmax.xlane.f32.xlu0 %v5034_v48 }
0x188d   :  { %v5203_v35 = vpop.f32.mrb[42].mxu0 }
0x188e   :  { %v5208_v49 = vsel %vm5207_vm7, -1e+09, %v5203_v35  ;;  %v12618_v20 = vpop.f32.mrb[43].mxu0 }
0x188f   :  { %v5209_v21 = vsel %vm642_vm6, %v5208_v49, -inf }
0x1890   :  { %5210 = vmax.xlane.f32.xlu0 %v5209_v21 }
0x1891   :  { %v5371_v36 = vpop.f32.mrb[44].mxu0 }
0x1892   :  { %v5375_v32 = vsel %vm5207_vm7, -1e+09, %v5371_v36  ;;  %v12628_v28 = vpop.f32.mrb[45].mxu0 }
0x1893   :  { %v5376_v51 = vsel %vm642_vm6, %v5375_v32, -inf }
0x1894   :  { %5377 = vmax.xlane.f32.xlu1 %v5376_v51 }
0x1895   :  { %v5542_v52 = vpop.f32.mrb[46].mxu0 }
0x1896   :  { %v5546_v53 = vsel %vm5207_vm7, -1e+09, %v5542_v52  ;;  %v12638_v33 = vpop.f32.mrb[47].mxu0 }
0x1897   :  { %v5547_v46 = vsel %vm642_vm6, %v5546_v53, -inf }
0x1898   :  { %5548 = vmax.xlane.f32.xlu0 %v5547_v46 }
0x1899   :  { %v5713_v56 = vpop.f32.mrb[48].mxu0 }
0x189a   :  { %v12648_v57 = vpop.f32.mrb[49].mxu0  ;;  %v5717_v58 = vsel %vm5207_vm7, -1e+09, %v5713_v56 }
0x189b   :  { %v5718_v59 = vsel %vm642_vm6, %v5717_v58, -inf }
0x18a5   :  { %4536 = vrot.lane.b32.xlu1 %v15283_v2, %s14282_s1 }
0x18c9   :  { %5719 = vmax.xlane.f32.xlu1 %v5718_v59 }
0x18da   :  { %4874 = vrot.lane.b32.xlu1 %v15283_v2, %s14285_s10 }
0x18de   :  { %5045 = vrot.lane.b32.xlu1 %v15283_v2, %s14284_s29 }
0x18e2   :  { %5220 = vrot.lane.b32.xlu1 %v15295_v6, %s14282_s1 }
0x190d   :  { %v4527_v60 = vpop.xlane.xlu0 %4526 }
0x190e   :  { %v4528_v62 = vsub.f32 %v4524_v29, %v4527_v60  ;;  %v4694_v63 = vpop.xlane.xlu1 %4693 }
0x190f   :  { %v4695_v0 = vsub.f32 %v4691_v38, %v4694_v63 }
0x1910   :  { %v4529_v1 = vmul.f32 1.442695, %v4528_v62 }
0x1911   :  { %v4696_v4 = vmul.f32 1.442695, %v4695_v0 }
0x1912   :  { %13488 = vpow2.f32 %v4529_v1 }
0x1913   :  { %13490 = vpow2.f32 %v4696_v4 }
0x1915   :  { %v4865_v7 = vpop.xlane.xlu0 %4864 }
0x1916   :  { %v4866_v19 = vsub.f32 %v15358_v5, %v4865_v7 }
0x1918   :  { %v4867_v23 = vmul.f32 1.442695, %v4866_v19 }
0x1919   :  { %v5036_v8 = vpop.xlane.xlu0 %5035 }
0x191a   :  { %v5037_v9 = vsub.f32 %v5033_v45, %v5036_v8 }
0x191c   :  { %v13489_v12 = vpop.eup %13488  ;;  %v5038_v61 = vmul.f32 1.442695, %v5037_v9 }
0x191d   :  { %v15381_v13 = vpop.eup %13490  ;;  %v4531_v14 = vsel %vm642_vm6, %v13489_v12, 0.0  ;;  %v5211_v22 = vpop.xlane.xlu0 %5210 }
0x191e   :  { %13492 = vpow2.f32 %v5038_v61  ;;  %4532 = vadd.xlane.f32.xlu0 %v4531_v14  ;;  %v4698_v15 = vsel %vm642_vm6, %v15381_v13, 0.0  ;;  %v5212_v26 = vsub.f32 %v5208_v49, %v5211_v22 }
0x191f   :  { %4699 = vadd.xlane.f32.xlu1 %v4698_v15  ;;  %13494 = vpow2.f32 %v4867_v23 }
0x1920   :  { %v5213_v29 = vmul.f32 1.442695, %v5212_v26 }
0x1921   :  { %v5378_v55 = vpop.xlane.xlu1 %5377 }
0x1922   :  { %13496 = vpow2.f32 %v5213_v29  ;;  %v5379_v31 = vsub.f32 %v5375_v32, %v5378_v55  ;;  %v4351_v29 = vld [vmem:[%s16265_s18] sm:$0xff] }
0x1924   :  { %v5380_v38 = vmul.f32 1.442695, %v5379_v31 }
0x1925   :  { %v4537_v16 = vpop.permute.xlu1 %4536  ;;  %v5549_v27 = vpop.xlane.xlu0 %5548 }
0x1926   :  { %12580 = vmatpush3.msra.mxu1 %v4537_v16  ;;  %v5550_v30 = vsub.f32 %v5546_v53, %v5549_v27 }
0x1927   :  { %12589 = vmatprep.subr.mxu1 %v14273_v50 }
0x1928   :  { %v15387_v17 = vpop.eup %13492  ;;  %v5551_v37 = vmul.f32 1.442695, %v5550_v30  ;;  %v4352_v30 = vld [vmem:[%s16265_s18 + $0x8] sm:$0xff] }
0x1929   :  { %v5040_v18 = vsel %vm642_vm6, %v15387_v17, 0.0  ;;  %v13495_v39 = vpop.eup %13494  ;;  %v13152_v31 = vpack.c.bf16 %v4352_v30, %v4351_v29  ;;  %v5959_v30 = vld [vmem:[%s16267_s22] sm:$0xff] }
0x192a   :  { %5041 = vadd.xlane.f32.xlu1 %v5040_v18  ;;  %13498 = vpow2.f32 %v5551_v37 }
0x192b   :  { %13500 = vpow2.f32 %v5380_v38  ;;  %v4353_v38 = vld [vmem:[%s16265_s18 + $0x10] sm:$0xff]  ;;  %13153 = vmatprep.subr.bf16.mxu0 %v13152_v31 }
0x192c   :  { %v15397_v40 = vpop.eup %13496  ;;  %13155 = vmatpush3.bf16.msra.mxu0 %v13152_v31 }
0x192d   :  { %v5215_v5 = vsel %vm642_vm6, %v15397_v40, 0.0 }
0x1934   :  { %4703 = vrot.lane.b32.xlu0 %v15283_v2, %s14283_s13  ;;  %v4869_v2 = vsel %vm642_vm6, %v13495_v39, 0.0  ;;  %v15401_v41 = vpop.eup %13498 }
0x1935   :  { %v5553_v44 = vsel %vm642_vm6, %v15401_v41, 0.0  ;;  %v15405_v45 = vpop.eup %13500 }
0x1936   :  { %v5382_v47 = vsel %vm642_vm6, %v15405_v45, 0.0 }
0x193b   :  { %5387 = vrot.lane.b32.xlu1 %v15295_v6, %s14283_s13 }
0x1953   :  { %4870 = vadd.xlane.f32.xlu0 %v4869_v2 }
0x1956   :  { %v5720_v54 = vpop.xlane.xlu1 %5719 }
0x1957   :  { %v5721_v3 = vsub.f32 %v5717_v58, %v5720_v54  ;;  %5216 = vadd.xlane.f32.xlu0 %v5215_v5 }
0x1959   :  { %v5722_v42 = vmul.f32 1.442695, %v5721_v3 }
0x195a   :  { %v4875_v49 = vpop.permute.xlu1 %4874 }
0x195b   :  { %13502 = vpow2.f32 %v5722_v42  ;;  %5554 = vadd.xlane.f32.xlu0 %v5553_v44 }
0x195e   :  { %v5046_v20 = vpop.permute.xlu1 %5045 }
0x195f   :  { %5383 = vadd.xlane.f32.xlu1 %v5382_v47 }
0x1962   :  { %v5221_v21 = vpop.permute.xlu1 %5220 }
0x1965   :  { %v15409_v48 = vpop.eup %13502 }
0x1966   :  { %v5724_v35 = vsel %vm642_vm6, %v15409_v48, 0.0 }
0x1967   :  { %5725 = vadd.xlane.f32.xlu0 %v5724_v35 }
0x1970   :  { %5729 = vrot.lane.b32.xlu1 %v15295_v6, %s14284_s29 }
0x197d   :  { %5558 = vrot.lane.b32.xlu0 %v15295_v6, %s14285_s10 }
0x19ab   :  { %v4533_v36 = vpop.xlane.xlu0 %4532 }
0x19ac   :  { %13504 = vrcp.f32 %v4533_v36  ;;  %v4700_v32 = vpop.xlane.xlu1 %4699 }
0x19ad   :  { %13506 = vrcp.f32 %v4700_v32 }
0x19af   :  { %v4704_v53 = vpop.permute.xlu0 %4703 }
0x19b6   :  { %v13505_v28 = vpop.eup %13504 }
0x19b7   :  { %v4535_v51 = vmul.f32 %v13505_v28, %v13489_v12  ;;  %v13507_v52 = vpop.eup %13506  ;;  %v5042_v33 = vpop.xlane.xlu1 %5041 }
0x19b8   :  { %v4702_v6 = vmul.f32 %v13507_v52, %v15381_v13 }
0x19b9   :  { %12582 = vmatmul.mubr.msk.f32.vlgmr.msra.gmra.mrb[48].mxu1 %vm642_vm6, %v4535_v51 }
0x19ba   :  { %12590 = vmatpush3.msra.mxu1 %v4704_v53  ;;  %12591 = vmatprep.mubr.msk.f32.mxu1 %vm14274_vm5, %v14273_v50 }
0x19bb   :  { %12599 = vmatprep.subr.mxu1 %v14273_v50  ;;  %v5388_v57 = vpop.permute.xlu1 %5387 }
0x19bd   :  { %12592 = vmatmul.mubr.msk.f32.vlgmr.msra.gmra.mrb[50].mxu1 %vm642_vm6, %v4702_v6 }
0x19be   :  { %12600 = vmatpush3.msra.mxu1 %v4875_v49  ;;  %12601 = vmatprep.mubr.msk.f32.mxu1 %vm14274_vm5, %v14273_v50 }
0x19bf   :  { %12609 = vmatprep.subr.mxu1 %v14273_v50 }
0x19e0   :  { %v4871_v46 = vpop.xlane.xlu0 %4870 }
0x19e1   :  { %13508 = vrcp.f32 %v4871_v46 }
0x19e2   :  { %13510 = vrcp.f32 %v5042_v33  ;;  %v11770_v33 = vld [vmem:[%s16266_s6] ss:$0 sm:$0xff] }
0x19e4   :  { %v5217_v56 = vpop.xlane.xlu0 %5216 }
0x19e5   :  { %13512 = vrcp.f32 %v5217_v56 }
0x19e8   :  { %v5555_v59 = vpop.xlane.xlu0 %5554 }
0x19eb   :  { %v13509_v58 = vpop.eup %13508 }
0x19ec   :  { %v5384_v60 = vpop.xlane.xlu1 %5383  ;;  %v4873_v62 = vmul.f32 %v13509_v58, %v13495_v39  ;;  %v13511_v63 = vpop.eup %13510  ;;  %v4354_v39 = vld [vmem:[%s16265_s18 + $0x18] sm:$0xff] }
0x19ed   :  { %13514 = vrcp.f32 %v5384_v60  ;;  %v5044_v0 = vmul.f32 %v13511_v63, %v15387_v17 }
0x19ee   :  { %12602 = vmatmul.mubr.msk.f32.vlgmr.msra.gmra.mrb[52].mxu1 %vm642_vm6, %v4873_v62  ;;  %13516 = vrcp.f32 %v5555_v59  ;;  %v11802_v59 = vld [vmem:[#allocation18] ss:$0 sm:$0xff] }
0x19ef   :  { %12610 = vmatpush3.msra.mxu1 %v5046_v20  ;;  %12611 = vmatprep.mubr.msk.f32.mxu1 %vm14274_vm5, %v14273_v50  ;;  %v13513_v1 = vpop.eup %13512 }
0x19f0   :  { %12619 = vmatprep.subr.mxu1 %v14273_v50  ;;  %v5219_v7 = vmul.f32 %v13513_v1, %v15397_v40  ;;  %v5730_v14 = vpop.permute.xlu1 %5729  ;;  %v13156_v40 = vpack.c.bf16 %v4354_v39, %v4353_v38  ;;  %v5961_v38 = vld [vmem:[%s16267_s22 + $0x10] sm:$0xff]  ;;  %v5962_v39 = vld [vmem:[%s16267_s22 + $0x18] sm:$0xff] }
0x19f2   :  { %12612 = vmatmul.mubr.msk.f32.vlgmr.msra.gmra.mrb[54].mxu1 %vm642_vm6, %v5044_v0  ;;  %13157 = vmatprep.subr.bf16.mxu0 %v13156_v40 }
0x19f3   :  { %12620 = vmatpush3.msra.mxu1 %v5221_v21  ;;  %12621 = vmatprep.mubr.msk.f32.mxu1 %vm14274_vm5, %v14273_v50 }
0x19f4   :  { %v5726_v4 = vpop.xlane.xlu0 %5725  ;;  %12629 = vmatprep.subr.mxu1 %v14273_v50  ;;  %13159 = vmatpush3.bf16.msra.mxu0 %v13156_v40 }
0x19f5   :  { %13518 = vrcp.f32 %v5726_v4 }
0x19f6   :  { %12622 = vmatmul.mubr.msk.f32.vlgmr.msra.gmra.mrb[56].mxu1 %vm642_vm6, %v5219_v7 }
0x19f7   :  { %v13515_v8 = vpop.eup %13514  ;;  %12630 = vmatpush3.msra.mxu1 %v5388_v57  ;;  %12631 = vmatprep.mubr.msk.f32.mxu1 %vm14274_vm5, %v14273_v50 }
0x19f8   :  { %v5559_v9 = vpop.permute.xlu0 %5558  ;;  %12639 = vmatprep.subr.mxu1 %v14273_v50  ;;  %v5386_v12 = vmul.f32 %v13515_v8, %v15405_v45  ;;  %v13517_v61 = vpop.eup %13516  ;;  %v11767_v45 = vld [vmem:[#allocation9 + $0x1] ss:$0 sm:$0xff] }
0x19f9   :  { %v5557_v13 = vmul.f32 %v13517_v61, %v15401_v41  ;;  %v4214_v47 = vadd.f32 %v11767_v45, %v15350_v25  ;;  %v4219_v49 = vadd.f32 %v15348_v24, %v11767_v45  ;;  %v11771_v45 = vld [vmem:[%s16268_s23] ss:$0 sm:$0xff] }
0x19fa   :  { %12632 = vmatmul.mubr.msk.f32.vlgmr.msra.gmra.mrb[58].mxu1 %vm642_vm6, %v5386_v12 }
0x19fb   :  { %12640 = vmatpush3.msra.mxu1 %v5559_v9  ;;  %12641 = vmatprep.mubr.msk.f32.mxu1 %vm14274_vm5, %v14273_v50  ;;  %v4223_v20 = vadd.f32 %v4219_v49, %v15204_v10  ;;  %v15516_v49 = vld [vmem:[#allocation19] ss:$0 sm:$0xff] }
0x19fc   :  { %12649 = vmatprep.subr.mxu1 %v14273_v50 }
0x19fd   :  { %v4229_v21 = vsel %vm481_vm0, %v4223_v20, 0.0 }
0x19fe   :  { %12642 = vmatmul.mubr.msk.f32.vlgmr.msra.gmra.mrb[60].mxu1 %vm642_vm6, %v5557_v13 }
0x19ff   :  { %v13519_v15 = vpop.eup %13518  ;;  %12650 = vmatpush3.msra.mxu1 %v5730_v14  ;;  %12651 = vmatprep.mubr.msk.f32.mxu1 %vm14274_vm5, %v14273_v50 }
0x1a00   :  { %v5728_v55 = vmul.f32 %v13519_v15, %v15409_v48  ;;  %v4222_v48 = vadd.f32 %v4214_v47, %v15207_v11 }
0x1a02   :  { %12652 = vmatmul.mubr.msk.f32.vlgmr.msra.gmra.mrb[62].mxu1 %vm642_vm6, %v5728_v55  ;;  %v4226_v35 = vsel %vm481_vm0, %v4222_v48, 0.0 }
0x1a8c   :  { %v4608_v16 = vpop.f32.mrb[48].mxu1 }
0x1a8d   :  { %4612 = vst.msk [vmem:[#allocation3] sm:$0xff] %vm642_vm6, %v4608_v16  ;;  %v12583_v17 = vpop.f32.mrb[49].mxu1 }
0x1a90   :  { %v4775_v18 = vpop.f32.mrb[50].mxu1 }
0x1a91   :  { %4780 = vrot.lane.b32.xlu0 %v4775_v18, %s14266_s30  ;;  %v12593_v19 = vpop.f32.mrb[51].mxu1 }
0x1ac1   :  { %v4946_v22 = vpop.f32.mrb[52].mxu1 }
0x1ac2   :  { %4951 = vrot.lane.b32.xlu1 %v4946_v22, %s14249_s2  ;;  %v12603_v23 = vpop.f32.mrb[53].mxu1 }
0x1ac5   :  { %v5117_v26 = vpop.f32.mrb[54].mxu1 }
0x1ac6   :  { %5122 = vrot.lane.b32.xlu1 %v5117_v26, %s14286_s17  ;;  %v12613_v27 = vpop.f32.mrb[55].mxu1 }
0x1ac9   :  { %v5292_v37 = vpop.f32.mrb[56].mxu1 }
0x1aca   :  { %5296 = vst.msk [vmem:[#allocation3 + $0x8] sm:$0xff] %vm642_vm6, %v5292_v37  ;;  %v12623_v2 = vpop.f32.mrb[57].mxu1  ;;  %v5960_v37 = vld [vmem:[%s16267_s22 + $0x8] sm:$0xff] }
0x1acd   :  { %v5459_v54 = vpop.f32.mrb[58].mxu1 }
0x1ace   :  { %5464 = vrot.lane.b32.xlu0 %v5459_v54, %s14266_s30  ;;  %v12633_v5 = vpop.f32.mrb[59].mxu1  ;;  %v13364_v54 = vpack.i.bf16 %v5960_v37, %v5959_v30 }
0x1acf   :  { %v13369_v5 = vpack.i.bf16 %v5962_v39, %v5961_v38 }
0x1ad1   :  { %v5630_v41 = vpop.f32.mrb[60].mxu1 }
0x1ad2   :  { %5635 = vrot.lane.b32.xlu0 %v5630_v41, %s14249_s2  ;;  %v12643_v3 = vpop.f32.mrb[61].mxu1 }
0x1ad5   :  { %v5801_v42 = vpop.f32.mrb[62].mxu1 }
0x1ad6   :  { %5806 = vrot.lane.b32.xlu1 %v5801_v42, %s14286_s17  ;;  %v12653_v44 = vpop.f32.mrb[63].mxu1 }
0x1af1   :  { %4227 = vadd.xlane.f32.xlu0 %v4226_v35  ;;  %v13164_v35 = vpack.c.bf16 %v5962_v39, %v5961_v38 }
0x1afa   :  { %4230 = vadd.xlane.f32.xlu1 %v4229_v21 }
0x1b03   :  { %v4781_v36 = vpop.permute.xlu0 %4780 }
0x1b04   :  { %4783 = vst.msk [vmem:[#allocation3] sm:$0xff] %vm978_vm9, %v4781_v36 }
0x1b34   :  { %v4952_v32 = vpop.permute.xlu1 %4951 }
0x1b35   :  { %4954 = vst.msk [vmem:[#allocation3] sm:$0xff] %vm1150_vm10, %v4952_v32 }
0x1b38   :  { %v5123_v25 = vpop.permute.xlu1 %5122 }
0x1b39   :  { %5125 = vst.msk [vmem:[#allocation3] sm:$0xff] %vm1322_vm11, %v5123_v25 }
0x1b40   :  { %v5465_v11 = vpop.permute.xlu0 %5464  ;;  %v5810_v28 = vld [vmem:[#allocation3] sm:$0xff] }
0x1b41   :  { %5467 = vst.msk [vmem:[#allocation3 + $0x8] sm:$0xff] %vm978_vm9, %v5465_v11  ;;  %12662 = vmatprep.mubr.msk.f32.mxu0 %vm481_vm0, %v5810_v28 }
0x1b44   :  { %v5636_v10 = vpop.permute.xlu0 %5635 }
0x1b45   :  { %5638 = vst.msk [vmem:[#allocation3 + $0x8] sm:$0xff] %vm1150_vm10, %v5636_v10 }
0x1b48   :  { %v5807_v24 = vpop.permute.xlu1 %5806 }
0x1b49   :  { %5809 = vst.msk [vmem:[#allocation3 + $0x8] sm:$0xff] %vm1322_vm11, %v5807_v24 }
0x1b50   :  { %v5811_v51 = vld [vmem:[#allocation3 + $0x8] sm:$0xff] }
0x1b51   :  { %12663 = vmatmul.mubr.msk.f32.vlgmr.msra.gmra.mrb[50].mxu0 %vm481_vm0, %v5811_v51 }
0x1b7e   :  { %v4228_v58 = vpop.xlane.xlu0 %4227 }
0x1b7f   :  { %v4232_v63 = vmul.f32 0.03125, %v4228_v58 }
0x1b81   :  { %v4234_v7 = vsub.f32 %v4222_v48, %v4232_v63  ;;  %v13160_v48 = vpack.c.bf16 %v5960_v37, %v5959_v30 }
0x1b83   :  { %v4236_v61 = vmul.f32 %v4234_v7, %v4234_v7  ;;  %v4252_v3 = vmul.f32 %v11770_v33, %v4234_v7  ;;  %13161 = vmatprep.subr.bf16.mxu1 %v13160_v48 }
0x1b84   :  { %13163 = vmatpush3.bf16.msra.mxu1 %v13160_v48 }
0x1b85   :  { %v4238_v13 = vsel %vm481_vm0, %v4236_v61, 0.0  ;;  %13165 = vmatprep.subr.bf16.mxu1 %v13164_v35 }
0x1b87   :  { %v4231_v52 = vpop.xlane.xlu1 %4230 }
0x1b88   :  { %v4233_v53 = vmul.f32 0.03125, %v4231_v52  ;;  %13167 = vmatpush3.bf16.msra.mxu1 %v13164_v35 }
0x1b89   :  { %12687 = vmatprep.subr.mxu1 %v14273_v50 }
0x1b8a   :  { %v4235_v6 = vsub.f32 %v4223_v20, %v4233_v53 }
0x1b8c   :  { %v15478_v46 = vmul.f32 %v11770_v33, %v4235_v6  ;;  %v4237_v56 = vmul.f32 %v4235_v6, %v4235_v6 }
0x1b8e   :  { %v4241_v57 = vsel %vm481_vm0, %v4237_v56, 0.0 }
0x1b8f   :  { %4242 = vadd.xlane.f32.xlu1 %v4241_v57 }
0x1c1c   :  { %v4243_v20 = vpop.xlane.xlu1 %4242 }
0x1c1d   :  { %v4245_v21 = vmul.f32 0.032258064, %v4243_v20 }
0x1c1f   :  { %vm4263_vm14 = vcmp.eq.f32.partialorder %v4245_v21, inf  ;;  %v4266_v11 = vand.u32 2147483648, %v4245_v21  ;;  %vm4265_vm15 = vcmp.eq.f32.partialorder %v4245_v21, 0.0 }
0x1c24   :  { %v12664_v60 = vpop.f32.mrb[50].mxu0 }
0x1c25   :  { %v5890_v62 = vpop.f32.mrb[51].mxu0  ;;  %v5896_v0 = vadd.f32 %v12664_v60, %v11802_v59 }
0x1c26   :  { %v5891_v1 = vadd.f32 %v11802_v59, %v5890_v62 }
0x1c27   :  { %v15485_v8 = vadd.f32 %v5896_v0, %v15219_v43 }
0x1c28   :  { %v15482_v4 = vadd.f32 %v5891_v1, %v15209_v34 }
0x1c29   :  { %v5906_v12 = vsel %vm481_vm0, %v15485_v8, 0.0 }
0x1c2a   :  { %v5903_v9 = vsel %vm481_vm0, %v15482_v4, 0.0 }
0x1c2b   :  { %5904 = vadd.xlane.f32.xlu0 %v5903_v9 }
0x1c2f   :  { %5907 = vadd.xlane.f32.xlu0 %v5906_v12 }
0x1c33   :  { %4239 = vadd.xlane.f32.xlu0 %v4238_v13 }
0x1cb8   :  { %v5905_v14 = vpop.xlane.xlu0 %5904 }
0x1cb9   :  { %v5909_v15 = vmul.f32 0.03125, %v5905_v14 }
0x1cbb   :  { %v15493_v34 = vsub.f32 %v15482_v4, %v5909_v15 }
0x1cbc   :  { %v5908_v43 = vpop.xlane.xlu0 %5907 }
0x1cbd   :  { %v5910_v55 = vmul.f32 0.03125, %v5908_v43  ;;  %v5913_v16 = vmul.f32 %v15493_v34, %v15493_v34 }
0x1cbf   :  { %v15498_v17 = vsub.f32 %v15485_v8, %v5910_v55  ;;  %v5915_v18 = vsel %vm481_vm0, %v5913_v16, 0.0 }
0x1cc0   :  { %5916 = vadd.xlane.f32.xlu0 %v5915_v18  ;;  %v4240_v19 = vpop.xlane.xlu0 %4239 }
0x1cc1   :  { %v4244_v22 = vmul.f32 0.032258064, %v4240_v19  ;;  %v5914_v23 = vmul.f32 %v15498_v17, %v15498_v17  ;;  %v11805_v19 = vld [vmem:[#allocation30] ss:$0 sm:$0xff] }
0x1cc2   :  { %v5930_v30 = vmul.f32 %v11805_v19, %v15498_v17 }
0x1cc3   :  { %13520 = vrsqrt.f32 %v4244_v22  ;;  %v5918_v26 = vsel %vm481_vm0, %v5914_v23, 0.0  ;;  %vm4256_vm8 = vcmp.eq.f32.partialorder %v4244_v22, inf  ;;  %v4259_v31 = vand.u32 2147483648, %v4244_v22 }
0x1cc4   :  { %5919 = vadd.xlane.f32.xlu1 %v5918_v26  ;;  %vm4258_vm13 = vcmp.eq.f32.partialorder %v4244_v22, 0.0  ;;  %v11806_v26 = vld [vmem:[#allocation31] ss:$0 sm:$0xff] }
0x1ccd   :  { %v13521_v27 = vpop.eup %13520 }
0x1cce   :  { %v4255_v29 = vmul.f32 %v13521_v27, %v4244_v22 }
0x1cd0   :  { %v4257_v2 = vsel %vm4256_vm8, %v4244_v22, %v4255_v29  ;;  %v5929_v22 = vmul.f32 %v11805_v19, %v15493_v34 }
0x1cd1   :  { %v4260_v40 = vsel %vm4258_vm13, %v4259_v31, %v4257_v2 }
0x1cd2   :  { %v4268_v41 = vadd.f32 1e-06, %v4260_v40 }
0x1cd4   :  { %13522 = vrcp.f32 %v4268_v41 }
0x1cd5   :  { %13370 = vrot.lane.b32.xlu1 %v13369_v5, %s14275_s20  ;;  %13524 = vrsqrt.f32 %v4245_v21 }
0x1cd6   :  { %13365 = vrot.lane.b32.xlu0 %v13364_v54, %s14275_s20 }
0x1cd9   :  { %6072 = vrot.lane.b32.xlu1 %v15516_v49, %s14275_s20 }
0x1cde   :  { %v13523_v42 = vpop.eup %13522 }
0x1cdf   :  { %v4271_v44 = vmul.f32 %v13523_v42, %v4252_v3  ;;  %v13525_v36 = vpop.eup %13524 }
0x1ce0   :  { %v4262_v32 = vmul.f32 %v13525_v36, %v4245_v21 }
0x1ce1   :  { %v15511_v47 = vadd.f32 %v11771_v45, %v4271_v44 }
0x1ce2   :  { %v4264_v25 = vsel %vm4263_vm14, %v4245_v21, %v4262_v32 }
0x1ce3   :  { %12684 = vmatprep.mubr.msk.f32.mxu0 %vm481_vm0, %v15511_v47  ;;  %v4267_v28 = vsel %vm4265_vm15, %v4266_v11, %v4264_v25 }
0x1ce4   :  { %v4269_v10 = vadd.f32 1e-06, %v4267_v28 }
0x1ce6   :  { %13526 = vrcp.f32 %v4269_v10 }
0x1cf0   :  { %v13527_v58 = vpop.eup %13526 }
0x1cf1   :  { %v4273_v63 = vmul.f32 %v13527_v58, %v15478_v46 }
0x1cf3   :  { %v15521_v12 = vadd.f32 %v11771_v45, %v4273_v63 }
0x1d4d   :  { %v5917_v24 = vpop.xlane.xlu0 %5916 }
0x1d4e   :  { %v5921_v51 = vmul.f32 0.032258064, %v5917_v24  ;;  %v6156_v24 = vld [vmem:[%s16269_s14] sm:$0xff] }
0x1d4f   :  { %vm6234_vm7 = vcmp.eq.f32.partialorder %v6156_v24, 0.0 }
0x1d50   :  { %13528 = vrsqrt.f32 %v5921_v51  ;;  %vm5933_vm2 = vcmp.eq.f32.partialorder %v5921_v51, inf  ;;  %v5936_v9 = vand.u32 2147483648, %v5921_v51  ;;  %vm5935_vm3 = vcmp.eq.f32.partialorder %v5921_v51, 0.0 }
0x1d51   :  { %v13366_v52 = vpop.permute.xlu0 %13365  ;;  %v5920_v53 = vpop.xlane.xlu1 %5919 }
0x1d52   :  { %v13368_v6 = vunpack.i.h.bf16 %v13366_v52  ;;  %v13367_v33 = vunpack.i.l.bf16 %v13366_v52  ;;  %v5922_v56 = vmul.f32 0.032258064, %v5920_v53 }
0x1d54   :  { %v13168_v57 = vpack.c.bf16 %v13368_v6, %v13367_v33  ;;  %13530 = vrsqrt.f32 %v5922_v56  ;;  %vm5940_vm4 = vcmp.eq.f32.partialorder %v5922_v56, inf  ;;  %v5943_v43 = vand.u32 2147483648, %v5922_v56 }
0x1d55   :  { %v13371_v59 = vpop.permute.xlu1 %13370  ;;  %vm5942_vm12 = vcmp.eq.f32.partialorder %v5922_v56, 0.0 }
0x1d56   :  { %13169 = vmatprep.subr.bf16.mxu0 %v13168_v57  ;;  %v13373_v60 = vunpack.i.h.bf16 %v13371_v59  ;;  %v13372_v62 = vunpack.i.l.bf16 %v13371_v59 }
0x1d57   :  { %13171 = vmatpush3.bf16.msra.mxu0 %v13168_v57 }
0x1d58   :  { %v13172_v0 = vpack.c.bf16 %v13373_v60, %v13372_v62 }
0x1d59   :  { %v6073_v39 = vpop.permute.xlu1 %6072 }
0x1d5a   :  { %v13529_v1 = vpop.eup %13528  ;;  %13173 = vmatprep.subr.bf16.mxu0 %v13172_v0 }
0x1d5b   :  { %v5932_v7 = vmul.f32 %v13529_v1, %v5921_v51  ;;  %13175 = vmatpush3.bf16.msra.mxu0 %v13172_v0  ;;  %v11824_v0 = vld [vmem:[%s16269_s14 + $0x8] sm:$0xff] }
0x1d5c   :  { %12697 = vmatprep.subr.mxu0 %v14273_v50  ;;  %vm6916_vm8 = vcmp.eq.f32.partialorder %v11824_v0, 0.0 }
0x1d5d   :  { %v5934_v61 = vsel %vm5933_vm2, %v5921_v51, %v5932_v7 }
0x1d5e   :  { %v5937_v13 = vsel %vm5935_vm3, %v5936_v9, %v5934_v61  ;;  %v13531_v14 = vpop.eup %13530  ;;  %12685 = vmatmul.mubr.msk.f32.vlgmr.msra.gmra.mrb[52].mxu0 %vm481_vm0, %v15521_v12 }
0x1d5f   :  { %v5945_v15 = vadd.f32 1e-06, %v5937_v13  ;;  %v5939_v46 = vmul.f32 %v13531_v14, %v5922_v56  ;;  %12699 = vmatprep.mubr.msk.f32.mxu0 %vm14274_vm5, %v14273_v50 }
0x1d61   :  { %13532 = vrcp.f32 %v5945_v15  ;;  %v5941_v55 = vsel %vm5940_vm4, %v5922_v56, %v5939_v46 }
0x1d62   :  { %v5944_v16 = vsel %vm5942_vm12, %v5943_v43, %v5941_v55 }
0x1d63   :  { %v5946_v18 = vadd.f32 1e-06, %v5944_v16 }
0x1d65   :  { %13534 = vrcp.f32 %v5946_v18 }
0x1d6b   :  { %v13533_v23 = vpop.eup %13532 }
0x1d6c   :  { %v5948_v27 = vmul.f32 %v13533_v23, %v5929_v22 }
0x1d6e   :  { %v5957_v29 = vadd.f32 %v11806_v26, %v5948_v27 }
0x1d6f   :  { %v13535_v31 = vpop.eup %13534 }
0x1d70   :  { %12673 = vmatprep.mubr.msk.f32.mxu1 %vm481_vm0, %v5957_v29  ;;  %v5950_v37 = vmul.f32 %v13535_v31, %v5930_v30 }
0x1d72   :  { %v5958_v38 = vadd.f32 %v11806_v26, %v5950_v37 }
0x1d74   :  { %12674 = vmatmul.mubr.msk.f32.vlgmr.msra.gmra.mrb[64].mxu1 %vm481_vm0, %v5958_v38 }
0x1d75   :  { %12689 = vmatprep.mubr.msk.f32.mxu1 %vm14274_vm5, %v14273_v50 }
0x1e31   :  { %v12686_v2 = vpop.f32.mrb[52].mxu0 }
0x1e32   :  { %v6147_v40 = vpop.f32.mrb[53].mxu0  ;;  %v15545_v17 = vadd.f32 %v12686_v2, %v6073_v39 }
0x1e33   :  { %v15534_v34 = vadd.f32 %v6147_v40, %v6073_v39 }
0x1e35   :  { %6326 = vrot.lane.b32.xlu1 %v15534_v34, %s14279_s0  ;;  %12688 = vmatpush3.xpose.msk.msra.mxu1 %vm642_vm6, %v15534_v34 }
0x1e36   :  { %12692 = vmatprep.subr.mxu1 %v14273_v50 }
0x1e39   :  { %6497 = vrot.lane.b32.xlu1 %v15534_v34, %s14280_s26 }
0x1e3d   :  { %6668 = vrot.lane.b32.xlu1 %v15534_v34, %s14281_s28 }
0x1e41   :  { %7008 = vrot.lane.b32.xlu1 %v15545_v17, %s14279_s0 }
0x1e45   :  { %7179 = vrot.lane.b32.xlu1 %v15545_v17, %s14280_s26 }
0x1e47   :  { %v12675_v54 = vpop.f32.mrb[64].mxu1 }
0x1e48   :  { %v6047_v5 = vpop.f32.mrb[65].mxu1  ;;  %v6053_v42 = vadd.f32 %v12675_v54, %v15516_v49 }
0x1e49   :  { %v6048_v41 = vadd.f32 %v15516_v49, %v6047_v5  ;;  %7350 = vrot.lane.b32.xlu1 %v15545_v17, %s14281_s28 }
0x1e4a   :  { %v6839_v44 = vmul.f32 0.35355338, %v6053_v42 }
0x1e4b   :  { %v6157_v3 = vmul.f32 0.35355338, %v6048_v41 }
0x1e4d   :  { %6324 = vrot.lane.b32.xlu0 %v6157_v3, %s14279_s0  ;;  %12690 = vmatmul.mubr.msk.f32.vlgmr.msra.gmra.mrb[66].mxu1 %vm642_vm6, %v6157_v3 }
0x1e4e   :  { %12694 = vmatprep.mubr.msk.f32.mxu1 %vm14274_vm5, %v14273_v50 }
0x1e51   :  { %6495 = vrot.lane.b32.xlu0 %v6157_v3, %s14280_s26 }
0x1e55   :  { %6666 = vrot.lane.b32.xlu0 %v6157_v3, %s14281_s28 }
0x1e59   :  { %7006 = vrot.lane.b32.xlu0 %v6839_v44, %s14279_s0 }
0x1e5d   :  { %7177 = vrot.lane.b32.xlu0 %v6839_v44, %s14280_s26 }
0x1e61   :  { %7348 = vrot.lane.b32.xlu0 %v6839_v44, %s14281_s28 }
0x1ea7   :  { %v6327_v45 = vpop.permute.xlu1 %6326 }
0x1ea8   :  { %12698 = vmatpush3.xpose.msk.msra.mxu0 %vm642_vm6, %v6327_v45 }
0x1ea9   :  { %12707 = vmatprep.subr.mxu0 %v14273_v50 }
0x1eab   :  { %v6498_v48 = vpop.permute.xlu1 %6497 }
0x1eaf   :  { %v6669_v49 = vpop.permute.xlu1 %6668 }
0x1eb3   :  { %v7009_v36 = vpop.permute.xlu1 %7008 }
0x1eb7   :  { %v7180_v25 = vpop.permute.xlu1 %7179 }
0x1ebb   :  { %v7351_v28 = vpop.permute.xlu1 %7350 }
0x1ebf   :  { %v6325_v35 = vpop.permute.xlu0 %6324 }
0x1ec0   :  { %12700 = vmatmul.mubr.msk.f32.vlgmr.msra.gmra.mrb[54].mxu0 %vm642_vm6, %v6325_v35 }
0x1ec1   :  { %12708 = vmatpush3.xpose.msk.msra.mxu0 %vm642_vm6, %v6498_v48  ;;  %12709 = vmatprep.mubr.msk.f32.mxu0 %vm14274_vm5, %v14273_v50 }
0x1ec2   :  { %12717 = vmatprep.subr.mxu0 %v14273_v50 }
0x1ec3   :  { %v6496_v20 = vpop.permute.xlu0 %6495 }
0x1ec4   :  { %12710 = vmatmul.mubr.msk.f32.vlgmr.msra.gmra.mrb[56].mxu0 %vm642_vm6, %v6496_v20 }
0x1ec5   :  { %12718 = vmatpush3.xpose.msk.msra.mxu0 %vm642_vm6, %v6669_v49  ;;  %12719 = vmatprep.mubr.msk.f32.mxu0 %vm14274_vm5, %v14273_v50 }
0x1ec6   :  { %12727 = vmatprep.subr.mxu0 %v14273_v50 }
0x1ec7   :  { %v6667_v21 = vpop.permute.xlu0 %6666 }
0x1ec8   :  { %12720 = vmatmul.mubr.msk.f32.vlgmr.msra.gmra.mrb[58].mxu0 %vm642_vm6, %v6667_v21 }
0x1ec9   :  { %12728 = vmatpush3.xpose.msk.msra.mxu0 %vm642_vm6, %v15545_v17  ;;  %12729 = vmatprep.mubr.msk.f32.mxu0 %vm14274_vm5, %v14273_v50 }
0x1eca   :  { %12737 = vmatprep.subr.mxu0 %v14273_v50 }
0x1ecb   :  { %v7007_v32 = vpop.permute.xlu0 %7006 }
0x1ecc   :  { %12730 = vmatmul.mubr.msk.f32.vlgmr.msra.gmra.mrb[60].mxu0 %vm642_vm6, %v6839_v44 }
0x1ecd   :  { %12738 = vmatpush3.xpose.msk.msra.mxu0 %vm642_vm6, %v7009_v36  ;;  %12739 = vmatprep.mubr.msk.f32.mxu0 %vm14274_vm5, %v14273_v50 }
0x1ece   :  { %12747 = vmatprep.subr.mxu0 %v14273_v50 }
0x1ecf   :  { %v7178_v11 = vpop.permute.xlu0 %7177 }
0x1ed0   :  { %12740 = vmatmul.mubr.msk.f32.vlgmr.msra.gmra.mrb[62].mxu0 %vm642_vm6, %v7007_v32 }
0x1ed1   :  { %12748 = vmatpush3.xpose.msk.msra.mxu0 %vm642_vm6, %v7180_v25  ;;  %12749 = vmatprep.mubr.msk.f32.mxu0 %vm14274_vm5, %v14273_v50 }
0x1ed2   :  { %12757 = vmatprep.subr.mxu0 %v14273_v50 }
0x1ed3   :  { %v7349_v10 = vpop.permute.xlu0 %7348 }
0x1ed4   :  { %12750 = vmatmul.mubr.msk.f32.vlgmr.msra.gmra.mrb[64].mxu0 %vm642_vm6, %v7178_v11 }
0x1ed5   :  { %12758 = vmatpush3.xpose.msk.msra.mxu0 %vm642_vm6, %v7351_v28  ;;  %12759 = vmatprep.mubr.msk.f32.mxu0 %vm14274_vm5, %v14273_v50 }
0x1ed8   :  { %12760 = vmatmul.mubr.msk.f32.vlgmr.msra.gmra.mrb[66].mxu0 %vm642_vm6, %v7349_v10 }
0x1f20   :  { %v6230_v51 = vpop.f32.mrb[66].mxu1 }
0x1f21   :  { %v6235_v52 = vsel %vm6234_vm7, -1e+09, %v6230_v51  ;;  %v12691_v53 = vpop.f32.mrb[67].mxu1 }
0x1f22   :  { %v6236_v6 = vsel %vm642_vm6, %v6235_v52, -inf }
0x1f23   :  { %6237 = vmax.xlane.f32.xlu1 %v6236_v6 }
0x1f93   :  { %v6398_v33 = vpop.f32.mrb[54].mxu0 }
0x1f94   :  { %v6402_v56 = vsel %vm6234_vm7, -1e+09, %v6398_v33  ;;  %v12701_v57 = vpop.f32.mrb[55].mxu0 }
0x1f95   :  { %v6403_v58 = vsel %vm642_vm6, %v6402_v56, -inf }
0x1f96   :  { %6404 = vmax.xlane.f32.xlu0 %v6403_v58 }
0x1f97   :  { %v6569_v59 = vpop.f32.mrb[56].mxu0 }
0x1f98   :  { %v6573_v60 = vsel %vm6234_vm7, -1e+09, %v6569_v59  ;;  %v12711_v62 = vpop.f32.mrb[57].mxu0 }
0x1f99   :  { %v6574_v63 = vsel %vm642_vm6, %v6573_v60, -inf }
0x1f9a   :  { %6575 = vmax.xlane.f32.xlu0 %v6574_v63 }
0x1f9b   :  { %v6740_v1 = vpop.f32.mrb[58].mxu0 }
0x1f9c   :  { %v15606_v7 = vsel %vm6234_vm7, -1e+09, %v6740_v1  ;;  %v12721_v9 = vpop.f32.mrb[59].mxu0 }
0x1f9d   :  { %v6745_v61 = vsel %vm642_vm6, %v15606_v7, -inf }
0x1f9e   :  { %6746 = vmax.xlane.f32.xlu0 %v6745_v61 }
0x1f9f   :  { %v6912_v13 = vpop.f32.mrb[60].mxu0 }
0x1fa0   :  { %v6917_v14 = vsel %vm6916_vm8, -1e+09, %v6912_v13  ;;  %v12731_v15 = vpop.f32.mrb[61].mxu0 }
0x1fa1   :  { %v6918_v46 = vsel %vm642_vm6, %v6917_v14, -inf }
0x1fa2   :  { %6919 = vmax.xlane.f32.xlu1 %v6918_v46 }
0x1fa3   :  { %v7080_v43 = vpop.f32.mrb[62].mxu0 }
0x1fa4   :  { %v15613_v55 = vsel %vm6916_vm8, -1e+09, %v7080_v43  ;;  %v12741_v16 = vpop.f32.mrb[63].mxu0 }
0x1fa5   :  { %v7085_v18 = vsel %vm642_vm6, %v15613_v55, -inf }
0x1fa6   :  { %7086 = vmax.xlane.f32.xlu0 %v7085_v18 }
0x1fa7   :  { %v7251_v19 = vpop.f32.mrb[64].mxu0 }
0x1fa8   :  { %v7255_v22 = vsel %vm6916_vm8, -1e+09, %v7251_v19  ;;  %v12751_v23 = vpop.f32.mrb[65].mxu0 }
0x1fa9   :  { %v7256_v26 = vsel %vm642_vm6, %v7255_v22, -inf }
0x1faa   :  { %7257 = vmax.xlane.f32.xlu1 %v7256_v26 }
0x1fab   :  { %v7422_v27 = vpop.f32.mrb[66].mxu0 }
0x1fac   :  { %v7426_v29 = vsel %vm6916_vm8, -1e+09, %v7422_v27  ;;  %v12761_v30 = vpop.f32.mrb[67].mxu0 }
0x1fad   :  { %v7427_v31 = vsel %vm642_vm6, %v7426_v29, -inf }
0x1fae   :  { %7428 = vmax.xlane.f32.xlu0 %v7427_v31 }
0x1fb0   :  { %v6238_v37 = vpop.xlane.xlu1 %6237 }
0x1fb1   :  { %v6239_v38 = vsub.f32 %v6235_v52, %v6238_v37 }
0x1fb3   :  { %v6240_v39 = vmul.f32 1.442695, %v6239_v38 }
0x1fb5   :  { %13536 = vpow2.f32 %v6240_v39 }
0x1fbb   :  { %6414 = vrot.lane.b32.xlu1 %v15534_v34, %s14276_s12 }
0x1fbf   :  { %6585 = vrot.lane.b32.xlu1 %v15534_v34, %s14277_s3  ;;  %v15627_v2 = vpop.eup %13536 }
0x1fc0   :  { %v6242_v40 = vsel %vm642_vm6, %v15627_v2, 0.0 }
0x1fc4   :  { %6247 = vrot.lane.b32.xlu0 %v15534_v34, %s14275_s20 }
0x1fe3   :  { %6243 = vadd.xlane.f32.xlu1 %v6242_v40 }
0x1ff4   :  { %6929 = vrot.lane.b32.xlu1 %v15545_v17, %s14275_s20 }
0x2023   :  { %v6405_v54 = vpop.xlane.xlu0 %6404 }
0x2024   :  { %v6406_v5 = vsub.f32 %v6402_v56, %v6405_v54 }
0x2026   :  { %v6407_v41 = vmul.f32 1.442695, %v6406_v5 }
0x2027   :  { %v6576_v3 = vpop.xlane.xlu0 %6575 }
0x2028   :  { %13538 = vpow2.f32 %v6407_v41  ;;  %v6577_v42 = vsub.f32 %v6573_v60, %v6576_v3 }
0x202a   :  { %v6578_v44 = vmul.f32 1.442695, %v6577_v42 }
0x202b   :  { %v6747_v20 = vpop.xlane.xlu0 %6746 }
0x202c   :  { %13540 = vpow2.f32 %v6578_v44  ;;  %v6748_v60 = vsub.f32 %v15606_v7, %v6747_v20 }
0x202e   :  { %v6749_v62 = vmul.f32 1.442695, %v6748_v60 }
0x202f   :  { %v6920_v45 = vpop.xlane.xlu1 %6919 }
0x2030   :  { %v6921_v48 = vsub.f32 %v6917_v14, %v6920_v45 }
0x2032   :  { %v13539_v35 = vpop.eup %13538  ;;  %v6922_v49 = vmul.f32 1.442695, %v6921_v48 }
0x2033   :  { %v6409_v21 = vsel %vm642_vm6, %v13539_v35, 0.0  ;;  %v7087_v32 = vpop.xlane.xlu0 %7086 }
0x2034   :  { %13542 = vpow2.f32 %v6922_v49  ;;  %6410 = vadd.xlane.f32.xlu0 %v6409_v21  ;;  %v7088_v63 = vsub.f32 %v15613_v55, %v7087_v32 }
0x2036   :  { %v13541_v36 = vpop.eup %13540  ;;  %v7089_v0 = vmul.f32 1.442695, %v7088_v63 }
0x2037   :  { %v7258_v25 = vpop.xlane.xlu1 %7257  ;;  %v6580_v11 = vsel %vm642_vm6, %v13541_v36, 0.0 }
0x2038   :  { %v7259_v28 = vsub.f32 %v7255_v22, %v7258_v25  ;;  %6581 = vadd.xlane.f32.xlu1 %v6580_v11 }
0x203a   :  { %v7260_v10 = vmul.f32 1.442695, %v7259_v28  ;;  %v5964_v28 = vld [vmem:[#allocation21] sm:$0xff] }
0x203b   :  { %v7429_v24 = vpop.xlane.xlu0 %7428  ;;  %v6415_v9 = vpop.permute.xlu1 %6414 }
0x203c   :  { %13544 = vpow2.f32 %v7260_v10  ;;  %v7430_v51 = vsub.f32 %v7426_v29, %v7429_v24  ;;  %v5965_v10 = vld [vmem:[#allocation21 + $0x8] sm:$0xff] }
0x203d   :  { %v13176_v24 = vpack.c.bf16 %v5965_v10, %v5964_v28 }
0x203e   :  { %v15635_v52 = vpop.eup %13542  ;;  %v7431_v53 = vmul.f32 1.442695, %v7430_v51 }
0x203f   :  { %v6248_v6 = vpop.permute.xlu0 %6247  ;;  %v6924_v33 = vsel %vm642_vm6, %v15635_v52, 0.0  ;;  %v6586_v13 = vpop.permute.xlu1 %6585  ;;  %13177 = vmatprep.subr.bf16.mxu0 %v13176_v24 }
0x2040   :  { %13546 = vpow2.f32 %v7431_v53  ;;  %12693 = vmatpush3.msra.mxu1 %v6248_v6  ;;  %6925 = vadd.xlane.f32.xlu1 %v6924_v33  ;;  %v5967_v53 = vld [vmem:[#allocation21 + $0x18] sm:$0xff] }
0x2041   :  { %12702 = vmatprep.subr.mxu1 %v14273_v50  ;;  %13548 = vpow2.f32 %v6749_v62  ;;  %13179 = vmatpush3.bf16.msra.mxu0 %v13176_v24 }
0x2042   :  { %13550 = vpow2.f32 %v7089_v0 }
0x2046   :  { %v15640_v56 = vpop.eup %13544 }
0x2047   :  { %v7262_v57 = vsel %vm642_vm6, %v15640_v56, 0.0 }
0x2048   :  { %7263 = vadd.xlane.f32.xlu1 %v7262_v57 }
0x204a   :  { %v15644_v58 = vpop.eup %13546  ;;  %6756 = vrot.lane.b32.xlu0 %v15534_v34, %s14278_s27 }
0x204b   :  { %v7433_v59 = vsel %vm642_vm6, %v15644_v58, 0.0  ;;  %v13549_v1 = vpop.eup %13548 }
0x204c   :  { %7434 = vadd.xlane.f32.xlu1 %v7433_v59  ;;  %v6751_v61 = vsel %vm642_vm6, %v13549_v1, 0.0  ;;  %v13551_v34 = vpop.eup %13550 }
0x204d   :  { %v7091_v14 = vsel %vm642_vm6, %v13551_v34, 0.0 }
0x205d   :  { %7267 = vrot.lane.b32.xlu1 %v15545_v17, %s14277_s3 }
0x2069   :  { %6752 = vadd.xlane.f32.xlu0 %v6751_v61 }
0x206d   :  { %7092 = vadd.xlane.f32.xlu0 %v7091_v14 }
0x2070   :  { %v6244_v7 = vpop.xlane.xlu1 %6243 }
0x2071   :  { %13552 = vrcp.f32 %v6244_v7  ;;  %v11837_v7 = vld [vmem:[#allocation22] ss:$0 sm:$0xff] }
0x2074   :  { %v6930_v43 = vpop.permute.xlu1 %6929 }
0x207b   :  { %v13553_v15 = vpop.eup %13552 }
0x207c   :  { %v6246_v46 = vmul.f32 %v13553_v15, %v15627_v2 }
0x207e   :  { %12695 = vmatmul.mubr.msk.f32.vlgmr.msra.gmra.mrb[68].mxu1 %vm642_vm6, %v6246_v46 }
0x207f   :  { %12703 = vmatpush3.msra.mxu1 %v6415_v9  ;;  %12704 = vmatprep.mubr.msk.f32.mxu1 %vm14274_vm5, %v14273_v50 }
0x2080   :  { %12712 = vmatprep.subr.mxu1 %v14273_v50 }
0x2083   :  { %7096 = vrot.lane.b32.xlu0 %v15545_v17, %s14276_s12 }
0x2087   :  { %7438 = vrot.lane.b32.xlu0 %v15545_v17, %s14278_s27 }
0x20c1   :  { %v6411_v55 = vpop.xlane.xlu0 %6410 }
0x20c2   :  { %13554 = vrcp.f32 %v6411_v55 }
0x20c5   :  { %v6582_v16 = vpop.xlane.xlu1 %6581  ;;  %v6757_v26 = vpop.permute.xlu0 %6756 }
0x20c6   :  { %13556 = vrcp.f32 %v6582_v16 }
0x20cc   :  { %v13555_v18 = vpop.eup %13554 }
0x20cd   :  { %v6413_v19 = vmul.f32 %v13555_v18, %v13539_v35  ;;  %v6926_v17 = vpop.xlane.xlu1 %6925 }
0x20cf   :  { %12705 = vmatmul.mubr.msk.f32.vlgmr.msra.gmra.mrb[70].mxu1 %vm642_vm6, %v6413_v19 }
0x20d0   :  { %v13557_v22 = vpop.eup %13556  ;;  %12713 = vmatpush3.msra.mxu1 %v6586_v13  ;;  %12714 = vmatprep.mubr.msk.f32.mxu1 %vm14274_vm5, %v14273_v50 }
0x20d1   :  { %12722 = vmatprep.subr.mxu1 %v14273_v50  ;;  %v6584_v23 = vmul.f32 %v13557_v22, %v13541_v36 }
0x20d3   :  { %12715 = vmatmul.mubr.msk.f32.vlgmr.msra.gmra.mrb[72].mxu1 %vm642_vm6, %v6584_v23 }
0x20d4   :  { %12723 = vmatpush3.msra.mxu1 %v6757_v26  ;;  %12724 = vmatprep.mubr.msk.f32.mxu1 %vm14274_vm5, %v14273_v50 }
0x20d5   :  { %12732 = vmatprep.subr.mxu1 %v14273_v50  ;;  %v7264_v30 = vpop.xlane.xlu1 %7263 }
0x20d9   :  { %v7435_v37 = vpop.xlane.xlu1 %7434 }
0x20dd   :  { %v7268_v3 = vpop.permute.xlu1 %7267 }
0x20f6   :  { %v6753_v27 = vpop.xlane.xlu0 %6752 }
0x20f7   :  { %13558 = vrcp.f32 %v6753_v27 }
0x20f8   :  { %13560 = vrcp.f32 %v6926_v17 }
0x20fa   :  { %v7093_v29 = vpop.xlane.xlu0 %7092 }
0x20fb   :  { %13562 = vrcp.f32 %v7093_v29 }
0x20fc   :  { %13564 = vrcp.f32 %v7264_v30 }
0x20fd   :  { %13566 = vrcp.f32 %v7435_v37 }
0x20fe   :  { %v7097_v54 = vpop.permute.xlu0 %7096 }
0x2101   :  { %v13559_v31 = vpop.eup %13558 }
0x2102   :  { %v6755_v38 = vmul.f32 %v13559_v31, %v13549_v1  ;;  %v13561_v39 = vpop.eup %13560  ;;  %v7439_v45 = vpop.permute.xlu0 %7438 }
0x2103   :  { %v6928_v2 = vmul.f32 %v13561_v39, %v15635_v52  ;;  %v5966_v52 = vld [vmem:[#allocation21 + $0x10] sm:$0xff] }
0x2104   :  { %12725 = vmatmul.mubr.msk.f32.vlgmr.msra.gmra.mrb[74].mxu1 %vm642_vm6, %v6755_v38  ;;  %v13180_v33 = vpack.c.bf16 %v5967_v53, %v5966_v52  ;;  %v7668_v38 = vld [vmem:[%s16270_s4] sm:$0xff]  ;;  %v7669_v39 = vld [vmem:[%s16270_s4 + $0x8] sm:$0xff] }
0x2105   :  { %12733 = vmatpush3.msra.mxu1 %v6930_v43  ;;  %12734 = vmatprep.mubr.msk.f32.mxu1 %vm14274_vm5, %v14273_v50  ;;  %v13563_v40 = vpop.eup %13562 }
0x2106   :  { %12742 = vmatprep.subr.mxu1 %v14273_v50  ;;  %v7095_v5 = vmul.f32 %v13563_v40, %v13551_v34  ;;  %v13565_v41 = vpop.eup %13564  ;;  %13181 = vmatprep.subr.bf16.mxu0 %v13180_v33  ;;  %v13184_v40 = vpack.c.bf16 %v7669_v39, %v7668_v38 }
0x2107   :  { %v7266_v42 = vmul.f32 %v13565_v41, %v15640_v56  ;;  %v13567_v44 = vpop.eup %13566  ;;  %13183 = vmatpush3.bf16.msra.mxu0 %v13180_v33  ;;  %v7673_v41 = vld [vmem:[%s16271_s5] sm:$0xff] }
0x2108   :  { %12735 = vmatmul.mubr.msk.f32.vlgmr.msra.gmra.mrb[76].mxu1 %vm642_vm6, %v6928_v2  ;;  %v7437_v48 = vmul.f32 %v13567_v44, %v15644_v58  ;;  %v7670_v2 = vld [vmem:[%s16270_s4 + $0x10] sm:$0xff] }
0x2109   :  { %12743 = vmatpush3.msra.mxu1 %v7097_v54  ;;  %12744 = vmatprep.mubr.msk.f32.mxu1 %vm14274_vm5, %v14273_v50  ;;  %v7671_v54 = vld [vmem:[%s16270_s4 + $0x18] sm:$0xff] }
0x210a   :  { %12752 = vmatprep.subr.mxu1 %v14273_v50 }
0x210c   :  { %12745 = vmatmul.mubr.msk.f32.vlgmr.msra.gmra.mrb[78].mxu1 %vm642_vm6, %v7095_v5  ;;  %v13188_v5 = vpack.c.bf16 %v7671_v54, %v7670_v2 }
0x210d   :  { %12753 = vmatpush3.msra.mxu1 %v7268_v3  ;;  %12754 = vmatprep.mubr.msk.f32.mxu1 %vm14274_vm5, %v14273_v50  ;;  %v7674_v3 = vld [vmem:[%s16271_s5 + $0x8] sm:$0xff] }
0x210e   :  { %12762 = vmatprep.subr.mxu1 %v14273_v50  ;;  %v13192_v44 = vpack.c.bf16 %v7674_v3, %v7673_v41 }
0x2110   :  { %12755 = vmatmul.mubr.msk.f32.vlgmr.msra.gmra.mrb[80].mxu1 %vm642_vm6, %v7266_v42  ;;  %v7675_v42 = vld [vmem:[%s16271_s5 + $0x10] sm:$0xff]  ;;  %13193 = vmatprep.subr.bf16.mxu0 %v13192_v44 }
0x2111   :  { %12763 = vmatpush3.msra.mxu1 %v7439_v45  ;;  %12764 = vmatprep.mubr.msk.f32.mxu1 %vm14274_vm5, %v14273_v50  ;;  %v7676_v45 = vld [vmem:[%s16271_s5 + $0x18] sm:$0xff] }
0x2112   :  { %13185 = vmatprep.subr.bf16.mxu1 %v13184_v40 }
0x2114   :  { %12765 = vmatmul.mubr.msk.f32.vlgmr.msra.gmra.mrb[82].mxu1 %vm642_vm6, %v7437_v48  ;;  %v13196_v48 = vpack.c.bf16 %v7676_v45, %v7675_v42  ;;  %v11851_v45 = vld [vmem:[%s16263_s7 + $0x28] sm:$0xff] }
0x2115   :  { %13187 = vmatpush3.bf16.msra.mxu1 %v13184_v40 }
0x2116   :  { %13189 = vmatprep.subr.bf16.mxu1 %v13188_v5 }
0x2119   :  { %13191 = vmatpush3.bf16.msra.mxu1 %v13188_v5 }
0x2151   :  { %v6319_v35 = vpop.f32.mrb[68].mxu1 }
0x2152   :  { %6323 = vst.msk [vmem:[#allocation3] sm:$0xff] %vm642_vm6, %v6319_v35  ;;  %v12696_v49 = vpop.f32.mrb[69].mxu1  ;;  %v7677_v35 = vld [vmem:[%s16271_s5 + $0x20] sm:$0xff] }
0x2153   :  { %v7678_v49 = vld [vmem:[%s16271_s5 + $0x28] sm:$0xff] }
0x21a2   :  { %v6486_v20 = vpop.f32.mrb[70].mxu1 }
0x21a3   :  { %6491 = vrot.lane.b32.xlu1 %v6486_v20, %s14266_s30  ;;  %v12706_v21 = vpop.f32.mrb[71].mxu1  ;;  %v13200_v20 = vpack.c.bf16 %v7678_v49, %v7677_v35  ;;  %v11853_v49 = vld [vmem:[%s16263_s7 + $0x38] sm:$0xff] }
0x21a6   :  { %v6657_v36 = vpop.f32.mrb[72].mxu1 }
0x21a7   :  { %6662 = vrot.lane.b32.xlu0 %v6657_v36, %s14249_s2  ;;  %v12716_v32 = vpop.f32.mrb[73].mxu1 }
0x21d7   :  { %v6828_v25 = vpop.f32.mrb[74].mxu1 }
0x21d8   :  { %6833 = vrot.lane.b32.xlu0 %v6828_v25, %s14286_s17  ;;  %v12726_v11 = vpop.f32.mrb[75].mxu1 }
0x21db   :  { %v7001_v51 = vpop.f32.mrb[76].mxu1 }
0x21dc   :  { %7005 = vst.msk [vmem:[#allocation3 + $0x8] sm:$0xff] %vm642_vm6, %v7001_v51  ;;  %v12736_v6 = vpop.f32.mrb[77].mxu1 }
0x21df   :  { %v7168_v56 = vpop.f32.mrb[78].mxu1 }
0x21e0   :  { %7173 = vrot.lane.b32.xlu1 %v7168_v56, %s14266_s30  ;;  %v12746_v57 = vpop.f32.mrb[79].mxu1 }
0x21e3   :  { %v7339_v58 = vpop.f32.mrb[80].mxu1 }
0x21e4   :  { %7344 = vrot.lane.b32.xlu1 %v7339_v58, %s14249_s2  ;;  %v12756_v59 = vpop.f32.mrb[81].mxu1 }
0x21e5   :  { %v11840_v59 = vld [vmem:[#allocation33] ss:$0 sm:$0xff] }
0x21e7   :  { %v7510_v60 = vpop.f32.mrb[82].mxu1 }
0x21e8   :  { %7515 = vrot.lane.b32.xlu0 %v7510_v60, %s14286_s17  ;;  %v12766_v62 = vpop.f32.mrb[83].mxu1 }
0x2215   :  { %v6492_v63 = vpop.permute.xlu1 %6491 }
0x2216   :  { %6494 = vst.msk [vmem:[#allocation3] sm:$0xff] %vm978_vm9, %v6492_v63  ;;  %v11841_v63 = vld [vmem:[#allocation34] ss:$0 sm:$0xff] }
0x2219   :  { %v6663_v0 = vpop.permute.xlu0 %6662 }
0x221a   :  { %6665 = vst.msk [vmem:[#allocation3] sm:$0xff] %vm1150_vm10, %v6663_v0 }
0x224a   :  { %v6834_v1 = vpop.permute.xlu0 %6833 }
0x224b   :  { %6836 = vst.msk [vmem:[#allocation3] sm:$0xff] %vm1322_vm11, %v6834_v1 }
0x2252   :  { %v7174_v9 = vpop.permute.xlu1 %7173  ;;  %v7519_v61 = vld [vmem:[#allocation3] sm:$0xff] }
0x2253   :  { %7176 = vst.msk [vmem:[#allocation3 + $0x8] sm:$0xff] %vm978_vm9, %v7174_v9  ;;  %12775 = vmatprep.mubr.msk.f32.mxu0 %vm481_vm0, %v7519_v61 }
0x2256   :  { %v7345_v34 = vpop.permute.xlu1 %7344 }
0x2257   :  { %7347 = vst.msk [vmem:[#allocation3 + $0x8] sm:$0xff] %vm1150_vm10, %v7345_v34 }
0x225a   :  { %v7516_v13 = vpop.permute.xlu0 %7515 }
0x225b   :  { %7518 = vst.msk [vmem:[#allocation3 + $0x8] sm:$0xff] %vm1322_vm11, %v7516_v13 }
0x2262   :  { %v7520_v14 = vld [vmem:[#allocation3 + $0x8] sm:$0xff] }
0x2263   :  { %12776 = vmatmul.mubr.msk.f32.vlgmr.msra.gmra.mrb[68].mxu0 %vm481_vm0, %v7520_v14  ;;  %v7679_v14 = vld [vmem:[%s16271_s5 + $0x30] sm:$0xff] }
0x2264   :  { %13195 = vmatpush3.bf16.msra.mxu0 %v13192_v44  ;;  %v11850_v44 = vld [vmem:[%s16263_s7 + $0x20] sm:$0xff] }
0x2265   :  { %13197 = vmatprep.subr.bf16.mxu0 %v13196_v48  ;;  %v13208_v35 = vpack.c.bf16 %v11851_v45, %v11850_v44 }
0x2267   :  { %13209 = vmatprep.subr.bf16.mxu1 %v13208_v35 }
0x2268   :  { %13199 = vmatpush3.bf16.msra.mxu0 %v13196_v48  ;;  %v11852_v48 = vld [vmem:[%s16263_s7 + $0x30] sm:$0xff] }
0x2269   :  { %13201 = vmatprep.subr.bf16.mxu0 %v13200_v20 }
0x226c   :  { %13203 = vmatpush3.bf16.msra.mxu0 %v13200_v20  ;;  %v13212_v20 = vpack.c.bf16 %v11853_v49, %v11852_v48 }
0x2336   :  { %v12777_v15 = vpop.f32.mrb[68].mxu0 }
0x2337   :  { %v7605_v46 = vadd.f32 %v12777_v15, %v11837_v7  ;;  %v7599_v43 = vpop.f32.mrb[69].mxu0 }
0x2338   :  { %v7600_v55 = vadd.f32 %v11837_v7, %v7599_v43  ;;  %v7680_v7 = vld [vmem:[%s16271_s5 + $0x38] sm:$0xff] }
0x2339   :  { %v15709_v16 = vadd.f32 %v7605_v46, %v15485_v8  ;;  %v13204_v15 = vpack.c.bf16 %v7680_v7, %v7679_v14  ;;  %v11842_v46 = vld [vmem:[#allocation24] ss:$0 sm:$0xff]  ;;  %v11858_v14 = vld [vmem:[#allocation16 + $0x1] ss:$0 sm:$0xff] }
0x233a   :  { %v15712_v18 = vadd.f32 %v7600_v55, %v15482_v4 }
0x233b   :  { %v7615_v19 = vsel %vm481_vm0, %v15709_v16, 0.0  ;;  %13205 = vmatprep.subr.bf16.mxu0 %v13204_v15 }
0x233c   :  { %7616 = vadd.xlane.f32.xlu0 %v7615_v19  ;;  %v7612_v22 = vsel %vm481_vm0, %v15712_v18, 0.0  ;;  %13207 = vmatpush3.bf16.msra.mxu0 %v13204_v15 }
0x233d   :  { %7613 = vadd.xlane.f32.xlu1 %v7612_v22  ;;  %12829 = vmatprep.subr.mxu0 %v14273_v50 }
0x23c9   :  { %v7617_v23 = vpop.xlane.xlu0 %7616 }
0x23ca   :  { %v7619_v26 = vmul.f32 0.03125, %v7617_v23  ;;  %v7614_v17 = vpop.xlane.xlu1 %7613 }
0x23cb   :  { %v7618_v8 = vmul.f32 0.03125, %v7614_v17  ;;  %v11845_v17 = vld [vmem:[#allocation25] ss:$0 sm:$0xff] }
0x23cc   :  { %v7621_v27 = vsub.f32 %v15709_v16, %v7619_v26 }
0x23cd   :  { %v7620_v4 = vsub.f32 %v15712_v18, %v7618_v8 }
0x23ce   :  { %v7623_v31 = vmul.f32 %v7621_v27, %v7621_v27  ;;  %v7639_v1 = vmul.f32 %v11840_v59, %v7621_v27 }
0x23cf   :  { %v7622_v29 = vmul.f32 %v7620_v4, %v7620_v4  ;;  %v7638_v60 = vmul.f32 %v11840_v59, %v7620_v4  ;;  %v11848_v59 = vld [vmem:[#allocation27 + $0x1] ss:$0 sm:$0xff] }
0x23d0   :  { %v7627_v37 = vsel %vm481_vm0, %v7623_v31, 0.0 }
0x23d1   :  { %v7624_v30 = vsel %vm481_vm0, %v7622_v29, 0.0 }
0x23d2   :  { %7625 = vadd.xlane.f32.xlu0 %v7624_v30 }
0x23d6   :  { %7628 = vadd.xlane.f32.xlu0 %v7627_v37 }
0x245f   :  { %v7626_v21 = vpop.xlane.xlu0 %7625 }
0x2460   :  { %v7630_v36 = vmul.f32 0.032258064, %v7626_v21 }
0x2462   :  { %13568 = vrsqrt.f32 %v7630_v36  ;;  %vm7642_vm13 = vcmp.eq.f32.partialorder %v7630_v36, inf  ;;  %v7645_v10 = vand.u32 2147483648, %v7630_v36  ;;  %vm7644_vm14 = vcmp.eq.f32.partialorder %v7630_v36, 0.0 }
0x2463   :  { %v7629_v32 = vpop.xlane.xlu0 %7628 }
0x2464   :  { %v7631_v25 = vmul.f32 0.032258064, %v7629_v32 }
0x2466   :  { %13570 = vrsqrt.f32 %v7631_v25  ;;  %vm7649_vm15 = vcmp.eq.f32.partialorder %v7631_v25, inf  ;;  %v7652_v33 = vand.u32 2147483648, %v7631_v25  ;;  %vm7651_vm2 = vcmp.eq.f32.partialorder %v7631_v25, 0.0 }
0x246c   :  { %v13569_v11 = vpop.eup %13568 }
0x246d   :  { %v7641_v28 = vmul.f32 %v13569_v11, %v7630_v36 }
0x246f   :  { %v7643_v24 = vsel %vm7642_vm13, %v7630_v36, %v7641_v28 }
0x2470   :  { %v13571_v51 = vpop.eup %13570  ;;  %v7646_v52 = vsel %vm7644_vm14, %v7645_v10, %v7643_v24 }
0x2471   :  { %v7648_v53 = vmul.f32 %v13571_v51, %v7631_v25  ;;  %v7654_v6 = vadd.f32 1e-06, %v7646_v52 }
0x2473   :  { %v7650_v56 = vsel %vm7649_vm15, %v7631_v25, %v7648_v53  ;;  %13572 = vrcp.f32 %v7654_v6 }
0x2474   :  { %v7653_v57 = vsel %vm7651_vm2, %v7652_v33, %v7650_v56 }
0x2475   :  { %v7655_v58 = vadd.f32 1e-06, %v7653_v57 }
0x2477   :  { %13574 = vrcp.f32 %v7655_v58 }
0x247d   :  { %v13573_v62 = vpop.eup %13572 }
0x247e   :  { %v7657_v0 = vmul.f32 %v13573_v62, %v7638_v60 }
0x2480   :  { %v7666_v9 = vadd.f32 %v11841_v63, %v7657_v0 }
0x2481   :  { %v13575_v61 = vpop.eup %13574 }
0x2482   :  { %v7659_v34 = vmul.f32 %v13575_v61, %v7639_v1  ;;  %12786 = vmatprep.mubr.msk.f32.mxu1 %vm481_vm0, %v7666_v9  ;;  %v11849_v1 = vld [vmem:[#allocation28 + $0x1] ss:$0 sm:$0xff] }
0x2484   :  { %v7667_v13 = vadd.f32 %v11841_v63, %v7659_v34 }
0x2486   :  { %12787 = vmatmul.mubr.msk.f32.vlgmr.msra.gmra.mrb[84].mxu1 %vm481_vm0, %v7667_v13 }
0x2487   :  { %13211 = vmatpush3.bf16.msra.mxu1 %v13208_v35 }
0x2488   :  { %13213 = vmatprep.subr.bf16.mxu1 %v13212_v20 }
0x248b   :  { %13215 = vmatpush3.bf16.msra.mxu1 %v13212_v20 }
0x248c   :  { %12819 = vmatprep.subr.mxu1 %v14273_v50 }
0x2559   :  { %v12788_v43 = vpop.f32.mrb[84].mxu1 }
0x255a   :  { %v7766_v55 = vadd.f32 %v12788_v43, %v11842_v46  ;;  %v7760_v19 = vpop.f32.mrb[85].mxu1 }
0x255b   :  { %v7761_v22 = vadd.f32 %v11842_v46, %v7760_v19 }
0x255c   :  { %v7770_v26 = vmax.f32 %v7766_v55, 0.0 }
0x255d   :  { %v7769_v23 = vmax.f32 %v7761_v22, 0.0 }
0x255f   :  { %12805 = vmatprep.mubr.msk.f32.mxu0 %vm2266_vm1, %v7769_v23 }
0x2560   :  { %12806 = vmatmul.mubr.msk.f32.vlgmr.msra.gmra.mrb[70].mxu0 %vm2266_vm1, %v7770_v26 }
0x2561   :  { %12831 = vmatprep.mubr.msk.f32.mxu0 %vm14274_vm5, %v14273_v50 }
0x2633   :  { %v12807_v8 = vpop.f32.mrb[70].mxu0 }
0x2634   :  { %v7855_v27 = vadd.f32 %v12807_v8, %v11845_v17  ;;  %v7849_v4 = vpop.f32.mrb[71].mxu0 }
0x2635   :  { %v7850_v29 = vadd.f32 %v11845_v17, %v7849_v4 }
0x2636   :  { %v15742_v30 = vadd.f32 %v7855_v27, %v15709_v16 }
0x2637   :  { %v15745_v31 = vadd.f32 %v7850_v29, %v15712_v18 }
0x2638   :  { %v7867_v37 = vsel %vm481_vm0, %v15742_v30, 0.0 }
0x2639   :  { %7868 = vadd.xlane.f32.xlu0 %v7867_v37  ;;  %v7864_v38 = vsel %vm481_vm0, %v15745_v31, 0.0 }
0x263a   :  { %7865 = vadd.xlane.f32.xlu1 %v7864_v38 }
0x26c6   :  { %v7869_v39 = vpop.xlane.xlu0 %7868 }
0x26c7   :  { %v7871_v2 = vmul.f32 0.03125, %v7869_v39  ;;  %v7866_v40 = vpop.xlane.xlu1 %7865 }
0x26c8   :  { %v7870_v16 = vmul.f32 0.03125, %v7866_v40 }
0x26c9   :  { %v7873_v54 = vsub.f32 %v15742_v30, %v7871_v2 }
0x26ca   :  { %v7872_v18 = vsub.f32 %v15745_v31, %v7870_v16 }
0x26cb   :  { %v7875_v5 = vmul.f32 %v7873_v54, %v7873_v54  ;;  %v7891_v60 = vmul.f32 %v11848_v59, %v7873_v54  ;;  %v8021_v54 = vld [vmem:[%s16264_s19] sm:$0xff] }
0x26cc   :  { %v7874_v41 = vmul.f32 %v7872_v18, %v7872_v18  ;;  %v7890_v63 = vmul.f32 %v11848_v59, %v7872_v18  ;;  %vm8101_vm8 = vcmp.eq.f32.partialorder %v8021_v54, 0.0 }
0x26cd   :  { %v7879_v3 = vsel %vm481_vm0, %v7875_v5, 0.0 }
0x26ce   :  { %7880 = vadd.xlane.f32.xlu0 %v7879_v3  ;;  %v7876_v42 = vsel %vm481_vm0, %v7874_v41, 0.0 }
0x26cf   :  { %7877 = vadd.xlane.f32.xlu1 %v7876_v42 }
0x275b   :  { %v7881_v21 = vpop.xlane.xlu0 %7880 }
0x275c   :  { %v7883_v36 = vmul.f32 0.032258064, %v7881_v21  ;;  %v7878_v32 = vpop.xlane.xlu1 %7877 }
0x275d   :  { %v7882_v25 = vmul.f32 0.032258064, %v7878_v32 }
0x275e   :  { %13576 = vrsqrt.f32 %v7883_v36  ;;  %vm7901_vm3 = vcmp.eq.f32.partialorder %v7883_v36, inf  ;;  %v7904_v24 = vand.u32 2147483648, %v7883_v36  ;;  %vm7903_vm4 = vcmp.eq.f32.partialorder %v7883_v36, 0.0 }
0x275f   :  { %13578 = vrsqrt.f32 %v7882_v25  ;;  %vm7894_vm12 = vcmp.eq.f32.partialorder %v7882_v25, inf  ;;  %v7897_v53 = vand.u32 2147483648, %v7882_v25  ;;  %vm7896_vm7 = vcmp.eq.f32.partialorder %v7882_v25, 0.0 }
0x2768   :  { %v13577_v11 = vpop.eup %13576 }
0x2769   :  { %v13579_v28 = vpop.eup %13578  ;;  %v7900_v10 = vmul.f32 %v13577_v11, %v7883_v36 }
0x276a   :  { %v7893_v51 = vmul.f32 %v13579_v28, %v7882_v25 }
0x276b   :  { %v7902_v52 = vsel %vm7901_vm3, %v7883_v36, %v7900_v10  ;;  %v11873_v36 = vld [vmem:[%s16264_s19 + $0x8] sm:$0xff] }
0x276c   :  { %v7905_v6 = vsel %vm7903_vm4, %v7904_v24, %v7902_v52  ;;  %v7895_v33 = vsel %vm7894_vm12, %v7882_v25, %v7893_v51  ;;  %vm8784_vm13 = vcmp.eq.f32.partialorder %v11873_v36, 0.0 }
0x276d   :  { %v7907_v56 = vadd.f32 1e-06, %v7905_v6  ;;  %v7898_v57 = vsel %vm7896_vm7, %v7897_v53, %v7895_v33 }
0x276e   :  { %v7906_v58 = vadd.f32 1e-06, %v7898_v57 }
0x276f   :  { %13580 = vrcp.f32 %v7907_v56 }
0x2770   :  { %13582 = vrcp.f32 %v7906_v58 }
0x2779   :  { %v13581_v62 = vpop.eup %13580 }
0x277a   :  { %v13583_v0 = vpop.eup %13582  ;;  %v7911_v9 = vmul.f32 %v13581_v62, %v7891_v60 }
0x277b   :  { %v7909_v61 = vmul.f32 %v13583_v0, %v7890_v63 }
0x277c   :  { %v7919_v13 = vadd.f32 %v11849_v1, %v7911_v9 }
0x277d   :  { %v7918_v34 = vadd.f32 %v11849_v1, %v7909_v61 }
0x277f   :  { %12816 = vmatprep.mubr.msk.f32.mxu1 %vm481_vm0, %v7918_v34 }
0x2780   :  { %12817 = vmatmul.mubr.msk.f32.vlgmr.msra.gmra.mrb[86].mxu1 %vm481_vm0, %v7919_v13 }
0x2781   :  { %12821 = vmatprep.mubr.msk.f32.mxu1 %vm14274_vm5, %v14273_v50 }
0x2853   :  { %v12818_v7 = vpop.f32.mrb[86].mxu1 }
0x2854   :  { %v8012_v15 = vpop.f32.mrb[87].mxu1  ;;  %v15774_v43 = vadd.f32 %v12818_v7, %v11858_v14 }
0x2855   :  { %v15764_v46 = vadd.f32 %v11858_v14, %v8012_v15 }
0x2856   :  { %v8705_v19 = vmul.f32 0.35355338, %v15774_v43 }
0x2857   :  { %8193 = vrot.lane.b32.xlu0 %v15764_v46, %s14276_s12  ;;  %8024 = vrot.lane.b32.xlu1 %v15764_v46, %s14275_s20  ;;  %v8022_v55 = vmul.f32 0.35355338, %v15764_v46 }
0x285b   :  { %8535 = vrot.lane.b32.xlu0 %v15764_v46, %s14278_s27  ;;  %8364 = vrot.lane.b32.xlu1 %v15764_v46, %s14277_s3 }
0x285f   :  { %8707 = vrot.lane.b32.xlu0 %v15774_v43, %s14275_s20  ;;  %8191 = vrot.lane.b32.xlu1 %v8022_v55, %s14279_s0 }
0x2863   :  { %8874 = vrot.lane.b32.xlu0 %v8705_v19, %s14279_s0  ;;  %8362 = vrot.lane.b32.xlu1 %v8022_v55, %s14280_s26 }
0x2867   :  { %9045 = vrot.lane.b32.xlu0 %v8705_v19, %s14280_s26  ;;  %8533 = vrot.lane.b32.xlu1 %v8022_v55, %s14281_s28 }
0x286b   :  { %9216 = vrot.lane.b32.xlu0 %v8705_v19, %s14281_s28  ;;  %8876 = vrot.lane.b32.xlu1 %v15774_v43, %s14276_s12 }
0x286f   :  { %9047 = vrot.lane.b32.xlu1 %v15774_v43, %s14277_s3 }
0x2873   :  { %9218 = vrot.lane.b32.xlu1 %v15774_v43, %s14278_s27 }
0x28c9   :  { %v8194_v22 = vpop.permute.xlu0 %8193  ;;  %v8025_v23 = vpop.permute.xlu1 %8024 }
0x28ca   :  { %12820 = vmatpush3.xpose.msk.msra.mxu1 %vm642_vm6, %v8025_v23  ;;  %12830 = vmatpush3.xpose.msk.msra.mxu0 %vm642_vm6, %v8194_v22 }
0x28cb   :  { %12839 = vmatprep.subr.mxu0 %v14273_v50  ;;  %12824 = vmatprep.subr.mxu1 %v14273_v50 }
0x28cd   :  { %v8365_v26 = vpop.permute.xlu1 %8364  ;;  %12822 = vmatmul.mubr.msk.f32.vlgmr.msra.gmra.mrb[88].mxu1 %vm642_vm6, %v8022_v55  ;;  %v8536_v17 = vpop.permute.xlu0 %8535 }
0x28ce   :  { %12826 = vmatprep.mubr.msk.f32.mxu1 %vm14274_vm5, %v14273_v50 }
0x28d1   :  { %v8192_v8 = vpop.permute.xlu1 %8191  ;;  %v8708_v4 = vpop.permute.xlu0 %8707 }
0x28d2   :  { %12832 = vmatmul.mubr.msk.f32.vlgmr.msra.gmra.mrb[72].mxu0 %vm642_vm6, %v8192_v8 }
0x28d3   :  { %12840 = vmatpush3.xpose.msk.msra.mxu0 %vm642_vm6, %v8365_v26  ;;  %12841 = vmatprep.mubr.msk.f32.mxu0 %vm14274_vm5, %v14273_v50 }
0x28d4   :  { %12849 = vmatprep.subr.mxu0 %v14273_v50 }
0x28d5   :  { %v8363_v27 = vpop.permute.xlu1 %8362  ;;  %v8875_v37 = vpop.permute.xlu0 %8874 }
0x28d6   :  { %12842 = vmatmul.mubr.msk.f32.vlgmr.msra.gmra.mrb[74].mxu0 %vm642_vm6, %v8363_v27 }
0x28d7   :  { %12850 = vmatpush3.xpose.msk.msra.mxu0 %vm642_vm6, %v8536_v17  ;;  %12851 = vmatprep.mubr.msk.f32.mxu0 %vm14274_vm5, %v14273_v50 }
0x28d8   :  { %12859 = vmatprep.subr.mxu0 %v14273_v50 }
0x28d9   :  { %v8534_v29 = vpop.permute.xlu1 %8533  ;;  %v9046_v2 = vpop.permute.xlu0 %9045 }
0x28da   :  { %12852 = vmatmul.mubr.msk.f32.vlgmr.msra.gmra.mrb[76].mxu0 %vm642_vm6, %v8534_v29 }
0x28db   :  { %12860 = vmatpush3.xpose.msk.msra.mxu0 %vm642_vm6, %v8708_v4  ;;  %12861 = vmatprep.mubr.msk.f32.mxu0 %vm14274_vm5, %v14273_v50 }
0x28dc   :  { %12869 = vmatprep.subr.mxu0 %v14273_v50 }
0x28dd   :  { %v8877_v38 = vpop.permute.xlu1 %8876  ;;  %v9217_v16 = vpop.permute.xlu0 %9216 }
0x28de   :  { %12862 = vmatmul.mubr.msk.f32.vlgmr.msra.gmra.mrb[78].mxu0 %vm642_vm6, %v8705_v19 }
0x28df   :  { %12870 = vmatpush3.xpose.msk.msra.mxu0 %vm642_vm6, %v8877_v38  ;;  %12871 = vmatprep.mubr.msk.f32.mxu0 %vm14274_vm5, %v14273_v50 }
0x28e0   :  { %12879 = vmatprep.subr.mxu0 %v14273_v50 }
0x28e1   :  { %v9048_v39 = vpop.permute.xlu1 %9047 }
0x28e2   :  { %12872 = vmatmul.mubr.msk.f32.vlgmr.msra.gmra.mrb[80].mxu0 %vm642_vm6, %v8875_v37 }
0x28e3   :  { %12880 = vmatpush3.xpose.msk.msra.mxu0 %vm642_vm6, %v9048_v39  ;;  %12881 = vmatprep.mubr.msk.f32.mxu0 %vm14274_vm5, %v14273_v50 }
0x28e4   :  { %12889 = vmatprep.subr.mxu0 %v14273_v50 }
0x28e5   :  { %v9219_v40 = vpop.permute.xlu1 %9218 }
0x28e6   :  { %12882 = vmatmul.mubr.msk.f32.vlgmr.msra.gmra.mrb[82].mxu0 %vm642_vm6, %v9046_v2 }
0x28e7   :  { %12890 = vmatpush3.xpose.msk.msra.mxu0 %vm642_vm6, %v9219_v40  ;;  %12891 = vmatprep.mubr.msk.f32.mxu0 %vm14274_vm5, %v14273_v50 }
0x28ea   :  { %12892 = vmatmul.mubr.msk.f32.vlgmr.msra.gmra.mrb[84].mxu0 %vm642_vm6, %v9217_v16 }
0x29a0   :  { %v8097_v18 = vpop.f32.mrb[88].mxu1 }
0x29a1   :  { %v8102_v5 = vsel %vm8101_vm8, -1e+09, %v8097_v18  ;;  %v12823_v41 = vpop.f32.mrb[89].mxu1 }
0x29a2   :  { %v8103_v3 = vsel %vm642_vm6, %v8102_v5, -inf }
0x29a3   :  { %8104 = vmax.xlane.f32.xlu1 %v8103_v3 }
0x29a5   :  { %v8265_v42 = vpop.f32.mrb[72].mxu0 }
0x29a6   :  { %v8269_v44 = vsel %vm8101_vm8, -1e+09, %v8265_v42  ;;  %v12833_v45 = vpop.f32.mrb[73].mxu0 }
0x29a7   :  { %v8270_v48 = vsel %vm642_vm6, %v8269_v44, -inf }
0x29a8   :  { %8271 = vmax.xlane.f32.xlu0 %v8270_v48 }
0x29a9   :  { %v8436_v35 = vpop.f32.mrb[74].mxu0 }
0x29aa   :  { %v8440_v49 = vsel %vm8101_vm8, -1e+09, %v8436_v35  ;;  %v12843_v20 = vpop.f32.mrb[75].mxu0 }
0x29ab   :  { %v8441_v21 = vsel %vm642_vm6, %v8440_v49, -inf }
0x29ac   :  { %8442 = vmax.xlane.f32.xlu0 %v8441_v21 }
0x29ad   :  { %v8607_v32 = vpop.f32.mrb[76].mxu0 }
0x29ae   :  { %v8611_v25 = vsel %vm8101_vm8, -1e+09, %v8607_v32  ;;  %v12853_v11 = vpop.f32.mrb[77].mxu0 }
0x29af   :  { %v8612_v28 = vsel %vm642_vm6, %v8611_v25, -inf }
0x29b0   :  { %8613 = vmax.xlane.f32.xlu0 %v8612_v28 }
0x29b1   :  { %v8780_v10 = vpop.f32.mrb[78].mxu0 }
0x29b2   :  { %v8785_v24 = vsel %vm8784_vm13, -1e+09, %v8780_v10  ;;  %v12863_v51 = vpop.f32.mrb[79].mxu0 }
0x29b3   :  { %v8786_v52 = vsel %vm642_vm6, %v8785_v24, -inf }
0x29b4   :  { %8787 = vmax.xlane.f32.xlu1 %v8786_v52 }
0x29b5   :  { %v8948_v53 = vpop.f32.mrb[80].mxu0 }
0x29b6   :  { %v8952_v6 = vsel %vm8784_vm13, -1e+09, %v8948_v53  ;;  %v12873_v33 = vpop.f32.mrb[81].mxu0 }
0x29b7   :  { %v8953_v56 = vsel %vm642_vm6, %v8952_v6, -inf }
0x29b8   :  { %8954 = vmax.xlane.f32.xlu0 %v8953_v56 }
0x29b9   :  { %v9119_v57 = vpop.f32.mrb[82].mxu0 }
0x29ba   :  { %v9123_v58 = vsel %vm8784_vm13, -1e+09, %v9119_v57  ;;  %v12883_v59 = vpop.f32.mrb[83].mxu0 }
0x29bb   :  { %v9124_v60 = vsel %vm642_vm6, %v9123_v58, -inf }
0x29bc   :  { %9125 = vmax.xlane.f32.xlu1 %v9124_v60 }
0x29bd   :  { %v9290_v62 = vpop.f32.mrb[84].mxu0 }
0x29be   :  { %v9294_v63 = vsel %vm8784_vm13, -1e+09, %v9290_v62  ;;  %v12893_v0 = vpop.f32.mrb[85].mxu0 }
0x29bf   :  { %v9295_v1 = vsel %vm642_vm6, %v9294_v63, -inf }
0x29c0   :  { %9296 = vmax.xlane.f32.xlu0 %v9295_v1 }
0x29cd   :  { %8281 = vrot.lane.b32.xlu1 %v15764_v46, %s14283_s13 }
0x29d1   :  { %8452 = vrot.lane.b32.xlu1 %v15764_v46, %s14285_s10 }
0x29d6   :  { %8114 = vrot.lane.b32.xlu0 %v15764_v46, %s14282_s1 }
0x2a30   :  { %v8105_v9 = vpop.xlane.xlu1 %8104 }
0x2a31   :  { %v8106_v61 = vsub.f32 %v8102_v5, %v8105_v9 }
0x2a33   :  { %v8107_v34 = vmul.f32 1.442695, %v8106_v61 }
0x2a35   :  { %13584 = vpow2.f32 %v8107_v34  ;;  %v8272_v13 = vpop.xlane.xlu0 %8271 }
0x2a36   :  { %v8273_v14 = vsub.f32 %v8269_v44, %v8272_v13 }
0x2a38   :  { %v8274_v7 = vmul.f32 1.442695, %v8273_v14 }
0x2a39   :  { %v8443_v55 = vpop.xlane.xlu0 %8442 }
0x2a3a   :  { %13586 = vpow2.f32 %v8274_v7  ;;  %v8444_v4 = vsub.f32 %v8440_v49, %v8443_v55 }
0x2a3c   :  { %v8445_v37 = vmul.f32 1.442695, %v8444_v4 }
0x2a3d   :  { %v8614_v23 = vpop.xlane.xlu0 %8613 }
0x2a3e   :  { %v8615_v39 = vsub.f32 %v8611_v25, %v8614_v23  ;;  %13588 = vpow2.f32 %v8445_v37 }
0x2a3f   :  { %v15853_v15 = vpop.eup %13584 }
0x2a40   :  { %v8109_v19 = vsel %vm642_vm6, %v15853_v15, 0.0  ;;  %v8616_v54 = vmul.f32 1.442695, %v8615_v39 }
0x2a41   :  { %8110 = vadd.xlane.f32.xlu1 %v8109_v19  ;;  %v8788_v29 = vpop.xlane.xlu1 %8787 }
0x2a42   :  { %v8789_v38 = vsub.f32 %v8785_v24, %v8788_v29 }
0x2a44   :  { %v15857_v22 = vpop.eup %13586  ;;  %v8790_v40 = vmul.f32 1.442695, %v8789_v38 }
0x2a45   :  { %v8276_v26 = vsel %vm642_vm6, %v15857_v22, 0.0  ;;  %v8955_v17 = vpop.xlane.xlu0 %8954 }
0x2a46   :  { %8277 = vadd.xlane.f32.xlu0 %v8276_v26  ;;  %v8956_v18 = vsub.f32 %v8952_v6, %v8955_v17  ;;  %13590 = vpow2.f32 %v8790_v40  ;;  %v11854_v40 = vld [vmem:[%s16265_s18 + $0x20] sm:$0xff] }
0x2a47   :  { %13592 = vpow2.f32 %v8616_v54 }
0x2a48   :  { %v8957_v3 = vmul.f32 1.442695, %v8956_v18 }
0x2a49   :  { %v9126_v2 = vpop.xlane.xlu1 %9125 }
0x2a4a   :  { %v9127_v16 = vsub.f32 %v9123_v58, %v9126_v2 }
0x2a4c   :  { %v9128_v5 = vmul.f32 1.442695, %v9127_v16  ;;  %v11855_v16 = vld [vmem:[%s16265_s18 + $0x28] sm:$0xff] }
0x2a4d   :  { %v9297_v8 = vpop.xlane.xlu0 %9296  ;;  %v8282_v28 = vpop.permute.xlu1 %8281  ;;  %v13216_v54 = vpack.c.bf16 %v11855_v16, %v11854_v40 }
0x2a4e   :  { %v9298_v41 = vsub.f32 %v9294_v63, %v9297_v8  ;;  %13594 = vpow2.f32 %v9128_v5  ;;  %v11856_v5 = vld [vmem:[%s16265_s18 + $0x30] sm:$0xff] }
0x2a4f   :  { %13596 = vpow2.f32 %v8957_v3  ;;  %13217 = vmatprep.subr.bf16.mxu0 %v13216_v54 }
0x2a50   :  { %v9299_v42 = vmul.f32 1.442695, %v9298_v41  ;;  %v11857_v41 = vld [vmem:[%s16265_s18 + $0x38] sm:$0xff]  ;;  %13219 = vmatpush3.bf16.msra.mxu0 %v13216_v54 }
0x2a51   :  { %v8115_v27 = vpop.permute.xlu0 %8114  ;;  %v8453_v10 = vpop.permute.xlu1 %8452 }
0x2a52   :  { %12825 = vmatpush3.msra.mxu1 %v8115_v27  ;;  %8797 = vrot.lane.b32.xlu1 %v15774_v43, %s14282_s1  ;;  %13598 = vpow2.f32 %v9299_v42  ;;  %v13220_v42 = vpack.c.bf16 %v11857_v41, %v11856_v5 }
0x2a53   :  { %12834 = vmatprep.subr.mxu1 %v14273_v50 }
0x2a54   :  { %13221 = vmatprep.subr.bf16.mxu0 %v13220_v42 }
0x2a55   :  { %13223 = vmatpush3.bf16.msra.mxu0 %v13220_v42 }
0x2a5c   :  { %8623 = vrot.lane.b32.xlu0 %v15764_v46, %s14284_s29  ;;  %v13589_v46 = vpop.eup %13588 }
0x2a5d   :  { %v8447_v44 = vsel %vm642_vm6, %v13589_v46, 0.0  ;;  %v15867_v45 = vpop.eup %13590 }
0x2a5e   :  { %v13593_v48 = vpop.eup %13592  ;;  %v8792_v35 = vsel %vm642_vm6, %v15867_v45, 0.0 }
0x2a5f   :  { %v15871_v49 = vpop.eup %13594  ;;  %v8618_v20 = vsel %vm642_vm6, %v13593_v48, 0.0 }
0x2a60   :  { %v15874_v21 = vpop.eup %13596  ;;  %v9130_v36 = vsel %vm642_vm6, %v15871_v49, 0.0 }
0x2a61   :  { %v15878_v32 = vpop.eup %13598  ;;  %v8959_v25 = vsel %vm642_vm6, %v15874_v21, 0.0 }
0x2a62   :  { %v9301_v11 = vsel %vm642_vm6, %v15878_v32, 0.0 }
0x2a76   :  { %8448 = vadd.xlane.f32.xlu1 %v8447_v44 }
0x2a7a   :  { %8793 = vadd.xlane.f32.xlu1 %v8792_v35 }
0x2a7b   :  { %8619 = vadd.xlane.f32.xlu0 %v8618_v20 }
0x2a7e   :  { %9131 = vadd.xlane.f32.xlu1 %v9130_v36 }
0x2a7f   :  { %8960 = vadd.xlane.f32.xlu0 %v8959_v25 }
0x2a82   :  { %9302 = vadd.xlane.f32.xlu1 %v9301_v11 }
0x2a93   :  { %9135 = vrot.lane.b32.xlu1 %v15774_v43, %s14285_s10 }
0x2a95   :  { %8964 = vrot.lane.b32.xlu0 %v15774_v43, %s14283_s13 }
0x2a99   :  { %9306 = vrot.lane.b32.xlu0 %v15774_v43, %s14284_s29 }
0x2ace   :  { %v8111_v24 = vpop.xlane.xlu1 %8110 }
0x2acf   :  { %13600 = vrcp.f32 %v8111_v24  ;;  %v11886_v24 = vld [vmem:[#allocation18 + $0x1] ss:$0 sm:$0xff] }
0x2ad2   :  { %v8798_v33 = vpop.permute.xlu1 %8797 }
0x2ad3   :  { %v8278_v51 = vpop.xlane.xlu0 %8277 }
0x2ad4   :  { %13602 = vrcp.f32 %v8278_v51 }
0x2ad7   :  { %v8624_v57 = vpop.permute.xlu0 %8623 }
0x2ad9   :  { %v13601_v52 = vpop.eup %13600 }
0x2ada   :  { %v8113_v53 = vmul.f32 %v13601_v52, %v15853_v15 }
0x2adc   :  { %12827 = vmatmul.mubr.msk.f32.vlgmr.msra.gmra.mrb[90].mxu1 %vm642_vm6, %v8113_v53 }
0x2add   :  { %12835 = vmatpush3.msra.mxu1 %v8282_v28  ;;  %12836 = vmatprep.mubr.msk.f32.mxu1 %vm14274_vm5, %v14273_v50 }
0x2ade   :  { %v13603_v6 = vpop.eup %13602  ;;  %12844 = vmatprep.subr.mxu1 %v14273_v50 }
0x2adf   :  { %v8280_v43 = vmul.f32 %v13603_v6, %v15857_v22 }
0x2ae1   :  { %12837 = vmatmul.mubr.msk.f32.vlgmr.msra.gmra.mrb[92].mxu1 %vm642_vm6, %v8280_v43 }
0x2ae2   :  { %12845 = vmatpush3.msra.mxu1 %v8453_v10  ;;  %12846 = vmatprep.mubr.msk.f32.mxu1 %vm14274_vm5, %v14273_v50 }
0x2ae3   :  { %12854 = vmatprep.subr.mxu1 %v14273_v50 }
0x2b03   :  { %v8449_v56 = vpop.xlane.xlu1 %8448 }
0x2b04   :  { %13604 = vrcp.f32 %v8449_v56 }
0x2b07   :  { %v8794_v58 = vpop.xlane.xlu1 %8793 }
0x2b08   :  { %v8620_v59 = vpop.xlane.xlu0 %8619 }
0x2b09   :  { %13606 = vrcp.f32 %v8620_v59 }
0x2b0a   :  { %13608 = vrcp.f32 %v8794_v58  ;;  %v11892_v58 = vld [vmem:[%s16267_s22 + $0x28] sm:$0xff] }
0x2b0b   :  { %v9132_v63 = vpop.xlane.xlu1 %9131 }
0x2b0c   :  { %v8961_v60 = vpop.xlane.xlu0 %8960 }
0x2b0d   :  { %13610 = vrcp.f32 %v8961_v60 }
0x2b0e   :  { %v13605_v62 = vpop.eup %13604  ;;  %13612 = vrcp.f32 %v9132_v63 }
0x2b0f   :  { %v8451_v0 = vmul.f32 %v13605_v62, %v13589_v46  ;;  %v9303_v61 = vpop.xlane.xlu1 %9302 }
0x2b10   :  { %13614 = vrcp.f32 %v9303_v61  ;;  %v8965_v7 = vpop.permute.xlu0 %8964 }
0x2b11   :  { %12847 = vmatmul.mubr.msk.f32.vlgmr.msra.gmra.mrb[94].mxu1 %vm642_vm6, %v8451_v0 }
0x2b12   :  { %12855 = vmatpush3.msra.mxu1 %v8624_v57  ;;  %12856 = vmatprep.mubr.msk.f32.mxu1 %vm14274_vm5, %v14273_v50 }
0x2b13   :  { %v13607_v1 = vpop.eup %13606  ;;  %12864 = vmatprep.subr.mxu1 %v14273_v50  ;;  %v9136_v19 = vpop.permute.xlu1 %9135 }
0x2b14   :  { %v8622_v9 = vmul.f32 %v13607_v1, %v13593_v48  ;;  %v13609_v34 = vpop.eup %13608  ;;  %v9307_v26 = vpop.permute.xlu0 %9306 }
0x2b15   :  { %v8796_v13 = vmul.f32 %v13609_v34, %v15867_v45 }
0x2b16   :  { %12857 = vmatmul.mubr.msk.f32.vlgmr.msra.gmra.mrb[96].mxu1 %vm642_vm6, %v8622_v9 }
0x2b17   :  { %12865 = vmatpush3.msra.mxu1 %v8798_v33  ;;  %12866 = vmatprep.mubr.msk.f32.mxu1 %vm14274_vm5, %v14273_v50  ;;  %v13611_v14 = vpop.eup %13610 }
0x2b18   :  { %12874 = vmatprep.subr.mxu1 %v14273_v50  ;;  %v8963_v15 = vmul.f32 %v13611_v14, %v15874_v21  ;;  %v13613_v55 = vpop.eup %13612  ;;  %v11893_v14 = vld [vmem:[%s16267_s22 + $0x30] sm:$0xff] }
0x2b19   :  { %v9134_v22 = vmul.f32 %v13613_v55, %v15871_v49 }
0x2b1a   :  { %12867 = vmatmul.mubr.msk.f32.vlgmr.msra.gmra.mrb[98].mxu1 %vm642_vm6, %v8796_v13  ;;  %v13615_v23 = vpop.eup %13614 }
0x2b1b   :  { %12875 = vmatpush3.msra.mxu1 %v8965_v7  ;;  %12876 = vmatprep.mubr.msk.f32.mxu1 %vm14274_vm5, %v14273_v50  ;;  %v9305_v17 = vmul.f32 %v13615_v23, %v15878_v32  ;;  %v11894_v7 = vld [vmem:[%s16267_s22 + $0x38] sm:$0xff] }
0x2b1c   :  { %12884 = vmatprep.subr.mxu1 %v14273_v50 }
0x2b1e   :  { %12877 = vmatmul.mubr.msk.f32.vlgmr.msra.gmra.mrb[100].mxu1 %vm642_vm6, %v8963_v15 }
0x2b1f   :  { %12885 = vmatpush3.msra.mxu1 %v9136_v19  ;;  %12886 = vmatprep.mubr.msk.f32.mxu1 %vm14274_vm5, %v14273_v50 }
0x2b20   :  { %12894 = vmatprep.subr.mxu1 %v14273_v50 }
0x2b22   :  { %12887 = vmatmul.mubr.msk.f32.vlgmr.msra.gmra.mrb[102].mxu1 %vm642_vm6, %v9134_v22  ;;  %v13379_v22 = vpack.i.bf16 %v11894_v7, %v11893_v14 }
0x2b23   :  { %12895 = vmatpush3.msra.mxu1 %v9307_v26  ;;  %12896 = vmatprep.mubr.msk.f32.mxu1 %vm14274_vm5, %v14273_v50  ;;  %v13228_v26 = vpack.c.bf16 %v11894_v7, %v11893_v14  ;;  %v9733_v7 = vld [vmem:[%s16269_s14] sm:$0xff] }
0x2b24   :  { %vm9811_vm4 = vcmp.eq.f32.partialorder %v9733_v7, 0.0 }
0x2b26   :  { %12897 = vmatmul.mubr.msk.f32.vlgmr.msra.gmra.mrb[104].mxu1 %vm642_vm6, %v9305_v17  ;;  %v15971_v17 = vld [vmem:[#allocation19 + $0x1] ss:$0 sm:$0xff] }
0x2baf   :  { %v8186_v8 = vpop.f32.mrb[90].mxu1 }
0x2bb0   :  { %8190 = vst.msk [vmem:[#allocation3] sm:$0xff] %vm642_vm6, %v8186_v8  ;;  %v12828_v27 = vpop.f32.mrb[91].mxu1 }
0x2bb4   :  { %v8353_v4 = vpop.f32.mrb[92].mxu1 }
0x2bb5   :  { %8358 = vrot.lane.b32.xlu1 %v8353_v4, %s14266_s30  ;;  %v12838_v29 = vpop.f32.mrb[93].mxu1 }
0x2be4   :  { %v8524_v37 = vpop.f32.mrb[94].mxu1 }
0x2be5   :  { %8529 = vrot.lane.b32.xlu0 %v8524_v37, %s14249_s2  ;;  %v12848_v38 = vpop.f32.mrb[95].mxu1 }
0x2be9   :  { %v8695_v39 = vpop.f32.mrb[96].mxu1 }
0x2bea   :  { %8700 = vrot.lane.b32.xlu0 %v8695_v39, %s14286_s17  ;;  %v12858_v2 = vpop.f32.mrb[97].mxu1 }
0x2bed   :  { %v8869_v18 = vpop.f32.mrb[98].mxu1 }
0x2bee   :  { %8873 = vst.msk [vmem:[#allocation3 + $0x8] sm:$0xff] %vm642_vm6, %v8869_v18  ;;  %v12868_v3 = vpop.f32.mrb[99].mxu1 }
0x2bf1   :  { %v9036_v46 = vpop.f32.mrb[100].mxu1 }
0x2bf2   :  { %9041 = vrot.lane.b32.xlu1 %v9036_v46, %s14266_s30  ;;  %v12878_v44 = vpop.f32.mrb[101].mxu1 }
0x2bf5   :  { %v9207_v45 = vpop.f32.mrb[102].mxu1 }
0x2bf6   :  { %9212 = vrot.lane.b32.xlu1 %v9207_v45, %s14249_s2  ;;  %v12888_v48 = vpop.f32.mrb[103].mxu1 }
0x2bf9   :  { %v9378_v35 = vpop.f32.mrb[104].mxu1 }
0x2bfa   :  { %9383 = vrot.lane.b32.xlu0 %v9378_v35, %s14286_s17  ;;  %v12898_v49 = vpop.f32.mrb[105].mxu1  ;;  %v11889_v35 = vld [vmem:[#allocation30 + $0x1] ss:$0 sm:$0xff] }
0x2c27   :  { %v8359_v20 = vpop.permute.xlu1 %8358 }
0x2c28   :  { %8361 = vst.msk [vmem:[#allocation3] sm:$0xff] %vm978_vm9, %v8359_v20 }
0x2c57   :  { %v8530_v21 = vpop.permute.xlu0 %8529 }
0x2c58   :  { %8532 = vst.msk [vmem:[#allocation3] sm:$0xff] %vm1150_vm10, %v8530_v21  ;;  %v11890_v21 = vld [vmem:[#allocation31 + $0x1] ss:$0 sm:$0xff] }
0x2c5c   :  { %v8701_v36 = vpop.permute.xlu0 %8700 }
0x2c5d   :  { %8703 = vst.msk [vmem:[#allocation3] sm:$0xff] %vm1322_vm11, %v8701_v36 }
0x2c64   :  { %v9042_v32 = vpop.permute.xlu1 %9041  ;;  %v9387_v25 = vld [vmem:[#allocation3] sm:$0xff] }
0x2c65   :  { %9044 = vst.msk [vmem:[#allocation3 + $0x8] sm:$0xff] %vm978_vm9, %v9042_v32  ;;  %12907 = vmatprep.mubr.msk.f32.mxu0 %vm481_vm0, %v9387_v25 }
0x2c68   :  { %v9213_v11 = vpop.permute.xlu1 %9212 }
0x2c69   :  { %9215 = vst.msk [vmem:[#allocation3 + $0x8] sm:$0xff] %vm1150_vm10, %v9213_v11 }
0x2c6c   :  { %v9384_v28 = vpop.permute.xlu0 %9383 }
0x2c6d   :  { %9386 = vst.msk [vmem:[#allocation3 + $0x8] sm:$0xff] %vm1322_vm11, %v9384_v28 }
0x2c74   :  { %v9388_v10 = vld [vmem:[#allocation3 + $0x8] sm:$0xff] }
0x2c75   :  { %12908 = vmatmul.mubr.msk.f32.vlgmr.msra.gmra.mrb[86].mxu0 %vm481_vm0, %v9388_v10 }
0x2c76   :  { %12929 = vmatprep.mubr.msk.f32.mxu0 %vm481_vm0, %v15511_v47  ;;  %v11891_v47 = vld [vmem:[%s16267_s22 + $0x20] sm:$0xff] }
0x2c77   :  { %v13374_v59 = vpack.i.bf16 %v11892_v58, %v11891_v47  ;;  %v13224_v23 = vpack.c.bf16 %v11892_v58, %v11891_v47 }
0x2c79   :  { %13225 = vmatprep.subr.bf16.mxu1 %v13224_v23 }
0x2c7a   :  { %13227 = vmatpush3.bf16.msra.mxu1 %v13224_v23 }
0x2c7b   :  { %13229 = vmatprep.subr.bf16.mxu1 %v13228_v26 }
0x2c7e   :  { %13231 = vmatpush3.bf16.msra.mxu1 %v13228_v26 }
0x2c7f   :  { %12932 = vmatprep.subr.mxu1 %v14273_v50 }
0x2d48   :  { %v12909_v51 = vpop.f32.mrb[86].mxu0 }
0x2d49   :  { %v9473_v52 = vadd.f32 %v12909_v51, %v11886_v24  ;;  %v9467_v53 = vpop.f32.mrb[87].mxu0 }
0x2d4a   :  { %v9468_v6 = vadd.f32 %v11886_v24, %v9467_v53 }
0x2d4b   :  { %v15947_v43 = vadd.f32 %v9473_v52, %v15742_v30 }
0x2d4c   :  { %v15950_v33 = vadd.f32 %v9468_v6, %v15745_v31 }
0x2d4d   :  { %v9485_v56 = vsel %vm481_vm0, %v15947_v43, 0.0 }
0x2d4e   :  { %9486 = vadd.xlane.f32.xlu0 %v9485_v56  ;;  %v9482_v57 = vsel %vm481_vm0, %v15950_v33, 0.0 }
0x2d4f   :  { %9483 = vadd.xlane.f32.xlu1 %v9482_v57 }
0x2d60   :  { %13375 = vrot.lane.b32.xlu1 %v13374_v59, %s14275_s20 }
0x2d64   :  { %9655 = vrot.lane.b32.xlu1 %v15971_v17, %s14275_s20 }
0x2ddb   :  { %v9487_v30 = vpop.xlane.xlu0 %9486 }
0x2ddc   :  { %v9489_v60 = vmul.f32 0.03125, %v9487_v30  ;;  %v9484_v62 = vpop.xlane.xlu1 %9483 }
0x2ddd   :  { %v9488_v31 = vmul.f32 0.03125, %v9484_v62 }
0x2dde   :  { %v15960_v63 = vsub.f32 %v15947_v43, %v9489_v60 }
0x2ddf   :  { %v9490_v0 = vsub.f32 %v15950_v33, %v9488_v31 }
0x2de0   :  { %v9493_v61 = vmul.f32 %v15960_v63, %v15960_v63  ;;  %v13376_v13 = vpop.permute.xlu1 %13375 }
0x2de1   :  { %v9492_v1 = vmul.f32 %v9490_v0, %v9490_v0  ;;  %v13378_v15 = vunpack.i.h.bf16 %v13376_v13  ;;  %v13377_v55 = vunpack.i.l.bf16 %v13376_v13  ;;  %v9508_v49 = vmul.f32 %v11889_v35, %v9490_v0 }
0x2de2   :  { %v9497_v34 = vsel %vm481_vm0, %v9493_v61, 0.0 }
0x2de3   :  { %v9494_v9 = vsel %vm481_vm0, %v9492_v1, 0.0  ;;  %v13232_v19 = vpack.c.bf16 %v13378_v15, %v13377_v55 }
0x2de4   :  { %9495 = vadd.xlane.f32.xlu0 %v9494_v9  ;;  %v9656_v10 = vpop.permute.xlu1 %9655 }
0x2de5   :  { %13233 = vmatprep.subr.bf16.mxu0 %v13232_v19 }
0x2de6   :  { %13235 = vmatpush3.bf16.msra.mxu0 %v13232_v19 }
0x2de8   :  { %9498 = vadd.xlane.f32.xlu0 %v9497_v34 }
0x2dfe   :  { %13380 = vrot.lane.b32.xlu0 %v13379_v22, %s14275_s20 }
0x2e71   :  { %v9496_v8 = vpop.xlane.xlu0 %9495 }
0x2e72   :  { %v9500_v27 = vmul.f32 0.032258064, %v9496_v8 }
0x2e74   :  { %13616 = vrsqrt.f32 %v9500_v27  ;;  %vm9512_vm14 = vcmp.eq.f32.partialorder %v9500_v27, inf  ;;  %v9515_v54 = vand.u32 2147483648, %v9500_v27  ;;  %vm9514_vm15 = vcmp.eq.f32.partialorder %v9500_v27, 0.0 }
0x2e75   :  { %v9499_v4 = vpop.xlane.xlu0 %9498 }
0x2e76   :  { %v9501_v29 = vmul.f32 0.032258064, %v9499_v4 }
0x2e78   :  { %13618 = vrsqrt.f32 %v9501_v29  ;;  %vm9519_vm2 = vcmp.eq.f32.partialorder %v9501_v29, inf  ;;  %v9522_v46 = vand.u32 2147483648, %v9501_v29  ;;  %vm9521_vm3 = vcmp.eq.f32.partialorder %v9501_v29, 0.0 }
0x2e79   :  { %v13381_v37 = vpop.permute.xlu0 %13380 }
0x2e7a   :  { %v13383_v38 = vunpack.i.h.bf16 %v13381_v37  ;;  %v13382_v39 = vunpack.i.l.bf16 %v13381_v37 }
0x2e7c   :  { %v13236_v2 = vpack.c.bf16 %v13383_v38, %v13382_v39  ;;  %v11912_v38 = vld [vmem:[%s16269_s14 + $0x8] sm:$0xff] }
0x2e7d   :  { %vm10492_vm12 = vcmp.eq.f32.partialorder %v11912_v38, 0.0 }
0x2e7e   :  { %v13617_v40 = vpop.eup %13616  ;;  %13237 = vmatprep.subr.bf16.mxu0 %v13236_v2 }
0x2e7f   :  { %v9511_v16 = vmul.f32 %v13617_v40, %v9500_v27  ;;  %13239 = vmatpush3.bf16.msra.mxu0 %v13236_v2 }
0x2e80   :  { %12942 = vmatprep.subr.mxu0 %v14273_v50 }
0x2e81   :  { %v9513_v18 = vsel %vm9512_vm14, %v9500_v27, %v9511_v16 }
0x2e82   :  { %v13619_v5 = vpop.eup %13618  ;;  %v9516_v41 = vsel %vm9514_vm15, %v9515_v54, %v9513_v18  ;;  %12930 = vmatmul.mubr.msk.f32.vlgmr.msra.gmra.mrb[88].mxu0 %vm481_vm0, %v15521_v12  ;;  %v9509_v12 = vmul.f32 %v11889_v35, %v15960_v63 }
0x2e83   :  { %v9518_v3 = vmul.f32 %v13619_v5, %v9501_v29  ;;  %v9524_v42 = vadd.f32 1e-06, %v9516_v41  ;;  %12944 = vmatprep.mubr.msk.f32.mxu0 %vm14274_vm5, %v14273_v50 }
0x2e85   :  { %v9520_v44 = vsel %vm9519_vm2, %v9501_v29, %v9518_v3  ;;  %13620 = vrcp.f32 %v9524_v42 }
0x2e86   :  { %v9523_v45 = vsel %vm9521_vm3, %v9522_v46, %v9520_v44 }
0x2e87   :  { %v9525_v48 = vadd.f32 1e-06, %v9523_v45 }
0x2e89   :  { %13622 = vrcp.f32 %v9525_v48 }
0x2e8f   :  { %v13621_v20 = vpop.eup %13620 }
0x2e90   :  { %v9527_v36 = vmul.f32 %v13621_v20, %v9508_v49 }
0x2e92   :  { %v9536_v32 = vadd.f32 %v11890_v21, %v9527_v36 }
0x2e93   :  { %v13623_v25 = vpop.eup %13622 }
0x2e94   :  { %v9529_v11 = vmul.f32 %v13623_v25, %v9509_v12  ;;  %12918 = vmatprep.mubr.msk.f32.mxu1 %vm481_vm0, %v9536_v32 }
0x2e96   :  { %v9537_v28 = vadd.f32 %v11890_v21, %v9529_v11 }
0x2e98   :  { %12919 = vmatmul.mubr.msk.f32.vlgmr.msra.gmra.mrb[106].mxu1 %vm481_vm0, %v9537_v28 }
0x2e99   :  { %12934 = vmatprep.mubr.msk.f32.mxu1 %vm14274_vm5, %v14273_v50 }
0x2f55   :  { %v12931_v24 = vpop.f32.mrb[88].mxu0 }
0x2f56   :  { %v9724_v51 = vpop.f32.mrb[89].mxu0  ;;  %v15996_v53 = vadd.f32 %v12931_v24, %v9656_v10 }
0x2f57   :  { %v15985_v52 = vadd.f32 %v9724_v51, %v9656_v10 }
0x2f59   :  { %10074 = vrot.lane.b32.xlu0 %v15985_v52, %s14280_s26  ;;  %9903 = vrot.lane.b32.xlu1 %v15985_v52, %s14279_s0 }
0x2f5a   :  { %12933 = vmatpush3.xpose.msk.msra.mxu1 %vm642_vm6, %v15985_v52 }
0x2f5b   :  { %12937 = vmatprep.subr.mxu1 %v14273_v50 }
0x2f5d   :  { %10245 = vrot.lane.b32.xlu0 %v15985_v52, %s14281_s28 }
0x2f61   :  { %10584 = vrot.lane.b32.xlu0 %v15996_v53, %s14279_s0 }
0x2f65   :  { %10755 = vrot.lane.b32.xlu0 %v15996_v53, %s14280_s26 }
0x2f69   :  { %10926 = vrot.lane.b32.xlu0 %v15996_v53, %s14281_s28 }
0x2f6b   :  { %v12920_v6 = vpop.f32.mrb[106].mxu1 }
0x2f6c   :  { %v9630_v56 = vpop.f32.mrb[107].mxu1  ;;  %v9636_v58 = vadd.f32 %v12920_v6, %v15971_v17 }
0x2f6d   :  { %v9631_v57 = vadd.f32 %v15971_v17, %v9630_v56 }
0x2f6e   :  { %v10415_v59 = vmul.f32 0.35355338, %v9636_v58 }
0x2f6f   :  { %v9734_v47 = vmul.f32 0.35355338, %v9631_v57 }
0x2f71   :  { %9901 = vrot.lane.b32.xlu1 %v9734_v47, %s14279_s0  ;;  %12935 = vmatmul.mubr.msk.f32.vlgmr.msra.gmra.mrb[108].mxu1 %vm642_vm6, %v9734_v47 }
0x2f72   :  { %12939 = vmatprep.mubr.msk.f32.mxu1 %vm14274_vm5, %v14273_v50 }
0x2f75   :  { %10072 = vrot.lane.b32.xlu1 %v9734_v47, %s14280_s26 }
0x2f79   :  { %10243 = vrot.lane.b32.xlu1 %v9734_v47, %s14281_s28 }
0x2f7d   :  { %10582 = vrot.lane.b32.xlu1 %v10415_v59, %s14279_s0 }
0x2f81   :  { %10753 = vrot.lane.b32.xlu1 %v10415_v59, %s14280_s26 }
0x2f85   :  { %10924 = vrot.lane.b32.xlu1 %v10415_v59, %s14281_s28 }
0x2fcb   :  { %v9904_v30 = vpop.permute.xlu1 %9903  ;;  %v10075_v60 = vpop.permute.xlu0 %10074 }
0x2fcc   :  { %12943 = vmatpush3.xpose.msk.msra.mxu0 %vm642_vm6, %v9904_v30 }
0x2fcd   :  { %12952 = vmatprep.subr.mxu0 %v14273_v50 }
0x2fcf   :  { %v10246_v31 = vpop.permute.xlu0 %10245 }
0x2fd3   :  { %v10585_v1 = vpop.permute.xlu0 %10584 }
0x2fd7   :  { %v10756_v61 = vpop.permute.xlu0 %10755 }
0x2fdb   :  { %v10927_v13 = vpop.permute.xlu0 %10926 }
0x2fe3   :  { %v9902_v62 = vpop.permute.xlu1 %9901 }
0x2fe4   :  { %12945 = vmatmul.mubr.msk.f32.vlgmr.msra.gmra.mrb[90].mxu0 %vm642_vm6, %v9902_v62 }
0x2fe5   :  { %12953 = vmatpush3.xpose.msk.msra.mxu0 %vm642_vm6, %v10075_v60  ;;  %12954 = vmatprep.mubr.msk.f32.mxu0 %vm14274_vm5, %v14273_v50 }
0x2fe6   :  { %12962 = vmatprep.subr.mxu0 %v14273_v50 }
0x2fe7   :  { %v10073_v63 = vpop.permute.xlu1 %10072 }
0x2fe8   :  { %12955 = vmatmul.mubr.msk.f32.vlgmr.msra.gmra.mrb[92].mxu0 %vm642_vm6, %v10073_v63 }
0x2fe9   :  { %12963 = vmatpush3.xpose.msk.msra.mxu0 %vm642_vm6, %v10246_v31  ;;  %12964 = vmatprep.mubr.msk.f32.mxu0 %vm14274_vm5, %v14273_v50 }
0x2fea   :  { %12972 = vmatprep.subr.mxu0 %v14273_v50 }
0x2feb   :  { %v10244_v0 = vpop.permute.xlu1 %10243 }
0x2fec   :  { %12965 = vmatmul.mubr.msk.f32.vlgmr.msra.gmra.mrb[94].mxu0 %vm642_vm6, %v10244_v0 }
0x2fed   :  { %12973 = vmatpush3.xpose.msk.msra.mxu0 %vm642_vm6, %v15996_v53  ;;  %12974 = vmatprep.mubr.msk.f32.mxu0 %vm14274_vm5, %v14273_v50 }
0x2fee   :  { %12982 = vmatprep.subr.mxu0 %v14273_v50 }
0x2fef   :  { %v10583_v9 = vpop.permute.xlu1 %10582 }
0x2ff0   :  { %12975 = vmatmul.mubr.msk.f32.vlgmr.msra.gmra.mrb[96].mxu0 %vm642_vm6, %v10415_v59 }
0x2ff1   :  { %12983 = vmatpush3.xpose.msk.msra.mxu0 %vm642_vm6, %v10585_v1  ;;  %12984 = vmatprep.mubr.msk.f32.mxu0 %vm14274_vm5, %v14273_v50 }
0x2ff2   :  { %12992 = vmatprep.subr.mxu0 %v14273_v50 }
0x2ff3   :  { %v10754_v34 = vpop.permute.xlu1 %10753 }
0x2ff4   :  { %12985 = vmatmul.mubr.msk.f32.vlgmr.msra.gmra.mrb[98].mxu0 %vm642_vm6, %v10583_v9 }
0x2ff5   :  { %12993 = vmatpush3.xpose.msk.msra.mxu0 %vm642_vm6, %v10756_v61  ;;  %12994 = vmatprep.mubr.msk.f32.mxu0 %vm14274_vm5, %v14273_v50 }
0x2ff6   :  { %13002 = vmatprep.subr.mxu0 %v14273_v50 }
0x2ff7   :  { %v10925_v14 = vpop.permute.xlu1 %10924 }
0x2ff8   :  { %12995 = vmatmul.mubr.msk.f32.vlgmr.msra.gmra.mrb[100].mxu0 %vm642_vm6, %v10754_v34 }
0x2ff9   :  { %13003 = vmatpush3.xpose.msk.msra.mxu0 %vm642_vm6, %v10927_v13  ;;  %13004 = vmatprep.mubr.msk.f32.mxu0 %vm14274_vm5, %v14273_v50 }
0x2ffc   :  { %13005 = vmatmul.mubr.msk.f32.vlgmr.msra.gmra.mrb[102].mxu0 %vm642_vm6, %v10925_v14 }
0x3044   :  { %v9807_v15 = vpop.f32.mrb[108].mxu1 }
0x3045   :  { %v9812_v55 = vsel %vm9811_vm4, -1e+09, %v9807_v15  ;;  %v12936_v19 = vpop.f32.mrb[109].mxu1 }
0x3046   :  { %v9813_v22 = vsel %vm642_vm6, %v9812_v55, -inf }
0x3047   :  { %9814 = vmax.xlane.f32.xlu0 %v9813_v22 }
0x30b7   :  { %v9975_v23 = vpop.f32.mrb[90].mxu0 }
0x30b8   :  { %v9979_v26 = vsel %vm9811_vm4, -1e+09, %v9975_v23  ;;  %v12946_v17 = vpop.f32.mrb[91].mxu0 }
0x30b9   :  { %v9980_v8 = vsel %vm642_vm6, %v9979_v26, -inf }
0x30ba   :  { %9981 = vmax.xlane.f32.xlu1 %v9980_v8 }
0x30bb   :  { %v10146_v27 = vpop.f32.mrb[92].mxu0 }
0x30bc   :  { %v10150_v4 = vsel %vm9811_vm4, -1e+09, %v10146_v27  ;;  %v12956_v29 = vpop.f32.mrb[93].mxu0 }
0x30bd   :  { %v10151_v37 = vsel %vm642_vm6, %v10150_v4, -inf }
0x30be   :  { %10152 = vmax.xlane.f32.xlu0 %v10151_v37 }
0x30bf   :  { %v10317_v39 = vpop.f32.mrb[94].mxu0 }
0x30c0   :  { %v10321_v2 = vsel %vm9811_vm4, -1e+09, %v10317_v39  ;;  %v12966_v40 = vpop.f32.mrb[95].mxu0 }
0x30c1   :  { %v10322_v16 = vsel %vm642_vm6, %v10321_v2, -inf }
0x30c2   :  { %10323 = vmax.xlane.f32.xlu0 %v10322_v16 }
0x30c3   :  { %v10488_v54 = vpop.f32.mrb[96].mxu0 }
0x30c4   :  { %v10493_v18 = vsel %vm10492_vm12, -1e+09, %v10488_v54  ;;  %v12976_v5 = vpop.f32.mrb[97].mxu0 }
0x30c5   :  { %v10494_v41 = vsel %vm642_vm6, %v10493_v18, -inf }
0x30c6   :  { %10495 = vmax.xlane.f32.xlu0 %v10494_v41 }
0x30c7   :  { %v10656_v3 = vpop.f32.mrb[98].mxu0 }
0x30c8   :  { %v16061_v42 = vsel %vm10492_vm12, -1e+09, %v10656_v3  ;;  %v12986_v46 = vpop.f32.mrb[99].mxu0 }
0x30c9   :  { %v10661_v44 = vsel %vm642_vm6, %v16061_v42, -inf }
0x30ca   :  { %10662 = vmax.xlane.f32.xlu1 %v10661_v44 }
0x30cb   :  { %v10827_v45 = vpop.f32.mrb[100].mxu0 }
0x30cc   :  { %v10831_v48 = vsel %vm10492_vm12, -1e+09, %v10827_v45  ;;  %v12996_v35 = vpop.f32.mrb[101].mxu0 }
0x30cd   :  { %v10832_v49 = vsel %vm642_vm6, %v10831_v48, -inf }
0x30ce   :  { %10833 = vmax.xlane.f32.xlu0 %v10832_v49 }
0x30cf   :  { %v10998_v20 = vpop.f32.mrb[102].mxu0 }
0x30d0   :  { %v13006_v21 = vpop.f32.mrb[103].mxu0  ;;  %v11002_v28 = vsel %vm10492_vm12, -1e+09, %v10998_v20 }
0x30d1   :  { %v11003_v10 = vsel %vm642_vm6, %v11002_v28, -inf }
0x30d4   :  { %v9815_v36 = vpop.xlane.xlu0 %9814 }
0x30d5   :  { %v9816_v12 = vsub.f32 %v9812_v55, %v9815_v36 }
0x30d7   :  { %v9817_v32 = vmul.f32 1.442695, %v9816_v12 }
0x30d9   :  { %13624 = vpow2.f32 %v9817_v32 }
0x30db   :  { %9824 = vrot.lane.b32.xlu1 %v15985_v52, %s14275_s20 }
0x30e3   :  { %v13625_v25 = vpop.eup %13624 }
0x30e4   :  { %v9819_v11 = vsel %vm642_vm6, %v13625_v25, 0.0 }
0x30e5   :  { %9820 = vadd.xlane.f32.xlu0 %v9819_v11 }
0x30fb   :  { %9991 = vrot.lane.b32.xlu0 %v15985_v52, %s14276_s12 }
0x30ff   :  { %11004 = vmax.xlane.f32.xlu1 %v11003_v10 }
0x3110   :  { %10162 = vrot.lane.b32.xlu1 %v15985_v52, %s14277_s3 }
0x3114   :  { %10333 = vrot.lane.b32.xlu1 %v15985_v52, %s14278_s27 }
0x3118   :  { %10505 = vrot.lane.b32.xlu1 %v15996_v53, %s14275_s20 }
0x3147   :  { %v9982_v24 = vpop.xlane.xlu1 %9981 }
0x3148   :  { %v9983_v51 = vsub.f32 %v9979_v26, %v9982_v24 }
0x314a   :  { %v9984_v6 = vmul.f32 1.442695, %v9983_v51 }
0x314b   :  { %v10153_v56 = vpop.xlane.xlu0 %10152 }
0x314c   :  { %13626 = vpow2.f32 %v9984_v6  ;;  %v10154_v57 = vsub.f32 %v10150_v4, %v10153_v56 }
0x314e   :  { %v10155_v47 = vmul.f32 1.442695, %v10154_v57 }
0x314f   :  { %v10324_v58 = vpop.xlane.xlu0 %10323 }
0x3150   :  { %13628 = vpow2.f32 %v10155_v47  ;;  %v10325_v59 = vsub.f32 %v10321_v2, %v10324_v58 }
0x3152   :  { %v10326_v30 = vmul.f32 1.442695, %v10325_v59 }
0x3153   :  { %v10496_v60 = vpop.xlane.xlu0 %10495 }
0x3154   :  { %13630 = vpow2.f32 %v10326_v30  ;;  %v10497_v62 = vsub.f32 %v10493_v18, %v10496_v60 }
0x3156   :  { %v13627_v31 = vpop.eup %13626  ;;  %v10498_v63 = vmul.f32 1.442695, %v10497_v62 }
0x3157   :  { %v10663_v52 = vpop.xlane.xlu1 %10662  ;;  %v9986_v0 = vsel %vm642_vm6, %v13627_v31, 0.0 }
0x3158   :  { %13632 = vpow2.f32 %v10498_v63  ;;  %9987 = vadd.xlane.f32.xlu1 %v9986_v0  ;;  %v10664_v27 = vsub.f32 %v16061_v42, %v10663_v52 }
0x315a   :  { %v13629_v1 = vpop.eup %13628  ;;  %v10665_v29 = vmul.f32 1.442695, %v10664_v27 }
0x315b   :  { %v9825_v9 = vpop.permute.xlu1 %9824  ;;  %v10834_v61 = vpop.xlane.xlu0 %10833  ;;  %v10157_v34 = vsel %vm642_vm6, %v13629_v1, 0.0 }
0x315c   :  { %v10835_v13 = vsub.f32 %v10831_v48, %v10834_v61  ;;  %12938 = vmatpush3.msra.mxu1 %v9825_v9  ;;  %10158 = vadd.xlane.f32.xlu0 %v10157_v34  ;;  %v9547_v9 = vld [vmem:[#allocation21 + $0x28] sm:$0xff]  ;;  %v9548_v34 = vld [vmem:[#allocation21 + $0x30] sm:$0xff] }
0x315d   :  { %12947 = vmatprep.subr.mxu1 %v14273_v50 }
0x315e   :  { %v13631_v14 = vpop.eup %13630  ;;  %v10836_v7 = vmul.f32 1.442695, %v10835_v13  ;;  %v9549_v13 = vld [vmem:[#allocation21 + $0x38] sm:$0xff] }
0x315f   :  { %v10328_v15 = vsel %vm642_vm6, %v13631_v14, 0.0 }
0x3160   :  { %13634 = vpow2.f32 %v10836_v7  ;;  %10329 = vadd.xlane.f32.xlu1 %v10328_v15 }
0x3162   :  { %v13633_v55 = vpop.eup %13632 }
0x3163   :  { %v10500_v19 = vsel %vm642_vm6, %v13633_v55, 0.0 }
0x3164   :  { %10501 = vadd.xlane.f32.xlu0 %v10500_v19 }
0x316a   :  { %v16085_v22 = vpop.eup %13634 }
0x316b   :  { %v10838_v23 = vsel %vm642_vm6, %v16085_v22, 0.0 }
0x316c   :  { %10839 = vadd.xlane.f32.xlu0 %v10838_v23 }
0x3171   :  { %10672 = vrot.lane.b32.xlu1 %v15996_v53, %s14276_s12 }
0x3172   :  { %v9821_v26 = vpop.xlane.xlu0 %9820 }
0x3173   :  { %13636 = vrcp.f32 %v9821_v26 }
0x3174   :  { %13638 = vpow2.f32 %v10665_v29 }
0x3176   :  { %v9992_v4 = vpop.permute.xlu0 %9991 }
0x317d   :  { %v13637_v17 = vpop.eup %13636 }
0x317e   :  { %v9823_v8 = vmul.f32 %v13637_v17, %v13625_v25  ;;  %v13639_v2 = vpop.eup %13638 }
0x317f   :  { %v10667_v40 = vsel %vm642_vm6, %v13639_v2, 0.0 }
0x3180   :  { %12940 = vmatmul.mubr.msk.f32.vlgmr.msra.gmra.mrb[110].mxu1 %vm642_vm6, %v9823_v8 }
0x3181   :  { %12948 = vmatpush3.msra.mxu1 %v9992_v4  ;;  %12949 = vmatprep.mubr.msk.f32.mxu1 %vm14274_vm5, %v14273_v50 }
0x3182   :  { %12957 = vmatprep.subr.mxu1 %v14273_v50 }
0x318c   :  { %v11005_v37 = vpop.xlane.xlu1 %11004 }
0x318d   :  { %v11006_v38 = vsub.f32 %v11002_v28, %v11005_v37 }
0x318f   :  { %v11007_v39 = vmul.f32 1.442695, %v11006_v38 }
0x3190   :  { %v10163_v18 = vpop.permute.xlu1 %10162 }
0x3191   :  { %13640 = vpow2.f32 %v11007_v39  ;;  %v11925_v39 = vld [vmem:[#allocation22 + $0x1] ss:$0 sm:$0xff] }
0x3194   :  { %v10334_v5 = vpop.permute.xlu1 %10333 }
0x3195   :  { %10668 = vadd.xlane.f32.xlu1 %v10667_v40 }
0x3198   :  { %v10506_v41 = vpop.permute.xlu1 %10505 }
0x319b   :  { %v13641_v16 = vpop.eup %13640 }
0x319c   :  { %v11009_v54 = vsel %vm642_vm6, %v13641_v16, 0.0 }
0x319d   :  { %11010 = vadd.xlane.f32.xlu0 %v11009_v54 }
0x31a6   :  { %11014 = vrot.lane.b32.xlu1 %v15996_v53, %s14278_s27 }
0x31b3   :  { %10843 = vrot.lane.b32.xlu0 %v15996_v53, %s14277_s3 }
0x31e5   :  { %v9988_v3 = vpop.xlane.xlu1 %9987 }
0x31e6   :  { %13642 = vrcp.f32 %v9988_v3 }
0x31e9   :  { %v10159_v42 = vpop.xlane.xlu0 %10158 }
0x31ea   :  { %13644 = vrcp.f32 %v10159_v42 }
0x31ed   :  { %v10330_v46 = vpop.xlane.xlu1 %10329 }
0x31ee   :  { %13646 = vrcp.f32 %v10330_v46 }
0x31f0   :  { %v13643_v44 = vpop.eup %13642 }
0x31f1   :  { %v9990_v45 = vmul.f32 %v13643_v44, %v13627_v31  ;;  %v10502_v48 = vpop.xlane.xlu0 %10501  ;;  %v10673_v12 = vpop.permute.xlu1 %10672 }
0x31f2   :  { %13648 = vrcp.f32 %v10502_v48 }
0x31f3   :  { %12950 = vmatmul.mubr.msk.f32.vlgmr.msra.gmra.mrb[112].mxu1 %vm642_vm6, %v9990_v45 }
0x31f4   :  { %v13645_v35 = vpop.eup %13644  ;;  %12958 = vmatpush3.msra.mxu1 %v10163_v18  ;;  %12959 = vmatprep.mubr.msk.f32.mxu1 %vm14274_vm5, %v14273_v50 }
0x31f5   :  { %v10161_v53 = vmul.f32 %v13645_v35, %v13629_v1  ;;  %12967 = vmatprep.subr.mxu1 %v14273_v50  ;;  %v9546_v1 = vld [vmem:[#allocation21 + $0x20] sm:$0xff] }
0x31f6   :  { %v13240_v61 = vpack.c.bf16 %v9547_v9, %v9546_v1 }
0x31f7   :  { %12960 = vmatmul.mubr.msk.f32.vlgmr.msra.gmra.mrb[114].mxu1 %vm642_vm6, %v10161_v53 }
0x31f8   :  { %v13647_v49 = vpop.eup %13646  ;;  %12968 = vmatpush3.msra.mxu1 %v10334_v5  ;;  %12969 = vmatprep.mubr.msk.f32.mxu1 %vm14274_vm5, %v14273_v50 }
0x31f9   :  { %v10332_v20 = vmul.f32 %v13647_v49, %v13631_v14  ;;  %12977 = vmatprep.subr.mxu1 %v14273_v50  ;;  %v10840_v32 = vpop.xlane.xlu0 %10839  ;;  %13241 = vmatprep.subr.bf16.mxu0 %v13240_v61  ;;  %v13244_v14 = vpack.c.bf16 %v9549_v13, %v9548_v34 }
0x31fa   :  { %13243 = vmatpush3.bf16.msra.mxu0 %v13240_v61 }
0x31fb   :  { %12970 = vmatmul.mubr.msk.f32.vlgmr.msra.gmra.mrb[116].mxu1 %vm642_vm6, %v10332_v20  ;;  %13245 = vmatprep.subr.bf16.mxu0 %v13244_v14  ;;  %v11930_v20 = vld [vmem:[%s16270_s4 + $0x20] sm:$0xff] }
0x31fc   :  { %v13649_v21 = vpop.eup %13648  ;;  %12978 = vmatpush3.msra.mxu1 %v10506_v41  ;;  %12979 = vmatprep.mubr.msk.f32.mxu1 %vm14274_vm5, %v14273_v50 }
0x31fd   :  { %v10504_v36 = vmul.f32 %v13649_v21, %v13633_v55  ;;  %12987 = vmatprep.subr.mxu1 %v14273_v50  ;;  %v11931_v21 = vld [vmem:[%s16270_s4 + $0x28] sm:$0xff] }
0x31fe   :  { %13247 = vmatpush3.bf16.msra.mxu0 %v13244_v14 }
0x31ff   :  { %12980 = vmatmul.mubr.msk.f32.vlgmr.msra.gmra.mrb[118].mxu1 %vm642_vm6, %v10504_v36  ;;  %v11932_v36 = vld [vmem:[%s16270_s4 + $0x30] sm:$0xff] }
0x3200   :  { %12988 = vmatpush3.msra.mxu1 %v10673_v12  ;;  %12989 = vmatprep.mubr.msk.f32.mxu1 %vm14274_vm5, %v14273_v50  ;;  %v13248_v12 = vpack.c.bf16 %v11931_v21, %v11930_v20 }
0x3201   :  { %12997 = vmatprep.subr.mxu1 %v14273_v50 }
0x3222   :  { %v10669_v25 = vpop.xlane.xlu1 %10668 }
0x3223   :  { %13650 = vrcp.f32 %v10669_v25 }
0x3224   :  { %13652 = vrcp.f32 %v10840_v32  ;;  %v11933_v32 = vld [vmem:[%s16270_s4 + $0x38] sm:$0xff] }
0x3225   :  { %v13252_v25 = vpack.c.bf16 %v11933_v32, %v11932_v36 }
0x3226   :  { %v11015_v56 = vpop.permute.xlu1 %11014 }
0x322a   :  { %v11011_v11 = vpop.xlane.xlu0 %11010 }
0x322b   :  { %13654 = vrcp.f32 %v11011_v11  ;;  %v11934_v11 = vld [vmem:[%s16271_s5 + $0x40] sm:$0xff] }
0x322d   :  { %v13651_v28 = vpop.eup %13650 }
0x322e   :  { %v10671_v10 = vmul.f32 %v13651_v28, %v13639_v2  ;;  %v10844_v24 = vpop.permute.xlu0 %10843  ;;  %v13653_v51 = vpop.eup %13652  ;;  %v11935_v28 = vld [vmem:[%s16271_s5 + $0x48] sm:$0xff] }
0x322f   :  { %v10842_v6 = vmul.f32 %v13653_v51, %v16085_v22  ;;  %v11937_v51 = vld [vmem:[%s16271_s5 + $0x58] sm:$0xff] }
0x3230   :  { %12990 = vmatmul.mubr.msk.f32.vlgmr.msra.gmra.mrb[120].mxu1 %vm642_vm6, %v10671_v10  ;;  %v11936_v10 = vld [vmem:[%s16271_s5 + $0x50] sm:$0xff] }
0x3231   :  { %12998 = vmatpush3.msra.mxu1 %v10844_v24  ;;  %12999 = vmatprep.mubr.msk.f32.mxu1 %vm14274_vm5, %v14273_v50  ;;  %v13256_v24 = vpack.c.bf16 %v11935_v28, %v11934_v11  ;;  %v11500_v11 = vld [vmem:[%s14501_s8] sm:$0xff]  ;;  %v11501_v28 = vld [vmem:[%s14501_s8 + $0x8] sm:$0xff] }
0x3232   :  { %13007 = vmatprep.subr.mxu1 %v14273_v50 }
0x3233   :  { %13257 = vmatprep.subr.bf16.mxu0 %v13256_v24 }
0x3234   :  { %13000 = vmatmul.mubr.msk.f32.vlgmr.msra.gmra.mrb[122].mxu1 %vm642_vm6, %v10842_v6  ;;  %v13260_v6 = vpack.c.bf16 %v11937_v51, %v11936_v10  ;;  %v11502_v10 = vld [vmem:[%s14501_s8 + $0x10] sm:$0xff]  ;;  %v11503_v51 = vld [vmem:[%s14501_s8 + $0x18] sm:$0xff]  ;;  %s14287_s8 = smov [#allocation39]  }
0x3235   :  { %v13655_v57 = vpop.eup %13654  ;;  %13008 = vmatpush3.msra.mxu1 %v11015_v56  ;;  %13009 = vmatprep.mubr.msk.f32.mxu1 %vm14274_vm5, %v14273_v50  ;;  %v11938_v56 = vld [vmem:[%s16271_s5 + $0x60] sm:$0xff] }
0x3236   :  { %v11013_v47 = vmul.f32 %v13655_v57, %v13641_v16  ;;  %13249 = vmatprep.subr.bf16.mxu1 %v13248_v12  ;;  %v11939_v57 = vld [vmem:[%s16271_s5 + $0x68] sm:$0xff] }
0x3238   :  { %13010 = vmatmul.mubr.msk.f32.vlgmr.msra.gmra.mrb[124].mxu1 %vm642_vm6, %v11013_v47  ;;  %v13264_v47 = vpack.c.bf16 %v11939_v57, %v11938_v56 }
0x3239   :  { %13251 = vmatpush3.bf16.msra.mxu1 %v13248_v12 }
0x323a   :  { %13253 = vmatprep.subr.bf16.mxu1 %v13252_v25 }
0x323d   :  { %13255 = vmatpush3.bf16.msra.mxu1 %v13252_v25 }
0x3253   :  { %v9896_v58 = vpop.f32.mrb[110].mxu1 }
0x3254   :  { %9900 = vst.msk [vmem:[#allocation3] sm:$0xff] %vm642_vm6, %v9896_v58  ;;  %v12941_v59 = vpop.f32.mrb[111].mxu1 }
0x32c6   :  { %v10063_v30 = vpop.f32.mrb[112].mxu1 }
0x32c7   :  { %10068 = vrot.lane.b32.xlu0 %v10063_v30, %s14266_s30  ;;  %v12951_v60 = vpop.f32.mrb[113].mxu1 }
0x32ca   :  { %v10234_v62 = vpop.f32.mrb[114].mxu1 }
0x32cb   :  { %10239 = vrot.lane.b32.xlu1 %v10234_v62, %s14249_s2  ;;  %v12961_v31 = vpop.f32.mrb[115].mxu1 }
0x32ce   :  { %v10405_v63 = vpop.f32.mrb[116].mxu1 }
0x32cf   :  { %10410 = vrot.lane.b32.xlu1 %v10405_v63, %s14286_s17  ;;  %v12971_v52 = vpop.f32.mrb[117].mxu1 }
0x32d2   :  { %v10577_v50 = vpop.f32.mrb[118].mxu1 }
0x32d3   :  { %10581 = vst.msk [vmem:[#allocation3 + $0x8] sm:$0xff] %vm642_vm6, %v10577_v50  ;;  %v12981_v0 = vpop.f32.mrb[119].mxu1 }
0x3303   :  { %v10744_v7 = vpop.f32.mrb[120].mxu1 }
0x3304   :  { %10749 = vrot.lane.b32.xlu0 %v10744_v7, %s14266_s30  ;;  %v12991_v15 = vpop.f32.mrb[121].mxu1  ;;  %v11928_v7 = vld [vmem:[#allocation33 + $0x1] ss:$0 sm:$0xff] }
0x3307   :  { %v10915_v55 = vpop.f32.mrb[122].mxu1 }
0x3308   :  { %10920 = vrot.lane.b32.xlu0 %v10915_v55, %s14249_s2  ;;  %v13001_v19 = vpop.f32.mrb[123].mxu1  ;;  %s11601_s2 = sshll.u32 %s14287_s8, 4  ;;  %s11602_s2 = int_to_ptr.vmem [resolvable:$true] %s11601_s2 }
0x3309   :  { %v11929_v19 = vld [vmem:[#allocation34 + $0x1] ss:$0 sm:$0xff]  ;;  %s14156_s20 = scalar_lea.vmem %s11602_s2, 256  ;;  %p14161_p9 = scmp.lt.s32.totalorder %s11602_s2, %s11602_s2 }
0x330a   :  { %p14157_p8 = scmp.ne.s32.totalorder %s11602_s2, %s14156_s20  ;;  %p14162_p10 = scmp.lt.s32.totalorder %s14156_s20, %s14156_s20 }
0x330b   :  { %v11086_v22 = vpop.f32.mrb[124].mxu1 }
0x330c   :  { %11091 = vrot.lane.b32.xlu1 %v11086_v22, %s14286_s17  ;;  %v13011_v23 = vpop.f32.mrb[125].mxu1  ;;  %p14163_p11 = por %p14162_p10, %p14161_p9 }
0x330e   :  { %p14164_p12 = pnand %p14163_p11, %p14157_p8 }
0x3339   :  { %v10069_v26 = vpop.permute.xlu0 %10068 }
0x333a   :  { %10071 = vst.msk [vmem:[#allocation3] sm:$0xff] %vm978_vm9, %v10069_v26 }
0x333d   :  { %v10240_v17 = vpop.permute.xlu1 %10239 }
0x333e   :  { %10242 = vst.msk [vmem:[#allocation3] sm:$0xff] %vm1150_vm10, %v10240_v17 }
0x3341   :  { %v10411_v8 = vpop.permute.xlu1 %10410 }
0x3342   :  { %10413 = vst.msk [vmem:[#allocation3] sm:$0xff] %vm1322_vm11, %v10411_v8 }
0x3349   :  { %v11095_v27 = vld [vmem:[#allocation3] sm:$0xff] }
0x334a   :  { %13020 = vmatprep.mubr.msk.f32.mxu0 %vm481_vm0, %v11095_v27 }
0x3376   :  { %v10750_v4 = vpop.permute.xlu0 %10749 }
0x3377   :  { %10752 = vst.msk [vmem:[#allocation3 + $0x8] sm:$0xff] %vm978_vm9, %v10750_v4  ;;  %v11940_v4 = vld [vmem:[%s16271_s5 + $0x70] sm:$0xff] }
0x337a   :  { %v10921_v29 = vpop.permute.xlu0 %10920 }
0x337b   :  { %10923 = vst.msk [vmem:[#allocation3 + $0x8] sm:$0xff] %vm1150_vm10, %v10921_v29  ;;  %v11941_v29 = vld [vmem:[%s16271_s5 + $0x78] sm:$0xff] }
0x337e   :  { %v11092_v37 = vpop.permute.xlu1 %11091 }
0x337f   :  { %11094 = vst.msk [vmem:[#allocation3 + $0x8] sm:$0xff] %vm1322_vm11, %v11092_v37  ;;  %v13268_v37 = vpack.c.bf16 %v11941_v29, %v11940_v4 }
0x3386   :  { %v11096_v38 = vld [vmem:[#allocation3 + $0x8] sm:$0xff] }
0x3387   :  { %13021 = vmatmul.mubr.msk.f32.vlgmr.msra.gmra.mrb[104].mxu0 %vm481_vm0, %v11096_v38  ;;  %v11942_v38 = vld [vmem:[#allocation24 + $0x1] ss:$0 sm:$0xff] }
0x3388   :  { %13259 = vmatpush3.bf16.msra.mxu0 %v13256_v24  ;;  %v13272_v24 = vpack.c.bf16 %v11501_v28, %v11500_v11 }
0x3389   :  { %13261 = vmatprep.subr.bf16.mxu0 %v13260_v6 }
0x338a   :  { %13273 = vmatprep.subr.bf16.mxu1 %v13272_v24 }
0x338c   :  { %13263 = vmatpush3.bf16.msra.mxu0 %v13260_v6  ;;  %v13276_v6 = vpack.c.bf16 %v11503_v51, %v11502_v10 }
0x338d   :  { %13265 = vmatprep.subr.bf16.mxu0 %v13264_v47 }
0x3390   :  { %13267 = vmatpush3.bf16.msra.mxu0 %v13264_v47 }
0x3391   :  { %13269 = vmatprep.subr.bf16.mxu0 %v13268_v37 }
0x3394   :  { %13271 = vmatpush3.bf16.msra.mxu0 %v13268_v37 }
0x345a   :  { %v13022_v2 = vpop.f32.mrb[104].mxu0 }
0x345b   :  { %v11181_v40 = vadd.f32 %v13022_v2, %v11925_v39  ;;  %v11175_v16 = vpop.f32.mrb[105].mxu0 }
0x345c   :  { %v11176_v54 = vadd.f32 %v11925_v39, %v11175_v16 }
0x345d   :  { %v16144_v18 = vadd.f32 %v11181_v40, %v15947_v43 }
0x345e   :  { %v16147_v5 = vadd.f32 %v11176_v54, %v15950_v33 }
0x345f   :  { %v11193_v41 = vsel %vm481_vm0, %v16144_v18, 0.0 }
0x3460   :  { %11194 = vadd.xlane.f32.xlu1 %v11193_v41  ;;  %v11190_v3 = vsel %vm481_vm0, %v16147_v5, 0.0 }
0x3461   :  { %11191 = vadd.xlane.f32.xlu0 %v11190_v3  ;;  %v11945_v3 = vld [vmem:[#allocation25 + $0x1] ss:$0 sm:$0xff] }
0x34ed   :  { %v11195_v42 = vpop.xlane.xlu1 %11194 }
0x34ee   :  { %v11197_v46 = vmul.f32 0.03125, %v11195_v42  ;;  %v11192_v44 = vpop.xlane.xlu0 %11191 }
0x34ef   :  { %v11196_v43 = vmul.f32 0.03125, %v11192_v44 }
0x34f0   :  { %v11199_v45 = vsub.f32 %v16144_v18, %v11197_v46 }
0x34f1   :  { %v11198_v33 = vsub.f32 %v16147_v5, %v11196_v43 }
0x34f2   :  { %v11201_v53 = vmul.f32 %v11199_v45, %v11199_v45  ;;  %v11217_v23 = vmul.f32 %v11928_v7, %v11199_v45 }
0x34f3   :  { %v11200_v48 = vmul.f32 %v11198_v33, %v11198_v33  ;;  %v11216_v15 = vmul.f32 %v11928_v7, %v11198_v33 }
0x34f4   :  { %v11205_v49 = vsel %vm481_vm0, %v11201_v53, 0.0 }
0x34f5   :  { %v11202_v35 = vsel %vm481_vm0, %v11200_v48, 0.0 }
0x34f6   :  { %11203 = vadd.xlane.f32.xlu0 %v11202_v35 }
0x34fa   :  { %11206 = vadd.xlane.f32.xlu0 %v11205_v49 }
0x3583   :  { %v11204_v58 = vpop.xlane.xlu0 %11203 }
0x3584   :  { %v11208_v59 = vmul.f32 0.032258064, %v11204_v58 }
0x3586   :  { %13656 = vrsqrt.f32 %v11208_v59  ;;  %vm11220_vm5 = vcmp.eq.f32.partialorder %v11208_v59, inf  ;;  %v11223_v63 = vand.u32 2147483648, %v11208_v59  ;;  %vm11222_vm6 = vcmp.eq.f32.partialorder %v11208_v59, 0.0 }
0x3587   :  { %v11207_v30 = vpop.xlane.xlu0 %11206 }
0x3588   :  { %v11209_v60 = vmul.f32 0.032258064, %v11207_v30 }
0x358a   :  { %13658 = vrsqrt.f32 %v11209_v60  ;;  %vm11227_vm9 = vcmp.eq.f32.partialorder %v11209_v60, inf  ;;  %v11230_v61 = vand.u32 2147483648, %v11209_v60  ;;  %vm11229_vm10 = vcmp.eq.f32.partialorder %v11209_v60, 0.0 }
0x3590   :  { %v13657_v62 = vpop.eup %13656 }
0x3591   :  { %v11219_v31 = vmul.f32 %v13657_v62, %v11208_v59 }
0x3593   :  { %v11221_v52 = vsel %vm11220_vm5, %v11208_v59, %v11219_v31 }
0x3594   :  { %v13659_v50 = vpop.eup %13658  ;;  %v11224_v0 = vsel %vm11222_vm6, %v11223_v63, %v11221_v52 }
0x3595   :  { %v11226_v1 = vmul.f32 %v13659_v50, %v11209_v60  ;;  %v11232_v9 = vadd.f32 1e-06, %v11224_v0 }
0x3597   :  { %v11228_v34 = vsel %vm11227_vm9, %v11209_v60, %v11226_v1  ;;  %13660 = vrcp.f32 %v11232_v9 }
0x3598   :  { %v11231_v13 = vsel %vm11229_vm10, %v11230_v61, %v11228_v34  ;;  %v11948_v34 = vld [vmem:[#allocation36] ss:$0 sm:$0xff] }
0x3599   :  { %v11233_v14 = vadd.f32 1e-06, %v11231_v13 }
0x359b   :  { %13662 = vrcp.f32 %v11233_v14 }
0x35a1   :  { %v13661_v55 = vpop.eup %13660 }
0x35a2   :  { %v11235_v22 = vmul.f32 %v13661_v55, %v11216_v15  ;;  %v11949_v55 = vld [vmem:[#allocation37] ss:$0 sm:$0xff] }
0x35a4   :  { %v11244_v26 = vadd.f32 %v11929_v19, %v11235_v22 }
0x35a5   :  { %v13663_v17 = vpop.eup %13662 }
0x35a6   :  { %v11237_v8 = vmul.f32 %v13663_v17, %v11217_v23  ;;  %13031 = vmatprep.mubr.msk.f32.mxu1 %vm481_vm0, %v11244_v26  ;;  %v11950_v17 = vld [vmem:[%s14506_s9] ss:$0 sm:$0xff] }
0x35a8   :  { %v11245_v27 = vadd.f32 %v11929_v19, %v11237_v8 }
0x35aa   :  { %13032 = vmatmul.mubr.msk.f32.vlgmr.msra.gmra.mrb[126].mxu1 %vm481_vm0, %v11245_v27 }
0x35ab   :  { %13275 = vmatpush3.bf16.msra.mxu1 %v13272_v24 }
0x35ac   :  { %13277 = vmatprep.subr.bf16.mxu1 %v13276_v6 }
0x35af   :  { %13279 = vmatpush3.bf16.msra.mxu1 %v13276_v6 }
0x367d   :  { %v13033_v39 = vpop.f32.mrb[126].mxu1 }
0x367e   :  { %v11348_v2 = vadd.f32 %v13033_v39, %v11942_v38  ;;  %v11342_v40 = vpop.f32.mrb[127].mxu1 }
0x367f   :  { %v11343_v16 = vadd.f32 %v11942_v38, %v11342_v40 }
0x3680   :  { %v11352_v41 = vmax.f32 %v11348_v2, 0.0 }
0x3681   :  { %v11351_v54 = vmax.f32 %v11343_v16, 0.0 }
0x3683   :  { %13050 = vmatprep.mubr.msk.f32.mxu0 %vm2266_vm1, %v11351_v54 }
0x3684   :  { %13051 = vmatmul.mubr.msk.f32.vlgmr.msra.gmra.mrb[106].mxu0 %vm2266_vm1, %v11352_v41 }
0x3757   :  { %v13052_v42 = vpop.f32.mrb[106].mxu0 }
0x3758   :  { %v11437_v46 = vadd.f32 %v13052_v42, %v11945_v3  ;;  %v11431_v44 = vpop.f32.mrb[107].mxu0 }
0x3759   :  { %v11432_v43 = vadd.f32 %v11945_v3, %v11431_v44 }
0x375a   :  { %v11441_v45 = vadd.f32 %v11437_v46, %v16144_v18 }
0x375b   :  { %v11440_v33 = vadd.f32 %v11432_v43, %v16147_v5 }
0x375c   :  { %v11447_v48 = vsel %vm481_vm0, %v11441_v45, 0.0 }
0x375d   :  { %11448 = vadd.xlane.f32.xlu1 %v11447_v48  ;;  %v11444_v35 = vsel %vm481_vm0, %v11440_v33, 0.0 }
0x375e   :  { %11445 = vadd.xlane.f32.xlu0 %v11444_v35 }
0x37ea   :  { %v11449_v53 = vpop.xlane.xlu1 %11448 }
0x37eb   :  { %v11451_v49 = vmul.f32 0.03125, %v11449_v53  ;;  %v11446_v20 = vpop.xlane.xlu0 %11445 }
0x37ec   :  { %v11450_v21 = vmul.f32 0.03125, %v11446_v20 }
0x37ed   :  { %v11453_v36 = vsub.f32 %v11441_v45, %v11451_v49 }
0x37ee   :  { %v11452_v12 = vsub.f32 %v11440_v33, %v11450_v21 }
0x37ef   :  { %v11455_v32 = vmul.f32 %v11453_v36, %v11453_v36  ;;  %v11471_v13 = vmul.f32 %v11948_v34, %v11453_v36 }
0x37f0   :  { %v11454_v18 = vmul.f32 %v11452_v12, %v11452_v12  ;;  %v11470_v7 = vmul.f32 %v11948_v34, %v11452_v12 }
0x37f1   :  { %v11459_v5 = vsel %vm481_vm0, %v11455_v32, 0.0 }
0x37f2   :  { %11460 = vadd.xlane.f32.xlu1 %v11459_v5  ;;  %v11456_v25 = vsel %vm481_vm0, %v11454_v18, 0.0 }
0x37f3   :  { %11457 = vadd.xlane.f32.xlu0 %v11456_v25 }
0x387f   :  { %v11461_v56 = vpop.xlane.xlu1 %11460 }
0x3880   :  { %v11463_v57 = vmul.f32 0.032258064, %v11461_v56  ;;  %v11458_v47 = vpop.xlane.xlu0 %11457 }
0x3881   :  { %v11462_v58 = vmul.f32 0.032258064, %v11458_v47 }
0x3882   :  { %13664 = vrsqrt.f32 %v11463_v57  ;;  %vm11481_vm11 = vcmp.eq.f32.partialorder %v11463_v57, inf  ;;  %v11484_v62 = vand.u32 2147483648, %v11463_v57  ;;  %vm11483_vm1 = vcmp.eq.f32.partialorder %v11463_v57, 0.0 }
0x3883   :  { %13666 = vrsqrt.f32 %v11462_v58  ;;  %vm11474_vm7 = vcmp.eq.f32.partialorder %v11462_v58, inf  ;;  %v11477_v52 = vand.u32 2147483648, %v11462_v58  ;;  %vm11476_vm8 = vcmp.eq.f32.partialorder %v11462_v58, 0.0 }
0x388c   :  { %v13665_v59 = vpop.eup %13664 }
0x388d   :  { %v13667_v30 = vpop.eup %13666  ;;  %v11480_v60 = vmul.f32 %v13665_v59, %v11463_v57 }
0x388e   :  { %v11473_v31 = vmul.f32 %v13667_v30, %v11462_v58 }
0x388f   :  { %v11482_v63 = vsel %vm11481_vm11, %v11463_v57, %v11480_v60 }
0x3890   :  { %v11485_v50 = vsel %vm11483_vm1, %v11484_v62, %v11482_v63  ;;  %v11475_v0 = vsel %vm11474_vm7, %v11462_v58, %v11473_v31 }
0x3891   :  { %v11487_v1 = vadd.f32 1e-06, %v11485_v50  ;;  %v11478_v9 = vsel %vm11476_vm8, %v11477_v52, %v11475_v0 }
0x3892   :  { %v11486_v61 = vadd.f32 1e-06, %v11478_v9 }
0x3893   :  { %13668 = vrcp.f32 %v11487_v1 }
0x3894   :  { %13670 = vrcp.f32 %v11486_v61 }
0x389d   :  { %v13669_v14 = vpop.eup %13668 }
0x389e   :  { %v13671_v15 = vpop.eup %13670  ;;  %v11491_v19 = vmul.f32 %v13669_v14, %v11471_v13 }
0x389f   :  { %v11489_v22 = vmul.f32 %v13671_v15, %v11470_v7 }
0x38a0   :  { %v11499_v26 = vadd.f32 %v11949_v55, %v11491_v19 }
0x38a1   :  { %v11498_v23 = vadd.f32 %v11949_v55, %v11489_v22 }
0x38a3   :  { %13061 = vmatprep.mubr.msk.f32.mxu1 %vm481_vm0, %v11498_v23 }
0x38a4   :  { %13062 = vmatmul.mubr.msk.f32.vlgmr.msra.gmra.mrb[128].mxu1 %vm481_vm0, %v11499_v26 }
0x3977   :  { %v13063_v8 = vpop.f32.mrb[128].mxu1 }
0x3978   :  { %v11589_v27 = vadd.f32 %v13063_v8, %v11950_v17  ;;  %v11583_v4 = vpop.f32.mrb[129].mxu1 }
0x3979   :  { %v11584_v29 = vadd.f32 %v11950_v17, %v11583_v4 }
0x397a   :  { %v11593_v37 = vmax.f32 %v11589_v27, 0.0 }
0x397b   :  { %v11592_v38 = vmax.f32 %v11584_v29, 0.0 }
0x397c   :  { %11595 = vst.msk [vmem:[#allocation39 + $0x8] sm:$0xff] %vm481_vm0, %v11593_v37 }
0x397d   :  { %11594 = vst.msk [vmem:[#allocation39] sm:$0xff] %vm481_vm0, %v11592_v38 }
0x397e   :  { %14167 = shalt.err (!%p14164_p12)
}
0x397f   :  { %s14168_s9 = scalar_lea.hbm %s14511_s25, 256 }
0x3980   :  { %p14169_p13 = scmp.ne.s32.totalorder %s14511_s25, %s14168_s9  ;;  %p14172_p0 = scmp.lt.u32.totalorder %s14168_s9, %s14511_s25 }
0x3982   :  { %p14174_p1 = pnand %p14172_p0, %p14169_p13 }
0x3984   :  { %14177 = shalt.err (!%p14174_p1)
}
0x3985   :  { %11607 = dma.vmem_to_hbm [thread:$0]  %s11602_s2, 256, %s14511_s25, [#allocation6], %s14265_s11, %s14265_s11, %s14266_s30  }
0x3986   :  { %14202 = dma.done.wait [#allocation6], 256  }
0x3987   :  { %14203 = vsyncadd [#allocation6], 4294967040 }
0x3988   :  { %11611 = vsyncpa [#allocation5], 1 }
0x3989   :  { %11612 = vsyncpa [#allocation8], 1 }
0x398a   :  { %11613 = vsyncpa [#allocation11], 1 }
0x398b   :  { %11614 = vsyncpa [#allocation14], 1 }
0x398c   :  { %11615 = vsyncpa [#allocation17], 1 }
0x398d   :  { %11616 = vsyncpa [#allocation20], 1 }
0x398e   :  { %11617 = vsyncpa [#allocation23], 1 }
0x398f   :  { %11618 = vsyncpa [#allocation26], 1 }
0x3990   :  { %11619 = vsyncpa [#allocation29], 1 }
0x3991   :  { %11620 = vsyncpa [#allocation32], 1 }
0x3992   :  { %11621 = vsyncpa [#allocation35], 1 }
0x3993   :  { %11622 = vsyncpa [#allocation38], 1 }
0x3994   :  { %11623 = vsyncpa [#allocation6], 1 }

</bundles_post_ra>
